<compile_context>
chip_gen: v6e
topology: v6e:2x2x1
jax: 0.10.0
libtpu: 0.0.40
codegen_flags: <defaults>
</compile_context>

<pallas_src>
import functools

import jax
import jax.numpy as jnp
from jax.experimental import pallas as pl
from jax.experimental.pallas import tpu as pltpu


def _convgru_kernel(hxp_ref, wzr_ref, wqx_ref, wqh_ref, bzr_ref, bq_ref,
                    o_ref, rhp_ref, *, row_tile, lane_pack):
    # hxp_ref : (1, H+4, W+2, Chx)  concat([x, h]) NHWC, rows padded by 2,
    #                               cols by 1 (whole image, resident per batch)
    # wzr_ref : (9*Chx, 2*Co)       fused [wz | wr], rows = (tap, [x-ch, h-ch])
    # wqx_ref : (9*Cx,  Co)         wq restricted to the x channels
    # wqh_ref : (9*Ch,  Co)         wq restricted to the h channels (on r*h)
    # bzr_ref : (1, 2*Co)           fused [bz | br];  bq_ref: (1, Co)
    # o_ref   : (1, TH, W*Co) if lane_pack else (1, TH*W, Co)
    # rhp_ref : (TH+2, W+2, Ch)     scratch: column-padded r*h image
    TH = row_tile
    W = hxp_ref.shape[2] - 2
    Chx = hxp_ref.shape[3]
    Co = wqh_ref.shape[1]
    Ch = wqh_ref.shape[0] // 9
    Cx = wqx_ref.shape[0] // 9
    E = TH + 2            # extended rows: 1 halo row above/below for conv(r*h)

    r0 = pl.program_id(1) * TH
    if TH % 8 == 0:
        r0 = pl.multiple_of(r0, 8)

    # ---- z | r pre-activations over the extended row range -----------------
    # 9 shifted-slice matmuls accumulate straight into an f32 value: no im2col
    # scratch, nothing round-trips through the store slot.
    acc_zr = jnp.zeros((E * W, 2 * Co), jnp.float32)
    for dy in range(3):
        for dx in range(3):
            t = dy * 3 + dx
            lhs = hxp_ref[0, pl.ds(r0 + dy, E), pl.ds(dx, W), :]
            acc_zr = acc_zr + jnp.dot(
                lhs.reshape(E * W, Chx),
                wzr_ref[t * Chx:(t + 1) * Chx, :],
                preferred_element_type=jnp.float32)
    zr = jax.nn.sigmoid(acc_zr + bzr_ref[...]).reshape(E, W, 2 * Co)

    # h over the extended rows = centre tap, h channels.  Halo rows of the
    # first/last tile hit the zero padding, so r*h vanishes there exactly as
    # conv padding requires -- no masking needed.
    h_ext = hxp_ref[0, pl.ds(r0 + 1, E), pl.ds(1, W), Cx:].astype(jnp.float32)
    rh = zr[:, :, Co:] * h_ext                                   # (E, W, Ch)

    # Column-padded r*h image.  Only the two 1-pixel column strips need
    # zeroing; the rows are fully rewritten every grid step (megacore-safe,
    # do NOT gate this on program_id).
    rhp_ref[:, 0:1, :] = jnp.zeros((E, 1, Ch), rhp_ref.dtype)
    rhp_ref[:, W + 1:W + 2, :] = jnp.zeros((E, 1, Ch), rhp_ref.dtype)
    rhp_ref[:, 1:W + 1, :] = rh.astype(rhp_ref.dtype)

    # ---- q pre-activation over the interior rows ----------------------------
    # x-part straight from the x channels of hxp (lane offset 0), h-part from
    # the r*h image: no zero weight block, no im2col.
    acc_q = jnp.zeros((TH * W, Co), jnp.float32)
    for dy in range(3):
        for dx in range(3):
            t = dy * 3 + dx
            lhs_x = hxp_ref[0, pl.ds(r0 + 1 + dy, TH), pl.ds(dx, W), :Cx]
            acc_q = acc_q + jnp.dot(
                lhs_x.reshape(TH * W, Cx),
                wqx_ref[t * Cx:(t + 1) * Cx, :],
                preferred_element_type=jnp.float32)
            lhs_h = rhp_ref[dy:dy + TH, dx:dx + W, :]
            acc_q = acc_q + jnp.dot(
                lhs_h.reshape(TH * W, Ch),
                wqh_ref[t * Ch:(t + 1) * Ch, :],
                preferred_element_type=jnp.float32)
    q = jnp.tanh(acc_q + bq_ref[...]).reshape(TH, W, Co)

    # ---- GRU blend (f32) -----------------------------------------------------
    z_int = zr[1:TH + 1, :, :Co]
    h_int = h_ext[1:TH + 1, :, :]
    h_new = (1.0 - z_int) * h_int + z_int * q                    # (TH, W, Co)

    if lane_pack:
        # Co < 128: pack to (TH, W*Co) so the writeback is a full-lane vst.
        o_ref[0] = h_new.reshape(TH, W * Co).astype(o_ref.dtype)
    else:
        # Co is a multiple of 128: the (rows, Co) store is already lane-dense.
        o_ref[0] = h_new.reshape(TH * W, Co).astype(o_ref.dtype)


_BUFFERED_WEIGHTS_OK = None   # lazily resolved: does this jax accept pl.Buffered(1)?


def _default_row_tile(H):
    for th in (32, 16, 8):
        if th < H and H % th == 0:
            return th
    return H


def conv_gru_pallas(h, x, params, *, compute_dtype=jnp.bfloat16, row_tile=None):
    """h: (N, hidden, H, W), x: (N, input, H, W) -> (N, hidden, H, W) f32.

    compute_dtype=bfloat16 (default) halves HBM/VMEM traffic and runs the MXU
    at full bf16 rate on v6e/v7x; accumulation, activations and the GRU blend
    stay in f32.  Pass float32 for bit-accurate parity with the module.
    """
    global _BUFFERED_WEIGHTS_OK

    N, Ch, H, W = h.shape
    Cx = x.shape[1]
    Co = Ch
    Chx = Ch + Cx

    TH = _default_row_tile(H) if row_tile is None else int(row_tile)
    if H % TH != 0:
        raise ValueError(f"row_tile={TH} must divide H={H}")
    if TH != H and TH % 8 != 0:
        raise ValueError(f"row_tile={TH} must be a multiple of 8 (or equal H)")
    lane_pack = (Co % 128) != 0   # pack output lanes only when Co is sub-128
    E = TH + 2

    # NCHW -> NHWC, concat channels once (x first so the q-gate x slices sit at
    # lane offset 0), pad rows by 2 / cols by 1 (the extra row of padding lets
    # every row tile compute r over its halo rows without boundary cases).
    # TODO(synk): in a full RAFT update loop keep h (f32) and the static x
    # features in NHWC, pre-padded, across iterations so these transposes/pads
    # (each a full HBM read+write) happen once, not per GRU call; likewise keep
    # an f32 copy of h for the blend if bf16 state drift matters.
    h_nhwc = jnp.transpose(h, (0, 2, 3, 1))
    x_nhwc = jnp.transpose(x, (0, 2, 3, 1))
    hx = jnp.concatenate([x_nhwc, h_nhwc], axis=-1).astype(compute_dtype)
    hxp = jnp.pad(hx, ((0, 0), (2, 2), (1, 1), (0, 0)))

    def to_col(w):    # (Co, Cin, 3, 3) -> (9*Cin, Co), rows = (tap, in-channel)
        return jnp.transpose(w, (2, 3, 1, 0)).reshape(-1, w.shape[0])

    def to_col_xh(w):  # same, but channel order [x | h] to match hxp
        t = jnp.transpose(w, (2, 3, 1, 0))                       # (3,3,[h|x],Co)
        t = jnp.concatenate([t[:, :, Ch:, :], t[:, :, :Ch, :]], axis=2)
        return t.reshape(9 * Chx, w.shape[0])

    wz, wr, wq = params["wz"], params["wr"], params["wq"]
    wzr = jnp.concatenate([to_col_xh(wz), to_col_xh(wr)], axis=1
                          ).astype(compute_dtype)                # (9*Chx, 2*Co)
    wqx = to_col(wq[:, Ch:, :, :]).astype(compute_dtype)         # (9*Cx, Co)
    wqh = to_col(wq[:, :Ch, :, :]).astype(compute_dtype)         # (9*Ch, Co)
    bzr = jnp.concatenate([params["bz"], params["br"]]).reshape(1, 2 * Co)
    bzr = bzr.astype(jnp.float32)
    bq = params["bq"].reshape(1, Co).astype(jnp.float32)

    if lane_pack:
        out_shape = jax.ShapeDtypeStruct((N, H, W * Co), jnp.float32)
        out_spec = pl.BlockSpec((1, TH, W * Co), lambda n, rt: (n, rt, 0))
    else:
        out_shape = jax.ShapeDtypeStruct((N, H * W, Co), jnp.float32)
        out_spec = pl.BlockSpec((1, TH * W, Co), lambda n, rt: (n, rt, 0))

    # Explicit VMEM budget (v7x: 64 MiB physical / 32 MiB scoped default).
    it = jnp.dtype(compute_dtype).itemsize
    est = 2 * (H + 4) * (W + 2) * Chx * it                           # hxp block
    est += 2 * (9 * Chx * 2 * Co + 9 * Cx * Co + 9 * Ch * Co) * it   # weights
    est += 2 * TH * W * Co * 4                                       # out block
    est += E * (W + 2) * Ch * it                                     # rhp scratch
    est += 2 * (E * W * (2 * Co + Ch) + TH * W * Co) * 4             # accumulators
    vmem_limit = int(min(100 << 20, max(32 << 20, 2 * est)))

    def build(single_buffer_weights):
        def wspec(shape):
            if single_buffer_weights and hasattr(pl, "Buffered"):
                # Constant-index blocks: one buffer is enough; saves VMEM.
                return pl.BlockSpec(shape, lambda n, rt: (0, 0),
                                    pipeline_mode=pl.Buffered(1))
            return pl.BlockSpec(shape, lambda n, rt: (0, 0))

        grid_spec = pltpu.PrefetchScalarGridSpec(
            num_scalar_prefetch=0,
            grid=(N, H // TH),
            in_specs=[
                # Whole padded image per batch; constant across the row-tile
                # axis so it is DMA'd once per batch (rows sliced with pl.ds
                # inside the kernel -> no halo-overlap BlockSpecs needed).
                pl.BlockSpec((1, H + 4, W + 2, Chx), lambda n, rt: (n, 0, 0, 0)),
                wspec((9 * Chx, 2 * Co)),
                wspec((9 * Cx, Co)),
                wspec((9 * Ch, Co)),
                wspec((1, 2 * Co)),
                wspec((1, Co)),
            ],
            out_specs=out_spec,
            scratch_shapes=[pltpu.VMEM((E, W + 2, Ch), compute_dtype)],
        )
        return pl.pallas_call(
            functools.partial(_convgru_kernel, row_tile=TH, lane_pack=lane_pack),
            out_shape=out_shape,
            grid_spec=grid_spec,
            compiler_params=pltpu.CompilerParams(
                # batch and row-tile axes are independent; the row axis is what
                # keeps the second v7x TensorCore busy at RAFT's N=1.
                dimension_semantics=("parallel", "parallel"),
                vmem_limit_bytes=vmem_limit),
        )

    attempts = ([True, False] if _BUFFERED_WEIGHTS_OK is None
                else [_BUFFERED_WEIGHTS_OK])
    out_flat, last_err = None, None
    for use_buffered in attempts:
        try:
            out_flat = build(use_buffered)(hxp, wzr, wqx, wqh, bzr, bq)
            _BUFFERED_WEIGHTS_OK = use_buffered
            break
        except Exception as e:   # pl.Buffered(1) unsupported -> plain specs
            last_err = e
    if out_flat is None:
        raise last_err

    out_nhwc = out_flat.reshape(N, H, W, Co)
    return jnp.transpose(out_nhwc, (0, 3, 1, 2))   # back to NCHW


def conv_gru_ref(h, x, params):
    """Pure-JAX NCHW reference (mirrors the PyTorch forward exactly)."""
    def conv(inp, w, b):
        out = jax.lax.conv_general_dilated(
            inp, w, window_strides=(1, 1), padding=((1, 1), (1, 1)),
            dimension_numbers=("NCHW", "OIHW", "NCHW"))
        return out + b[None, :, None, None]

    hx = jnp.concatenate([h, x], axis=1)
    z = jax.nn.sigmoid(conv(hx, params["wz"], params["bz"]))
    r = jax.nn.sigmoid(conv(hx, params["wr"], params["br"]))
    q = jnp.tanh(conv(jnp.concatenate([r * h, x], axis=1),
                      params["wq"], params["bq"]))
    return (1.0 - z) * h + z * q


def _make_inputs(key, N, Ch, Cx, H, W):
    ks = jax.random.split(key, 8)
    Ctot = Ch + Cx
    scale = 0.05
    h = jax.random.normal(ks[0], (N, Ch, H, W), jnp.float32)
    x = jax.random.normal(ks[1], (N, Cx, H, W), jnp.float32)
    params = {
        "wz": scale * jax.random.normal(ks[2], (Ch, Ctot, 3, 3), jnp.float32),
        "wr": scale * jax.random.normal(ks[3], (Ch, Ctot, 3, 3), jnp.float32),
        "wq": scale * jax.random.normal(ks[4], (Ch, Ctot, 3, 3), jnp.float32),
        "bz": scale * jax.random.normal(ks[5], (Ch,), jnp.float32),
        "br": scale * jax.random.normal(ks[6], (Ch,), jnp.float32),
        "bq": scale * jax.random.normal(ks[7], (Ch,), jnp.float32),
    }
    return h, x, params


if __name__ == "__main__":
    key = jax.random.PRNGKey(0)
    k1, k2 = jax.random.split(key)

    # Config 1: small test shape (Co=32 -> lane-packed output path), N=2.
    h1, x1, p1 = _make_inputs(k1, N=2, Ch=32, Cx=32, H=16, W=16)
    ref1 = conv_gru_ref(h1, x1, p1)

    # f32, default row tiling (TH=8 -> 2 row tiles per batch).
    o = jax.block_until_ready(
        conv_gru_pallas(h1, x1, p1, compute_dtype=jnp.float32))
    assert o.shape == (2, 32, 16, 16), o.shape
    err = float(jnp.max(jnp.abs(o - ref1)))
    assert err < 1e-3, f"f32 tiled mismatch: {err}"

    # f32, single row tile (whole image per grid step).
    o = jax.block_until_ready(
        conv_gru_pallas(h1, x1, p1, compute_dtype=jnp.float32, row_tile=16))
    err = float(jnp.max(jnp.abs(o - ref1)))
    assert err < 1e-3, f"f32 single-tile mismatch: {err}"

    # bf16 compute (default): f32 accumulation, looser tolerance.
    o = jax.block_until_ready(conv_gru_pallas(h1, x1, p1))
    err_max = float(jnp.max(jnp.abs(o - ref1)))
    err_mean = float(jnp.mean(jnp.abs(o - ref1)))
    assert err_max < 0.35 and err_mean < 0.02, (err_max, err_mean)

    # Config 2: production-like channel count (Co=128 -> lane-dense output
    # path, no W*Co packing); N=1 exercises the row-parallel grid axis.
    h2, x2, p2 = _make_inputs(k2, N=1, Ch=128, Cx=64, H=8, W=8)
    ref2 = conv_gru_ref(h2, x2, p2)
    o2 = jax.block_until_ready(
        conv_gru_pallas(h2, x2, p2, compute_dtype=jnp.float32))
    assert o2.shape == (1, 128, 8, 8), o2.shape
    err2 = float(jnp.max(jnp.abs(o2 - ref2)))
    assert err2 < 1e-3, f"f32 Co=128 mismatch: {err2}"

    print("KERNEL_OK")
</pallas_src>

<mosaic_0001>
module attributes {stable_mosaic.version = 11 : i64} {
  func.func @_convgru_kernel(%arg0: i32, %arg1: i32, %arg2: memref<1x20x18x64xf32, #tpu.memory_space<vmem>>, %arg3: memref<576x64xf32, #tpu.memory_space<vmem>>, %arg4: memref<288x32xf32, #tpu.memory_space<vmem>>, %arg5: memref<288x32xf32, #tpu.memory_space<vmem>>, %arg6: memref<1x64xf32, #tpu.memory_space<vmem>>, %arg7: memref<1x32xf32, #tpu.memory_space<vmem>>, %arg8: memref<1x8x512xf32, #tpu.memory_space<vmem>>, %arg9: memref<10x18x32xf32, #tpu.memory_space<vmem>>) attributes {dimension_semantics = [#tpu.dimension_semantics<parallel>, #tpu.dimension_semantics<parallel>], iteration_bounds = array<i64: 2, 2>, scalar_prefetch = 0 : i64, scratch_operands = 1 : i64, tpu.core_type = #tpu.core_type<tc>, window_params = [{transform_indices = @transform_0, window_bounds = array<i64: 1, 20, 18, 64>}, {pipeline_mode = #tpu.pipeline_mode<synchronous>, transform_indices = @transform_1, window_bounds = array<i64: 576, 64>}, {pipeline_mode = #tpu.pipeline_mode<synchronous>, transform_indices = @transform_2, window_bounds = array<i64: 288, 32>}, {pipeline_mode = #tpu.pipeline_mode<synchronous>, transform_indices = @transform_3, window_bounds = array<i64: 288, 32>}, {pipeline_mode = #tpu.pipeline_mode<synchronous>, transform_indices = @transform_4, window_bounds = array<i64: 1, 64>}, {pipeline_mode = #tpu.pipeline_mode<synchronous>, transform_indices = @transform_5, window_bounds = array<i64: 1, 32>}, {transform_indices = @transform_6, window_bounds = array<i64: 1, 8, 512>}]} {
    %c8_i32 = arith.constant 8 : i32
    %0 = arith.muli %arg1, %c8_i32 : i32
    %1 = tpu.assume_multiple %0, 8 : i32
    %cst = arith.constant 0.000000e+00 : f32
    %2 = vector.broadcast %cst : f32 to vector<160x64xf32>
    %c0_i32 = arith.constant 0 : i32
    %3 = arith.addi %1, %c0_i32 : i32
    %c0 = arith.constant 0 : index
    %4 = arith.index_cast %3 : i32 to index
    %c0_0 = arith.constant 0 : index
    %c0_1 = arith.constant 0 : index
    %5 = vector.load %arg2[%c0, %4, %c0_0, %c0_1] : memref<1x20x18x64xf32, #tpu.memory_space<vmem>>, vector<1x10x16x64xf32>
    %6 = vector.shape_cast %5 : vector<1x10x16x64xf32> to vector<10x16x64xf32>
    %7 = vector.shape_cast %6 : vector<10x16x64xf32> to vector<160x64xf32>
    %c0_2 = arith.constant 0 : index
    %c0_3 = arith.constant 0 : index
    %8 = vector.load %arg3[%c0_2, %c0_3] : memref<576x64xf32, #tpu.memory_space<vmem>>, vector<64x64xf32>
    %cst_4 = arith.constant dense<0.000000e+00> : vector<160x64xf32>
    %9 = tpu.matmul %7, %8, %cst_4 {dimension_numbers = #tpu.dot_dimension_numbers<[1], [0], [0], [1], [0, 0, 1, 1], [], []>} : vector<160x64xf32>, vector<64x64xf32>, vector<160x64xf32> -> vector<160x64xf32>
    %10 = arith.addf %2, %9 : vector<160x64xf32>
    %c0_i32_5 = arith.constant 0 : i32
    %11 = arith.addi %1, %c0_i32_5 : i32
    %c0_6 = arith.constant 0 : index
    %12 = arith.index_cast %11 : i32 to index
    %c1 = arith.constant 1 : index
    %c0_7 = arith.constant 0 : index
    %13 = vector.load %arg2[%c0_6, %12, %c1, %c0_7] : memref<1x20x18x64xf32, #tpu.memory_space<vmem>>, vector<1x10x16x64xf32>
    %14 = vector.shape_cast %13 : vector<1x10x16x64xf32> to vector<10x16x64xf32>
    %15 = vector.shape_cast %14 : vector<10x16x64xf32> to vector<160x64xf32>
    %c64 = arith.constant 64 : index
    %c0_8 = arith.constant 0 : index
    %16 = vector.load %arg3[%c64, %c0_8] : memref<576x64xf32, #tpu.memory_space<vmem>>, vector<64x64xf32>
    %cst_9 = arith.constant dense<0.000000e+00> : vector<160x64xf32>
    %17 = tpu.matmul %15, %16, %cst_9 {dimension_numbers = #tpu.dot_dimension_numbers<[1], [0], [0], [1], [0, 0, 1, 1], [], []>} : vector<160x64xf32>, vector<64x64xf32>, vector<160x64xf32> -> vector<160x64xf32>
    %18 = arith.addf %10, %17 : vector<160x64xf32>
    %c0_i32_10 = arith.constant 0 : i32
    %19 = arith.addi %1, %c0_i32_10 : i32
    %c0_11 = arith.constant 0 : index
    %20 = arith.index_cast %19 : i32 to index
    %c2 = arith.constant 2 : index
    %c0_12 = arith.constant 0 : index
    %21 = vector.load %arg2[%c0_11, %20, %c2, %c0_12] : memref<1x20x18x64xf32, #tpu.memory_space<vmem>>, vector<1x10x16x64xf32>
    %22 = vector.shape_cast %21 : vector<1x10x16x64xf32> to vector<10x16x64xf32>
    %23 = vector.shape_cast %22 : vector<10x16x64xf32> to vector<160x64xf32>
    %c128 = arith.constant 128 : index
    %c0_13 = arith.constant 0 : index
    %24 = vector.load %arg3[%c128, %c0_13] : memref<576x64xf32, #tpu.memory_space<vmem>>, vector<64x64xf32>
    %cst_14 = arith.constant dense<0.000000e+00> : vector<160x64xf32>
    %25 = tpu.matmul %23, %24, %cst_14 {dimension_numbers = #tpu.dot_dimension_numbers<[1], [0], [0], [1], [0, 0, 1, 1], [], []>} : vector<160x64xf32>, vector<64x64xf32>, vector<160x64xf32> -> vector<160x64xf32>
    %26 = arith.addf %18, %25 : vector<160x64xf32>
    %c1_i32 = arith.constant 1 : i32
    %27 = arith.addi %1, %c1_i32 : i32
    %c0_15 = arith.constant 0 : index
    %28 = arith.index_cast %27 : i32 to index
    %c0_16 = arith.constant 0 : index
    %c0_17 = arith.constant 0 : index
    %29 = vector.load %arg2[%c0_15, %28, %c0_16, %c0_17] : memref<1x20x18x64xf32, #tpu.memory_space<vmem>>, vector<1x10x16x64xf32>
    %30 = vector.shape_cast %29 : vector<1x10x16x64xf32> to vector<10x16x64xf32>
    %31 = vector.shape_cast %30 : vector<10x16x64xf32> to vector<160x64xf32>
    %c192 = arith.constant 192 : index
    %c0_18 = arith.constant 0 : index
    %32 = vector.load %arg3[%c192, %c0_18] : memref<576x64xf32, #tpu.memory_space<vmem>>, vector<64x64xf32>
    %cst_19 = arith.constant dense<0.000000e+00> : vector<160x64xf32>
    %33 = tpu.matmul %31, %32, %cst_19 {dimension_numbers = #tpu.dot_dimension_numbers<[1], [0], [0], [1], [0, 0, 1, 1], [], []>} : vector<160x64xf32>, vector<64x64xf32>, vector<160x64xf32> -> vector<160x64xf32>
    %34 = arith.addf %26, %33 : vector<160x64xf32>
    %c1_i32_20 = arith.constant 1 : i32
    %35 = arith.addi %1, %c1_i32_20 : i32
    %c0_21 = arith.constant 0 : index
    %36 = arith.index_cast %35 : i32 to index
    %c1_22 = arith.constant 1 : index
    %c0_23 = arith.constant 0 : index
    %37 = vector.load %arg2[%c0_21, %36, %c1_22, %c0_23] : memref<1x20x18x64xf32, #tpu.memory_space<vmem>>, vector<1x10x16x64xf32>
    %38 = vector.shape_cast %37 : vector<1x10x16x64xf32> to vector<10x16x64xf32>
    %39 = vector.shape_cast %38 : vector<10x16x64xf32> to vector<160x64xf32>
    %c256 = arith.constant 256 : index
    %c0_24 = arith.constant 0 : index
    %40 = vector.load %arg3[%c256, %c0_24] : memref<576x64xf32, #tpu.memory_space<vmem>>, vector<64x64xf32>
    %cst_25 = arith.constant dense<0.000000e+00> : vector<160x64xf32>
    %41 = tpu.matmul %39, %40, %cst_25 {dimension_numbers = #tpu.dot_dimension_numbers<[1], [0], [0], [1], [0, 0, 1, 1], [], []>} : vector<160x64xf32>, vector<64x64xf32>, vector<160x64xf32> -> vector<160x64xf32>
    %42 = arith.addf %34, %41 : vector<160x64xf32>
    %c1_i32_26 = arith.constant 1 : i32
    %43 = arith.addi %1, %c1_i32_26 : i32
    %c0_27 = arith.constant 0 : index
    %44 = arith.index_cast %43 : i32 to index
    %c2_28 = arith.constant 2 : index
    %c0_29 = arith.constant 0 : index
    %45 = vector.load %arg2[%c0_27, %44, %c2_28, %c0_29] : memref<1x20x18x64xf32, #tpu.memory_space<vmem>>, vector<1x10x16x64xf32>
    %46 = vector.shape_cast %45 : vector<1x10x16x64xf32> to vector<10x16x64xf32>
    %47 = vector.shape_cast %46 : vector<10x16x64xf32> to vector<160x64xf32>
    %c320 = arith.constant 320 : index
    %c0_30 = arith.constant 0 : index
    %48 = vector.load %arg3[%c320, %c0_30] : memref<576x64xf32, #tpu.memory_space<vmem>>, vector<64x64xf32>
    %cst_31 = arith.constant dense<0.000000e+00> : vector<160x64xf32>
    %49 = tpu.matmul %47, %48, %cst_31 {dimension_numbers = #tpu.dot_dimension_numbers<[1], [0], [0], [1], [0, 0, 1, 1], [], []>} : vector<160x64xf32>, vector<64x64xf32>, vector<160x64xf32> -> vector<160x64xf32>
    %50 = arith.addf %42, %49 : vector<160x64xf32>
    %c2_i32 = arith.constant 2 : i32
    %51 = arith.addi %1, %c2_i32 : i32
    %c0_32 = arith.constant 0 : index
    %52 = arith.index_cast %51 : i32 to index
    %c0_33 = arith.constant 0 : index
    %c0_34 = arith.constant 0 : index
    %53 = vector.load %arg2[%c0_32, %52, %c0_33, %c0_34] : memref<1x20x18x64xf32, #tpu.memory_space<vmem>>, vector<1x10x16x64xf32>
    %54 = vector.shape_cast %53 : vector<1x10x16x64xf32> to vector<10x16x64xf32>
    %55 = vector.shape_cast %54 : vector<10x16x64xf32> to vector<160x64xf32>
    %c384 = arith.constant 384 : index
    %c0_35 = arith.constant 0 : index
    %56 = vector.load %arg3[%c384, %c0_35] : memref<576x64xf32, #tpu.memory_space<vmem>>, vector<64x64xf32>
    %cst_36 = arith.constant dense<0.000000e+00> : vector<160x64xf32>
    %57 = tpu.matmul %55, %56, %cst_36 {dimension_numbers = #tpu.dot_dimension_numbers<[1], [0], [0], [1], [0, 0, 1, 1], [], []>} : vector<160x64xf32>, vector<64x64xf32>, vector<160x64xf32> -> vector<160x64xf32>
    %58 = arith.addf %50, %57 : vector<160x64xf32>
    %c2_i32_37 = arith.constant 2 : i32
    %59 = arith.addi %1, %c2_i32_37 : i32
    %c0_38 = arith.constant 0 : index
    %60 = arith.index_cast %59 : i32 to index
    %c1_39 = arith.constant 1 : index
    %c0_40 = arith.constant 0 : index
    %61 = vector.load %arg2[%c0_38, %60, %c1_39, %c0_40] : memref<1x20x18x64xf32, #tpu.memory_space<vmem>>, vector<1x10x16x64xf32>
    %62 = vector.shape_cast %61 : vector<1x10x16x64xf32> to vector<10x16x64xf32>
    %63 = vector.shape_cast %62 : vector<10x16x64xf32> to vector<160x64xf32>
    %c448 = arith.constant 448 : index
    %c0_41 = arith.constant 0 : index
    %64 = vector.load %arg3[%c448, %c0_41] : memref<576x64xf32, #tpu.memory_space<vmem>>, vector<64x64xf32>
    %cst_42 = arith.constant dense<0.000000e+00> : vector<160x64xf32>
    %65 = tpu.matmul %63, %64, %cst_42 {dimension_numbers = #tpu.dot_dimension_numbers<[1], [0], [0], [1], [0, 0, 1, 1], [], []>} : vector<160x64xf32>, vector<64x64xf32>, vector<160x64xf32> -> vector<160x64xf32>
    %66 = arith.addf %58, %65 : vector<160x64xf32>
    %c2_i32_43 = arith.constant 2 : i32
    %67 = arith.addi %1, %c2_i32_43 : i32
    %c0_44 = arith.constant 0 : index
    %68 = arith.index_cast %67 : i32 to index
    %c2_45 = arith.constant 2 : index
    %c0_46 = arith.constant 0 : index
    %69 = vector.load %arg2[%c0_44, %68, %c2_45, %c0_46] : memref<1x20x18x64xf32, #tpu.memory_space<vmem>>, vector<1x10x16x64xf32>
    %70 = vector.shape_cast %69 : vector<1x10x16x64xf32> to vector<10x16x64xf32>
    %71 = vector.shape_cast %70 : vector<10x16x64xf32> to vector<160x64xf32>
    %c512 = arith.constant 512 : index
    %c0_47 = arith.constant 0 : index
    %72 = vector.load %arg3[%c512, %c0_47] : memref<576x64xf32, #tpu.memory_space<vmem>>, vector<64x64xf32>
    %cst_48 = arith.constant dense<0.000000e+00> : vector<160x64xf32>
    %73 = tpu.matmul %71, %72, %cst_48 {dimension_numbers = #tpu.dot_dimension_numbers<[1], [0], [0], [1], [0, 0, 1, 1], [], []>} : vector<160x64xf32>, vector<64x64xf32>, vector<160x64xf32> -> vector<160x64xf32>
    %74 = arith.addf %66, %73 : vector<160x64xf32>
    %c0_49 = arith.constant 0 : index
    %c0_50 = arith.constant 0 : index
    %75 = vector.load %arg6[%c0_49, %c0_50] : memref<1x64xf32, #tpu.memory_space<vmem>>, vector<1x64xf32>
    %76 = vector.broadcast %75 : vector<1x64xf32> to vector<160x64xf32>
    %77 = arith.addf %74, %76 : vector<160x64xf32>
    %78 = arith.negf %77 : vector<160x64xf32>
    %79 = math.exp %78 : vector<160x64xf32>
    %cst_51 = arith.constant 1.000000e+00 : f32
    %80 = vector.broadcast %cst_51 : f32 to vector<160x64xf32>
    %81 = arith.addf %80, %79 : vector<160x64xf32>
    %82 = arith.divf %80, %81 : vector<160x64xf32>
    %83 = vector.shape_cast %82 : vector<160x64xf32> to vector<10x16x64xf32>
    %c1_i32_52 = arith.constant 1 : i32
    %84 = arith.addi %1, %c1_i32_52 : i32
    %c0_53 = arith.constant 0 : index
    %85 = arith.index_cast %84 : i32 to index
    %c1_54 = arith.constant 1 : index
    %c32 = arith.constant 32 : index
    %86 = vector.load %arg2[%c0_53, %85, %c1_54, %c32] : memref<1x20x18x64xf32, #tpu.memory_space<vmem>>, vector<1x10x16x32xf32>
    %87 = vector.shape_cast %86 : vector<1x10x16x32xf32> to vector<10x16x32xf32>
    %88 = vector.extract_strided_slice %83 {offsets = [0, 0, 32], sizes = [10, 16, 32], strides = [1, 1, 1]} : vector<10x16x64xf32> to vector<10x16x32xf32>
    %89 = arith.mulf %88, %87 : vector<10x16x32xf32>
    %cst_55 = arith.constant 0.000000e+00 : f32
    %90 = vector.broadcast %cst_55 : f32 to vector<10x1x32xf32>
    %c0_56 = arith.constant 0 : index
    %c0_57 = arith.constant 0 : index
    %c0_58 = arith.constant 0 : index
    %91 = vector.load %arg9[%c0_56, %c0_57, %c0_58] : memref<10x18x32xf32, #tpu.memory_space<vmem>>, vector<10x1x32xf32>
    tpu.vector_store %arg9[%c0_56, %c0_57, %c0_58], %90 {strides = array<i32>} : memref<10x18x32xf32, #tpu.memory_space<vmem>>, vector<10x1x32xf32>,
    %cst_59 = arith.constant 0.000000e+00 : f32
    %92 = vector.broadcast %cst_59 : f32 to vector<10x1x32xf32>
    %c0_60 = arith.constant 0 : index
    %c17 = arith.constant 17 : index
    %c0_61 = arith.constant 0 : index
    %93 = vector.load %arg9[%c0_60, %c17, %c0_61] : memref<10x18x32xf32, #tpu.memory_space<vmem>>, vector<10x1x32xf32>
    tpu.vector_store %arg9[%c0_60, %c17, %c0_61], %92 {strides = array<i32>} : memref<10x18x32xf32, #tpu.memory_space<vmem>>, vector<10x1x32xf32>,
    %c0_62 = arith.constant 0 : index
    %c1_63 = arith.constant 1 : index
    %c0_64 = arith.constant 0 : index
    %94 = vector.load %arg9[%c0_62, %c1_63, %c0_64] : memref<10x18x32xf32, #tpu.memory_space<vmem>>, vector<10x16x32xf32>
    tpu.vector_store %arg9[%c0_62, %c1_63, %c0_64], %89 {strides = array<i32>} : memref<10x18x32xf32, #tpu.memory_space<vmem>>, vector<10x16x32xf32>,
    %cst_65 = arith.constant 0.000000e+00 : f32
    %95 = vector.broadcast %cst_65 : f32 to vector<128x32xf32>
    %c1_i32_66 = arith.constant 1 : i32
    %96 = arith.addi %1, %c1_i32_66 : i32
    %c0_i32_67 = arith.constant 0 : i32
    %97 = arith.addi %96, %c0_i32_67 : i32
    %c0_68 = arith.constant 0 : index
    %98 = arith.index_cast %97 : i32 to index
    %c0_69 = arith.constant 0 : index
    %c0_70 = arith.constant 0 : index
    %99 = vector.load %arg2[%c0_68, %98, %c0_69, %c0_70] : memref<1x20x18x64xf32, #tpu.memory_space<vmem>>, vector<1x8x16x32xf32>
    %100 = vector.shape_cast %99 : vector<1x8x16x32xf32> to vector<8x16x32xf32>
    %101 = vector.shape_cast %100 : vector<8x16x32xf32> to vector<128x32xf32>
    %c0_71 = arith.constant 0 : index
    %c0_72 = arith.constant 0 : index
    %102 = vector.load %arg4[%c0_71, %c0_72] : memref<288x32xf32, #tpu.memory_space<vmem>>, vector<32x32xf32>
    %cst_73 = arith.constant dense<0.000000e+00> : vector<128x32xf32>
    %103 = tpu.matmul %101, %102, %cst_73 {dimension_numbers = #tpu.dot_dimension_numbers<[1], [0], [0], [1], [0, 0, 1, 1], [], []>} : vector<128x32xf32>, vector<32x32xf32>, vector<128x32xf32> -> vector<128x32xf32>
    %104 = arith.addf %95, %103 : vector<128x32xf32>
    %c0_74 = arith.constant 0 : index
    %c0_75 = arith.constant 0 : index
    %c0_76 = arith.constant 0 : index
    %105 = vector.load %arg9[%c0_74, %c0_75, %c0_76] : memref<10x18x32xf32, #tpu.memory_space<vmem>>, vector<8x16x32xf32>
    %106 = vector.shape_cast %105 : vector<8x16x32xf32> to vector<128x32xf32>
    %c0_77 = arith.constant 0 : index
    %c0_78 = arith.constant 0 : index
    %107 = vector.load %arg5[%c0_77, %c0_78] : memref<288x32xf32, #tpu.memory_space<vmem>>, vector<32x32xf32>
    %cst_79 = arith.constant dense<0.000000e+00> : vector<128x32xf32>
    %108 = tpu.matmul %106, %107, %cst_79 {dimension_numbers = #tpu.dot_dimension_numbers<[1], [0], [0], [1], [0, 0, 1, 1], [], []>} : vector<128x32xf32>, vector<32x32xf32>, vector<128x32xf32> -> vector<128x32xf32>
    %109 = arith.addf %104, %108 : vector<128x32xf32>
    %c1_i32_80 = arith.constant 1 : i32
    %110 = arith.addi %1, %c1_i32_80 : i32
    %c0_i32_81 = arith.constant 0 : i32
    %111 = arith.addi %110, %c0_i32_81 : i32
    %c0_82 = arith.constant 0 : index
    %112 = arith.index_cast %111 : i32 to index
    %c1_83 = arith.constant 1 : index
    %c0_84 = arith.constant 0 : index
    %113 = vector.load %arg2[%c0_82, %112, %c1_83, %c0_84] : memref<1x20x18x64xf32, #tpu.memory_space<vmem>>, vector<1x8x16x32xf32>
    %114 = vector.shape_cast %113 : vector<1x8x16x32xf32> to vector<8x16x32xf32>
    %115 = vector.shape_cast %114 : vector<8x16x32xf32> to vector<128x32xf32>
    %c32_85 = arith.constant 32 : index
    %c0_86 = arith.constant 0 : index
    %116 = vector.load %arg4[%c32_85, %c0_86] : memref<288x32xf32, #tpu.memory_space<vmem>>, vector<32x32xf32>
    %cst_87 = arith.constant dense<0.000000e+00> : vector<128x32xf32>
    %117 = tpu.matmul %115, %116, %cst_87 {dimension_numbers = #tpu.dot_dimension_numbers<[1], [0], [0], [1], [0, 0, 1, 1], [], []>} : vector<128x32xf32>, vector<32x32xf32>, vector<128x32xf32> -> vector<128x32xf32>
    %118 = arith.addf %109, %117 : vector<128x32xf32>
    %c0_88 = arith.constant 0 : index
    %c1_89 = arith.constant 1 : index
    %c0_90 = arith.constant 0 : index
    %119 = vector.load %arg9[%c0_88, %c1_89, %c0_90] : memref<10x18x32xf32, #tpu.memory_space<vmem>>, vector<8x16x32xf32>
    %120 = vector.shape_cast %119 : vector<8x16x32xf32> to vector<128x32xf32>
    %c32_91 = arith.constant 32 : index
    %c0_92 = arith.constant 0 : index
    %121 = vector.load %arg5[%c32_91, %c0_92] : memref<288x32xf32, #tpu.memory_space<vmem>>, vector<32x32xf32>
    %cst_93 = arith.constant dense<0.000000e+00> : vector<128x32xf32>
    %122 = tpu.matmul %120, %121, %cst_93 {dimension_numbers = #tpu.dot_dimension_numbers<[1], [0], [0], [1], [0, 0, 1, 1], [], []>} : vector<128x32xf32>, vector<32x32xf32>, vector<128x32xf32> -> vector<128x32xf32>
    %123 = arith.addf %118, %122 : vector<128x32xf32>
    %c1_i32_94 = arith.constant 1 : i32
    %124 = arith.addi %1, %c1_i32_94 : i32
    %c0_i32_95 = arith.constant 0 : i32
    %125 = arith.addi %124, %c0_i32_95 : i32
    %c0_96 = arith.constant 0 : index
    %126 = arith.index_cast %125 : i32 to index
    %c2_97 = arith.constant 2 : index
    %c0_98 = arith.constant 0 : index
    %127 = vector.load %arg2[%c0_96, %126, %c2_97, %c0_98] : memref<1x20x18x64xf32, #tpu.memory_space<vmem>>, vector<1x8x16x32xf32>
    %128 = vector.shape_cast %127 : vector<1x8x16x32xf32> to vector<8x16x32xf32>
    %129 = vector.shape_cast %128 : vector<8x16x32xf32> to vector<128x32xf32>
    %c64_99 = arith.constant 64 : index
    %c0_100 = arith.constant 0 : index
    %130 = vector.load %arg4[%c64_99, %c0_100] : memref<288x32xf32, #tpu.memory_space<vmem>>, vector<32x32xf32>
    %cst_101 = arith.constant dense<0.000000e+00> : vector<128x32xf32>
    %131 = tpu.matmul %129, %130, %cst_101 {dimension_numbers = #tpu.dot_dimension_numbers<[1], [0], [0], [1], [0, 0, 1, 1], [], []>} : vector<128x32xf32>, vector<32x32xf32>, vector<128x32xf32> -> vector<128x32xf32>
    %132 = arith.addf %123, %131 : vector<128x32xf32>
    %c0_102 = arith.constant 0 : index
    %c2_103 = arith.constant 2 : index
    %c0_104 = arith.constant 0 : index
    %133 = vector.load %arg9[%c0_102, %c2_103, %c0_104] : memref<10x18x32xf32, #tpu.memory_space<vmem>>, vector<8x16x32xf32>
    %134 = vector.shape_cast %133 : vector<8x16x32xf32> to vector<128x32xf32>
    %c64_105 = arith.constant 64 : index
    %c0_106 = arith.constant 0 : index
    %135 = vector.load %arg5[%c64_105, %c0_106] : memref<288x32xf32, #tpu.memory_space<vmem>>, vector<32x32xf32>
    %cst_107 = arith.constant dense<0.000000e+00> : vector<128x32xf32>
    %136 = tpu.matmul %134, %135, %cst_107 {dimension_numbers = #tpu.dot_dimension_numbers<[1], [0], [0], [1], [0, 0, 1, 1], [], []>} : vector<128x32xf32>, vector<32x32xf32>, vector<128x32xf32> -> vector<128x32xf32>
    %137 = arith.addf %132, %136 : vector<128x32xf32>
    %c1_i32_108 = arith.constant 1 : i32
    %138 = arith.addi %1, %c1_i32_108 : i32
    %c1_i32_109 = arith.constant 1 : i32
    %139 = arith.addi %138, %c1_i32_109 : i32
    %c0_110 = arith.constant 0 : index
    %140 = arith.index_cast %139 : i32 to index
    %c0_111 = arith.constant 0 : index
    %c0_112 = arith.constant 0 : index
    %141 = vector.load %arg2[%c0_110, %140, %c0_111, %c0_112] : memref<1x20x18x64xf32, #tpu.memory_space<vmem>>, vector<1x8x16x32xf32>
    %142 = vector.shape_cast %141 : vector<1x8x16x32xf32> to vector<8x16x32xf32>
    %143 = vector.shape_cast %142 : vector<8x16x32xf32> to vector<128x32xf32>
    %c96 = arith.constant 96 : index
    %c0_113 = arith.constant 0 : index
    %144 = vector.load %arg4[%c96, %c0_113] : memref<288x32xf32, #tpu.memory_space<vmem>>, vector<32x32xf32>
    %cst_114 = arith.constant dense<0.000000e+00> : vector<128x32xf32>
    %145 = tpu.matmul %143, %144, %cst_114 {dimension_numbers = #tpu.dot_dimension_numbers<[1], [0], [0], [1], [0, 0, 1, 1], [], []>} : vector<128x32xf32>, vector<32x32xf32>, vector<128x32xf32> -> vector<128x32xf32>
    %146 = arith.addf %137, %145 : vector<128x32xf32>
    %c1_115 = arith.constant 1 : index
    %c0_116 = arith.constant 0 : index
    %c0_117 = arith.constant 0 : index
    %147 = vector.load %arg9[%c1_115, %c0_116, %c0_117] : memref<10x18x32xf32, #tpu.memory_space<vmem>>, vector<8x16x32xf32>
    %148 = vector.shape_cast %147 : vector<8x16x32xf32> to vector<128x32xf32>
    %c96_118 = arith.constant 96 : index
    %c0_119 = arith.constant 0 : index
    %149 = vector.load %arg5[%c96_118, %c0_119] : memref<288x32xf32, #tpu.memory_space<vmem>>, vector<32x32xf32>
    %cst_120 = arith.constant dense<0.000000e+00> : vector<128x32xf32>
    %150 = tpu.matmul %148, %149, %cst_120 {dimension_numbers = #tpu.dot_dimension_numbers<[1], [0], [0], [1], [0, 0, 1, 1], [], []>} : vector<128x32xf32>, vector<32x32xf32>, vector<128x32xf32> -> vector<128x32xf32>
    %151 = arith.addf %146, %150 : vector<128x32xf32>
    %c1_i32_121 = arith.constant 1 : i32
    %152 = arith.addi %1, %c1_i32_121 : i32
    %c1_i32_122 = arith.constant 1 : i32
    %153 = arith.addi %152, %c1_i32_122 : i32
    %c0_123 = arith.constant 0 : index
    %154 = arith.index_cast %153 : i32 to index
    %c1_124 = arith.constant 1 : index
    %c0_125 = arith.constant 0 : index
    %155 = vector.load %arg2[%c0_123, %154, %c1_124, %c0_125] : memref<1x20x18x64xf32, #tpu.memory_space<vmem>>, vector<1x8x16x32xf32>
    %156 = vector.shape_cast %155 : vector<1x8x16x32xf32> to vector<8x16x32xf32>
    %157 = vector.shape_cast %156 : vector<8x16x32xf32> to vector<128x32xf32>
    %c128_126 = arith.constant 128 : index
    %c0_127 = arith.constant 0 : index
    %158 = vector.load %arg4[%c128_126, %c0_127] : memref<288x32xf32, #tpu.memory_space<vmem>>, vector<32x32xf32>
    %cst_128 = arith.constant dense<0.000000e+00> : vector<128x32xf32>
    %159 = tpu.matmul %157, %158, %cst_128 {dimension_numbers = #tpu.dot_dimension_numbers<[1], [0], [0], [1], [0, 0, 1, 1], [], []>} : vector<128x32xf32>, vector<32x32xf32>, vector<128x32xf32> -> vector<128x32xf32>
    %160 = arith.addf %151, %159 : vector<128x32xf32>
    %c1_129 = arith.constant 1 : index
    %c1_130 = arith.constant 1 : index
    %c0_131 = arith.constant 0 : index
    %161 = vector.load %arg9[%c1_129, %c1_130, %c0_131] : memref<10x18x32xf32, #tpu.memory_space<vmem>>, vector<8x16x32xf32>
    %162 = vector.shape_cast %161 : vector<8x16x32xf32> to vector<128x32xf32>
    %c128_132 = arith.constant 128 : index
    %c0_133 = arith.constant 0 : index
    %163 = vector.load %arg5[%c128_132, %c0_133] : memref<288x32xf32, #tpu.memory_space<vmem>>, vector<32x32xf32>
    %cst_134 = arith.constant dense<0.000000e+00> : vector<128x32xf32>
    %164 = tpu.matmul %162, %163, %cst_134 {dimension_numbers = #tpu.dot_dimension_numbers<[1], [0], [0], [1], [0, 0, 1, 1], [], []>} : vector<128x32xf32>, vector<32x32xf32>, vector<128x32xf32> -> vector<128x32xf32>
    %165 = arith.addf %160, %164 : vector<128x32xf32>
    %c1_i32_135 = arith.constant 1 : i32
    %166 = arith.addi %1, %c1_i32_135 : i32
    %c1_i32_136 = arith.constant 1 : i32
    %167 = arith.addi %166, %c1_i32_136 : i32
    %c0_137 = arith.constant 0 : index
    %168 = arith.index_cast %167 : i32 to index
    %c2_138 = arith.constant 2 : index
    %c0_139 = arith.constant 0 : index
    %169 = vector.load %arg2[%c0_137, %168, %c2_138, %c0_139] : memref<1x20x18x64xf32, #tpu.memory_space<vmem>>, vector<1x8x16x32xf32>
    %170 = vector.shape_cast %169 : vector<1x8x16x32xf32> to vector<8x16x32xf32>
    %171 = vector.shape_cast %170 : vector<8x16x32xf32> to vector<128x32xf32>
    %c160 = arith.constant 160 : index
    %c0_140 = arith.constant 0 : index
    %172 = vector.load %arg4[%c160, %c0_140] : memref<288x32xf32, #tpu.memory_space<vmem>>, vector<32x32xf32>
    %cst_141 = arith.constant dense<0.000000e+00> : vector<128x32xf32>
    %173 = tpu.matmul %171, %172, %cst_141 {dimension_numbers = #tpu.dot_dimension_numbers<[1], [0], [0], [1], [0, 0, 1, 1], [], []>} : vector<128x32xf32>, vector<32x32xf32>, vector<128x32xf32> -> vector<128x32xf32>
    %174 = arith.addf %165, %173 : vector<128x32xf32>
    %c1_142 = arith.constant 1 : index
    %c2_143 = arith.constant 2 : index
    %c0_144 = arith.constant 0 : index
    %175 = vector.load %arg9[%c1_142, %c2_143, %c0_144] : memref<10x18x32xf32, #tpu.memory_space<vmem>>, vector<8x16x32xf32>
    %176 = vector.shape_cast %175 : vector<8x16x32xf32> to vector<128x32xf32>
    %c160_145 = arith.constant 160 : index
    %c0_146 = arith.constant 0 : index
    %177 = vector.load %arg5[%c160_145, %c0_146] : memref<288x32xf32, #tpu.memory_space<vmem>>, vector<32x32xf32>
    %cst_147 = arith.constant dense<0.000000e+00> : vector<128x32xf32>
    %178 = tpu.matmul %176, %177, %cst_147 {dimension_numbers = #tpu.dot_dimension_numbers<[1], [0], [0], [1], [0, 0, 1, 1], [], []>} : vector<128x32xf32>, vector<32x32xf32>, vector<128x32xf32> -> vector<128x32xf32>
    %179 = arith.addf %174, %178 : vector<128x32xf32>
    %c1_i32_148 = arith.constant 1 : i32
    %180 = arith.addi %1, %c1_i32_148 : i32
    %c2_i32_149 = arith.constant 2 : i32
    %181 = arith.addi %180, %c2_i32_149 : i32
    %c0_150 = arith.constant 0 : index
    %182 = arith.index_cast %181 : i32 to index
    %c0_151 = arith.constant 0 : index
    %c0_152 = arith.constant 0 : index
    %183 = vector.load %arg2[%c0_150, %182, %c0_151, %c0_152] : memref<1x20x18x64xf32, #tpu.memory_space<vmem>>, vector<1x8x16x32xf32>
    %184 = vector.shape_cast %183 : vector<1x8x16x32xf32> to vector<8x16x32xf32>
    %185 = vector.shape_cast %184 : vector<8x16x32xf32> to vector<128x32xf32>
    %c192_153 = arith.constant 192 : index
    %c0_154 = arith.constant 0 : index
    %186 = vector.load %arg4[%c192_153, %c0_154] : memref<288x32xf32, #tpu.memory_space<vmem>>, vector<32x32xf32>
    %cst_155 = arith.constant dense<0.000000e+00> : vector<128x32xf32>
    %187 = tpu.matmul %185, %186, %cst_155 {dimension_numbers = #tpu.dot_dimension_numbers<[1], [0], [0], [1], [0, 0, 1, 1], [], []>} : vector<128x32xf32>, vector<32x32xf32>, vector<128x32xf32> -> vector<128x32xf32>
    %188 = arith.addf %179, %187 : vector<128x32xf32>
    %c2_156 = arith.constant 2 : index
    %c0_157 = arith.constant 0 : index
    %c0_158 = arith.constant 0 : index
    %189 = vector.load %arg9[%c2_156, %c0_157, %c0_158] : memref<10x18x32xf32, #tpu.memory_space<vmem>>, vector<8x16x32xf32>
    %190 = vector.shape_cast %189 : vector<8x16x32xf32> to vector<128x32xf32>
    %c192_159 = arith.constant 192 : index
    %c0_160 = arith.constant 0 : index
    %191 = vector.load %arg5[%c192_159, %c0_160] : memref<288x32xf32, #tpu.memory_space<vmem>>, vector<32x32xf32>
    %cst_161 = arith.constant dense<0.000000e+00> : vector<128x32xf32>
    %192 = tpu.matmul %190, %191, %cst_161 {dimension_numbers = #tpu.dot_dimension_numbers<[1], [0], [0], [1], [0, 0, 1, 1], [], []>} : vector<128x32xf32>, vector<32x32xf32>, vector<128x32xf32> -> vector<128x32xf32>
    %193 = arith.addf %188, %192 : vector<128x32xf32>
    %c1_i32_162 = arith.constant 1 : i32
    %194 = arith.addi %1, %c1_i32_162 : i32
    %c2_i32_163 = arith.constant 2 : i32
    %195 = arith.addi %194, %c2_i32_163 : i32
    %c0_164 = arith.constant 0 : index
    %196 = arith.index_cast %195 : i32 to index
    %c1_165 = arith.constant 1 : index
    %c0_166 = arith.constant 0 : index
    %197 = vector.load %arg2[%c0_164, %196, %c1_165, %c0_166] : memref<1x20x18x64xf32, #tpu.memory_space<vmem>>, vector<1x8x16x32xf32>
    %198 = vector.shape_cast %197 : vector<1x8x16x32xf32> to vector<8x16x32xf32>
    %199 = vector.shape_cast %198 : vector<8x16x32xf32> to vector<128x32xf32>
    %c224 = arith.constant 224 : index
    %c0_167 = arith.constant 0 : index
    %200 = vector.load %arg4[%c224, %c0_167] : memref<288x32xf32, #tpu.memory_space<vmem>>, vector<32x32xf32>
    %cst_168 = arith.constant dense<0.000000e+00> : vector<128x32xf32>
    %201 = tpu.matmul %199, %200, %cst_168 {dimension_numbers = #tpu.dot_dimension_numbers<[1], [0], [0], [1], [0, 0, 1, 1], [], []>} : vector<128x32xf32>, vector<32x32xf32>, vector<128x32xf32> -> vector<128x32xf32>
    %202 = arith.addf %193, %201 : vector<128x32xf32>
    %c2_169 = arith.constant 2 : index
    %c1_170 = arith.constant 1 : index
    %c0_171 = arith.constant 0 : index
    %203 = vector.load %arg9[%c2_169, %c1_170, %c0_171] : memref<10x18x32xf32, #tpu.memory_space<vmem>>, vector<8x16x32xf32>
    %204 = vector.shape_cast %203 : vector<8x16x32xf32> to vector<128x32xf32>
    %c224_172 = arith.constant 224 : index
    %c0_173 = arith.constant 0 : index
    %205 = vector.load %arg5[%c224_172, %c0_173] : memref<288x32xf32, #tpu.memory_space<vmem>>, vector<32x32xf32>
    %cst_174 = arith.constant dense<0.000000e+00> : vector<128x32xf32>
    %206 = tpu.matmul %204, %205, %cst_174 {dimension_numbers = #tpu.dot_dimension_numbers<[1], [0], [0], [1], [0, 0, 1, 1], [], []>} : vector<128x32xf32>, vector<32x32xf32>, vector<128x32xf32> -> vector<128x32xf32>
    %207 = arith.addf %202, %206 : vector<128x32xf32>
    %c1_i32_175 = arith.constant 1 : i32
    %208 = arith.addi %1, %c1_i32_175 : i32
    %c2_i32_176 = arith.constant 2 : i32
    %209 = arith.addi %208, %c2_i32_176 : i32
    %c0_177 = arith.constant 0 : index
    %210 = arith.index_cast %209 : i32 to index
    %c2_178 = arith.constant 2 : index
    %c0_179 = arith.constant 0 : index
    %211 = vector.load %arg2[%c0_177, %210, %c2_178, %c0_179] : memref<1x20x18x64xf32, #tpu.memory_space<vmem>>, vector<1x8x16x32xf32>
    %212 = vector.shape_cast %211 : vector<1x8x16x32xf32> to vector<8x16x32xf32>
    %213 = vector.shape_cast %212 : vector<8x16x32xf32> to vector<128x32xf32>
    %c256_180 = arith.constant 256 : index
    %c0_181 = arith.constant 0 : index
    %214 = vector.load %arg4[%c256_180, %c0_181] : memref<288x32xf32, #tpu.memory_space<vmem>>, vector<32x32xf32>
    %cst_182 = arith.constant dense<0.000000e+00> : vector<128x32xf32>
    %215 = tpu.matmul %213, %214, %cst_182 {dimension_numbers = #tpu.dot_dimension_numbers<[1], [0], [0], [1], [0, 0, 1, 1], [], []>} : vector<128x32xf32>, vector<32x32xf32>, vector<128x32xf32> -> vector<128x32xf32>
    %216 = arith.addf %207, %215 : vector<128x32xf32>
    %c2_183 = arith.constant 2 : index
    %c2_184 = arith.constant 2 : index
    %c0_185 = arith.constant 0 : index
    %217 = vector.load %arg9[%c2_183, %c2_184, %c0_185] : memref<10x18x32xf32, #tpu.memory_space<vmem>>, vector<8x16x32xf32>
    %218 = vector.shape_cast %217 : vector<8x16x32xf32> to vector<128x32xf32>
    %c256_186 = arith.constant 256 : index
    %c0_187 = arith.constant 0 : index
    %219 = vector.load %arg5[%c256_186, %c0_187] : memref<288x32xf32, #tpu.memory_space<vmem>>, vector<32x32xf32>
    %cst_188 = arith.constant dense<0.000000e+00> : vector<128x32xf32>
    %220 = tpu.matmul %218, %219, %cst_188 {dimension_numbers = #tpu.dot_dimension_numbers<[1], [0], [0], [1], [0, 0, 1, 1], [], []>} : vector<128x32xf32>, vector<32x32xf32>, vector<128x32xf32> -> vector<128x32xf32>
    %221 = arith.addf %216, %220 : vector<128x32xf32>
    %c0_189 = arith.constant 0 : index
    %c0_190 = arith.constant 0 : index
    %222 = vector.load %arg7[%c0_189, %c0_190] : memref<1x32xf32, #tpu.memory_space<vmem>>, vector<1x32xf32>
    %223 = vector.broadcast %222 : vector<1x32xf32> to vector<128x32xf32>
    %224 = arith.addf %221, %223 : vector<128x32xf32>
    %225 = math.tanh %224 : vector<128x32xf32>
    %226 = vector.shape_cast %225 : vector<128x32xf32> to vector<8x16x32xf32>
    %227 = vector.extract_strided_slice %83 {offsets = [1, 0, 0], sizes = [8, 16, 32], strides = [1, 1, 1]} : vector<10x16x64xf32> to vector<8x16x32xf32>
    %228 = vector.extract_strided_slice %87 {offsets = [1, 0, 0], sizes = [8, 16, 32], strides = [1, 1, 1]} : vector<10x16x32xf32> to vector<8x16x32xf32>
    %cst_191 = arith.constant 1.000000e+00 : f32
    %229 = vector.broadcast %cst_191 : f32 to vector<8x16x32xf32>
    %230 = arith.subf %229, %227 : vector<8x16x32xf32>
    %231 = arith.mulf %230, %228 : vector<8x16x32xf32>
    %232 = arith.mulf %227, %226 : vector<8x16x32xf32>
    %233 = arith.addf %231, %232 : vector<8x16x32xf32>
    %234 = vector.shape_cast %233 : vector<8x16x32xf32> to vector<8x512xf32>
    %c0_192 = arith.constant 0 : index
    %c0_193 = arith.constant 0 : index
    %c0_194 = arith.constant 0 : index
    %235 = vector.load %arg8[%c0_192, %c0_193, %c0_194] : memref<1x8x512xf32, #tpu.memory_space<vmem>>, vector<1x8x512xf32>
    %236 = vector.shape_cast %235 : vector<1x8x512xf32> to vector<8x512xf32>
    %237 = vector.shape_cast %234 : vector<8x512xf32> to vector<1x8x512xf32>
    tpu.vector_store %arg8[%c0_192, %c0_193, %c0_194], %237 {strides = array<i32>} : memref<1x8x512xf32, #tpu.memory_space<vmem>>, vector<1x8x512xf32>,
    return
  }
  func.func @transform_0(%arg0: i32, %arg1: i32) -> (i32, i32, i32, i32) {
    %c0_i32 = arith.constant 0 : i32
    %c0_i32_0 = arith.constant 0 : i32
    %c0_i32_1 = arith.constant 0 : i32
    %c0_i32_2 = arith.constant 0 : i32
    return %arg0, %c0_i32, %c0_i32_0, %c0_i32_1 : i32, i32, i32, i32
  }
  func.func @transform_1(%arg0: i32, %arg1: i32) -> (i32, i32) {
    %c0_i32 = arith.constant 0 : i32
    %c0_i32_0 = arith.constant 0 : i32
    %c0_i32_1 = arith.constant 0 : i32
    return %c0_i32, %c0_i32_0 : i32, i32
  }
  func.func @transform_2(%arg0: i32, %arg1: i32) -> (i32, i32) {
    %c0_i32 = arith.constant 0 : i32
    %c0_i32_0 = arith.constant 0 : i32
    %c0_i32_1 = arith.constant 0 : i32
    return %c0_i32, %c0_i32_0 : i32, i32
  }
  func.func @transform_3(%arg0: i32, %arg1: i32) -> (i32, i32) {
    %c0_i32 = arith.constant 0 : i32
    %c0_i32_0 = arith.constant 0 : i32
    %c0_i32_1 = arith.constant 0 : i32
    return %c0_i32, %c0_i32_0 : i32, i32
  }
  func.func @transform_4(%arg0: i32, %arg1: i32) -> (i32, i32) {
    %c0_i32 = arith.constant 0 : i32
    %c0_i32_0 = arith.constant 0 : i32
    %c0_i32_1 = arith.constant 0 : i32
    return %c0_i32, %c0_i32_0 : i32, i32
  }
  func.func @transform_5(%arg0: i32, %arg1: i32) -> (i32, i32) {
    %c0_i32 = arith.constant 0 : i32
    %c0_i32_0 = arith.constant 0 : i32
    %c0_i32_1 = arith.constant 0 : i32
    return %c0_i32, %c0_i32_0 : i32, i32
  }
  func.func @transform_6(%arg0: i32, %arg1: i32) -> (i32, i32, i32) {
    %c0_i32 = arith.constant 0 : i32
    %c0_i32_0 = arith.constant 0 : i32
    return %arg0, %arg1, %c0_i32 : i32, i32, i32
  }
}

module attributes {stable_mosaic.version = 11 : i64} {
  func.func @_convgru_kernel(%arg0: i32, %arg1: i32, %arg2: memref<1x20x18x64xf32, #tpu.memory_space<vmem>>, %arg3: memref<576x64xf32, #tpu.memory_space<vmem>>, %arg4: memref<288x32xf32, #tpu.memory_space<vmem>>, %arg5: memref<288x32xf32, #tpu.memory_space<vmem>>, %arg6: memref<1x64xf32, #tpu.memory_space<vmem>>, %arg7: memref<1x32xf32, #tpu.memory_space<vmem>>, %arg8: memref<1x8x512xf32, #tpu.memory_space<vmem>>, %arg9: memref<10x18x32xf32, #tpu.memory_space<vmem>>) attributes {dimension_semantics = [#tpu.dimension_semantics<parallel>, #tpu.dimension_semantics<parallel>], iteration_bounds = array<i64: 2, 2>, scalar_prefetch = 0 : i64, scratch_operands = 1 : i64, tpu.core_type = #tpu.core_type<tc>, window_params = [{transform_indices = @transform_0, window_bounds = array<i64: 1, 20, 18, 64>}, {pipeline_mode = #tpu.pipeline_mode<synchronous>, transform_indices = @transform_1, window_bounds = array<i64: 576, 64>}, {pipeline_mode = #tpu.pipeline_mode<synchronous>, transform_indices = @transform_2, window_bounds = array<i64: 288, 32>}, {pipeline_mode = #tpu.pipeline_mode<synchronous>, transform_indices = @transform_3, window_bounds = array<i64: 288, 32>}, {pipeline_mode = #tpu.pipeline_mode<synchronous>, transform_indices = @transform_4, window_bounds = array<i64: 1, 64>}, {pipeline_mode = #tpu.pipeline_mode<synchronous>, transform_indices = @transform_5, window_bounds = array<i64: 1, 32>}, {transform_indices = @transform_6, window_bounds = array<i64: 1, 8, 512>}]} {
    %c8_i32 = arith.constant 8 : i32
    %0 = arith.muli %arg1, %c8_i32 : i32
    %1 = tpu.assume_multiple %0, 8 : i32
    %cst = arith.constant 0.000000e+00 : f32
    %2 = vector.broadcast %cst : f32 to vector<160x64xf32>
    %c0_i32 = arith.constant 0 : i32
    %3 = arith.addi %1, %c0_i32 : i32
    %c0 = arith.constant 0 : index
    %4 = arith.index_cast %3 : i32 to index
    %c0_0 = arith.constant 0 : index
    %c0_1 = arith.constant 0 : index
    %5 = vector.load %arg2[%c0, %4, %c0_0, %c0_1] : memref<1x20x18x64xf32, #tpu.memory_space<vmem>>, vector<1x10x16x64xf32>
    %6 = vector.shape_cast %5 : vector<1x10x16x64xf32> to vector<10x16x64xf32>
    %7 = vector.shape_cast %6 : vector<10x16x64xf32> to vector<160x64xf32>
    %c0_2 = arith.constant 0 : index
    %c0_3 = arith.constant 0 : index
    %8 = vector.load %arg3[%c0_2, %c0_3] : memref<576x64xf32, #tpu.memory_space<vmem>>, vector<64x64xf32>
    %cst_4 = arith.constant dense<0.000000e+00> : vector<160x64xf32>
    %9 = tpu.matmul %7, %8, %cst_4 {dimension_numbers = #tpu.dot_dimension_numbers<[1], [0], [0], [1], [0, 0, 1, 1], [], []>} : vector<160x64xf32>, vector<64x64xf32>, vector<160x64xf32> -> vector<160x64xf32>
    %10 = arith.addf %2, %9 : vector<160x64xf32>
    %c0_i32_5 = arith.constant 0 : i32
    %11 = arith.addi %1, %c0_i32_5 : i32
    %c0_6 = arith.constant 0 : index
    %12 = arith.index_cast %11 : i32 to index
    %c1 = arith.constant 1 : index
    %c0_7 = arith.constant 0 : index
    %13 = vector.load %arg2[%c0_6, %12, %c1, %c0_7] : memref<1x20x18x64xf32, #tpu.memory_space<vmem>>, vector<1x10x16x64xf32>
    %14 = vector.shape_cast %13 : vector<1x10x16x64xf32> to vector<10x16x64xf32>
    %15 = vector.shape_cast %14 : vector<10x16x64xf32> to vector<160x64xf32>
    %c64 = arith.constant 64 : index
    %c0_8 = arith.constant 0 : index
    %16 = vector.load %arg3[%c64, %c0_8] : memref<576x64xf32, #tpu.memory_space<vmem>>, vector<64x64xf32>
    %cst_9 = arith.constant dense<0.000000e+00> : vector<160x64xf32>
    %17 = tpu.matmul %15, %16, %cst_9 {dimension_numbers = #tpu.dot_dimension_numbers<[1], [0], [0], [1], [0, 0, 1, 1], [], []>} : vector<160x64xf32>, vector<64x64xf32>, vector<160x64xf32> -> vector<160x64xf32>
    %18 = arith.addf %10, %17 : vector<160x64xf32>
    %c0_i32_10 = arith.constant 0 : i32
    %19 = arith.addi %1, %c0_i32_10 : i32
    %c0_11 = arith.constant 0 : index
    %20 = arith.index_cast %19 : i32 to index
    %c2 = arith.constant 2 : index
    %c0_12 = arith.constant 0 : index
    %21 = vector.load %arg2[%c0_11, %20, %c2, %c0_12] : memref<1x20x18x64xf32, #tpu.memory_space<vmem>>, vector<1x10x16x64xf32>
    %22 = vector.shape_cast %21 : vector<1x10x16x64xf32> to vector<10x16x64xf32>
    %23 = vector.shape_cast %22 : vector<10x16x64xf32> to vector<160x64xf32>
    %c128 = arith.constant 128 : index
    %c0_13 = arith.constant 0 : index
    %24 = vector.load %arg3[%c128, %c0_13] : memref<576x64xf32, #tpu.memory_space<vmem>>, vector<64x64xf32>
    %cst_14 = arith.constant dense<0.000000e+00> : vector<160x64xf32>
    %25 = tpu.matmul %23, %24, %cst_14 {dimension_numbers = #tpu.dot_dimension_numbers<[1], [0], [0], [1], [0, 0, 1, 1], [], []>} : vector<160x64xf32>, vector<64x64xf32>, vector<160x64xf32> -> vector<160x64xf32>
    %26 = arith.addf %18, %25 : vector<160x64xf32>
    %c1_i32 = arith.constant 1 : i32
    %27 = arith.addi %1, %c1_i32 : i32
    %c0_15 = arith.constant 0 : index
    %28 = arith.index_cast %27 : i32 to index
    %c0_16 = arith.constant 0 : index
    %c0_17 = arith.constant 0 : index
    %29 = vector.load %arg2[%c0_15, %28, %c0_16, %c0_17] : memref<1x20x18x64xf32, #tpu.memory_space<vmem>>, vector<1x10x16x64xf32>
    %30 = vector.shape_cast %29 : vector<1x10x16x64xf32> to vector<10x16x64xf32>
    %31 = vector.shape_cast %30 : vector<10x16x64xf32> to vector<160x64xf32>
    %c192 = arith.constant 192 : index
    %c0_18 = arith.constant 0 : index
    %32 = vector.load %arg3[%c192, %c0_18] : memref<576x64xf32, #tpu.memory_space<vmem>>, vector<64x64xf32>
    %cst_19 = arith.constant dense<0.000000e+00> : vector<160x64xf32>
    %33 = tpu.matmul %31, %32, %cst_19 {dimension_numbers = #tpu.dot_dimension_numbers<[1], [0], [0], [1], [0, 0, 1, 1], [], []>} : vector<160x64xf32>, vector<64x64xf32>, vector<160x64xf32> -> vector<160x64xf32>
    %34 = arith.addf %26, %33 : vector<160x64xf32>
    %c1_i32_20 = arith.constant 1 : i32
    %35 = arith.addi %1, %c1_i32_20 : i32
    %c0_21 = arith.constant 0 : index
    %36 = arith.index_cast %35 : i32 to index
    %c1_22 = arith.constant 1 : index
    %c0_23 = arith.constant 0 : index
    %37 = vector.load %arg2[%c0_21, %36, %c1_22, %c0_23] : memref<1x20x18x64xf32, #tpu.memory_space<vmem>>, vector<1x10x16x64xf32>
    %38 = vector.shape_cast %37 : vector<1x10x16x64xf32> to vector<10x16x64xf32>
    %39 = vector.shape_cast %38 : vector<10x16x64xf32> to vector<160x64xf32>
    %c256 = arith.constant 256 : index
    %c0_24 = arith.constant 0 : index
    %40 = vector.load %arg3[%c256, %c0_24] : memref<576x64xf32, #tpu.memory_space<vmem>>, vector<64x64xf32>
    %cst_25 = arith.constant dense<0.000000e+00> : vector<160x64xf32>
    %41 = tpu.matmul %39, %40, %cst_25 {dimension_numbers = #tpu.dot_dimension_numbers<[1], [0], [0], [1], [0, 0, 1, 1], [], []>} : vector<160x64xf32>, vector<64x64xf32>, vector<160x64xf32> -> vector<160x64xf32>
    %42 = arith.addf %34, %41 : vector<160x64xf32>
    %c1_i32_26 = arith.constant 1 : i32
    %43 = arith.addi %1, %c1_i32_26 : i32
    %c0_27 = arith.constant 0 : index
    %44 = arith.index_cast %43 : i32 to index
    %c2_28 = arith.constant 2 : index
    %c0_29 = arith.constant 0 : index
    %45 = vector.load %arg2[%c0_27, %44, %c2_28, %c0_29] : memref<1x20x18x64xf32, #tpu.memory_space<vmem>>, vector<1x10x16x64xf32>
    %46 = vector.shape_cast %45 : vector<1x10x16x64xf32> to vector<10x16x64xf32>
    %47 = vector.shape_cast %46 : vector<10x16x64xf32> to vector<160x64xf32>
    %c320 = arith.constant 320 : index
    %c0_30 = arith.constant 0 : index
    %48 = vector.load %arg3[%c320, %c0_30] : memref<576x64xf32, #tpu.memory_space<vmem>>, vector<64x64xf32>
    %cst_31 = arith.constant dense<0.000000e+00> : vector<160x64xf32>
    %49 = tpu.matmul %47, %48, %cst_31 {dimension_numbers = #tpu.dot_dimension_numbers<[1], [0], [0], [1], [0, 0, 1, 1], [], []>} : vector<160x64xf32>, vector<64x64xf32>, vector<160x64xf32> -> vector<160x64xf32>
    %50 = arith.addf %42, %49 : vector<160x64xf32>
    %c2_i32 = arith.constant 2 : i32
    %51 = arith.addi %1, %c2_i32 : i32
    %c0_32 = arith.constant 0 : index
    %52 = arith.index_cast %51 : i32 to index
    %c0_33 = arith.constant 0 : index
    %c0_34 = arith.constant 0 : index
    %53 = vector.load %arg2[%c0_32, %52, %c0_33, %c0_34] : memref<1x20x18x64xf32, #tpu.memory_space<vmem>>, vector<1x10x16x64xf32>
    %54 = vector.shape_cast %53 : vector<1x10x16x64xf32> to vector<10x16x64xf32>
    %55 = vector.shape_cast %54 : vector<10x16x64xf32> to vector<160x64xf32>
    %c384 = arith.constant 384 : index
    %c0_35 = arith.constant 0 : index
    %56 = vector.load %arg3[%c384, %c0_35] : memref<576x64xf32, #tpu.memory_space<vmem>>, vector<64x64xf32>
    %cst_36 = arith.constant dense<0.000000e+00> : vector<160x64xf32>
    %57 = tpu.matmul %55, %56, %cst_36 {dimension_numbers = #tpu.dot_dimension_numbers<[1], [0], [0], [1], [0, 0, 1, 1], [], []>} : vector<160x64xf32>, vector<64x64xf32>, vector<160x64xf32> -> vector<160x64xf32>
    %58 = arith.addf %50, %57 : vector<160x64xf32>
    %c2_i32_37 = arith.constant 2 : i32
    %59 = arith.addi %1, %c2_i32_37 : i32
    %c0_38 = arith.constant 0 : index
    %60 = arith.index_cast %59 : i32 to index
    %c1_39 = arith.constant 1 : index
    %c0_40 = arith.constant 0 : index
    %61 = vector.load %arg2[%c0_38, %60, %c1_39, %c0_40] : memref<1x20x18x64xf32, #tpu.memory_space<vmem>>, vector<1x10x16x64xf32>
    %62 = vector.shape_cast %61 : vector<1x10x16x64xf32> to vector<10x16x64xf32>
    %63 = vector.shape_cast %62 : vector<10x16x64xf32> to vector<160x64xf32>
    %c448 = arith.constant 448 : index
    %c0_41 = arith.constant 0 : index
    %64 = vector.load %arg3[%c448, %c0_41] : memref<576x64xf32, #tpu.memory_space<vmem>>, vector<64x64xf32>
    %cst_42 = arith.constant dense<0.000000e+00> : vector<160x64xf32>
    %65 = tpu.matmul %63, %64, %cst_42 {dimension_numbers = #tpu.dot_dimension_numbers<[1], [0], [0], [1], [0, 0, 1, 1], [], []>} : vector<160x64xf32>, vector<64x64xf32>, vector<160x64xf32> -> vector<160x64xf32>
    %66 = arith.addf %58, %65 : vector<160x64xf32>
    %c2_i32_43 = arith.constant 2 : i32
    %67 = arith.addi %1, %c2_i32_43 : i32
    %c0_44 = arith.constant 0 : index
    %68 = arith.index_cast %67 : i32 to index
    %c2_45 = arith.constant 2 : index
    %c0_46 = arith.constant 0 : index
    %69 = vector.load %arg2[%c0_44, %68, %c2_45, %c0_46] : memref<1x20x18x64xf32, #tpu.memory_space<vmem>>, vector<1x10x16x64xf32>
    %70 = vector.shape_cast %69 : vector<1x10x16x64xf32> to vector<10x16x64xf32>
    %71 = vector.shape_cast %70 : vector<10x16x64xf32> to vector<160x64xf32>
    %c512 = arith.constant 512 : index
    %c0_47 = arith.constant 0 : index
    %72 = vector.load %arg3[%c512, %c0_47] : memref<576x64xf32, #tpu.memory_space<vmem>>, vector<64x64xf32>
    %cst_48 = arith.constant dense<0.000000e+00> : vector<160x64xf32>
    %73 = tpu.matmul %71, %72, %cst_48 {dimension_numbers = #tpu.dot_dimension_numbers<[1], [0], [0], [1], [0, 0, 1, 1], [], []>} : vector<160x64xf32>, vector<64x64xf32>, vector<160x64xf32> -> vector<160x64xf32>
    %74 = arith.addf %66, %73 : vector<160x64xf32>
    %c0_49 = arith.constant 0 : index
    %c0_50 = arith.constant 0 : index
    %75 = vector.load %arg6[%c0_49, %c0_50] : memref<1x64xf32, #tpu.memory_space<vmem>>, vector<1x64xf32>
    %76 = vector.broadcast %75 : vector<1x64xf32> to vector<160x64xf32>
    %77 = arith.addf %74, %76 : vector<160x64xf32>
    %78 = arith.negf %77 : vector<160x64xf32>
    %79 = math.exp %78 : vector<160x64xf32>
    %cst_51 = arith.constant 1.000000e+00 : f32
    %80 = vector.broadcast %cst_51 : f32 to vector<160x64xf32>
    %81 = arith.addf %80, %79 : vector<160x64xf32>
    %82 = arith.divf %80, %81 : vector<160x64xf32>
    %83 = vector.shape_cast %82 : vector<160x64xf32> to vector<10x16x64xf32>
    %c1_i32_52 = arith.constant 1 : i32
    %84 = arith.addi %1, %c1_i32_52 : i32
    %c0_53 = arith.constant 0 : index
    %85 = arith.index_cast %84 : i32 to index
    %c1_54 = arith.constant 1 : index
    %c32 = arith.constant 32 : index
    %86 = vector.load %arg2[%c0_53, %85, %c1_54, %c32] : memref<1x20x18x64xf32, #tpu.memory_space<vmem>>, vector<1x10x16x32xf32>
    %87 = vector.shape_cast %86 : vector<1x10x16x32xf32> to vector<10x16x32xf32>
    %88 = vector.extract_strided_slice %83 {offsets = [0, 0, 32], sizes = [10, 16, 32], strides = [1, 1, 1]} : vector<10x16x64xf32> to vector<10x16x32xf32>
    %89 = arith.mulf %88, %87 : vector<10x16x32xf32>
    %cst_55 = arith.constant 0.000000e+00 : f32
    %90 = vector.broadcast %cst_55 : f32 to vector<10x1x32xf32>
    %c0_56 = arith.constant 0 : index
    %c0_57 = arith.constant 0 : index
    %c0_58 = arith.constant 0 : index
    %91 = vector.load %arg9[%c0_56, %c0_57, %c0_58] : memref<10x18x32xf32, #tpu.memory_space<vmem>>, vector<10x1x32xf32>
    tpu.vector_store %arg9[%c0_56, %c0_57, %c0_58], %90 {strides = array<i32>} : memref<10x18x32xf32, #tpu.memory_space<vmem>>, vector<10x1x32xf32>,
    %cst_59 = arith.constant 0.000000e+00 : f32
    %92 = vector.broadcast %cst_59 : f32 to vector<10x1x32xf32>
    %c0_60 = arith.constant 0 : index
    %c17 = arith.constant 17 : index
    %c0_61 = arith.constant 0 : index
    %93 = vector.load %arg9[%c0_60, %c17, %c0_61] : memref<10x18x32xf32, #tpu.memory_space<vmem>>, vector<10x1x32xf32>
    tpu.vector_store %arg9[%c0_60, %c17, %c0_61], %92 {strides = array<i32>} : memref<10x18x32xf32, #tpu.memory_space<vmem>>, vector<10x1x32xf32>,
    %c0_62 = arith.constant 0 : index
    %c1_63 = arith.constant 1 : index
    %c0_64 = arith.constant 0 : index
    %94 = vector.load %arg9[%c0_62, %c1_63, %c0_64] : memref<10x18x32xf32, #tpu.memory_space<vmem>>, vector<10x16x32xf32>
    tpu.vector_store %arg9[%c0_62, %c1_63, %c0_64], %89 {strides = array<i32>} : memref<10x18x32xf32, #tpu.memory_space<vmem>>, vector<10x16x32xf32>,
    %cst_65 = arith.constant 0.000000e+00 : f32
    %95 = vector.broadcast %cst_65 : f32 to vector<128x32xf32>
    %c1_i32_66 = arith.constant 1 : i32
    %96 = arith.addi %1, %c1_i32_66 : i32
    %c0_i32_67 = arith.constant 0 : i32
    %97 = arith.addi %96, %c0_i32_67 : i32
    %c0_68 = arith.constant 0 : index
    %98 = arith.index_cast %97 : i32 to index
    %c0_69 = arith.constant 0 : index
    %c0_70 = arith.constant 0 : index
    %99 = vector.load %arg2[%c0_68, %98, %c0_69, %c0_70] : memref<1x20x18x64xf32, #tpu.memory_space<vmem>>, vector<1x8x16x32xf32>
    %100 = vector.shape_cast %99 : vector<1x8x16x32xf32> to vector<8x16x32xf32>
    %101 = vector.shape_cast %100 : vector<8x16x32xf32> to vector<128x32xf32>
    %c0_71 = arith.constant 0 : index
    %c0_72 = arith.constant 0 : index
    %102 = vector.load %arg4[%c0_71, %c0_72] : memref<288x32xf32, #tpu.memory_space<vmem>>, vector<32x32xf32>
    %cst_73 = arith.constant dense<0.000000e+00> : vector<128x32xf32>
    %103 = tpu.matmul %101, %102, %cst_73 {dimension_numbers = #tpu.dot_dimension_numbers<[1], [0], [0], [1], [0, 0, 1, 1], [], []>} : vector<128x32xf32>, vector<32x32xf32>, vector<128x32xf32> -> vector<128x32xf32>
    %104 = arith.addf %95, %103 : vector<128x32xf32>
    %c0_74 = arith.constant 0 : index
    %c0_75 = arith.constant 0 : index
    %c0_76 = arith.constant 0 : index
    %105 = vector.load %arg9[%c0_74, %c0_75, %c0_76] : memref<10x18x32xf32, #tpu.memory_space<vmem>>, vector<8x16x32xf32>
    %106 = vector.shape_cast %105 : vector<8x16x32xf32> to vector<128x32xf32>
    %c0_77 = arith.constant 0 : index
    %c0_78 = arith.constant 0 : index
    %107 = vector.load %arg5[%c0_77, %c0_78] : memref<288x32xf32, #tpu.memory_space<vmem>>, vector<32x32xf32>
    %cst_79 = arith.constant dense<0.000000e+00> : vector<128x32xf32>
    %108 = tpu.matmul %106, %107, %cst_79 {dimension_numbers = #tpu.dot_dimension_numbers<[1], [0], [0], [1], [0, 0, 1, 1], [], []>} : vector<128x32xf32>, vector<32x32xf32>, vector<128x32xf32> -> vector<128x32xf32>
    %109 = arith.addf %104, %108 : vector<128x32xf32>
    %c1_i32_80 = arith.constant 1 : i32
    %110 = arith.addi %1, %c1_i32_80 : i32
    %c0_i32_81 = arith.constant 0 : i32
    %111 = arith.addi %110, %c0_i32_81 : i32
    %c0_82 = arith.constant 0 : index
    %112 = arith.index_cast %111 : i32 to index
    %c1_83 = arith.constant 1 : index
    %c0_84 = arith.constant 0 : index
    %113 = vector.load %arg2[%c0_82, %112, %c1_83, %c0_84] : memref<1x20x18x64xf32, #tpu.memory_space<vmem>>, vector<1x8x16x32xf32>
    %114 = vector.shape_cast %113 : vector<1x8x16x32xf32> to vector<8x16x32xf32>
    %115 = vector.shape_cast %114 : vector<8x16x32xf32> to vector<128x32xf32>
    %c32_85 = arith.constant 32 : index
    %c0_86 = arith.constant 0 : index
    %116 = vector.load %arg4[%c32_85, %c0_86] : memref<288x32xf32, #tpu.memory_space<vmem>>, vector<32x32xf32>
    %cst_87 = arith.constant dense<0.000000e+00> : vector<128x32xf32>
    %117 = tpu.matmul %115, %116, %cst_87 {dimension_numbers = #tpu.dot_dimension_numbers<[1], [0], [0], [1], [0, 0, 1, 1], [], []>} : vector<128x32xf32>, vector<32x32xf32>, vector<128x32xf32> -> vector<128x32xf32>
    %118 = arith.addf %109, %117 : vector<128x32xf32>
    %c0_88 = arith.constant 0 : index
    %c1_89 = arith.constant 1 : index
    %c0_90 = arith.constant 0 : index
    %119 = vector.load %arg9[%c0_88, %c1_89, %c0_90] : memref<10x18x32xf32, #tpu.memory_space<vmem>>, vector<8x16x32xf32>
    %120 = vector.shape_cast %119 : vector<8x16x32xf32> to vector<128x32xf32>
    %c32_91 = arith.constant 32 : index
    %c0_92 = arith.constant 0 : index
    %121 = vector.load %arg5[%c32_91, %c0_92] : memref<288x32xf32, #tpu.memory_space<vmem>>, vector<32x32xf32>
    %cst_93 = arith.constant dense<0.000000e+00> : vector<128x32xf32>
    %122 = tpu.matmul %120, %121, %cst_93 {dimension_numbers = #tpu.dot_dimension_numbers<[1], [0], [0], [1], [0, 0, 1, 1], [], []>} : vector<128x32xf32>, vector<32x32xf32>, vector<128x32xf32> -> vector<128x32xf32>
    %123 = arith.addf %118, %122 : vector<128x32xf32>
    %c1_i32_94 = arith.constant 1 : i32
    %124 = arith.addi %1, %c1_i32_94 : i32
    %c0_i32_95 = arith.constant 0 : i32
    %125 = arith.addi %124, %c0_i32_95 : i32
    %c0_96 = arith.constant 0 : index
    %126 = arith.index_cast %125 : i32 to index
    %c2_97 = arith.constant 2 : index
    %c0_98 = arith.constant 0 : index
    %127 = vector.load %arg2[%c0_96, %126, %c2_97, %c0_98] : memref<1x20x18x64xf32, #tpu.memory_space<vmem>>, vector<1x8x16x32xf32>
    %128 = vector.shape_cast %127 : vector<1x8x16x32xf32> to vector<8x16x32xf32>
    %129 = vector.shape_cast %128 : vector<8x16x32xf32> to vector<128x32xf32>
    %c64_99 = arith.constant 64 : index
    %c0_100 = arith.constant 0 : index
    %130 = vector.load %arg4[%c64_99, %c0_100] : memref<288x32xf32, #tpu.memory_space<vmem>>, vector<32x32xf32>
    %cst_101 = arith.constant dense<0.000000e+00> : vector<128x32xf32>
    %131 = tpu.matmul %129, %130, %cst_101 {dimension_numbers = #tpu.dot_dimension_numbers<[1], [0], [0], [1], [0, 0, 1, 1], [], []>} : vector<128x32xf32>, vector<32x32xf32>, vector<128x32xf32> -> vector<128x32xf32>
    %132 = arith.addf %123, %131 : vector<128x32xf32>
    %c0_102 = arith.constant 0 : index
    %c2_103 = arith.constant 2 : index
    %c0_104 = arith.constant 0 : index
    %133 = vector.load %arg9[%c0_102, %c2_103, %c0_104] : memref<10x18x32xf32, #tpu.memory_space<vmem>>, vector<8x16x32xf32>
    %134 = vector.shape_cast %133 : vector<8x16x32xf32> to vector<128x32xf32>
    %c64_105 = arith.constant 64 : index
    %c0_106 = arith.constant 0 : index
    %135 = vector.load %arg5[%c64_105, %c0_106] : memref<288x32xf32, #tpu.memory_space<vmem>>, vector<32x32xf32>
    %cst_107 = arith.constant dense<0.000000e+00> : vector<128x32xf32>
    %136 = tpu.matmul %134, %135, %cst_107 {dimension_numbers = #tpu.dot_dimension_numbers<[1], [0], [0], [1], [0, 0, 1, 1], [], []>} : vector<128x32xf32>, vector<32x32xf32>, vector<128x32xf32> -> vector<128x32xf32>
    %137 = arith.addf %132, %136 : vector<128x32xf32>
    %c1_i32_108 = arith.constant 1 : i32
    %138 = arith.addi %1, %c1_i32_108 : i32
    %c1_i32_109 = arith.constant 1 : i32
    %139 = arith.addi %138, %c1_i32_109 : i32
    %c0_110 = arith.constant 0 : index
    %140 = arith.index_cast %139 : i32 to index
    %c0_111 = arith.constant 0 : index
    %c0_112 = arith.constant 0 : index
    %141 = vector.load %arg2[%c0_110, %140, %c0_111, %c0_112] : memref<1x20x18x64xf32, #tpu.memory_space<vmem>>, vector<1x8x16x32xf32>
    %142 = vector.shape_cast %141 : vector<1x8x16x32xf32> to vector<8x16x32xf32>
    %143 = vector.shape_cast %142 : vector<8x16x32xf32> to vector<128x32xf32>
    %c96 = arith.constant 96 : index
    %c0_113 = arith.constant 0 : index
    %144 = vector.load %arg4[%c96, %c0_113] : memref<288x32xf32, #tpu.memory_space<vmem>>, vector<32x32xf32>
    %cst_114 = arith.constant dense<0.000000e+00> : vector<128x32xf32>
    %145 = tpu.matmul %143, %144, %cst_114 {dimension_numbers = #tpu.dot_dimension_numbers<[1], [0], [0], [1], [0, 0, 1, 1], [], []>} : vector<128x32xf32>, vector<32x32xf32>, vector<128x32xf32> -> vector<128x32xf32>
    %146 = arith.addf %137, %145 : vector<128x32xf32>
    %c1_115 = arith.constant 1 : index
    %c0_116 = arith.constant 0 : index
    %c0_117 = arith.constant 0 : index
    %147 = vector.load %arg9[%c1_115, %c0_116, %c0_117] : memref<10x18x32xf32, #tpu.memory_space<vmem>>, vector<8x16x32xf32>
    %148 = vector.shape_cast %147 : vector<8x16x32xf32> to vector<128x32xf32>
    %c96_118 = arith.constant 96 : index
    %c0_119 = arith.constant 0 : index
    %149 = vector.load %arg5[%c96_118, %c0_119] : memref<288x32xf32, #tpu.memory_space<vmem>>, vector<32x32xf32>
    %cst_120 = arith.constant dense<0.000000e+00> : vector<128x32xf32>
    %150 = tpu.matmul %148, %149, %cst_120 {dimension_numbers = #tpu.dot_dimension_numbers<[1], [0], [0], [1], [0, 0, 1, 1], [], []>} : vector<128x32xf32>, vector<32x32xf32>, vector<128x32xf32> -> vector<128x32xf32>
    %151 = arith.addf %146, %150 : vector<128x32xf32>
    %c1_i32_121 = arith.constant 1 : i32
    %152 = arith.addi %1, %c1_i32_121 : i32
    %c1_i32_122 = arith.constant 1 : i32
    %153 = arith.addi %152, %c1_i32_122 : i32
    %c0_123 = arith.constant 0 : index
    %154 = arith.index_cast %153 : i32 to index
    %c1_124 = arith.constant 1 : index
    %c0_125 = arith.constant 0 : index
    %155 = vector.load %arg2[%c0_123, %154, %c1_124, %c0_125] : memref<1x20x18x64xf32, #tpu.memory_space<vmem>>, vector<1x8x16x32xf32>
    %156 = vector.shape_cast %155 : vector<1x8x16x32xf32> to vector<8x16x32xf32>
    %157 = vector.shape_cast %156 : vector<8x16x32xf32> to vector<128x32xf32>
    %c128_126 = arith.constant 128 : index
    %c0_127 = arith.constant 0 : index
    %158 = vector.load %arg4[%c128_126, %c0_127] : memref<288x32xf32, #tpu.memory_space<vmem>>, vector<32x32xf32>
    %cst_128 = arith.constant dense<0.000000e+00> : vector<128x32xf32>
    %159 = tpu.matmul %157, %158, %cst_128 {dimension_numbers = #tpu.dot_dimension_numbers<[1], [0], [0], [1], [0, 0, 1, 1], [], []>} : vector<128x32xf32>, vector<32x32xf32>, vector<128x32xf32> -> vector<128x32xf32>
    %160 = arith.addf %151, %159 : vector<128x32xf32>
    %c1_129 = arith.constant 1 : index
    %c1_130 = arith.constant 1 : index
    %c0_131 = arith.constant 0 : index
    %161 = vector.load %arg9[%c1_129, %c1_130, %c0_131] : memref<10x18x32xf32, #tpu.memory_space<vmem>>, vector<8x16x32xf32>
    %162 = vector.shape_cast %161 : vector<8x16x32xf32> to vector<128x32xf32>
    %c128_132 = arith.constant 128 : index
    %c0_133 = arith.constant 0 : index
    %163 = vector.load %arg5[%c128_132, %c0_133] : memref<288x32xf32, #tpu.memory_space<vmem>>, vector<32x32xf32>
    %cst_134 = arith.constant dense<0.000000e+00> : vector<128x32xf32>
    %164 = tpu.matmul %162, %163, %cst_134 {dimension_numbers = #tpu.dot_dimension_numbers<[1], [0], [0], [1], [0, 0, 1, 1], [], []>} : vector<128x32xf32>, vector<32x32xf32>, vector<128x32xf32> -> vector<128x32xf32>
    %165 = arith.addf %160, %164 : vector<128x32xf32>
    %c1_i32_135 = arith.constant 1 : i32
    %166 = arith.addi %1, %c1_i32_135 : i32
    %c1_i32_136 = arith.constant 1 : i32
    %167 = arith.addi %166, %c1_i32_136 : i32
    %c0_137 = arith.constant 0 : index
    %168 = arith.index_cast %167 : i32 to index
    %c2_138 = arith.constant 2 : index
    %c0_139 = arith.constant 0 : index
    %169 = vector.load %arg2[%c0_137, %168, %c2_138, %c0_139] : memref<1x20x18x64xf32, #tpu.memory_space<vmem>>, vector<1x8x16x32xf32>
    %170 = vector.shape_cast %169 : vector<1x8x16x32xf32> to vector<8x16x32xf32>
    %171 = vector.shape_cast %170 : vector<8x16x32xf32> to vector<128x32xf32>
    %c160 = arith.constant 160 : index
    %c0_140 = arith.constant 0 : index
    %172 = vector.load %arg4[%c160, %c0_140] : memref<288x32xf32, #tpu.memory_space<vmem>>, vector<32x32xf32>
    %cst_141 = arith.constant dense<0.000000e+00> : vector<128x32xf32>
    %173 = tpu.matmul %171, %172, %cst_141 {dimension_numbers = #tpu.dot_dimension_numbers<[1], [0], [0], [1], [0, 0, 1, 1], [], []>} : vector<128x32xf32>, vector<32x32xf32>, vector<128x32xf32> -> vector<128x32xf32>
    %174 = arith.addf %165, %173 : vector<128x32xf32>
    %c1_142 = arith.constant 1 : index
    %c2_143 = arith.constant 2 : index
    %c0_144 = arith.constant 0 : index
    %175 = vector.load %arg9[%c1_142, %c2_143, %c0_144] : memref<10x18x32xf32, #tpu.memory_space<vmem>>, vector<8x16x32xf32>
    %176 = vector.shape_cast %175 : vector<8x16x32xf32> to vector<128x32xf32>
    %c160_145 = arith.constant 160 : index
    %c0_146 = arith.constant 0 : index
    %177 = vector.load %arg5[%c160_145, %c0_146] : memref<288x32xf32, #tpu.memory_space<vmem>>, vector<32x32xf32>
    %cst_147 = arith.constant dense<0.000000e+00> : vector<128x32xf32>
    %178 = tpu.matmul %176, %177, %cst_147 {dimension_numbers = #tpu.dot_dimension_numbers<[1], [0], [0], [1], [0, 0, 1, 1], [], []>} : vector<128x32xf32>, vector<32x32xf32>, vector<128x32xf32> -> vector<128x32xf32>
    %179 = arith.addf %174, %178 : vector<128x32xf32>
    %c1_i32_148 = arith.constant 1 : i32
    %180 = arith.addi %1, %c1_i32_148 : i32
    %c2_i32_149 = arith.constant 2 : i32
    %181 = arith.addi %180, %c2_i32_149 : i32
    %c0_150 = arith.constant 0 : index
    %182 = arith.index_cast %181 : i32 to index
    %c0_151 = arith.constant 0 : index
    %c0_152 = arith.constant 0 : index
    %183 = vector.load %arg2[%c0_150, %182, %c0_151, %c0_152] : memref<1x20x18x64xf32, #tpu.memory_space<vmem>>, vector<1x8x16x32xf32>
    %184 = vector.shape_cast %183 : vector<1x8x16x32xf32> to vector<8x16x32xf32>
    %185 = vector.shape_cast %184 : vector<8x16x32xf32> to vector<128x32xf32>
    %c192_153 = arith.constant 192 : index
    %c0_154 = arith.constant 0 : index
    %186 = vector.load %arg4[%c192_153, %c0_154] : memref<288x32xf32, #tpu.memory_space<vmem>>, vector<32x32xf32>
    %cst_155 = arith.constant dense<0.000000e+00> : vector<128x32xf32>
    %187 = tpu.matmul %185, %186, %cst_155 {dimension_numbers = #tpu.dot_dimension_numbers<[1], [0], [0], [1], [0, 0, 1, 1], [], []>} : vector<128x32xf32>, vector<32x32xf32>, vector<128x32xf32> -> vector<128x32xf32>
    %188 = arith.addf %179, %187 : vector<128x32xf32>
    %c2_156 = arith.constant 2 : index
    %c0_157 = arith.constant 0 : index
    %c0_158 = arith.constant 0 : index
    %189 = vector.load %arg9[%c2_156, %c0_157, %c0_158] : memref<10x18x32xf32, #tpu.memory_space<vmem>>, vector<8x16x32xf32>
    %190 = vector.shape_cast %189 : vector<8x16x32xf32> to vector<128x32xf32>
    %c192_159 = arith.constant 192 : index
    %c0_160 = arith.constant 0 : index
    %191 = vector.load %arg5[%c192_159, %c0_160] : memref<288x32xf32, #tpu.memory_space<vmem>>, vector<32x32xf32>
    %cst_161 = arith.constant dense<0.000000e+00> : vector<128x32xf32>
    %192 = tpu.matmul %190, %191, %cst_161 {dimension_numbers = #tpu.dot_dimension_numbers<[1], [0], [0], [1], [0, 0, 1, 1], [], []>} : vector<128x32xf32>, vector<32x32xf32>, vector<128x32xf32> -> vector<128x32xf32>
    %193 = arith.addf %188, %192 : vector<128x32xf32>
    %c1_i32_162 = arith.constant 1 : i32
    %194 = arith.addi %1, %c1_i32_162 : i32
    %c2_i32_163 = arith.constant 2 : i32
    %195 = arith.addi %194, %c2_i32_163 : i32
    %c0_164 = arith.constant 0 : index
    %196 = arith.index_cast %195 : i32 to index
    %c1_165 = arith.constant 1 : index
    %c0_166 = arith.constant 0 : index
    %197 = vector.load %arg2[%c0_164, %196, %c1_165, %c0_166] : memref<1x20x18x64xf32, #tpu.memory_space<vmem>>, vector<1x8x16x32xf32>
    %198 = vector.shape_cast %197 : vector<1x8x16x32xf32> to vector<8x16x32xf32>
    %199 = vector.shape_cast %198 : vector<8x16x32xf32> to vector<128x32xf32>
    %c224 = arith.constant 224 : index
    %c0_167 = arith.constant 0 : index
    %200 = vector.load %arg4[%c224, %c0_167] : memref<288x32xf32, #tpu.memory_space<vmem>>, vector<32x32xf32>
    %cst_168 = arith.constant dense<0.000000e+00> : vector<128x32xf32>
    %201 = tpu.matmul %199, %200, %cst_168 {dimension_numbers = #tpu.dot_dimension_numbers<[1], [0], [0], [1], [0, 0, 1, 1], [], []>} : vector<128x32xf32>, vector<32x32xf32>, vector<128x32xf32> -> vector<128x32xf32>
    %202 = arith.addf %193, %201 : vector<128x32xf32>
    %c2_169 = arith.constant 2 : index
    %c1_170 = arith.constant 1 : index
    %c0_171 = arith.constant 0 : index
    %203 = vector.load %arg9[%c2_169, %c1_170, %c0_171] : memref<10x18x32xf32, #tpu.memory_space<vmem>>, vector<8x16x32xf32>
    %204 = vector.shape_cast %203 : vector<8x16x32xf32> to vector<128x32xf32>
    %c224_172 = arith.constant 224 : index
    %c0_173 = arith.constant 0 : index
    %205 = vector.load %arg5[%c224_172, %c0_173] : memref<288x32xf32, #tpu.memory_space<vmem>>, vector<32x32xf32>
    %cst_174 = arith.constant dense<0.000000e+00> : vector<128x32xf32>
    %206 = tpu.matmul %204, %205, %cst_174 {dimension_numbers = #tpu.dot_dimension_numbers<[1], [0], [0], [1], [0, 0, 1, 1], [], []>} : vector<128x32xf32>, vector<32x32xf32>, vector<128x32xf32> -> vector<128x32xf32>
    %207 = arith.addf %202, %206 : vector<128x32xf32>
    %c1_i32_175 = arith.constant 1 : i32
    %208 = arith.addi %1, %c1_i32_175 : i32
    %c2_i32_176 = arith.constant 2 : i32
    %209 = arith.addi %208, %c2_i32_176 : i32
    %c0_177 = arith.constant 0 : index
    %210 = arith.index_cast %209 : i32 to index
    %c2_178 = arith.constant 2 : index
    %c0_179 = arith.constant 0 : index
    %211 = vector.load %arg2[%c0_177, %210, %c2_178, %c0_179] : memref<1x20x18x64xf32, #tpu.memory_space<vmem>>, vector<1x8x16x32xf32>
    %212 = vector.shape_cast %211 : vector<1x8x16x32xf32> to vector<8x16x32xf32>
    %213 = vector.shape_cast %212 : vector<8x16x32xf32> to vector<128x32xf32>
    %c256_180 = arith.constant 256 : index
    %c0_181 = arith.constant 0 : index
    %214 = vector.load %arg4[%c256_180, %c0_181] : memref<288x32xf32, #tpu.memory_space<vmem>>, vector<32x32xf32>
    %cst_182 = arith.constant dense<0.000000e+00> : vector<128x32xf32>
    %215 = tpu.matmul %213, %214, %cst_182 {dimension_numbers = #tpu.dot_dimension_numbers<[1], [0], [0], [1], [0, 0, 1, 1], [], []>} : vector<128x32xf32>, vector<32x32xf32>, vector<128x32xf32> -> vector<128x32xf32>
    %216 = arith.addf %207, %215 : vector<128x32xf32>
    %c2_183 = arith.constant 2 : index
    %c2_184 = arith.constant 2 : index
    %c0_185 = arith.constant 0 : index
    %217 = vector.load %arg9[%c2_183, %c2_184, %c0_185] : memref<10x18x32xf32, #tpu.memory_space<vmem>>, vector<8x16x32xf32>
    %218 = vector.shape_cast %217 : vector<8x16x32xf32> to vector<128x32xf32>
    %c256_186 = arith.constant 256 : index
    %c0_187 = arith.constant 0 : index
    %219 = vector.load %arg5[%c256_186, %c0_187] : memref<288x32xf32, #tpu.memory_space<vmem>>, vector<32x32xf32>
    %cst_188 = arith.constant dense<0.000000e+00> : vector<128x32xf32>
    %220 = tpu.matmul %218, %219, %cst_188 {dimension_numbers = #tpu.dot_dimension_numbers<[1], [0], [0], [1], [0, 0, 1, 1], [], []>} : vector<128x32xf32>, vector<32x32xf32>, vector<128x32xf32> -> vector<128x32xf32>
    %221 = arith.addf %216, %220 : vector<128x32xf32>
    %c0_189 = arith.constant 0 : index
    %c0_190 = arith.constant 0 : index
    %222 = vector.load %arg7[%c0_189, %c0_190] : memref<1x32xf32, #tpu.memory_space<vmem>>, vector<1x32xf32>
    %223 = vector.broadcast %222 : vector<1x32xf32> to vector<128x32xf32>
    %224 = arith.addf %221, %223 : vector<128x32xf32>
    %225 = math.tanh %224 : vector<128x32xf32>
    %226 = vector.shape_cast %225 : vector<128x32xf32> to vector<8x16x32xf32>
    %227 = vector.extract_strided_slice %83 {offsets = [1, 0, 0], sizes = [8, 16, 32], strides = [1, 1, 1]} : vector<10x16x64xf32> to vector<8x16x32xf32>
    %228 = vector.extract_strided_slice %87 {offsets = [1, 0, 0], sizes = [8, 16, 32], strides = [1, 1, 1]} : vector<10x16x32xf32> to vector<8x16x32xf32>
    %cst_191 = arith.constant 1.000000e+00 : f32
    %229 = vector.broadcast %cst_191 : f32 to vector<8x16x32xf32>
    %230 = arith.subf %229, %227 : vector<8x16x32xf32>
    %231 = arith.mulf %230, %228 : vector<8x16x32xf32>
    %232 = arith.mulf %227, %226 : vector<8x16x32xf32>
    %233 = arith.addf %231, %232 : vector<8x16x32xf32>
    %234 = vector.shape_cast %233 : vector<8x16x32xf32> to vector<8x512xf32>
    %c0_192 = arith.constant 0 : index
    %c0_193 = arith.constant 0 : index
    %c0_194 = arith.constant 0 : index
    %235 = vector.load %arg8[%c0_192, %c0_193, %c0_194] : memref<1x8x512xf32, #tpu.memory_space<vmem>>, vector<1x8x512xf32>
    %236 = vector.shape_cast %235 : vector<1x8x512xf32> to vector<8x512xf32>
    %237 = vector.shape_cast %234 : vector<8x512xf32> to vector<1x8x512xf32>
    tpu.vector_store %arg8[%c0_192, %c0_193, %c0_194], %237 {strides = array<i32>} : memref<1x8x512xf32, #tpu.memory_space<vmem>>, vector<1x8x512xf32>,
    return
  }
  func.func @transform_0(%arg0: i32, %arg1: i32) -> (i32, i32, i32, i32) {
    %c0_i32 = arith.constant 0 : i32
    %c0_i32_0 = arith.constant 0 : i32
    %c0_i32_1 = arith.constant 0 : i32
    %c0_i32_2 = arith.constant 0 : i32
    return %arg0, %c0_i32, %c0_i32_0, %c0_i32_1 : i32, i32, i32, i32
  }
  func.func @transform_1(%arg0: i32, %arg1: i32) -> (i32, i32) {
    %c0_i32 = arith.constant 0 : i32
    %c0_i32_0 = arith.constant 0 : i32
    %c0_i32_1 = arith.constant 0 : i32
    return %c0_i32, %c0_i32_0 : i32, i32
  }
  func.func @transform_2(%arg0: i32, %arg1: i32) -> (i32, i32) {
    %c0_i32 = arith.constant 0 : i32
    %c0_i32_0 = arith.constant 0 : i32
    %c0_i32_1 = arith.constant 0 : i32
    return %c0_i32, %c0_i32_0 : i32, i32
  }
  func.func @transform_3(%arg0: i32, %arg1: i32) -> (i32, i32) {
    %c0_i32 = arith.constant 0 : i32
    %c0_i32_0 = arith.constant 0 : i32
    %c0_i32_1 = arith.constant 0 : i32
    return %c0_i32, %c0_i32_0 : i32, i32
  }
  func.func @transform_4(%arg0: i32, %arg1: i32) -> (i32, i32) {
    %c0_i32 = arith.constant 0 : i32
    %c0_i32_0 = arith.constant 0 : i32
    %c0_i32_1 = arith.constant 0 : i32
    return %c0_i32, %c0_i32_0 : i32, i32
  }
  func.func @transform_5(%arg0: i32, %arg1: i32) -> (i32, i32) {
    %c0_i32 = arith.constant 0 : i32
    %c0_i32_0 = arith.constant 0 : i32
    %c0_i32_1 = arith.constant 0 : i32
    return %c0_i32, %c0_i32_0 : i32, i32
  }
  func.func @transform_6(%arg0: i32, %arg1: i32) -> (i32, i32, i32) {
    %c0_i32 = arith.constant 0 : i32
    %c0_i32_0 = arith.constant 0 : i32
    return %arg0, %arg1, %c0_i32 : i32, i32, i32
  }
}

</mosaic_0001>

<bundles_post_ra>
// kernel: tpu_custom_call.1
= control target key start
LH: loop header
LB: loop body
LE: loop exit
PB: predicated region body
PF: predicated region fallthrough
CT: control target
= control target key end

     0   :  { %11 = vsyncpa [#allocation4], 0  ;;  %s13303_s0 = inlined_call_operand.vmem [shape: f32[2,20,18,64], index: 0, kind: input, shape index: {}]   ;;  %s13304_s1 = inlined_call_operand.vmem [shape: f32[576,64], index: 1, kind: input, shape index: {}]   ;;  %s13305_s2 = inlined_call_operand.vmem [shape: f32[288,32], index: 2, kind: input, shape index: {}]   ;;  %s13306_s3 = inlined_call_operand.vmem [shape: f32[288,32], index: 3, kind: input, shape index: {}]   ;;  %s13307_s4 = inlined_call_operand.vmem [shape: f32[1,64], index: 4, kind: input, shape index: {}]   ;;  %s13308_s5 = inlined_call_operand.vmem [shape: f32[1,32], index: 5, kind: input, shape index: {}]   ;;  %s13309_s6 = inlined_call_operand.hbm [shape: f32[2,16,512], index: 6, kind: output, shape index: {}]  }
   0x1   :  { %13 = vsyncpa [#allocation4 + $0x1], 0  ;;  %s10398_s21 = smov 0   ;;  %s10400_s22 = smov 0  }
   0x2   :  { %s10402_s23 = smov 0   ;;  %s10404_s24 = smov 0  }
   0x3   :  { %s10406_s25 = smov 0   ;;  %s10408_s26 = smov 0  }
   0x4   :  { %s10410_s27 = smov 0   ;;  %s10412_s28 = smov 0  }
   0x5 LB: > { %s7667_s29 = sadd.s32 4294967295, %s10354_s28   ;;  %s7668_s30 = sadd.s32 4294967294, %s10354_s28   ;;  %s10354_s28 = sphi %s10412_s28, %s19_s28   ;;  %s10350_s27 = sphi %s10410_s27, %s13583_s27   ;;  %s10346_s26 = sphi %s10408_s26, %s13582_s26   ;;  %s10342_s25 = sphi %s10406_s25, %s13581_s25   ;;  %s10338_s24 = sphi %s10404_s24, %s13580_s24   ;;  %s10334_s23 = sphi %s10402_s23, %s13579_s23   ;;  %s10330_s22 = sphi %s10400_s22, %s13578_s22   ;;  %s10326_s21 = sphi %s10398_s21, %s13577_s21  }
   0x6   : > { %s28_s7 = sadd.s32 1, %s10346_s26  ;;  %s31_s8 = sadd.s32 1, %s10350_s27 }
   0x7   : > { %p29_p0 = scmp.ge.s32.totalorder %s28_s7, 2  ;;  %p181_p1 = scmp.ne.s32.totalorder %s10334_s23, %s10330_s22 }
   0x8   : > { %p182_p2 = scmp.eq.s32.totalorder %s7667_s29, 3  ;;  %p187_p5 = scmp.ne.s32.totalorder %s10330_s22, %s10326_s21 }
   0x9   : > { %s13585_s7 = smov (%p29_p0, %s28_s7), 0  ;;  %s13587_s8 = smov (!%p29_p0, %s31_s8), %s10350_s27 }
   0xa   : > { %s167_s9 = ssub.s32 %s10346_s26, %s13585_s7  ;;  %p10449_p3 = por %p182_p2, %p181_p1 }
   0xb   : > { %p33_p4 = scmp.ge.s32.totalorder %s13587_s8, 2  ;;  %p188_p6 = scmp.eq.s32.totalorder %s7668_s30, 3 }
   0xc   : > { %p7671_p7 = scmp.ge.s32.totalorder %s10354_s28, 1  ;;  %p229_p9 = scmp.lt.s32.totalorder %s10354_s28, 5 }
   0xd   : > { %s13589_s8 = smov (%p33_p4, %s13587_s8), 0  ;;  %p10458_p8 = por %p188_p6, %p187_p5 }
   0xe   : > { %13366 = sst [smem:[#allocation6_spill]] %s13589_s8  ;;  %s166_s12 = ssub.s32 %s10350_s27, %s13589_s8 }
   0xf   : > { %s171_s13 = sadd.s32 1, %s10334_s23  ;;  %s168_s14 = sor.u32 %s167_s9, %s166_s12 }
  0x10   : > { %p230_p10 = pnand %p7671_p7, %p229_p9  ;;  %p169_p11 = scmp.eq.s32.totalorder %s168_s14, 0 }
  0x12   : > { %s10467_s15 = scalar_select %p169_p11, %s10334_s23, %s171_s13  }
  0x13   : > { %233 = sbr.rel (%p230_p10) target bundleno = 1254 (0x4e6), region = 44 }
  0x18   : > { %v322_v0 = vld [vmem:[%s13304_s1 + $0x78] sm:$0xff]  ;;  %v321_v2 = vld [vmem:[%s13304_s1 + $0x70] sm:$0xff]  ;;  %p259_p12 = scmp.lt.s32.totalorder %s10342_s25, 1  ;;  %v320_v4 = vld [vmem:[%s13304_s1 + $0x68] sm:$0xff]  ;;  %s7675_s16 = smul.u32 192, %s10338_s24  ;;  %vm323_vm0 = vcmask 523264  }
  0x19   : > { %v294_v1 = vld [vmem:[%s13304_s1 + $0x38] sm:$0xff]  ;;  %9054 = vmatprep.subr.mxu0 %v322_v0  ;;  %v293_v3 = vld [vmem:[%s13304_s1 + $0x30] sm:$0xff]  ;;  %v292_v5 = vld [vmem:[%s13304_s1 + $0x28] sm:$0xff]  ;;  %vm2858_vm1 = vcmask 253952   ;;  %vm2959_vm2 = vcmask 261120   ;;  %s10361_s29 = smov 64  }
  0x1a   : > { %9100 = vmatprep.subr.mxu1 %v294_v1  ;;  %9055 = vmatpush3.msra.mxu0 %v322_v0  ;;  %s260_s17 = scalar_select %p259_p12, %s10342_s25, 1  ;;  %v319_v6 = vld [vmem:[%s13304_s1 + $0x60] sm:$0xff]  ;;  %v318_v8 = vld [vmem:[%s13304_s1 + $0x58] sm:$0xff]  ;;  %v317_v10 = vld [vmem:[%s13304_s1 + $0x50] sm:$0xff]  ;;  %vm7548_vm3 = vcmask 785408  }
  0x1b   : > { %9101 = vmatpush3.msra.mxu1 %v294_v1  ;;  %9056 = vmatprep.subr.mxu0 %v321_v2  ;;  %v291_v7 = vld [vmem:[%s13304_s1 + $0x20] sm:$0xff]  ;;  %v290_v9 = vld [vmem:[%s13304_s1 + $0x18] sm:$0xff]  ;;  %v289_v11 = vld [vmem:[%s13304_s1 + $0x10] sm:$0xff]  ;;  %s8437_s9 = sshll.u32 %s10338_s24, 2  ;;  %s8438_s12 = sshll.u32 %s10342_s25, 3 }
  0x1c   : > { %9102 = vmatprep.subr.mxu1 %v293_v3  ;;  %9057 = vmatpush3.msra.mxu0 %v321_v2  ;;  %s10052_s30 = smul.u32 480, %s260_s17  ;;  %v316_v12 = vld [vmem:[%s13304_s1 + $0x48] sm:$0xff]  ;;  %v315_v14 = vld [vmem:[%s13304_s1 + $0x40] sm:$0xff]  ;;  %v801_v20 = vld [vmem:[%s13304_s1 + $0xb8] sm:$0xff]  ;;  %s10360_s17 = smov 32  }
  0x1d   : > { %9103 = vmatpush3.msra.mxu1 %v293_v3  ;;  %9058 = vmatprep.subr.mxu0 %v320_v4  ;;  %v288_v13 = vld [vmem:[%s13304_s1 + $0x8] sm:$0xff]  ;;  %v287_v15 = vld [vmem:[%s13304_s1] sm:$0xff]  ;;  %v800_v23 = vld [vmem:[%s13304_s1 + $0xb0] sm:$0xff]  ;;  %s7576_s14 = sadd.s32 %s8438_s12, %s8437_s9 }
  0x1e   : > { %9104 = vmatprep.subr.mxu1 %v292_v5  ;;  %9059 = vmatpush3.msra.mxu0 %v320_v4  ;;  %s263_s20 = scalar_lea.vmem %s13303_s0, %s10052_s30  ;;  %v1077_v24 = vld [vmem:[%s13304_s1 + $0xf8] sm:$0xff]  ;;  %v799_v29 = vld [vmem:[%s13304_s1 + $0xa8] sm:$0xff]  ;;  %v798_v34 = vld [vmem:[%s13304_s1 + $0xa0] sm:$0xff]  ;;  %s8439_s24 = sshll.u32 %s7576_s14, 7 }
  0x1f   : > { %9105 = vmatpush3.msra.mxu1 %v292_v5  ;;  %9060 = vmatprep.subr.mxu0 %v319_v6  ;;  %s10517_s18 = scalar_lea.vmem %s263_s20, %s7675_s16  ;;  %v1076_v35 = vld [vmem:[%s13304_s1 + $0xf0] sm:$0xff]  ;;  %v797_v40 = vld [vmem:[%s13304_s1 + $0x98] sm:$0xff]  ;;  %v1075_v41 = vld [vmem:[%s13304_s1 + $0xe8] sm:$0xff]  ;;  %s10357_s20 = smov 96  }
  0x20   : > { %9106 = vmatprep.subr.mxu1 %v291_v7  ;;  %9061 = vmatpush3.msra.mxu0 %v319_v6  ;;  %v295_v16 = vld [vmem:[%s10517_s18 + $0x1] sm:$0xff]  ;;  %v296_v18 = vld [vmem:[%s10517_s18 + $0x9] sm:$0xff]  ;;  %v10534_v21 = vld [vmem:[%s10517_s18 + $0x19] sm:$0xff]  ;;  %s256_s16 = sand.u32 1, %s10330_s22  }
  0x21   : > { %9107 = vmatpush3.msra.mxu1 %v291_v7  ;;  %9062 = vmatprep.subr.mxu0 %v318_v8  ;;  %v267_v17 = vld [vmem:[%s10517_s18] sm:$0xff]  ;;  %v268_v19 = vld [vmem:[%s10517_s18 + $0x8] sm:$0xff]  ;;  %v10538_v22 = vld [vmem:[%s10517_s18 + $0x18] sm:$0xff]  ;;  %s7672_s13 = sshll.u32 %s256_s16, 5  ;;  %s7564_s19 = scalar_lea.sflag [#allocation4], %s256_s16 }
  0x22   : > { %9108 = vmatprep.subr.mxu1 %v290_v9  ;;  %9063 = vmatpush3.msra.mxu0 %v318_v8  ;;  %v10551_v25 = vld [vmem:[%s10517_s18 + $0x21] sm:$0xff]  ;;  %v10559_v27 = vld [vmem:[%s10517_s18 + $0x31] sm:$0xff]  ;;  %v10574_v30 = vld [vmem:[%s10517_s18 + $0x39] sm:$0xff]  ;;  %s258_s25 = scalar_lea.vmem [#allocation3], %s7672_s13 }
  0x23   : > { %9109 = vmatpush3.msra.mxu1 %v290_v9  ;;  %9064 = vmatprep.subr.mxu0 %v317_v10  ;;  %v10554_v26 = vld [vmem:[%s10517_s18 + $0x20] sm:$0xff]  ;;  %v10562_v28 = vld [vmem:[%s10517_s18 + $0x30] sm:$0xff]  ;;  %v10577_v31 = vld [vmem:[%s10517_s18 + $0x38] sm:$0xff] }
  0x24   : > { %9110 = vmatprep.subr.mxu1 %v289_v11  ;;  %9065 = vmatpush3.msra.mxu0 %v317_v10  ;;  %v10582_v32 = vld [vmem:[%s10517_s18 + $0x49] sm:$0xff]  ;;  %v10602_v36 = vld [vmem:[%s10517_s18 + $0x51] sm:$0xff]  ;;  %v10608_v38 = vld [vmem:[%s10517_s18 + $0x61] sm:$0xff] }
  0x25   : > { %9111 = vmatpush3.msra.mxu1 %v289_v11  ;;  %9066 = vmatprep.subr.mxu0 %v316_v12  ;;  %v10585_v33 = vld [vmem:[%s10517_s18 + $0x48] sm:$0xff]  ;;  %v10605_v37 = vld [vmem:[%s10517_s18 + $0x50] sm:$0xff]  ;;  %v10611_v39 = vld [vmem:[%s10517_s18 + $0x60] sm:$0xff] }
  0x26   : > { %9112 = vmatprep.subr.mxu1 %v288_v13  ;;  %9067 = vmatpush3.msra.mxu0 %v316_v12  ;;  %v10628_v42 = vld [vmem:[%s10517_s18 + $0x69] sm:$0xff]  ;;  %v10634_v44 = vld [vmem:[%s10517_s18 + $0x79] sm:$0xff]  ;;  %v10654_v48 = vld [vmem:[%s10517_s18 + $0x81] sm:$0xff] }
  0x27   : > { %9113 = vmatpush3.msra.mxu1 %v288_v13  ;;  %9068 = vmatprep.subr.mxu0 %v315_v14  ;;  %v10631_v43 = vld [vmem:[%s10517_s18 + $0x68] sm:$0xff]  ;;  %v10637_v45 = vld [vmem:[%s10517_s18 + $0x78] sm:$0xff]  ;;  %v796_v46 = vld [vmem:[%s13304_s1 + $0x90] sm:$0xff] }
  0x28   : > { %9114 = vmatprep.subr.mxu1 %v287_v15  ;;  %9069 = vmatpush3.msra.mxu0 %v315_v14  ;;  %v1074_v47 = vld [vmem:[%s13304_s1 + $0xe0] sm:$0xff]  ;;  %v10660_v50 = vld [vmem:[%s10517_s18 + $0x91] sm:$0xff]  ;;  %v795_v52 = vld [vmem:[%s13304_s1 + $0x88] sm:$0xff] }
  0x29   : > { %9070 = vmatprep.mubr.msk.f32.mxu0 %vm323_vm0, %v295_v16  ;;  %9115 = vmatpush3.msra.mxu1 %v287_v15  ;;  %v10657_v49 = vld [vmem:[%s10517_s18 + $0x80] sm:$0xff]  ;;  %v10663_v51 = vld [vmem:[%s10517_s18 + $0x90] sm:$0xff]  ;;  %v1073_v53 = vld [vmem:[%s13304_s1 + $0xd8] sm:$0xff] }
  0x2a   : > { %9116 = vmatprep.mubr.msk.f32.mxu1 %vm323_vm0, %v267_v17  ;;  %9071 = vmatmul.mubr.msk.f32.vlgmr.msra.gmra.mxu0 %vm323_vm0, %v296_v18  ;;  %v10680_v54 = vld [vmem:[%s10517_s18 + $0x99] sm:$0xff]  ;;  %v10686_v56 = vld [vmem:[%s10517_s18 + $0xa9] sm:$0xff]  ;;  %v10706_v60 = vld [vmem:[%s10517_s18 + $0xb1] sm:$0xff] }
  0x2b   : > { %9117 = vmatmul.mubr.msk.f32.vlgmr.msra.gmra.mxu1 %vm323_vm0, %v268_v19  ;;  %9146 = vmatprep.subr.mxu0 %v801_v20  ;;  %v10683_v55 = vld [vmem:[%s10517_s18 + $0x98] sm:$0xff]  ;;  %v10689_v57 = vld [vmem:[%s10517_s18 + $0xa8] sm:$0xff]  ;;  %v794_v58 = vld [vmem:[%s13304_s1 + $0x80] sm:$0xff] }
  0x2c   : > { %9073 = vmatprep.mubr.msk.f32.mxu0 %vm323_vm0, %v10534_v21  ;;  %9147 = vmatpush3.msra.mxu0 %v801_v20  ;;  %v1072_v59 = vld [vmem:[%s13304_s1 + $0xd0] sm:$0xff]  ;;  %v10712_v62 = vld [vmem:[%s10517_s18 + $0xc1] sm:$0xff]  ;;  %v1350_v1 = vld [vmem:[%s13304_s1 + $0x138] sm:$0xff] }
  0x2d   : > { %9119 = vmatprep.mubr.msk.f32.mxu1 %vm323_vm0, %v10538_v22  ;;  %9148 = vmatprep.subr.mxu0 %v800_v23  ;;  %v10709_v61 = vld [vmem:[%s10517_s18 + $0xb0] sm:$0xff]  ;;  %v10715_v63 = vld [vmem:[%s10517_s18 + $0xc0] sm:$0xff]  ;;  %v1071_v0 = vld [vmem:[%s13304_s1 + $0xc8] sm:$0xff] }
  0x2e   : > { %9192 = vmatprep.subr.mxu1 %v1077_v24  ;;  %9074 = vmatmul.mubr.msk.f32.gmra.mxu0 %vm323_vm0, %v10551_v25  ;;  %v10732_v2 = vld [vmem:[%s10517_s18 + $0xc9] sm:$0xff]  ;;  %v10738_v4 = vld [vmem:[%s10517_s18 + $0xd9] sm:$0xff]  ;;  %v10755_v7 = vld [vmem:[%s10517_s18 + $0xe1] sm:$0xff] }
  0x2f   : > { %9120 = vmatmul.mubr.msk.f32.gmra.mxu1 %vm323_vm0, %v10554_v26  ;;  %9149 = vmatpush3.msra.mxu0 %v800_v23  ;;  %v10735_v3 = vld [vmem:[%s10517_s18 + $0xc8] sm:$0xff]  ;;  %v10741_v5 = vld [vmem:[%s10517_s18 + $0xd8] sm:$0xff]  ;;  %v1070_v6 = vld [vmem:[%s13304_s1 + $0xc0] sm:$0xff] }
  0x30   : > { %9076 = vmatprep.mubr.msk.f32.mxu0 %vm323_vm0, %v10559_v27  ;;  %9122 = vmatprep.mubr.msk.f32.mxu1 %vm323_vm0, %v10562_v28  ;;  %v10758_v8 = vld [vmem:[%s10517_s18 + $0xe0] sm:$0xff]  ;;  %v1623_v10 = vld [vmem:[%s13304_s1 + $0x178] sm:$0xff]  ;;  %v775_v11 = vld [vmem:[%s10517_s18 + $0xa] sm:$0xff] }
  0x31   : > { %9150 = vmatprep.subr.mxu0 %v799_v29  ;;  %9193 = vmatpush3.msra.mxu1 %v1077_v24  ;;  %v774_v9 = vld [vmem:[%s10517_s18 + $0x2] sm:$0xff]  ;;  %v10773_v12 = vld [vmem:[%s10517_s18 + $0x1a] sm:$0xff]  ;;  %v1349_v13 = vld [vmem:[%s13304_s1 + $0x130] sm:$0xff] }
  0x32   : > { %9151 = vmatpush3.msra.mxu0 %v799_v29  ;;  %9194 = vmatprep.subr.mxu1 %v1076_v35  ;;  %v10784_v14 = vld [vmem:[%s10517_s18 + $0x22] sm:$0xff]  ;;  %v10789_v15 = vld [vmem:[%s10517_s18 + $0x32] sm:$0xff]  ;;  %v10804_v18 = vld [vmem:[%s10517_s18 + $0x3a] sm:$0xff] }
  0x33   : > { %9077 = vmatmul.mubr.msk.f32.gmra.mxu0 %vm323_vm0, %v10574_v30  ;;  %9123 = vmatmul.mubr.msk.f32.gmra.mxu1 %vm323_vm0, %v10577_v31  ;;  %v1348_v16 = vld [vmem:[%s13304_s1 + $0x128] sm:$0xff]  ;;  %v1622_v17 = vld [vmem:[%s13304_s1 + $0x170] sm:$0xff]  ;;  %v1347_v20 = vld [vmem:[%s13304_s1 + $0x120] sm:$0xff] }
  0x34   : > { %9079 = vmatprep.mubr.msk.f32.mxu0 %vm323_vm0, %v10582_v32  ;;  %9125 = vmatprep.mubr.msk.f32.mxu1 %vm323_vm0, %v10585_v33  ;;  %v10809_v19 = vld [vmem:[%s10517_s18 + $0x4a] sm:$0xff]  ;;  %v10824_v23 = vld [vmem:[%s10517_s18 + $0x52] sm:$0xff]  ;;  %v10829_v24 = vld [vmem:[%s10517_s18 + $0x62] sm:$0xff] }
  0x35   : > { %9152 = vmatprep.subr.mxu0 %v798_v34  ;;  %9195 = vmatpush3.msra.mxu1 %v1076_v35  ;;  %v1620_v29 = vld [vmem:[%s13304_s1 + $0x160] sm:$0xff] }
  0x36   : > { %9153 = vmatpush3.msra.mxu0 %v798_v34  ;;  %9196 = vmatprep.subr.mxu1 %v1075_v41  ;;  %v10844_v34 = vld [vmem:[%s10517_s18 + $0x6a] sm:$0xff]  ;;  %v10849_v35 = vld [vmem:[%s10517_s18 + $0x7a] sm:$0xff] }
  0x37   : > { %9080 = vmatmul.mubr.msk.f32.gmra.mxu0 %vm323_vm0, %v10602_v36  ;;  %9126 = vmatmul.mubr.msk.f32.gmra.mxu1 %vm323_vm0, %v10605_v37 }
  0x38   : > { %9082 = vmatprep.mubr.msk.f32.mxu0 %vm323_vm0, %v10608_v38  ;;  %9128 = vmatprep.mubr.msk.f32.mxu1 %vm323_vm0, %v10611_v39 }
  0x39   : > { %9154 = vmatprep.subr.mxu0 %v797_v40  ;;  %9197 = vmatpush3.msra.mxu1 %v1075_v41  ;;  %v1619_v41 = vld [vmem:[%s13304_s1 + $0x158] sm:$0xff] }
  0x3a   : > { %9155 = vmatpush3.msra.mxu0 %v797_v40  ;;  %9198 = vmatprep.subr.mxu1 %v1074_v47  ;;  %v1345_v40 = vld [vmem:[%s13304_s1 + $0x110] sm:$0xff] }
  0x3b   : > { %9083 = vmatmul.mubr.msk.f32.gmra.mxu0 %vm323_vm0, %v10628_v42  ;;  %9129 = vmatmul.mubr.msk.f32.gmra.mxu1 %vm323_vm0, %v10631_v43 }
  0x3c   : > { %9085 = vmatprep.mubr.msk.f32.mxu0 %vm323_vm0, %v10634_v44  ;;  %9131 = vmatprep.mubr.msk.f32.mxu1 %vm323_vm0, %v10637_v45 }
  0x3d   : > { %9156 = vmatprep.subr.mxu0 %v796_v46  ;;  %9199 = vmatpush3.msra.mxu1 %v1074_v47  ;;  %v10869_v47 = vld [vmem:[%s10517_s18 + $0x92] sm:$0xff] }
  0x3e   : > { %9157 = vmatpush3.msra.mxu0 %v796_v46  ;;  %9200 = vmatprep.subr.mxu1 %v1073_v53  ;;  %v10864_v46 = vld [vmem:[%s10517_s18 + $0x82] sm:$0xff] }
  0x3f   : > { %9086 = vmatmul.mubr.msk.f32.gmra.mxu0 %vm323_vm0, %v10654_v48  ;;  %9132 = vmatmul.mubr.msk.f32.gmra.mxu1 %vm323_vm0, %v10657_v49 }
  0x40   : > { %9088 = vmatprep.mubr.msk.f32.mxu0 %vm323_vm0, %v10660_v50  ;;  %9134 = vmatprep.mubr.msk.f32.mxu1 %vm323_vm0, %v10663_v51 }
  0x41   : > { %9158 = vmatprep.subr.mxu0 %v795_v52  ;;  %9201 = vmatpush3.msra.mxu1 %v1073_v53  ;;  %v1618_v53 = vld [vmem:[%s13304_s1 + $0x150] sm:$0xff] }
  0x42   : > { %9159 = vmatpush3.msra.mxu0 %v795_v52  ;;  %9202 = vmatprep.subr.mxu1 %v1072_v59  ;;  %v1344_v52 = vld [vmem:[%s13304_s1 + $0x108] sm:$0xff] }
  0x43   : > { %9089 = vmatmul.mubr.msk.f32.gmra.mxu0 %vm323_vm0, %v10680_v54  ;;  %9135 = vmatmul.mubr.msk.f32.gmra.mxu1 %vm323_vm0, %v10683_v55 }
  0x44   : > { %9091 = vmatprep.mubr.msk.f32.mxu0 %vm323_vm0, %v10686_v56  ;;  %9137 = vmatprep.mubr.msk.f32.mxu1 %vm323_vm0, %v10689_v57 }
  0x45   : > { %9160 = vmatprep.subr.mxu0 %v794_v58  ;;  %9203 = vmatpush3.msra.mxu1 %v1072_v59  ;;  %v10889_v59 = vld [vmem:[%s10517_s18 + $0xaa] sm:$0xff] }
  0x46   : > { %9161 = vmatpush3.msra.mxu0 %v794_v58  ;;  %9204 = vmatprep.subr.mxu1 %v1071_v0  ;;  %v10884_v58 = vld [vmem:[%s10517_s18 + $0x9a] sm:$0xff] }
  0x47   : > { %9092 = vmatmul.mubr.msk.f32.gmra.mxu0 %vm323_vm0, %v10706_v60  ;;  %9138 = vmatmul.mubr.msk.f32.gmra.mxu1 %vm323_vm0, %v10709_v61 }
  0x48   : > { %9094 = vmatprep.mubr.msk.f32.mxu0 %vm323_vm0, %v10712_v62  ;;  %9140 = vmatprep.mubr.msk.f32.mxu1 %vm323_vm0, %v10715_v63 }
  0x49   : > { %9238 = vmatprep.subr.mxu0 %v1350_v1  ;;  %9205 = vmatpush3.msra.mxu1 %v1071_v0  ;;  %v1343_v0 = vld [vmem:[%s13304_s1 + $0x100] sm:$0xff] }
  0x4a   : > { %9206 = vmatprep.subr.mxu1 %v1070_v6 }
  0x4b   : > { %9095 = vmatmul.mubr.msk.f32.gmra.mxu0 %vm323_vm0, %v10732_v2  ;;  %9141 = vmatmul.mubr.msk.f32.gmra.mxu1 %vm323_vm0, %v10735_v3 }
  0x4c   : > { %9097 = vmatprep.mubr.msk.f32.mxu0 %vm323_vm0, %v10738_v4  ;;  %9143 = vmatprep.mubr.msk.f32.mxu1 %vm323_vm0, %v10741_v5 }
  0x4d   : > { %9207 = vmatpush3.msra.mxu1 %v1070_v6  ;;  %v10904_v6 = vld [vmem:[%s10517_s18 + $0xb2] sm:$0xff] }
  0x4e   : > { %9284 = vmatprep.subr.mxu1 %v1623_v10 }
  0x4f   : > { %9098 = vmatmul.mubr.msk.f32.gmra.mxu0 %vm323_vm0, %v10755_v7  ;;  %9144 = vmatmul.mubr.msk.f32.gmra.mxu1 %vm323_vm0, %v10758_v8 }
  0x50   : > { %9162 = vmatprep.mubr.msk.f32.mxu0 %vm323_vm0, %v774_v9  ;;  %9208 = vmatprep.mubr.msk.f32.mxu1 %vm323_vm0, %v10538_v22  ;;  %v1621_v22 = vld [vmem:[%s13304_s1 + $0x168] sm:$0xff] }
  0x51   : > { %v10909_v9 = vld [vmem:[%s10517_s18 + $0xc2] sm:$0xff] }
  0x53   : > { %9163 = vmatmul.mubr.msk.f32.vlgmr.msra.gmra.mxu0 %vm323_vm0, %v775_v11  ;;  %9209 = vmatmul.mubr.msk.f32.vlgmr.msra.gmra.mxu1 %vm323_vm0, %v10554_v26  ;;  %v1346_v26 = vld [vmem:[%s13304_s1 + $0x118] sm:$0xff] }
  0x54   : > { %9239 = vmatpush3.msra.mxu0 %v1350_v1  ;;  %9165 = vmatprep.mubr.msk.f32.mxu0 %vm323_vm0, %v10773_v12  ;;  %v1617_v1 = vld [vmem:[%s13304_s1 + $0x148] sm:$0xff]  ;;  %v1899_v11 = vld [vmem:[%s13304_s1 + $0x1b8] sm:$0xff] }
  0x55   : > { %9211 = vmatprep.mubr.msk.f32.mxu1 %vm323_vm0, %v10562_v28  ;;  %9240 = vmatprep.subr.mxu0 %v1349_v13 }
  0x56   : > { %9241 = vmatpush3.msra.mxu0 %v1349_v13  ;;  %9285 = vmatpush3.msra.mxu1 %v1623_v10  ;;  %v1616_v10 = vld [vmem:[%s13304_s1 + $0x140] sm:$0xff]  ;;  %v10924_v13 = vld [vmem:[%s10517_s18 + $0xca] sm:$0xff] }
  0x57   : > { %9166 = vmatmul.mubr.msk.f32.gmra.mxu0 %vm323_vm0, %v10784_v14  ;;  %9212 = vmatmul.mubr.msk.f32.gmra.mxu1 %vm323_vm0, %v10577_v31 }
  0x58   : > { %9168 = vmatprep.mubr.msk.f32.mxu0 %vm323_vm0, %v10789_v15  ;;  %9214 = vmatprep.mubr.msk.f32.mxu1 %vm323_vm0, %v10585_v33 }
  0x59   : > { %9242 = vmatprep.subr.mxu0 %v1348_v16  ;;  %9286 = vmatprep.subr.mxu1 %v1622_v17 }
  0x5a   : > { %9243 = vmatpush3.msra.mxu0 %v1348_v16  ;;  %9287 = vmatpush3.msra.mxu1 %v1622_v17  ;;  %v10929_v16 = vld [vmem:[%s10517_s18 + $0xda] sm:$0xff]  ;;  %v10932_v17 = vld [vmem:[%s10517_s18 + $0xf0] sm:$0xff] }
  0x5b   : > { %9169 = vmatmul.mubr.msk.f32.gmra.mxu0 %vm323_vm0, %v10804_v18  ;;  %9215 = vmatmul.mubr.msk.f32.gmra.mxu1 %vm323_vm0, %v10605_v37 }
  0x5c   : > { %9171 = vmatprep.mubr.msk.f32.mxu0 %vm323_vm0, %v10809_v19  ;;  %9217 = vmatprep.mubr.msk.f32.mxu1 %vm323_vm0, %v10611_v39 }
  0x5d   : > { %9244 = vmatprep.subr.mxu0 %v1347_v20  ;;  %9288 = vmatprep.subr.mxu1 %v1621_v22 }
  0x5e   : > { %9245 = vmatpush3.msra.mxu0 %v1347_v20  ;;  %9289 = vmatpush3.msra.mxu1 %v1621_v22  ;;  %v2172_v20 = vld [vmem:[%s13304_s1 + $0x1f8] sm:$0xff]  ;;  %v10944_v22 = vld [vmem:[%s10517_s18 + $0xe2] sm:$0xff] }
  0x5f   : > { %9172 = vmatmul.mubr.msk.f32.gmra.mxu0 %vm323_vm0, %v10824_v23  ;;  %9218 = vmatmul.mubr.msk.f32.gmra.mxu1 %vm323_vm0, %v10631_v43 }
  0x60   : > { %9174 = vmatprep.mubr.msk.f32.mxu0 %vm323_vm0, %v10829_v24  ;;  %9220 = vmatprep.mubr.msk.f32.mxu1 %vm323_vm0, %v10637_v45 }
  0x61   : > { %9246 = vmatprep.subr.mxu0 %v1346_v26  ;;  %9290 = vmatprep.subr.mxu1 %v1620_v29 }
  0x62   : > { %9247 = vmatpush3.msra.mxu0 %v1346_v26  ;;  %9291 = vmatpush3.msra.mxu1 %v1620_v29  ;;  %v10949_v26 = vld [vmem:[%s10517_s18 + $0xf8] sm:$0xff]  ;;  %v1898_v29 = vld [vmem:[%s13304_s1 + $0x1b0] sm:$0xff] }
  0x63   : > { %9175 = vmatmul.mubr.msk.f32.gmra.mxu0 %vm323_vm0, %v10844_v34  ;;  %9221 = vmatmul.mubr.msk.f32.gmra.mxu1 %vm323_vm0, %v10657_v49 }
  0x64   : > { %9177 = vmatprep.mubr.msk.f32.mxu0 %vm323_vm0, %v10849_v35  ;;  %9223 = vmatprep.mubr.msk.f32.mxu1 %vm323_vm0, %v10663_v51 }
  0x65   : > { %9248 = vmatprep.subr.mxu0 %v1345_v40  ;;  %9292 = vmatprep.subr.mxu1 %v1619_v41 }
  0x66   : > { %9249 = vmatpush3.msra.mxu0 %v1345_v40  ;;  %9293 = vmatpush3.msra.mxu1 %v1619_v41  ;;  %v1895_v40 = vld [vmem:[%s13304_s1 + $0x198] sm:$0xff]  ;;  %v2169_v41 = vld [vmem:[%s13304_s1 + $0x1e0] sm:$0xff] }
  0x67   : > { %9178 = vmatmul.mubr.msk.f32.gmra.mxu0 %vm323_vm0, %v10864_v46  ;;  %9224 = vmatmul.mubr.msk.f32.gmra.mxu1 %vm323_vm0, %v10683_v55 }
  0x68   : > { %9180 = vmatprep.mubr.msk.f32.mxu0 %vm323_vm0, %v10869_v47  ;;  %9226 = vmatprep.mubr.msk.f32.mxu1 %vm323_vm0, %v10689_v57 }
  0x69   : > { %9250 = vmatprep.subr.mxu0 %v1344_v52  ;;  %9294 = vmatprep.subr.mxu1 %v1618_v53 }
  0x6a   : > { %9251 = vmatpush3.msra.mxu0 %v1344_v52  ;;  %9295 = vmatpush3.msra.mxu1 %v1618_v53  ;;  %v1894_v52 = vld [vmem:[%s13304_s1 + $0x190] sm:$0xff]  ;;  %v2168_v53 = vld [vmem:[%s13304_s1 + $0x1d8] sm:$0xff] }
  0x6b   : > { %9181 = vmatmul.mubr.msk.f32.gmra.mxu0 %vm323_vm0, %v10884_v58  ;;  %9227 = vmatmul.mubr.msk.f32.gmra.mxu1 %vm323_vm0, %v10709_v61 }
  0x6c   : > { %9183 = vmatprep.mubr.msk.f32.mxu0 %vm323_vm0, %v10889_v59  ;;  %9229 = vmatprep.mubr.msk.f32.mxu1 %vm323_vm0, %v10715_v63 }
  0x6d   : > { %9252 = vmatprep.subr.mxu0 %v1343_v0  ;;  %9296 = vmatprep.subr.mxu1 %v1617_v1 }
  0x6e   : > { %9253 = vmatpush3.msra.mxu0 %v1343_v0  ;;  %9297 = vmatpush3.msra.mxu1 %v1617_v1  ;;  %v1893_v0 = vld [vmem:[%s13304_s1 + $0x188] sm:$0xff]  ;;  %v2167_v1 = vld [vmem:[%s13304_s1 + $0x1d0] sm:$0xff] }
  0x6f   : > { %9184 = vmatmul.mubr.msk.f32.gmra.mxu0 %vm323_vm0, %v10904_v6  ;;  %9230 = vmatmul.mubr.msk.f32.gmra.mxu1 %vm323_vm0, %v10735_v3 }
  0x70   : > { %9186 = vmatprep.mubr.msk.f32.mxu0 %vm323_vm0, %v10909_v9  ;;  %9232 = vmatprep.mubr.msk.f32.mxu1 %vm323_vm0, %v10741_v5 }
  0x71   : > { %9298 = vmatprep.subr.mxu1 %v1616_v10  ;;  %9330 = vmatprep.subr.mxu0 %v1899_v11 }
  0x72   : > { %9299 = vmatpush3.msra.mxu1 %v1616_v10  ;;  %v1892_v10 = vld [vmem:[%s13304_s1 + $0x180] sm:$0xff] }
  0x73   : > { %9187 = vmatmul.mubr.msk.f32.gmra.mxu0 %vm323_vm0, %v10924_v13  ;;  %9233 = vmatmul.mubr.msk.f32.gmra.mxu1 %vm323_vm0, %v10758_v8 }
  0x74   : > { %9189 = vmatprep.mubr.msk.f32.mxu0 %vm323_vm0, %v10929_v16  ;;  %9235 = vmatprep.mubr.msk.f32.mxu1 %vm323_vm0, %v10932_v17 }
  0x75   : > { %9376 = vmatprep.subr.mxu1 %v2172_v20 }
  0x77   : > { %9190 = vmatmul.mubr.msk.f32.gmra.mxu0 %vm323_vm0, %v10944_v22  ;;  %9236 = vmatmul.mubr.msk.f32.gmra.mxu1 %vm323_vm0, %v10949_v26 }
  0x78   : > { %9254 = vmatprep.mubr.msk.f32.mxu0 %vm323_vm0, %v10534_v21  ;;  %9300 = vmatprep.mubr.msk.f32.mxu1 %vm323_vm0, %v10773_v12  ;;  %v1897_v21 = vld [vmem:[%s13304_s1 + $0x1a8] sm:$0xff]  ;;  %v1896_v12 = vld [vmem:[%s13304_s1 + $0x1a0] sm:$0xff] }
  0x7b   : > { %9255 = vmatmul.mubr.msk.f32.vlgmr.msra.gmra.mxu0 %vm323_vm0, %v10551_v25  ;;  %9301 = vmatmul.mubr.msk.f32.vlgmr.msra.gmra.mxu1 %vm323_vm0, %v10784_v14  ;;  %v2171_v25 = vld [vmem:[%s13304_s1 + $0x1f0] sm:$0xff]  ;;  %v2170_v14 = vld [vmem:[%s13304_s1 + $0x1e8] sm:$0xff] }
  0x7c   : > { %9331 = vmatpush3.msra.mxu0 %v1899_v11  ;;  %9257 = vmatprep.mubr.msk.f32.mxu0 %vm323_vm0, %v10559_v27  ;;  %v2166_v11 = vld [vmem:[%s13304_s1 + $0x1c8] sm:$0xff] }
  0x7d   : > { %9303 = vmatprep.mubr.msk.f32.mxu1 %vm323_vm0, %v10789_v15  ;;  %9332 = vmatprep.subr.mxu0 %v1898_v29 }
  0x7e   : > { %9333 = vmatpush3.msra.mxu0 %v1898_v29  ;;  %9377 = vmatpush3.msra.mxu1 %v2172_v20  ;;  %v2165_v20 = vld [vmem:[%s13304_s1 + $0x1c0] sm:$0xff]  ;;  %v2445_v29 = vld [vmem:[%s13304_s1 + $0x238] sm:$0xff] }
  0x7f   : > { %9258 = vmatmul.mubr.msk.f32.gmra.mxu0 %vm323_vm0, %v10574_v30  ;;  %9304 = vmatmul.mubr.msk.f32.gmra.mxu1 %vm323_vm0, %v10804_v18 }
  0x80   : > { %9260 = vmatprep.mubr.msk.f32.mxu0 %vm323_vm0, %v10582_v32  ;;  %9306 = vmatprep.mubr.msk.f32.mxu1 %vm323_vm0, %v10809_v19 }
  0x81   : > { %9334 = vmatprep.subr.mxu0 %v1897_v21  ;;  %9378 = vmatprep.subr.mxu1 %v2171_v25 }
  0x82   : > { %9335 = vmatpush3.msra.mxu0 %v1897_v21  ;;  %9379 = vmatpush3.msra.mxu1 %v2171_v25  ;;  %v11069_v21 = vld [vmem:[%s10517_s18 + $0xf1] sm:$0xff] }
  0x83   : > { %9261 = vmatmul.mubr.msk.f32.gmra.mxu0 %vm323_vm0, %v10602_v36  ;;  %9307 = vmatmul.mubr.msk.f32.gmra.mxu1 %vm323_vm0, %v10824_v23  ;;  %v11072_v25 = vld [vmem:[%s10517_s18 + $0xf2] sm:$0xff] }
  0x84   : > { %9263 = vmatprep.mubr.msk.f32.mxu0 %vm323_vm0, %v10608_v38  ;;  %9309 = vmatprep.mubr.msk.f32.mxu1 %vm323_vm0, %v10829_v24 }
  0x85   : > { %9336 = vmatprep.subr.mxu0 %v1896_v12  ;;  %9380 = vmatprep.subr.mxu1 %v2170_v14 }
  0x86   : > { %9337 = vmatpush3.msra.mxu0 %v1896_v12  ;;  %9381 = vmatpush3.msra.mxu1 %v2170_v14  ;;  %v11081_v12 = vld [vmem:[%s10517_s18 + $0xf9] sm:$0xff] }
  0x87   : > { %9264 = vmatmul.mubr.msk.f32.gmra.mxu0 %vm323_vm0, %v10628_v42  ;;  %9310 = vmatmul.mubr.msk.f32.gmra.mxu1 %vm323_vm0, %v10844_v34  ;;  %v11086_v14 = vld [vmem:[%s10517_s18 + $0xfa] sm:$0xff] }
  0x88   : > { %9266 = vmatprep.mubr.msk.f32.mxu0 %vm323_vm0, %v10634_v44  ;;  %9312 = vmatprep.mubr.msk.f32.mxu1 %vm323_vm0, %v10849_v35 }
  0x89   : > { %9338 = vmatprep.subr.mxu0 %v1895_v40  ;;  %9382 = vmatprep.subr.mxu1 %v2169_v41 }
  0x8a   : > { %9339 = vmatpush3.msra.mxu0 %v1895_v40  ;;  %9383 = vmatpush3.msra.mxu1 %v2169_v41  ;;  %v2444_v40 = vld [vmem:[%s13304_s1 + $0x230] sm:$0xff] }
  0x8b   : > { %9267 = vmatmul.mubr.msk.f32.gmra.mxu0 %vm323_vm0, %v10654_v48  ;;  %9313 = vmatmul.mubr.msk.f32.gmra.mxu1 %vm323_vm0, %v10864_v46 }
  0x8c   : > { %9269 = vmatprep.mubr.msk.f32.mxu0 %vm323_vm0, %v10660_v50  ;;  %9315 = vmatprep.mubr.msk.f32.mxu1 %vm323_vm0, %v10869_v47 }
  0x8d   : > { %9340 = vmatprep.subr.mxu0 %v1894_v52  ;;  %9384 = vmatprep.subr.mxu1 %v2168_v53 }
  0x8e   : > { %9341 = vmatpush3.msra.mxu0 %v1894_v52  ;;  %9385 = vmatpush3.msra.mxu1 %v2168_v53 }
  0x8f   : > { %9270 = vmatmul.mubr.msk.f32.gmra.mxu0 %vm323_vm0, %v10680_v54  ;;  %9316 = vmatmul.mubr.msk.f32.gmra.mxu1 %vm323_vm0, %v10884_v58 }
  0x90   : > { %9272 = vmatprep.mubr.msk.f32.mxu0 %vm323_vm0, %v10686_v56  ;;  %9318 = vmatprep.mubr.msk.f32.mxu1 %vm323_vm0, %v10889_v59 }
  0x91   : > { %9342 = vmatprep.subr.mxu0 %v1893_v0  ;;  %9386 = vmatprep.subr.mxu1 %v2167_v1 }
  0x92   : > { %9343 = vmatpush3.msra.mxu0 %v1893_v0  ;;  %9387 = vmatpush3.msra.mxu1 %v2167_v1 }
  0x93   : > { %9273 = vmatmul.mubr.msk.f32.gmra.mxu0 %vm323_vm0, %v10706_v60  ;;  %9319 = vmatmul.mubr.msk.f32.gmra.mxu1 %vm323_vm0, %v10904_v6 }
  0x94   : > { %9275 = vmatprep.mubr.msk.f32.mxu0 %vm323_vm0, %v10712_v62  ;;  %9321 = vmatprep.mubr.msk.f32.mxu1 %vm323_vm0, %v10909_v9 }
  0x95   : > { %9344 = vmatprep.subr.mxu0 %v1892_v10  ;;  %9388 = vmatprep.subr.mxu1 %v2166_v11 }
  0x96   : > { %9345 = vmatpush3.msra.mxu0 %v1892_v10  ;;  %9389 = vmatpush3.msra.mxu1 %v2166_v11 }
  0x97   : > { %9276 = vmatmul.mubr.msk.f32.gmra.mxu0 %vm323_vm0, %v10732_v2  ;;  %9322 = vmatmul.mubr.msk.f32.gmra.mxu1 %vm323_vm0, %v10924_v13 }
  0x98   : > { %9278 = vmatprep.mubr.msk.f32.mxu0 %vm323_vm0, %v10738_v4  ;;  %9324 = vmatprep.mubr.msk.f32.mxu1 %vm323_vm0, %v10929_v16 }
  0x99   : > { %9390 = vmatprep.subr.mxu1 %v2165_v20  ;;  %9422 = vmatprep.subr.mxu0 %v2445_v29 }
  0x9a   : > { %9391 = vmatpush3.msra.mxu1 %v2165_v20 }
  0x9b   : > { %9279 = vmatmul.mubr.msk.f32.gmra.mxu0 %vm323_vm0, %v10755_v7  ;;  %9325 = vmatmul.mubr.msk.f32.gmra.mxu1 %vm323_vm0, %v10944_v22 }
  0x9c   : > { %9281 = vmatprep.mubr.msk.f32.mxu0 %vm323_vm0, %v11069_v21  ;;  %9327 = vmatprep.mubr.msk.f32.mxu1 %vm323_vm0, %v11072_v25 }
  0x9f   : > { %9282 = vmatmul.mubr.msk.f32.gmra.mxu0 %vm323_vm0, %v11081_v12  ;;  %9328 = vmatmul.mubr.msk.f32.gmra.mxu1 %vm323_vm0, %v11086_v14 }
  0xa0   : > { %9346 = vmatprep.mubr.msk.f32.mxu0 %vm323_vm0, %v10562_v28  ;;  %9392 = vmatprep.mubr.msk.f32.mxu1 %vm323_vm0, %v10559_v27  ;;  %v2443_v27 = vld [vmem:[%s13304_s1 + $0x228] sm:$0xff]  ;;  %v2442_v28 = vld [vmem:[%s13304_s1 + $0x220] sm:$0xff] }
  0xa3   : > { %9347 = vmatmul.mubr.msk.f32.vlgmr.msra.gmra.mxu0 %vm323_vm0, %v10577_v31  ;;  %9393 = vmatmul.mubr.msk.f32.vlgmr.msra.gmra.mxu1 %vm323_vm0, %v10574_v30  ;;  %v2441_v30 = vld [vmem:[%s13304_s1 + $0x218] sm:$0xff]  ;;  %v2440_v31 = vld [vmem:[%s13304_s1 + $0x210] sm:$0xff] }
  0xa4   : > { %9423 = vmatpush3.msra.mxu0 %v2445_v29  ;;  %9349 = vmatprep.mubr.msk.f32.mxu0 %vm323_vm0, %v10585_v33  ;;  %v2438_v33 = vld [vmem:[%s13304_s1 + $0x200] sm:$0xff] }
  0xa5   : > { %9395 = vmatprep.mubr.msk.f32.mxu1 %vm323_vm0, %v10582_v32  ;;  %9424 = vmatprep.subr.mxu0 %v2444_v40  ;;  %v2439_v32 = vld [vmem:[%s13304_s1 + $0x208] sm:$0xff] }
  0xa6   : > { %9425 = vmatpush3.msra.mxu0 %v2444_v40 }
  0xa7   : > { %9350 = vmatmul.mubr.msk.f32.gmra.mxu0 %vm323_vm0, %v10605_v37  ;;  %9396 = vmatmul.mubr.msk.f32.gmra.mxu1 %vm323_vm0, %v10602_v36  ;;  %v7878_v36 = vld [vmem:[%s10517_s18 + $0x108] sm:$0xff] }
  0xa8   : > { %9352 = vmatprep.mubr.msk.f32.mxu0 %vm323_vm0, %v10611_v39  ;;  %9398 = vmatprep.mubr.msk.f32.mxu1 %vm323_vm0, %v10608_v38  ;;  %v7918_v37 = vld [vmem:[%s10517_s18 + $0x109] sm:$0xff]  ;;  %v7919_v39 = vld [vmem:[%s10517_s18 + $0x111] sm:$0xff] }
  0xa9   : > { %9426 = vmatprep.subr.mxu0 %v2443_v27  ;;  %v7879_v38 = vld [vmem:[%s10517_s18 + $0x110] sm:$0xff] }
  0xaa   : > { %9427 = vmatpush3.msra.mxu0 %v2443_v27 }
  0xab   : > { %9353 = vmatmul.mubr.msk.f32.gmra.mxu0 %vm323_vm0, %v10631_v43  ;;  %9399 = vmatmul.mubr.msk.f32.gmra.mxu1 %vm323_vm0, %v10628_v42  ;;  %v7958_v42 = vld [vmem:[%s10517_s18 + $0x10a] sm:$0xff] }
  0xac   : > { %9355 = vmatprep.mubr.msk.f32.mxu0 %vm323_vm0, %v10637_v45  ;;  %9401 = vmatprep.mubr.msk.f32.mxu1 %vm323_vm0, %v10634_v44 }
  0xad   : > { %9428 = vmatprep.subr.mxu0 %v2442_v28 }
  0xae   : > { %9429 = vmatpush3.msra.mxu0 %v2442_v28 }
  0xaf   : > { %9356 = vmatmul.mubr.msk.f32.gmra.mxu0 %vm323_vm0, %v10657_v49  ;;  %9402 = vmatmul.mubr.msk.f32.gmra.mxu1 %vm323_vm0, %v10654_v48  ;;  %v7959_v48 = vld [vmem:[%s10517_s18 + $0x112] sm:$0xff] }
  0xb0   : > { %9358 = vmatprep.mubr.msk.f32.mxu0 %vm323_vm0, %v10663_v51  ;;  %9404 = vmatprep.mubr.msk.f32.mxu1 %vm323_vm0, %v10660_v50 }
  0xb1   : > { %9430 = vmatprep.subr.mxu0 %v2441_v30 }
  0xb2   : > { %9431 = vmatpush3.msra.mxu0 %v2441_v30 }
  0xb3   : > { %9359 = vmatmul.mubr.msk.f32.gmra.mxu0 %vm323_vm0, %v10683_v55  ;;  %9405 = vmatmul.mubr.msk.f32.gmra.mxu1 %vm323_vm0, %v10680_v54 }
  0xb4   : > { %9361 = vmatprep.mubr.msk.f32.mxu0 %vm323_vm0, %v10689_v57  ;;  %9407 = vmatprep.mubr.msk.f32.mxu1 %vm323_vm0, %v10686_v56 }
  0xb5   : > { %9432 = vmatprep.subr.mxu0 %v2440_v31 }
  0xb6   : > { %9433 = vmatpush3.msra.mxu0 %v2440_v31 }
  0xb7   : > { %9362 = vmatmul.mubr.msk.f32.gmra.mxu0 %vm323_vm0, %v10709_v61  ;;  %9408 = vmatmul.mubr.msk.f32.gmra.mxu1 %vm323_vm0, %v10706_v60 }
  0xb8   : > { %9364 = vmatprep.mubr.msk.f32.mxu0 %vm323_vm0, %v10715_v63  ;;  %9410 = vmatprep.mubr.msk.f32.mxu1 %vm323_vm0, %v10712_v62 }
  0xb9   : > { %9434 = vmatprep.subr.mxu0 %v2439_v32 }
  0xba   : > { %9435 = vmatpush3.msra.mxu0 %v2439_v32 }
  0xbb   : > { %9365 = vmatmul.mubr.msk.f32.gmra.mxu0 %vm323_vm0, %v10735_v3  ;;  %9411 = vmatmul.mubr.msk.f32.gmra.mxu1 %vm323_vm0, %v10732_v2 }
  0xbc   : > { %9367 = vmatprep.mubr.msk.f32.mxu0 %vm323_vm0, %v10741_v5  ;;  %9413 = vmatprep.mubr.msk.f32.mxu1 %vm323_vm0, %v10738_v4 }
  0xbd   : > { %9436 = vmatprep.subr.mxu0 %v2438_v33 }
  0xbe   : > { %9437 = vmatpush3.msra.mxu0 %v2438_v33 }
  0xbf   : > { %9368 = vmatmul.mubr.msk.f32.gmra.mxu0 %vm323_vm0, %v10758_v8  ;;  %9414 = vmatmul.mubr.msk.f32.gmra.mxu1 %vm323_vm0, %v10755_v7 }
  0xc0   : > { %9370 = vmatprep.mubr.msk.f32.mxu0 %vm323_vm0, %v10932_v17  ;;  %9416 = vmatprep.mubr.msk.f32.mxu1 %vm323_vm0, %v11069_v21 }
  0xc3   : > { %9371 = vmatmul.mubr.msk.f32.gmra.mxu0 %vm323_vm0, %v10949_v26  ;;  %9417 = vmatmul.mubr.msk.f32.gmra.mxu1 %vm323_vm0, %v11081_v12 }
  0xc4   : > { %9373 = vmatprep.mubr.msk.f32.mxu0 %vm323_vm0, %v7878_v36  ;;  %9419 = vmatprep.mubr.msk.f32.mxu1 %vm323_vm0, %v7918_v37 }
  0xc7   : > { %9374 = vmatmul.mubr.msk.f32.gmra.mxu0 %vm323_vm0, %v7879_v38  ;;  %9420 = vmatmul.mubr.msk.f32.gmra.mxu1 %vm323_vm0, %v7919_v39 }
  0xc8   : > { %9438 = vmatprep.mubr.msk.f32.mxu0 %vm323_vm0, %v10789_v15 }
  0xcb   : > { %9439 = vmatmul.mubr.msk.f32.vlgmr.msra.gmra.mxu0 %vm323_vm0, %v10804_v18 }
  0xcc   : > { %9441 = vmatprep.mubr.msk.f32.mxu0 %vm323_vm0, %v10809_v19 }
  0xcf   : > { %9442 = vmatmul.mubr.msk.f32.gmra.mxu0 %vm323_vm0, %v10824_v23 }
  0xd0   : > { %9444 = vmatprep.mubr.msk.f32.mxu0 %vm323_vm0, %v10829_v24 }
  0xd3   : > { %9445 = vmatmul.mubr.msk.f32.gmra.mxu0 %vm323_vm0, %v10844_v34 }
  0xd4   : > { %9447 = vmatprep.mubr.msk.f32.mxu0 %vm323_vm0, %v10849_v35 }
  0xd7   : > { %9448 = vmatmul.mubr.msk.f32.gmra.mxu0 %vm323_vm0, %v10864_v46 }
  0xd8   : > { %9450 = vmatprep.mubr.msk.f32.mxu0 %vm323_vm0, %v10869_v47 }
  0xdb   : > { %9451 = vmatmul.mubr.msk.f32.gmra.mxu0 %vm323_vm0, %v10884_v58 }
  0xdc   : > { %9453 = vmatprep.mubr.msk.f32.mxu0 %vm323_vm0, %v10889_v59 }
  0xdf   : > { %9454 = vmatmul.mubr.msk.f32.gmra.mxu0 %vm323_vm0, %v10904_v6 }
  0xe0   : > { %9456 = vmatprep.mubr.msk.f32.mxu0 %vm323_vm0, %v10909_v9 }
  0xe3   : > { %9457 = vmatmul.mubr.msk.f32.gmra.mxu0 %vm323_vm0, %v10924_v13 }
  0xe4   : > { %9459 = vmatprep.mubr.msk.f32.mxu0 %vm323_vm0, %v10929_v16 }
  0xe7   : > { %9460 = vmatmul.mubr.msk.f32.gmra.mxu0 %vm323_vm0, %v10944_v22 }
  0xe8   : > { %9462 = vmatprep.mubr.msk.f32.mxu0 %vm323_vm0, %v11072_v25 }
  0xea   : > { %v9072_v43 = vpop.f32.mrf.mxu0 }
  0xeb   : > { %v9118_v44 = vpop.f32.mrf.mxu1  ;;  %9463 = vmatmul.mubr.msk.f32.gmra.mxu0 %vm323_vm0, %v11086_v14 }
  0xec   : > { %v681_v45 = vadd.f32 %v9118_v44, %v9072_v43  ;;  %9465 = vmatprep.mubr.msk.f32.mxu0 %vm323_vm0, %v7958_v42  ;;  %v11232_v49 = vpop.f32.mrf.mxu0 }
  0xed   : > { %v11234_v50 = vpop.f32.mrf.mxu1 }
  0xee   : > { %v9075_v51 = vpop.f32.mrf.mxu0 }
  0xef   : > { %v9121_v54 = vpop.f32.mrf.mxu1  ;;  %9466 = vmatmul.mubr.msk.f32.gmra.mxu0 %vm323_vm0, %v7959_v48 }
  0xf0   : > { %v691_v55 = vadd.f32 %v9121_v54, %v9075_v51  ;;  %v11237_v56 = vpop.f32.mrf.mxu0 }
  0xf1   : > { %v11239_v57 = vpop.f32.mrf.mxu1 }
  0xf3   : > { %v9078_v60 = vpop.f32.mrf.mxu0  ;;  %v9124_v61 = vpop.f32.mrf.mxu1 }
  0xf4   : > { %v701_v62 = vadd.f32 %v9124_v61, %v9078_v60 }
  0xf5   : > { %v11241_v63 = vpop.f32.mrf.mxu0  ;;  %v11243_v2 = vpop.f32.mrf.mxu1 }
  0xf7   : > { %v9081_v3 = vpop.f32.mrf.mxu0  ;;  %v9127_v4 = vpop.f32.mrf.mxu1 }
  0xf8   : > { %v711_v5 = vadd.f32 %v9127_v4, %v9081_v3 }
  0xf9   : > { %v11245_v7 = vpop.f32.mrf.mxu0  ;;  %v11247_v8 = vpop.f32.mrf.mxu1 }
  0xfb   : > { %v9084_v15 = vpop.f32.mrf.mxu0  ;;  %v9130_v18 = vpop.f32.mrf.mxu1 }
  0xfc   : > { %v721_v19 = vadd.f32 %v9130_v18, %v9084_v15 }
  0xfd   : > { %v11249_v23 = vpop.f32.mrf.mxu0  ;;  %v11251_v24 = vpop.f32.mrf.mxu1 }
  0xff   : > { %v9087_v34 = vpop.f32.mrf.mxu0  ;;  %v9133_v35 = vpop.f32.mrf.mxu1 }
 0x100   : > { %v731_v46 = vadd.f32 %v9133_v35, %v9087_v34 }
 0x101   : > { %v11253_v47 = vpop.f32.mrf.mxu0  ;;  %v11255_v58 = vpop.f32.mrf.mxu1 }
 0x103   : > { %v9090_v59 = vpop.f32.mrf.mxu0  ;;  %v9136_v6 = vpop.f32.mrf.mxu1 }
 0x104   : > { %v741_v9 = vadd.f32 %v9136_v6, %v9090_v59 }
 0x105   : > { %v11257_v13 = vpop.f32.mrf.mxu0  ;;  %v11259_v16 = vpop.f32.mrf.mxu1 }
 0x107   : > { %v9093_v17 = vpop.f32.mrf.mxu0  ;;  %v9139_v22 = vpop.f32.mrf.mxu1 }
 0x108   : > { %v751_v26 = vadd.f32 %v9139_v22, %v9093_v17 }
 0x109   : > { %v11261_v41 = vpop.f32.mrf.mxu0  ;;  %v11263_v52 = vpop.f32.mrf.mxu1 }
 0x10b   : > { %v9096_v53 = vpop.f32.mrf.mxu0  ;;  %v9142_v0 = vpop.f32.mrf.mxu1 }
 0x10c   : > { %v761_v1 = vadd.f32 %v9142_v0, %v9096_v53 }
 0x10d   : > { %v11265_v10 = vpop.f32.mrf.mxu0  ;;  %v11267_v11 = vpop.f32.mrf.mxu1 }
 0x10f   : > { %v9099_v20 = vpop.f32.mrf.mxu0  ;;  %v9145_v29 = vpop.f32.mrf.mxu1 }
 0x110   : > { %v771_v21 = vadd.f32 %v9145_v29, %v9099_v20 }
 0x111   : > { %v11269_v25 = vpop.f32.mrf.mxu0  ;;  %v11271_v12 = vpop.f32.mrf.mxu1 }
 0x113   : > { %v9164_v14 = vpop.f32.mrf.mxu0  ;;  %v9210_v40 = vpop.f32.mrf.mxu1 }
 0x114   : > { %v1028_v27 = vadd.f32 %v9164_v14, %v681_v45 }
 0x115   : > { %v11273_v28 = vpop.f32.mrf.mxu0  ;;  %v11275_v30 = vpop.f32.mrf.mxu1 }
 0x116   : > { %v1304_v31 = vadd.f32 %v9210_v40, %v1028_v27 }
 0x117   : > { %v9167_v32 = vpop.f32.mrf.mxu0  ;;  %v9213_v33 = vpop.f32.mrf.mxu1 }
 0x118   : > { %v1030_v36 = vadd.f32 %v9167_v32, %v691_v55 }
 0x119   : > { %v11277_v37 = vpop.f32.mrf.mxu0  ;;  %v11279_v38 = vpop.f32.mrf.mxu1 }
 0x11a   : > { %v1306_v39 = vadd.f32 %v9213_v33, %v1030_v36 }
 0x11b   : > { %v9170_v42 = vpop.f32.mrf.mxu0  ;;  %v9216_v43 = vpop.f32.mrf.mxu1 }
 0x11c   : > { %v1032_v44 = vadd.f32 %v9170_v42, %v701_v62 }
 0x11d   : > { %v11281_v48 = vpop.f32.mrf.mxu0  ;;  %v11283_v51 = vpop.f32.mrf.mxu1 }
 0x11e   : > { %v1308_v45 = vadd.f32 %v9216_v43, %v1032_v44 }
 0x11f   : > { %v9173_v54 = vpop.f32.mrf.mxu0  ;;  %v9219_v60 = vpop.f32.mrf.mxu1 }
 0x120   : > { %v1034_v61 = vadd.f32 %v9173_v54, %v711_v5 }
 0x121   : > { %v11285_v3 = vpop.f32.mrf.mxu0  ;;  %v11287_v4 = vpop.f32.mrf.mxu1 }
 0x122   : > { %v1310_v55 = vadd.f32 %v9219_v60, %v1034_v61 }
 0x123   : > { %v9176_v15 = vpop.f32.mrf.mxu0  ;;  %v9222_v18 = vpop.f32.mrf.mxu1 }
 0x124   : > { %v1036_v34 = vadd.f32 %v9176_v15, %v721_v19 }
 0x125   : > { %v11289_v35 = vpop.f32.mrf.mxu0  ;;  %v11291_v59 = vpop.f32.mrf.mxu1 }
 0x126   : > { %v1312_v62 = vadd.f32 %v9222_v18, %v1036_v34 }
 0x127   : > { %v9179_v6 = vpop.f32.mrf.mxu0  ;;  %v9225_v17 = vpop.f32.mrf.mxu1 }
 0x128   : > { %v1038_v22 = vadd.f32 %v9179_v6, %v731_v46 }
 0x129   : > { %v11293_v53 = vpop.f32.mrf.mxu0  ;;  %v11295_v0 = vpop.f32.mrf.mxu1 }
 0x12a   : > { %v1314_v5 = vadd.f32 %v9225_v17, %v1038_v22 }
 0x12b   : > { %v9182_v20 = vpop.f32.mrf.mxu0  ;;  %v9228_v29 = vpop.f32.mrf.mxu1 }
 0x12c   : > { %v1040_v14 = vadd.f32 %v9182_v20, %v741_v9 }
 0x12d   : > { %v11297_v40 = vpop.f32.mrf.mxu0  ;;  %v11299_v27 = vpop.f32.mrf.mxu1 }
 0x12e   : > { %13368 = vst [vmem:[#allocation7_spill] sm:$0xff] %v11299_v27  ;;  %v1316_v19 = vadd.f32 %v9228_v29, %v1040_v14 }
 0x12f   : > { %v9185_v32 = vpop.f32.mrf.mxu0  ;;  %v9231_v33 = vpop.f32.mrf.mxu1 }
 0x130   : > { %v1042_v36 = vadd.f32 %v9185_v32, %v751_v26 }
 0x131   : > { %v11301_v42 = vpop.f32.mrf.mxu0  ;;  %v11303_v43 = vpop.f32.mrf.mxu1 }
 0x132   : > { %13369 = vst [vmem:[#allocation8_spill] sm:$0xff] %v11303_v43  ;;  %v1318_v46 = vadd.f32 %v9231_v33, %v1042_v36 }
 0x133   : > { %v9188_v44 = vpop.f32.mrf.mxu0  ;;  %v9234_v54 = vpop.f32.mrf.mxu1 }
 0x134   : > { %v1044_v60 = vadd.f32 %v9188_v44, %v761_v1 }
 0x135   : > { %v11305_v61 = vpop.f32.mrf.mxu0  ;;  %v11307_v15 = vpop.f32.mrf.mxu1 }
 0x136   : > { %13370 = vst [vmem:[#allocation9_spill] sm:$0xff] %v11307_v15  ;;  %v1320_v9 = vadd.f32 %v9234_v54, %v1044_v60 }
 0x137   : > { %v9191_v18 = vpop.f32.mrf.mxu0  ;;  %v9237_v34 = vpop.f32.mrf.mxu1 }
 0x138   : > { %v1046_v6 = vadd.f32 %v9191_v18, %v771_v21 }
 0x139   : > { %v11309_v17 = vpop.f32.mrf.mxu0  ;;  %v11311_v22 = vpop.f32.mrf.mxu1 }
 0x13a   : > { %13371 = vst [vmem:[#allocation10_spill] sm:$0xff] %v11311_v22  ;;  %v1322_v26 = vadd.f32 %v9237_v34, %v1046_v6 }
 0x13b   : > { %v9256_v20 = vpop.f32.mrf.mxu0  ;;  %v9302_v29 = vpop.f32.mrf.mxu1 }
 0x13c   : > { %v1577_v14 = vadd.f32 %v9256_v20, %v1304_v31 }
 0x13d   : > { %v11313_v32 = vpop.f32.mrf.mxu0  ;;  %v11315_v33 = vpop.f32.mrf.mxu1 }
 0x13e   : > { %13372 = vst [vmem:[#allocation11_spill] sm:$0xff] %v11315_v33  ;;  %v1850_v1 = vadd.f32 %v9302_v29, %v1577_v14 }
 0x13f   : > { %v9259_v36 = vpop.f32.mrf.mxu0  ;;  %v9305_v44 = vpop.f32.mrf.mxu1 }
 0x140   : > { %v1579_v15 = vadd.f32 %v9259_v36, %v1306_v39 }
 0x141   : > { %v11317_v54 = vpop.f32.mrf.mxu0  ;;  %v11319_v60 = vpop.f32.mrf.mxu1 }
 0x142   : > { %13373 = vst [vmem:[#allocation12_spill] sm:$0xff] %v11319_v60  ;;  %v1852_v21 = vadd.f32 %v9305_v44, %v1579_v15 }
 0x143   : > { %v9262_v18 = vpop.f32.mrf.mxu0  ;;  %v9308_v43 = vpop.f32.mrf.mxu1 }
 0x144   : > { %v1581_v22 = vadd.f32 %v9262_v18, %v1308_v45 }
 0x145   : > { %v11321_v34 = vpop.f32.mrf.mxu0  ;;  %v11323_v6 = vpop.f32.mrf.mxu1 }
 0x146   : > { %13374 = vst [vmem:[#allocation13_spill] sm:$0xff] %v11323_v6  ;;  %v1854_v31 = vadd.f32 %v9308_v43, %v1581_v22 }
 0x147   : > { %v9265_v20 = vpop.f32.mrf.mxu0  ;;  %v11325_v27 = vpop.f32.mrf.mxu1 }
 0x148   : > { %v11327_v29 = vadd.f32 %v9265_v20, %v1310_v55 }
 0x149   : > { %v11329_v14 = vpop.f32.mrf.mxu0  ;;  %v11331_v39 = vpop.f32.mrf.mxu1 }
 0x14a   : > { %13375 = vst [vmem:[#allocation14_spill] sm:$0xff] %v11331_v39 }
 0x14b   : > { %v9268_v36 = vpop.f32.mrf.mxu0  ;;  %v11333_v60 = vpop.f32.mrf.mxu1 }
 0x14c   : > { %13376 = vst [vmem:[#allocation15_spill] sm:$0xff] %v11333_v60  ;;  %v11335_v15 = vadd.f32 %v9268_v36, %v1312_v62 }
 0x14d   : > { %v11337_v45 = vpop.f32.mrf.mxu0  ;;  %v11339_v44 = vpop.f32.mrf.mxu1 }
 0x14e   : > { %13377 = vst [vmem:[#allocation16_spill] sm:$0xff] %v11335_v15  ;;  %13378 = vst [vmem:[#allocation17_spill] sm:$0xff] %v11339_v44 }
 0x14f   : > { %v9271_v18 = vpop.f32.mrf.mxu0  ;;  %v11341_v43 = vpop.f32.mrf.mxu1 }
 0x150   : > { %13379 = vst [vmem:[#allocation18_spill] sm:$0xff] %v11341_v43  ;;  %v11343_v22 = vadd.f32 %v9271_v18, %v1314_v5 }
 0x151   : > { %v11345_v55 = vpop.f32.mrf.mxu0  ;;  %v11347_v20 = vpop.f32.mrf.mxu1 }
 0x152   : > { %13380 = vst [vmem:[#allocation19_spill] sm:$0xff] %v11343_v22  ;;  %13381 = vst [vmem:[#allocation20_spill] sm:$0xff] %v11347_v20 }
 0x153   : > { %v9274_v6 = vpop.f32.mrf.mxu0  ;;  %v11349_v33 = vpop.f32.mrf.mxu1 }
 0x154   : > { %13382 = vst [vmem:[#allocation21_spill] sm:$0xff] %v11349_v33  ;;  %v11351_v39 = vadd.f32 %v9274_v6, %v1316_v19 }
 0x155   : > { %v11353_v62 = vpop.f32.mrf.mxu0  ;;  %v11355_v36 = vpop.f32.mrf.mxu1 }
 0x156   : > { %13383 = vst [vmem:[#allocation22_spill] sm:$0xff] %v11351_v39  ;;  %13384 = vst [vmem:[#allocation23_spill] sm:$0xff] %v11355_v36 }
 0x157   : > { %v9277_v60 = vpop.f32.mrf.mxu0  ;;  %v11357_v44 = vpop.f32.mrf.mxu1 }
 0x158   : > { %13385 = vst [vmem:[#allocation24_spill] sm:$0xff] %v11357_v44  ;;  %v11359_v15 = vadd.f32 %v9277_v60, %v1318_v46 }
 0x159   : > { %v11361_v5 = vpop.f32.mrf.mxu0  ;;  %v11363_v18 = vpop.f32.mrf.mxu1 }
 0x15a   : > { %13386 = vst [vmem:[#allocation25_spill] sm:$0xff] %v11359_v15  ;;  %13387 = vst [vmem:[#allocation26_spill] sm:$0xff] %v11363_v18 }
 0x15b   : > { %v9280_v43 = vpop.f32.mrf.mxu0  ;;  %v11365_v20 = vpop.f32.mrf.mxu1 }
 0x15c   : > { %13388 = vst [vmem:[#allocation27_spill] sm:$0xff] %v11365_v20  ;;  %v11367_v22 = vadd.f32 %v9280_v43, %v1320_v9 }
 0x15d   : > { %v11369_v19 = vpop.f32.mrf.mxu0  ;;  %v11371_v6 = vpop.f32.mrf.mxu1 }
 0x15e   : > { %13389 = vst [vmem:[#allocation28_spill] sm:$0xff] %v11367_v22  ;;  %13390 = vst [vmem:[#allocation29_spill] sm:$0xff] %v11371_v6 }
 0x15f   : > { %v9283_v33 = vpop.f32.mrf.mxu0  ;;  %v11373_v36 = vpop.f32.mrf.mxu1 }
 0x160   : > { %13391 = vst [vmem:[#allocation30_spill] sm:$0xff] %v11373_v36  ;;  %v11375_v39 = vadd.f32 %v9283_v33, %v1322_v26 }
 0x161   : > { %v11377_v46 = vpop.f32.mrf.mxu0  ;;  %v11379_v60 = vpop.f32.mrf.mxu1 }
 0x162   : > { %13392 = vst [vmem:[#allocation31_spill] sm:$0xff] %v11375_v39  ;;  %13393 = vst [vmem:[#allocation32_spill] sm:$0xff] %v11379_v60 }
 0x163   : > { %v9348_v44 = vpop.f32.mrf.mxu0  ;;  %v11381_v18 = vpop.f32.mrf.mxu1 }
 0x164   : > { %13394 = vst [vmem:[#allocation33_spill] sm:$0xff] %v11381_v18  ;;  %v11383_v15 = vadd.f32 %v9348_v44, %v1850_v1 }
 0x165   : > { %v11385_v9 = vpop.f32.mrf.mxu0  ;;  %v11387_v43 = vpop.f32.mrf.mxu1 }
 0x166   : > { %13395 = vst [vmem:[#allocation34_spill] sm:$0xff] %v11383_v15  ;;  %13396 = vst [vmem:[#allocation35_spill] sm:$0xff] %v11387_v43 }
 0x167   : > { %v9351_v20 = vpop.f32.mrf.mxu0  ;;  %v11391_v22 = vpop.f32.mrf.mxu1 }
 0x168   : > { %v11389_v6 = vadd.f32 %v9351_v20, %v1852_v21  ;;  %13398 = vst [vmem:[#allocation37_spill] sm:$0xff] %v11391_v22 }
 0x169   : > { %v11393_v26 = vpop.f32.mrf.mxu0  ;;  %v11397_v39 = vpop.f32.mrf.mxu1 }
 0x16a   : > { %13397 = vst [vmem:[#allocation36_spill] sm:$0xff] %v11389_v6  ;;  %13399 = vst [vmem:[#allocation38_spill] sm:$0xff] %v11393_v26 }
 0x16b   : > { %v9354_v33 = vpop.f32.mrf.mxu0  ;;  %13401 = vst [vmem:[#allocation40_spill] sm:$0xff] %v11397_v39  ;;  %v11403_v44 = vpop.f32.mrf.mxu1 }
 0x16c   : > { %v11395_v36 = vadd.f32 %v9354_v33, %v1854_v31  ;;  %13403 = vst [vmem:[#allocation42_spill] sm:$0xff] %v11403_v44 }
 0x16d   : > { %v11399_v60 = vpop.f32.mrf.mxu0  ;;  %v11409_v21 = vpop.f32.mrf.mxu1 }
 0x16e   : > { %13400 = vst [vmem:[#allocation39_spill] sm:$0xff] %v11395_v36  ;;  %13402 = vst [vmem:[#allocation41_spill] sm:$0xff] %v11399_v60 }
 0x16f   : > { %v11401_v1 = vpop.f32.mrf.mxu0  ;;  %13404 = vst [vmem:[#allocation43_spill] sm:$0xff] %v11409_v21  ;;  %v11415_v31 = vpop.f32.mrf.mxu1 }
 0x171   : > { %v11405_v18 = vpop.f32.mrf.mxu0  ;;  %v11421_v39 = vpop.f32.mrf.mxu1 }
 0x173   : > { %v11407_v43 = vpop.f32.mrf.mxu0  ;;  %v11427_v6 = vpop.f32.mrf.mxu1 }
 0x174   : > { %13410 = vst [vmem:[#allocation49_spill] sm:$0xff] %v11427_v6 }
 0x175   : > { %v11411_v20 = vpop.f32.mrf.mxu0  ;;  %v11433_v15 = vpop.f32.mrf.mxu1 }
 0x176   : > { %13413 = vst [vmem:[#allocation52_spill] sm:$0xff] %v11433_v15 }
 0x177   : > { %v11413_v22 = vpop.f32.mrf.mxu0  ;;  %v11448_v6 = vpop.f32.mrf.mxu1 }
 0x178   : > { %13405 = vst [vmem:[#allocation44_spill] sm:$0xff] %v11413_v22 }
 0x179   : > { %v11417_v33 = vpop.f32.mrf.mxu0 }
 0x17a   : > { %13406 = vst [vmem:[#allocation45_spill] sm:$0xff] %v11417_v33  ;;  %v706_v33 = vadd.f32 %v11247_v8, %v11245_v7  ;;  %v746_v8 = vadd.f32 %v11263_v52, %v11261_v41 }
 0x17b   : > { %v11419_v36 = vpop.f32.mrf.mxu0 }
 0x17c   : > { %13407 = vst [vmem:[#allocation46_spill] sm:$0xff] %v11419_v36  ;;  %v676_v36 = vadd.f32 %v11234_v50, %v11232_v49  ;;  %v3019_v49 = vld [vmem:[%s13306_s3 + $0x18] sm:$0xff]  ;;  %v3018_v50 = vld [vmem:[%s13306_s3 + $0x10] sm:$0xff] }
 0x17d   : > { %v11423_v60 = vpop.f32.mrf.mxu0  ;;  %10044 = vmatprep.subr.mxu1 %v3019_v49  ;;  %9468 = vmatprep.subr.mxu0 %v3019_v49 }
 0x17e   : > { %13408 = vst [vmem:[#allocation47_spill] sm:$0xff] %v11423_v60  ;;  %v686_v60 = vadd.f32 %v11239_v57, %v11237_v56  ;;  %v716_v56 = vadd.f32 %v11251_v24, %v11249_v23  ;;  %v726_v57 = vadd.f32 %v11255_v58, %v11253_v47  ;;  %10048 = vmatpush3.msra.mxu1 %v3019_v49  ;;  %v3017_v23 = vld [vmem:[%s13306_s3 + $0x8] sm:$0xff] }
 0x17f   : > { %v11425_v44 = vpop.f32.mrf.mxu0  ;;  %9469 = vmatpush3.msra.mxu0 %v3019_v49  ;;  %v766_v24 = vadd.f32 %v11271_v12, %v11269_v25  ;;  %10045 = vmatprep.subr.mxu1 %v3018_v50 }
 0x180   : > { %13409 = vst [vmem:[#allocation48_spill] sm:$0xff] %v11425_v44  ;;  %v1029_v15 = vadd.f32 %v11277_v37, %v686_v60  ;;  %v1035_v58 = vadd.f32 %v11289_v35, %v716_v56  ;;  %9470 = vmatprep.subr.mxu0 %v3018_v50  ;;  %v1037_v52 = vadd.f32 %v11293_v53, %v726_v57  ;;  %v13417_v60 = vld [vmem:[#allocation8_spill] sm:$0xff]  ;;  %v13422_v56 = vld [vmem:[#allocation15_spill] sm:$0xff] }
 0x181   : > { %v11429_v26 = vpop.f32.mrf.mxu0  ;;  %10049 = vmatpush3.msra.mxu1 %v3018_v50  ;;  %9471 = vmatpush3.msra.mxu0 %v3018_v50  ;;  %v1856_v35 = vadd.f32 %v11325_v27, %v11327_v29  ;;  %v13418_v29 = vld [vmem:[#allocation9_spill] sm:$0xff]  ;;  %v13421_v50 = vld [vmem:[#allocation16_spill] sm:$0xff] }
 0x182   : > { %13411 = vst [vmem:[#allocation50_spill] sm:$0xff] %v11429_v26  ;;  %v696_v26 = vadd.f32 %v11243_v2, %v11241_v63  ;;  %v736_v2 = vadd.f32 %v11259_v16, %v11257_v13  ;;  %v11480_v13 = vpop.f32.mrf.mxu1  ;;  %v1305_v41 = vadd.f32 %v11279_v38, %v1029_v15  ;;  %10046 = vmatprep.subr.mxu1 %v3017_v23 }
 0x183   : > { %v11431_v21 = vpop.f32.mrf.mxu0  ;;  %9472 = vmatprep.subr.mxu0 %v3017_v23  ;;  %v1045_v38 = vadd.f32 %v11309_v17, %v766_v24  ;;  %10050 = vmatpush3.msra.mxu1 %v3017_v23  ;;  %v1858_v57 = vadd.f32 %v13422_v56, %v13421_v50  ;;  %v13442_v56 = vld [vmem:[#allocation35_spill] sm:$0xff] }
 0x184   : > { %13412 = vst [vmem:[#allocation51_spill] sm:$0xff] %v11431_v21  ;;  %v1033_v21 = vadd.f32 %v11285_v3, %v706_v33  ;;  %v1031_v63 = vadd.f32 %v11281_v48, %v696_v26  ;;  %v1039_v25 = vadd.f32 %v11297_v40, %v736_v2  ;;  %v1041_v48 = vadd.f32 %v11301_v42, %v746_v8  ;;  %v11499_v53 = vpop.f32.mrf.mxu1  ;;  %v13423_v2 = vld [vmem:[#allocation12_spill] sm:$0xff] }
 0x185   : > { %v11435_v22 = vpop.f32.mrf.mxu0  ;;  %9473 = vmatpush3.msra.mxu0 %v3017_v23  ;;  %v1313_v40 = vadd.f32 %v11295_v0, %v1037_v52  ;;  %v1578_v42 = vadd.f32 %v11317_v54, %v1305_v41  ;;  %v13426_v52 = vld [vmem:[#allocation19_spill] sm:$0xff] }
 0x186   : > { %13414 = vst [vmem:[#allocation53_spill] sm:$0xff] %v11435_v22  ;;  %v1027_v22 = vadd.f32 %v11273_v28, %v676_v36  ;;  %v756_v28 = vadd.f32 %v11267_v11, %v11265_v10  ;;  %v1309_v47 = vadd.f32 %v11287_v4, %v1033_v21  ;;  %v1307_v11 = vadd.f32 %v11283_v51, %v1031_v63  ;;  %v13419_v21 = vld [vmem:[#allocation10_spill] sm:$0xff] }
 0x187   : > { %v11443_v44 = vpop.f32.mrf.mxu0  ;;  %v1311_v4 = vadd.f32 %v11291_v59, %v1035_v58  ;;  %v1317_v27 = vadd.f32 %v13417_v60, %v1041_v48  ;;  %v1321_v0 = vadd.f32 %v13419_v21, %v1045_v38  ;;  %v1586_v54 = vadd.f32 %v11345_v55, %v1313_v40  ;;  %v13425_v58 = vld [vmem:[#allocation17_spill] sm:$0xff] }
 0x188   : > { %v1303_v16 = vadd.f32 %v11275_v30, %v1027_v22  ;;  %v1582_v12 = vadd.f32 %v11329_v14, %v1309_v47  ;;  %v1043_v30 = vadd.f32 %v11305_v61, %v756_v28  ;;  %v1580_v61 = vadd.f32 %v11321_v34, %v1307_v11  ;;  %v13415_v14 = vld [vmem:[#allocation7_spill] sm:$0xff]  ;;  %v13416_v22 = vld [vmem:[#allocation14_spill] sm:$0xff]  ;;  %v13424_v28 = vld [vmem:[#allocation13_spill] sm:$0xff] }
 0x189   : > { %v11452_v7 = vpop.f32.mrf.mxu0  ;;  %v1315_v15 = vadd.f32 %v13415_v14, %v1039_v25  ;;  %v1584_v59 = vadd.f32 %v11337_v45, %v1311_v4  ;;  %v13420_v34 = vld [vmem:[#allocation11_spill] sm:$0xff]  ;;  %v1851_v8 = vadd.f32 %v13423_v2, %v1578_v42  ;;  %v1590_v24 = vadd.f32 %v11361_v5, %v1317_v27  ;;  %v13427_v11 = vld [vmem:[#allocation18_spill] sm:$0xff]  ;;  %v13430_v38 = vld [vmem:[#allocation21_spill] sm:$0xff] }
 0x18a   : > { %v1576_v51 = vadd.f32 %v11313_v32, %v1303_v16  ;;  %v1855_v36 = vadd.f32 %v13416_v22, %v1582_v12  ;;  %v2132_v32 = vadd.f32 %v11401_v1, %v1856_v35  ;;  %v1319_v26 = vadd.f32 %v13418_v29, %v1043_v30  ;;  %v11521_v1 = vpop.f32.mrf.mxu1  ;;  %v13428_v12 = vld [vmem:[#allocation20_spill] sm:$0xff]  ;;  %v13429_v30 = vld [vmem:[#allocation22_spill] sm:$0xff]  ;;  %v13437_v60 = vld [vmem:[#allocation29_spill] sm:$0xff] }
 0x18b   : > { %v11471_v37 = vpop.f32.mrf.mxu0  ;;  %v1588_v63 = vadd.f32 %v11353_v62, %v1315_v15  ;;  %v1853_v23 = vadd.f32 %v13424_v28, %v1580_v61  ;;  %v1857_v16 = vadd.f32 %v13425_v58, %v1584_v59  ;;  %v1594_v41 = vadd.f32 %v11377_v46, %v1321_v0  ;;  %v13433_v61 = vld [vmem:[#allocation24_spill] sm:$0xff]  ;;  %v13434_v15 = vld [vmem:[#allocation26_spill] sm:$0xff]  ;;  %v13436_v59 = vld [vmem:[#allocation27_spill] sm:$0xff] }
 0x18c   : > { %v1849_v49 = vadd.f32 %v13420_v34, %v1576_v51  ;;  %v2131_v45 = vadd.f32 %v11405_v18, %v1855_v36  ;;  %v1592_v55 = vadd.f32 %v11369_v19, %v1319_v26  ;;  %v2405_v62 = vadd.f32 %v11415_v31, %v2132_v32  ;;  %v13431_v51 = vld [vmem:[#allocation23_spill] sm:$0xff]  ;;  %v9415_v31 = vpop.f32.mrf.mxu1  ;;  %v13435_v36 = vld [vmem:[#allocation28_spill] sm:$0xff]  ;;  %v13439_v26 = vld [vmem:[#allocation49_spill] sm:$0xff] }
 0x18d   : > { %v11485_v10 = vpop.f32.mrf.mxu0  ;;  %v2134_v18 = vadd.f32 %v11407_v43, %v1858_v57  ;;  %v1860_v25 = vadd.f32 %v13427_v11, %v13426_v52  ;;  %v1859_v48 = vadd.f32 %v13428_v12, %v1586_v54  ;;  %v1862_v5 = vadd.f32 %v13430_v38, %v13429_v30  ;;  %v13432_v43 = vld [vmem:[#allocation25_spill] sm:$0xff]  ;;  %v13438_v29 = vld [vmem:[#allocation32_spill] sm:$0xff]  ;;  %v13440_v34 = vld [vmem:[#allocation34_spill] sm:$0xff] }
 0x18e   : > { %v2125_v19 = vadd.f32 %v11385_v9, %v1849_v49  ;;  %v1861_v35 = vadd.f32 %v13431_v51, %v1588_v63  ;;  %v2404_v40 = vadd.f32 %v11421_v39, %v2131_v45  ;;  %v2133_v46 = vadd.f32 %v11411_v20, %v1857_v16  ;;  %v11551_v9 = vld [vmem:[%s13307_s4] ss:$0 sm:$0xff]  ;;  %v13443_v63 = vld [vmem:[#allocation44_spill] sm:$0xff]  ;;  %v2369_v16 = vpop.f32.mrf.mxu1  ;;  %v13446_v52 = vld [vmem:[#allocation38_spill] sm:$0xff] }
 0x18f   : > { %v11493_v3 = vpop.f32.mrf.mxu0  ;;  %v1864_v14 = vadd.f32 %v13433_v61, %v13432_v43  ;;  %v1863_v22 = vadd.f32 %v13434_v15, %v1590_v24  ;;  %v1866_v32 = vadd.f32 %v13436_v59, %v13435_v36  ;;  %v1865_v27 = vadd.f32 %v13437_v60, %v1592_v55  ;;  %v13441_v49 = vld [vmem:[#allocation33_spill] sm:$0xff]  ;;  %v13445_v55 = vld [vmem:[#allocation52_spill] sm:$0xff] }
 0x190   : > { %v11554_v20 = vadd.f32 %v13438_v29, %v1594_v41  ;;  %v2407_v21 = vadd.f32 %v13439_v26, %v2134_v18  ;;  %v2399_v50 = vadd.f32 %v13441_v49, %v13440_v34  ;;  %v2398_v57 = vadd.f32 %v13442_v56, %v2125_v19  ;;  %v13444_v2 = vld [vmem:[#allocation45_spill] sm:$0xff]  ;;  %v13447_v12 = vld [vmem:[#allocation36_spill] sm:$0xff]  ;;  %v11575_v60 = vpop.f32.mrf.mxu1 }
 0x191   : > { %v11504_v17 = vpop.f32.mrf.mxu0  ;;  %v2136_v45 = vadd.f32 %v13443_v63, %v1860_v25  ;;  %v2135_v28 = vadd.f32 %v13444_v2, %v1859_v48  ;;  %v2406_v58 = vadd.f32 %v13445_v55, %v2133_v46  ;;  %v2127_v11 = vadd.f32 %v13446_v52, %v1851_v8  ;;  %v13448_v30 = vld [vmem:[#allocation37_spill] sm:$0xff]  ;;  %v13451_v8 = vld [vmem:[#allocation47_spill] sm:$0xff]  ;;  %v13452_v29 = vld [vmem:[#allocation40_spill] sm:$0xff] }
 0x192   : > { %v2401_v38 = vadd.f32 %v13448_v30, %v13447_v12  ;;  %v2672_v19 = vadd.f32 %v11471_v37, %v2399_v50  ;;  %v2137_v36 = vadd.f32 %v13451_v8, %v1861_v35  ;;  %v2379_v55 = vpop.f32.mrf.mxu1  ;;  %v13459_v12 = vld [vmem:[#allocation51_spill] sm:$0xff] }
 0x193   : > { %v11514_v33 = vpop.f32.mrf.mxu0  ;;  %v2409_v61 = vadd.f32 %v11448_v6, %v2136_v45  ;;  %v2408_v15 = vadd.f32 %v11480_v13, %v2135_v28  ;;  %v2400_v26 = vadd.f32 %v13452_v29, %v2127_v11  ;;  %v13457_v28 = vld [vmem:[#allocation50_spill] sm:$0xff] }
 0x194   : > { %v2699_v49 = vadd.f32 %v11551_v9, %v2672_v19  ;;  %v2410_v63 = vadd.f32 %v11521_v1, %v2137_v36  ;;  %v2142_v1 = vadd.f32 %v13459_v12, %v1866_v32 }
 0x195   : > { %v11527_v47 = vpop.f32.mrf.mxu0  ;;  %v2673_v19 = vadd.f32 %v11504_v17, %v2400_v26  ;;  %v13461_v26 = vld [vmem:[#allocation30_spill] sm:$0xff] }
 0x196   : > { %v7982_v30 = vmul.f32 -1.442695, %v2699_v49 }
 0x197   : > { %v9449_v4 = vpop.f32.mrf.mxu0  ;;  %v2700_v36 = vadd.f32 %v11551_v9, %v2673_v19 }
 0x198   : > { %v2678_v42 = vadd.f32 %v9449_v4, %v2405_v62  ;;  %v13449_v4 = vld [vmem:[#allocation46_spill] sm:$0xff] }
 0x199   : > { %v2602_v39 = vpop.f32.mrf.mxu0  ;;  %v2138_v51 = vadd.f32 %v13449_v4, %v1862_v5  ;;  %v2671_v5 = vadd.f32 %v11485_v10, %v2398_v57  ;;  %v13456_v10 = vld [vmem:[#allocation43_spill] sm:$0xff] }
 0x19a   : > { %v2705_v0 = vadd.f32 %v11551_v9, %v2678_v42  ;;  %v2677_v54 = vadd.f32 %v2602_v39, %v2404_v40  ;;  %v13450_v42 = vld [vmem:[#allocation41_spill] sm:$0xff] }
 0x19b   : > { %v9452_v24 = vpop.f32.mrf.mxu0  ;;  %v2129_v43 = vadd.f32 %v13450_v42, %v1853_v23  ;;  %v2411_v35 = vadd.f32 %v11499_v53, %v2138_v51 }
 0x19c   : > { %v7988_v41 = vmul.f32 -1.442695, %v2705_v0  ;;  %v2704_v62 = vadd.f32 %v11551_v9, %v2677_v54  ;;  %v2680_v18 = vadd.f32 %v9452_v24, %v2407_v21  ;;  %v13453_v21 = vld [vmem:[#allocation39_spill] sm:$0xff]  ;;  %v13454_v0 = vld [vmem:[#allocation42_spill] sm:$0xff]  ;;  %v13455_v54 = vld [vmem:[#allocation48_spill] sm:$0xff]  ;;  %v2139_v24 = vadd.f32 %v13457_v28, %v1863_v22 }
 0x19d   : > { %v2612_v25 = vpop.f32.mrf.mxu0  ;;  %v2403_v23 = vadd.f32 %v13454_v0, %v13453_v21  ;;  %v2140_v6 = vadd.f32 %v13455_v54, %v1864_v14  ;;  %v2402_v57 = vadd.f32 %v13456_v10, %v2129_v43  ;;  %v2698_v14 = vadd.f32 %v11551_v9, %v2671_v5 }
 0x19e   : > { %10130 = vpow2.f32 %v7988_v41  ;;  %v7987_v48 = vmul.f32 -1.442695, %v2704_v62  ;;  %v2707_v40 = vadd.f32 %v11551_v9, %v2680_v18  ;;  %v2679_v46 = vadd.f32 %v2612_v25, %v2406_v58  ;;  %v13458_v62 = vld [vmem:[#allocation53_spill] sm:$0xff] }
 0x19f   : > { %v9455_v59 = vpop.f32.mrf.mxu0  ;;  %v2413_v41 = vadd.f32 %v9415_v31, %v2140_v6  ;;  %v2141_v18 = vadd.f32 %v13458_v62, %v1865_v27  ;;  %v2674_v22 = vadd.f32 %v11493_v3, %v2401_v38  ;;  %v9421_v31 = vpop.f32.mrf.mxu1  ;;  %v2143_v3 = vadd.f32 %v11452_v7, %v11554_v20  ;;  %v13460_v20 = vld [vmem:[#allocation31_spill] sm:$0xff] }
 0x1a0   : > { %10132 = vpow2.f32 %v7987_v48  ;;  %v7990_v37 = vmul.f32 -1.442695, %v2707_v40  ;;  %v2706_v39 = vadd.f32 %v11551_v9, %v2679_v46  ;;  %v2682_v34 = vadd.f32 %v9455_v59, %v2409_v61 }
 0x1a1   : > { %v2622_v13 = vpop.f32.mrf.mxu0  ;;  %v2412_v40 = vadd.f32 %v2369_v16, %v2139_v24  ;;  %v7981_v46 = vmul.f32 -1.442695, %v2698_v14  ;;  %v2414_v43 = vadd.f32 %v2379_v55, %v2141_v18  ;;  %v2675_v61 = vadd.f32 %v11527_v47, %v2402_v57  ;;  %v2389_v47 = vpop.f32.mrf.mxu1 }
 0x1a2   : > { %v7989_v50 = vmul.f32 -1.442695, %v2706_v39  ;;  %v2681_v56 = vadd.f32 %v2622_v13, %v2408_v15  ;;  %10134 = vpow2.f32 %v7990_v37  ;;  %v2709_v45 = vadd.f32 %v11551_v9, %v2682_v34 }
 0x1a3   : > { %v9458_v2 = vpop.f32.mrf.mxu0  ;;  %v2701_v16 = vadd.f32 %v11551_v9, %v2674_v22  ;;  %v2676_v37 = vadd.f32 %v11514_v33, %v2403_v23  ;;  %v1868_v21 = vadd.f32 %v13461_v26, %v13460_v20  ;;  %v2415_v0 = vadd.f32 %v11575_v60, %v2142_v1  ;;  %v11662_v26 = vld [vmem:[%s10517_s18 + $0x79] sm:$0xff] }
 0x1a4   : > { %v2708_v58 = vadd.f32 %v11551_v9, %v2681_v56  ;;  %v2684_v53 = vadd.f32 %v9458_v2, %v2411_v35  ;;  %10136 = vpow2.f32 %v7989_v50  ;;  %v7992_v52 = vmul.f32 -1.442695, %v2709_v45 }
 0x1a5   : > { %v2632_v11 = vpop.f32.mrf.mxu0  ;;  %v2702_v54 = vadd.f32 %v11551_v9, %v2675_v61  ;;  %v2144_v50 = vadd.f32 %v11443_v44, %v1868_v21  ;;  %v2416_v33 = vadd.f32 %v2389_v47, %v2143_v3  ;;  %v7983_v23 = vmul.f32 -1.442695, %v2700_v36 }
 0x1a6   : > { %v7991_v4 = vmul.f32 -1.442695, %v2708_v58  ;;  %v2711_v51 = vadd.f32 %v11551_v9, %v2684_v53  ;;  %10138 = vpow2.f32 %v7992_v52  ;;  %v2683_v25 = vadd.f32 %v2632_v11, %v2410_v63  ;;  %v3016_v58 = vld [vmem:[%s13306_s3] sm:$0xff] }
 0x1a7   : > { %v9461_v48 = vpop.f32.mrf.mxu0  ;;  %v7984_v57 = vmul.f32 -1.442695, %v2701_v16  ;;  %v2703_v63 = vadd.f32 %v11551_v9, %v2676_v37  ;;  %v7985_v28 = vmul.f32 -1.442695, %v2702_v54  ;;  %10047 = vmatprep.subr.mxu1 %v3016_v58  ;;  %9474 = vmatprep.subr.mxu0 %v3016_v58 }
 0x1a8   : > { %v7994_v27 = vmul.f32 -1.442695, %v2711_v51  ;;  %v2686_v42 = vadd.f32 %v9461_v48, %v2413_v41  ;;  %10140 = vpow2.f32 %v7991_v4  ;;  %v2710_v32 = vadd.f32 %v11551_v9, %v2683_v25  ;;  %10051 = vmatpush3.msra.mxu1 %v3016_v58  ;;  %9475 = vmatpush3.msra.mxu0 %v3016_v58 }
 0x1a9   : > { %v2642_v15 = vpop.f32.mrf.mxu0  ;;  %10142 = vpow2.f32 %v7982_v30  ;;  %v2417_v41 = vadd.f32 %v9421_v31, %v2144_v50  ;;  %v7986_v62 = vmul.f32 -1.442695, %v2703_v63  ;;  %v10356_v30 = vmov 0.0  }
 0x1aa   : > { %v2713_v17 = vadd.f32 %v11551_v9, %v2686_v42  ;;  %v2685_v38 = vadd.f32 %v2642_v15, %v2412_v40  ;;  %10144 = vpow2.f32 %v7994_v27  ;;  %v7993_v59 = vmul.f32 -1.442695, %v2710_v32  ;;  %2862 = vst.msk [vmem:[#allocation2 + $0x48] sm:$0x1] %vm2858_vm1, %v10356_v30  ;;  %2859 = vst.msk [vmem:[#allocation2] sm:$0x1] %vm2858_vm1, %v10356_v30 }
 0x1ab   : > { %v10131_v8 = vpop.eup %10130  ;;  %v9464_v5 = vpop.f32.mrf.mxu0  ;;  %10146 = vpow2.f32 %v7981_v46  ;;  %2860 = vst.msk [vmem:[#allocation2 + $0x18] sm:$0x1] %vm2858_vm1, %v10356_v30  ;;  %2861 = vst.msk [vmem:[#allocation2 + $0x30] sm:$0x1] %vm2858_vm1, %v10356_v30 }
 0x1ac   : > { %v7996_v39 = vmul.f32 -1.442695, %v2713_v17  ;;  %v2712_v29 = vadd.f32 %v11551_v9, %v2685_v38  ;;  %10148 = vpow2.f32 %v7993_v59  ;;  %v2785_v34 = vadd.f32 1.0, %v10131_v8  ;;  %2863 = vst.msk [vmem:[#allocation2 + $0x60] sm:$0x1] %vm2858_vm1, %v10356_v30  ;;  %v11641_v17 = vld [vmem:[%s10517_s18 + $0x61] sm:$0xff] }
 0x1ad   : > { %v10133_v7 = vpop.eup %10132  ;;  %v2652_v6 = vpop.f32.mrf.mxu0  ;;  %v2688_v60 = vadd.f32 %v9464_v5, %v2415_v0  ;;  %2864 = vst.msk [vmem:[#allocation2 + $0x78] sm:$0x1] %vm2858_vm1, %v10356_v30  ;;  %2865 = vst.msk [vmem:[#allocation2 + $0x90] sm:$0x1] %vm2858_vm1, %v10356_v30  ;;  %v11651_v59 = vld [vmem:[%s13305_s2 + $0x18] sm:$0xff] }
 0x1ae   : > { %v2784_v13 = vadd.f32 1.0, %v10133_v7  ;;  %v7995_v35 = vmul.f32 -1.442695, %v2712_v29  ;;  %v2687_v49 = vadd.f32 %v2652_v6, %v2414_v43  ;;  %10150 = vpow2.f32 %v7996_v39  ;;  %2866 = vst.msk [vmem:[#allocation2 + $0xa8] sm:$0x1] %vm2858_vm1, %v10356_v30  ;;  %9500 = vmatprep.subr.mxu1 %v11651_v59  ;;  %v11657_v39 = vld [vmem:[%s10517_s18 + $0x69] sm:$0xff] }
 0x1af   : > { %v9467_v56 = vpop.f32.mrf.mxu0  ;;  %v10135_v10 = vpop.eup %10134  ;;  %v2715_v18 = vadd.f32 %v11551_v9, %v2688_v60  ;;  %2867 = vst.msk [vmem:[#allocation2 + $0xc0] sm:$0x1] %vm2858_vm1, %v10356_v30  ;;  %2868 = vst.msk [vmem:[#allocation2 + $0xd8] sm:$0x1] %vm2858_vm1, %v10356_v30 }
 0x1b0   : > { %10152 = vrcp.f32 %v2784_v13  ;;  %v2714_v24 = vadd.f32 %v11551_v9, %v2687_v49  ;;  %v2787_v44 = vadd.f32 1.0, %v10135_v10  ;;  %v2690_v12 = vadd.f32 %v9467_v56, %v2417_v41  ;;  %2869 = vst.msk [vmem:[#allocation2 + $0x11] sm:$0x1] %vm2858_vm1, %v10356_v30  ;;  %2870 = vst.msk [vmem:[#allocation2 + $0x29] sm:$0x1] %vm2858_vm1, %v10356_v30  ;;  %v11673_v49 = vld [vmem:[%s10517_s18 + $0x81] sm:$0xff] }
 0x1b1   : > { %10154 = vpow2.f32 %v7995_v35  ;;  %v2662_v45 = vpop.f32.mrf.mxu0  ;;  %v10137_v2 = vpop.eup %10136  ;;  %2871 = vst.msk [vmem:[#allocation2 + $0x41] sm:$0x1] %vm2858_vm1, %v10356_v30  ;;  %2872 = vst.msk [vmem:[#allocation2 + $0x59] sm:$0x1] %vm2858_vm1, %v10356_v30  ;;  %v7998_v25 = vmul.f32 -1.442695, %v2715_v18 }
 0x1b2   : > { %10156 = vrcp.f32 %v2785_v34  ;;  %v2689_v55 = vadd.f32 %v2662_v45, %v2416_v33  ;;  %v2786_v14 = vadd.f32 1.0, %v10137_v2  ;;  %v7997_v11 = vmul.f32 -1.442695, %v2714_v24  ;;  %2873 = vst.msk [vmem:[#allocation2 + $0x71] sm:$0x1] %vm2858_vm1, %v10356_v30  ;;  %v11678_v33 = vld [vmem:[%s10517_s18 + $0x91] sm:$0xff] }
 0x1b3   : > { %10158 = vpow2.f32 %v7983_v23  ;;  %v10139_v53 = vpop.eup %10138  ;;  %2874 = vst.msk [vmem:[#allocation2 + $0x89] sm:$0x1] %vm2858_vm1, %v10356_v30  ;;  %2875 = vst.msk [vmem:[#allocation2 + $0xa1] sm:$0x1] %vm2858_vm1, %v10356_v30  ;;  %v2717_v31 = vadd.f32 %v11551_v9, %v2690_v12  ;;  %v11689_v2 = vld [vmem:[%s10517_s18 + $0x99] sm:$0xff]  ;;  %v11694_v24 = vld [vmem:[%s10517_s18 + $0xa9] sm:$0xff] }
 0x1b4   : > { %10160 = vpow2.f32 %v7984_v57  ;;  %v2716_v1 = vadd.f32 %v11551_v9, %v2689_v55  ;;  %2876 = vst.msk [vmem:[#allocation2 + $0xb9] sm:$0x1] %vm2858_vm1, %v10356_v30  ;;  %2877 = vst.msk [vmem:[#allocation2 + $0xd1] sm:$0x1] %vm2858_vm1, %v10356_v30  ;;  %v2789_v51 = vadd.f32 1.0, %v10139_v53  ;;  %v11705_v18 = vld [vmem:[%s10517_s18 + $0xb1] sm:$0xff] }
 0x1b5   : > { %10162 = vrcp.f32 %v2786_v14  ;;  %v10141_v52 = vpop.eup %10140  ;;  %2878 = vst.msk [vmem:[#allocation2 + $0xe9] sm:$0x1] %vm2858_vm1, %v10356_v30  ;;  %v8000_v3 = vmul.f32 -1.442695, %v2717_v31  ;;  %v10253_v31 = vld [vmem:[%s10517_s18 + $0x21] sm:$0xff] }
 0x1b6   : > { %10164 = vpow2.f32 %v7985_v28  ;;  %v10143_v4 = vpop.eup %10142  ;;  %v2788_v22 = vadd.f32 1.0, %v10141_v52  ;;  %v7999_v46 = vmul.f32 -1.442695, %v2716_v1 }
 0x1b7   : > { %10166 = vrcp.f32 %v2787_v44  ;;  %v10145_v19 = vpop.eup %10144  ;;  %v2779_v37 = vadd.f32 1.0, %v10143_v4 }
 0x1b8   : > { %10168 = vpow2.f32 %v7986_v62  ;;  %v10147_v48 = vpop.eup %10146  ;;  %v2791_v27 = vadd.f32 1.0, %v10145_v19  ;;  %v10252_v19 = vld [vmem:[%s10517_s18 + $0x19] sm:$0xff] }
 0x1b9   : > { %10170 = vrcp.f32 %v2788_v22  ;;  %v10149_v40 = vpop.eup %10148  ;;  %v2778_v61 = vadd.f32 1.0, %v10147_v48 }
 0x1ba   : > { %10172 = vpow2.f32 %v7997_v11  ;;  %v2790_v42 = vadd.f32 1.0, %v10149_v40  ;;  %v11710_v11 = vld [vmem:[%s10517_s18 + $0xc1] sm:$0xff] }
 0x1bb   : > { %10174 = vrcp.f32 %v2789_v51  ;;  %v10151_v43 = vpop.eup %10150  ;;  %v10251_v51 = vld [vmem:[%s10517_s18 + $0xc9] sm:$0xff] }
 0x1bc   : > { %10176 = vpow2.f32 %v7998_v25  ;;  %v2793_v8 = vadd.f32 1.0, %v10151_v43 }
 0x1bd   : > { %v11638_v32 = vpop.eup %10152  ;;  %10178 = vrcp.f32 %v2790_v42 }
 0x1be   : > { %13462 = vst [vmem:[#allocation7_spill] sm:$0xff] %v11638_v32  ;;  %v10155_v15 = vpop.eup %10154  ;;  %10180 = vpow2.f32 %v7999_v46  ;;  %v2844_v38 = vmul.f32 %v11641_v17, %v11638_v32  ;;  %v12145_v32 = vld [vmem:[%s10517_s18 + $0x62] sm:$0xff] }
 0x1bf   : > { %v11645_v9 = vpop.eup %10156  ;;  %10182 = vrcp.f32 %v2791_v27  ;;  %v2792_v16 = vadd.f32 1.0, %v10155_v15  ;;  %v10254_v27 = vld [vmem:[%s10517_s18 + $0x31] sm:$0xff]  ;;  %13482 = vst [vmem:[#allocation28_spill] sm:$0xff] %v12145_v32 }
 0x1c0   : > { %13463 = vst [vmem:[#allocation14_spill] sm:$0xff] %v11645_v9  ;;  %v10159_v36 = vpop.eup %10158  ;;  %10184 = vrcp.f32 %v2778_v61  ;;  %2911 = vrot.lane.b32.xlu0 %v2844_v38, %s10357_s20  ;;  %v2845_v29 = vmul.f32 %v11657_v39, %v11645_v9  ;;  %v11735_v61 = vld [vmem:[%s13305_s2 + $0x38] sm:$0xff] }
 0x1c1   : > { %v10161_v5 = vpop.eup %10160  ;;  %10186 = vrcp.f32 %v2792_v16  ;;  %v2780_v20 = vadd.f32 1.0, %v10159_v36  ;;  %9532 = vmatprep.subr.mxu0 %v11735_v61 }
 0x1c2   : > { %v11654_v47 = vpop.eup %10162  ;;  %10188 = vpow2.f32 %v8000_v3  ;;  %v2781_v34 = vadd.f32 1.0, %v10161_v5  ;;  %v10255_v3 = vld [vmem:[%s10517_s18 + $0x39] sm:$0xff] }
 0x1c3   : > { %13464 = vst [vmem:[#allocation8_spill] sm:$0xff] %v11654_v47  ;;  %v10165_v7 = vpop.eup %10164  ;;  %10190 = vrcp.f32 %v2793_v8  ;;  %v2846_v21 = vmul.f32 %v11662_v26, %v11654_v47  ;;  %v10256_v8 = vld [vmem:[%s10517_s18 + $0x49] sm:$0xff] }
 0x1c4   : > { %v11666_v0 = vpop.eup %10166  ;;  %2913 = vrot.lane.b32.xlu0 %v2845_v29, %s10357_s20  ;;  %10192 = vrcp.f32 %v2779_v37  ;;  %v2782_v35 = vadd.f32 1.0, %v10165_v7  ;;  %v10257_v37 = vld [vmem:[%s10517_s18 + $0x51] sm:$0xff]  ;;  %v10258_v7 = vld [vmem:[%s10517_s18 + $0xd9] sm:$0xff] }
 0x1c5   : > { %13465 = vst [vmem:[#allocation9_spill] sm:$0xff] %v11666_v0  ;;  %v10169_v54 = vpop.eup %10168  ;;  %2915 = vrot.lane.b32.xlu1 %v2846_v21, %s10357_s20  ;;  %10194 = vrcp.f32 %v2780_v20  ;;  %v2847_v50 = vmul.f32 %v11673_v49, %v11666_v0  ;;  %v4339_v0 = vld [vmem:[%s13305_s2 + $0x68] sm:$0xff] }
 0x1c6   : > { %v11670_v6 = vpop.eup %10170  ;;  %10196 = vrcp.f32 %v2781_v34  ;;  %v2783_v63 = vadd.f32 1.0, %v10169_v54  ;;  %v10259_v54 = vld [vmem:[%s10517_s18 + $0xe1] sm:$0xff] }
 0x1c7   : > { %13466 = vst [vmem:[#allocation10_spill] sm:$0xff] %v11670_v6  ;;  %v10173_v13 = vpop.eup %10172  ;;  %v2848_v23 = vmul.f32 %v11678_v33, %v11670_v6  ;;  %10198 = vrcp.f32 %v2782_v35 }
 0x1c8   : > { %v11682_v56 = vpop.eup %10174  ;;  %v2794_v45 = vadd.f32 1.0, %v10173_v13  ;;  %10200 = vrcp.f32 %v2783_v63  ;;  %v10260_v13 = vld [vmem:[%s10517_s18 + $0xf1] sm:$0xff] }
 0x1c9   : > { %13467 = vst [vmem:[#allocation11_spill] sm:$0xff] %v11682_v56  ;;  %v10177_v10 = vpop.eup %10176  ;;  %2917 = vrot.lane.b32.xlu1 %v2847_v50, %s10357_s20  ;;  %2919 = vrot.lane.b32.xlu0 %v2848_v23, %s10357_s20  ;;  %v2849_v28 = vmul.f32 %v11689_v2, %v11682_v56  ;;  %v10261_v23 = vld [vmem:[%s10517_s18 + $0xf9] sm:$0xff]  ;;  %v12124_v56 = vld [vmem:[%s10517_s18 + $0x4a] sm:$0xff] }
 0x1ca   : > { %v11686_v57 = vpop.eup %10178  ;;  %v2795_v53 = vadd.f32 1.0, %v10177_v10  ;;  %10202 = vrcp.f32 %v2794_v45  ;;  %v2998_v45 = vld [vmem:[%s13305_s2 + $0x10] sm:$0xff] }
 0x1cb   : > { %13468 = vst [vmem:[#allocation16_spill] sm:$0xff] %v11686_v57  ;;  %v10181_v60 = vpop.eup %10180  ;;  %v2850_v55 = vmul.f32 %v11694_v24, %v11686_v57 }
 0x1cc   : > { %v11698_v44 = vpop.eup %10182  ;;  %v2796_v62 = vadd.f32 1.0, %v10181_v60  ;;  %10204 = vrcp.f32 %v2795_v53 }
 0x1cd   : > { %13469 = vst [vmem:[#allocation15_spill] sm:$0xff] %v11698_v44  ;;  %v10185_v14 = vpop.eup %10184  ;;  %2921 = vrot.lane.b32.xlu1 %v2849_v28, %s10357_s20  ;;  %2923 = vrot.lane.b32.xlu0 %v2850_v55, %s10357_s20  ;;  %v2851_v52 = vmul.f32 %v11705_v18, %v11698_v44  ;;  %v2997_v55 = vld [vmem:[%s13305_s2 + $0x8] sm:$0xff]  ;;  %v4571_v44 = vld [vmem:[%s13306_s3 + $0x78] sm:$0xff] }
 0x1ce   : > { %v11702_v58 = vpop.eup %10186  ;;  %10206 = vrcp.f32 %v2796_v62  ;;  %v2838_v25 = vmul.f32 %v10252_v19, %v10185_v14 }
 0x1cf   : > { %13470 = vst [vmem:[#allocation12_spill] sm:$0xff] %v11702_v58  ;;  %v10189_v41 = vpop.eup %10188  ;;  %v2852_v12 = vmul.f32 %v11710_v11, %v11702_v58  ;;  %v12101_v58 = vld [vmem:[%s10517_s18 + $0x32] sm:$0xff] }
 0x1d0   : > { %v11714_v1 = vpop.eup %10190  ;;  %v2797_v4 = vadd.f32 1.0, %v10189_v41 }
 0x1d1   : > { %13471 = vst [vmem:[#allocation13_spill] sm:$0xff] %v11714_v1  ;;  %2925 = vrot.lane.b32.xlu1 %v2851_v52, %s10357_s20  ;;  %2927 = vrot.lane.b32.xlu0 %v2852_v12, %s10357_s20  ;;  %v10193_v30 = vpop.eup %10192  ;;  %v2853_v22 = vmul.f32 %v10251_v51, %v11714_v1 }
 0x1d2   : > { %v11721_v48 = vpop.eup %10194  ;;  %10208 = vrcp.f32 %v2797_v4  ;;  %v2839_v46 = vmul.f32 %v10253_v31, %v10193_v30 }
 0x1d3   : > { %13472 = vst [vmem:[#allocation17_spill] sm:$0xff] %v11721_v48  ;;  %v11725_v40 = vpop.eup %10196  ;;  %v2840_v42 = vmul.f32 %v10254_v27, %v11721_v48 }
 0x1d4   : > { %13473 = vst [vmem:[#allocation19_spill] sm:$0xff] %v11725_v40  ;;  %v11730_v43 = vpop.eup %10198  ;;  %v2841_v38 = vmul.f32 %v10255_v3, %v11725_v40  ;;  %v12166_v40 = vld [vmem:[%s10517_s18 + $0x7a] sm:$0xff] }
 0x1d5   : > { %2929 = vrot.lane.b32.xlu1 %v2853_v22, %s10357_s20  ;;  %2899 = vrot.lane.b32.xlu0 %v2838_v25, %s10357_s20  ;;  %13474 = vst [vmem:[#allocation18_spill] sm:$0xff] %v11730_v43  ;;  %v11740_v15 = vpop.eup %10200  ;;  %v2842_v16 = vmul.f32 %v10256_v8, %v11730_v43  ;;  %v8001_v25 = vld [vmem:[%s10517_s18 + $0x18] sm:$0xff]  ;;  %v4338_v43 = vld [vmem:[%s13305_s2 + $0x60] sm:$0xff]  ;;  %13486 = vst [vmem:[#allocation49_spill] sm:$0xff] %v12166_v40 }
 0x1d6   : > { %13475 = vst [vmem:[#allocation20_spill] sm:$0xff] %v11740_v15  ;;  %v2843_v29 = vmul.f32 %v10257_v37, %v11740_v15 }
 0x1d7   : > { %v11746_v36 = vpop.eup %10202 }
 0x1d8   : > { %13476 = vst [vmem:[#allocation22_spill] sm:$0xff] %v11746_v36  ;;  %v2854_v20 = vmul.f32 %v10258_v7, %v11746_v36 }
 0x1d9   : > { %2901 = vrot.lane.b32.xlu1 %v2839_v46, %s10357_s20  ;;  %2903 = vrot.lane.b32.xlu0 %v2840_v42, %s10357_s20  ;;  %v11750_v5 = vpop.eup %10204 }
 0x1da   : > { %13477 = vst [vmem:[#allocation21_spill] sm:$0xff] %v11750_v5  ;;  %v2855_v34 = vmul.f32 %v10259_v54, %v11750_v5  ;;  %v4109_v5 = vld [vmem:[%s13306_s3 + $0x40] sm:$0xff] }
 0x1db   : > { %v10207_v21 = vpop.eup %10206 }
 0x1dc   : > { %v2856_v35 = vmul.f32 %v10260_v13, %v10207_v21  ;;  %v11880_v21 = vld [vmem:[%s10517_s18 + $0x38] sm:$0xff] }
 0x1dd   : > { %2905 = vrot.lane.b32.xlu1 %v2841_v38, %s10357_s20  ;;  %2907 = vrot.lane.b32.xlu0 %v2842_v16, %s10357_s20 }
 0x1df   : > { %v10209_v50 = vpop.eup %10208 }
 0x1e0   : > { %v2857_v10 = vmul.f32 %v10261_v23, %v10209_v50  ;;  %v3652_v23 = vld [vmem:[%s13306_s3 + $0x28] sm:$0xff] }
 0x1e1   : > { %2909 = vrot.lane.b32.xlu1 %v2843_v29, %s10357_s20  ;;  %2931 = vrot.lane.b32.xlu0 %v2854_v20, %s10357_s20  ;;  %v11865_v29 = vld [vmem:[%s10517_s18 + $0x30] sm:$0xff] }
 0x1e2   : > { %v3653_v20 = vld [vmem:[%s13306_s3 + $0x30] sm:$0xff] }
 0x1e5   : > { %2933 = vrot.lane.b32.xlu1 %v2855_v34, %s10357_s20  ;;  %2935 = vrot.lane.b32.xlu0 %v2856_v35, %s10357_s20 }
 0x1e9   : > { %2937 = vrot.lane.b32.xlu1 %v2857_v10, %s10357_s20  ;;  %7130 = vrot.lane.b32.xlu0 %v10254_v27, %s10357_s20  ;;  %v11909_v10 = vld [vmem:[%s10517_s18 + $0x50] sm:$0xff] }
 0x1ea   : > { %13478 = vst [vmem:[#allocation23_spill] sm:$0xff] %v11909_v10 }
 0x1ed   : > { %7132 = vrot.lane.b32.xlu1 %v10255_v3, %s10357_s20  ;;  %7134 = vrot.lane.b32.xlu0 %v10256_v8, %s10357_s20  ;;  %v8002_v3 = vld [vmem:[%s10517_s18 + $0x20] sm:$0xff] }
 0x1f1   : > { %7136 = vrot.lane.b32.xlu1 %v10257_v37, %s10357_s20  ;;  %7138 = vrot.lane.b32.xlu0 %v11641_v17, %s10357_s20 }
 0x1f5   : > { %7140 = vrot.lane.b32.xlu1 %v11657_v39, %s10357_s20  ;;  %7142 = vrot.lane.b32.xlu0 %v11662_v26, %s10357_s20 }
 0x1f9   : > { %7144 = vrot.lane.b32.xlu1 %v11673_v49, %s10357_s20  ;;  %7146 = vrot.lane.b32.xlu0 %v11678_v33, %s10357_s20 }
 0x1fd   : > { %7148 = vrot.lane.b32.xlu1 %v11689_v2, %s10357_s20  ;;  %7150 = vrot.lane.b32.xlu0 %v11694_v24, %s10357_s20 }
 0x201   : > { %7152 = vrot.lane.b32.xlu1 %v11705_v18, %s10357_s20  ;;  %7154 = vrot.lane.b32.xlu0 %v11710_v11, %s10357_s20  ;;  %v2996_v18 = vld [vmem:[%s13305_s2] sm:$0xff] }
 0x205   : > { %7156 = vrot.lane.b32.xlu1 %v10251_v51, %s10357_s20  ;;  %7158 = vrot.lane.b32.xlu0 %v10258_v7, %s10357_s20  ;;  %v3424_v7 = vld [vmem:[%s13305_s2 + $0x30] sm:$0xff] }
 0x209   : > { %7160 = vrot.lane.b32.xlu1 %v10259_v54, %s10357_s20  ;;  %v11886_v54 = vld [vmem:[%s10517_s18 + $0x48] sm:$0xff] }
 0x232   : > { %v2912_v17 = vpop.permute.xlu0 %2911 }
 0x233   : > { %2966 = vst.msk [vmem:[#allocation2 + $0x49] sm:$0xff] %vm2959_vm2, %v2912_v17  ;;  %v11912_v17 = vld [vmem:[%s10517_s18 + $0x60] sm:$0xff] }
 0x236   : > { %v2914_v39 = vpop.permute.xlu0 %2913 }
 0x237   : > { %v2916_v26 = vpop.permute.xlu1 %2915  ;;  %2967 = vst.msk [vmem:[#allocation2 + $0x51] sm:$0xff] %vm2959_vm2, %v2914_v39 }
 0x238   : > { %2968 = vst.msk [vmem:[#allocation2 + $0x61] sm:$0xff] %vm2959_vm2, %v2916_v26 }
 0x23a   : > { %v11793_v49 = vld [vmem:[#allocation2 + $0x48] sm:$0xff] }
 0x23b   : > { %v2918_v33 = vpop.permute.xlu1 %2917  ;;  %v2920_v63 = vpop.permute.xlu0 %2919  ;;  %9485 = vmatprep.mubr.msk.f32.mxu1 %vm2959_vm2, %v11793_v49  ;;  %v12094_v1 = vld [vmem:[#allocation2 + $0x49] sm:$0xff] }
 0x23c   : > { %2969 = vst.msk [vmem:[#allocation2 + $0x69] sm:$0xff] %vm2959_vm2, %v2918_v33  ;;  %2970 = vst.msk [vmem:[#allocation2 + $0x79] sm:$0xff] %vm2959_vm2, %v2920_v63  ;;  %v3422_v33 = vld [vmem:[%s13305_s2 + $0x20] sm:$0xff] }
 0x23d   : > { %v8049_v63 = vld [vmem:[%s10517_s18 + $0x19] sm:$0xff] }
 0x23e   : > { %v11799_v60 = vld [vmem:[#allocation2 + $0x50] sm:$0xff] }
 0x23f   : > { %v2922_v2 = vpop.permute.xlu1 %2921  ;;  %v2924_v28 = vpop.permute.xlu0 %2923  ;;  %9486 = vmatmul.mubr.msk.f32.vlgmr.msra.gmra.mxu1 %vm2959_vm2, %v11799_v60  ;;  %v11806_v24 = vld [vmem:[#allocation2 + $0x60] sm:$0xff]  ;;  %v12103_v57 = vld [vmem:[#allocation2 + $0x51] sm:$0xff] }
 0x240   : > { %2971 = vst.msk [vmem:[#allocation2 + $0x81] sm:$0xff] %vm2959_vm2, %v2922_v2  ;;  %2972 = vst.msk [vmem:[#allocation2 + $0x91] sm:$0xff] %vm2959_vm2, %v2924_v28  ;;  %9488 = vmatprep.mubr.msk.f32.mxu1 %vm2959_vm2, %v11806_v24  ;;  %9501 = vmatpush3.msra.mxu1 %v11651_v59  ;;  %v3654_v59 = vld [vmem:[%s13306_s3 + $0x38] sm:$0xff]  ;;  %v8050_v2 = vld [vmem:[%s10517_s18 + $0x21] sm:$0xff] }
 0x241   : > { %9502 = vmatprep.subr.mxu1 %v2998_v45  ;;  %v11933_v28 = vld [vmem:[%s10517_s18 + $0x78] sm:$0xff]  ;;  %v12111_v6 = vld [vmem:[#allocation2 + $0x61] sm:$0xff] }
 0x242   : > { %9503 = vmatpush3.msra.mxu1 %v2998_v45  ;;  %v11928_v45 = vld [vmem:[%s10517_s18 + $0x68] sm:$0xff] }
 0x243   : > { %v2926_v14 = vpop.permute.xlu1 %2925  ;;  %v2928_v53 = vpop.permute.xlu0 %2927  ;;  %v11816_v41 = vld [vmem:[#allocation2 + $0x68] sm:$0xff]  ;;  %v11818_v62 = vld [vmem:[#allocation2 + $0x78] sm:$0xff]  ;;  %9504 = vmatprep.subr.mxu1 %v2997_v55  ;;  %13479 = vst [vmem:[#allocation25_spill] sm:$0xff] %v11928_v45 }
 0x244   : > { %2973 = vst.msk [vmem:[#allocation2 + $0x99] sm:$0xff] %vm2959_vm2, %v2926_v14  ;;  %2974 = vst.msk [vmem:[#allocation2 + $0xa9] sm:$0xff] %vm2959_vm2, %v2928_v53  ;;  %9489 = vmatmul.mubr.msk.f32.gmra.mxu1 %vm2959_vm2, %v11816_v41  ;;  %v3651_v14 = vld [vmem:[%s13306_s3 + $0x20] sm:$0xff]  ;;  %v3883_v53 = vld [vmem:[%s13305_s2 + $0x58] sm:$0xff] }
 0x245   : > { %9491 = vmatprep.mubr.msk.f32.mxu1 %vm2959_vm2, %v11818_v62  ;;  %9505 = vmatpush3.msra.mxu1 %v2997_v55  ;;  %v11936_v55 = vld [vmem:[%s10517_s18 + $0x31] sm:$0xff]  ;;  %v12132_v47 = vld [vmem:[#allocation2 + $0x79] sm:$0xff] }
 0x246   : > { %9506 = vmatprep.subr.mxu1 %v2996_v18 }
 0x247   : > { %v2930_v52 = vpop.permute.xlu1 %2929  ;;  %v2900_v11 = vpop.permute.xlu0 %2899  ;;  %v11832_v12 = vld [vmem:[#allocation2 + $0x80] sm:$0xff]  ;;  %v11834_v30 = vld [vmem:[#allocation2 + $0x90] sm:$0xff]  ;;  %9507 = vmatpush3.msra.mxu1 %v2996_v18 }
 0x248   : > { %2975 = vst.msk [vmem:[#allocation2 + $0xb1] sm:$0xff] %vm2959_vm2, %v2930_v52  ;;  %2960 = vst.msk [vmem:[#allocation2 + $0x1] sm:$0xff] %vm2959_vm2, %v2900_v11  ;;  %9492 = vmatmul.mubr.msk.f32.gmra.mxu1 %vm2959_vm2, %v11832_v12  ;;  %9564 = vmatprep.subr.mxu1 %v3654_v59  ;;  %v11952_v18 = vld [vmem:[%s10517_s18 + $0x80] sm:$0xff]  ;;  %v11958_v52 = vld [vmem:[%s10517_s18 + $0x90] sm:$0xff] }
 0x249   : > { %9494 = vmatprep.mubr.msk.f32.mxu1 %vm2959_vm2, %v11834_v30  ;;  %v11961_v11 = vld [vmem:[%s10517_s18 + $0x49] sm:$0xff]  ;;  %v12147_v9 = vld [vmem:[#allocation2 + $0x81] sm:$0xff]  ;;  %v12153_v15 = vld [vmem:[#allocation2 + $0x91] sm:$0xff] }
 0x24a   : > { %13483 = vst [vmem:[#allocation27_spill] sm:$0xff] %v12147_v9  ;;  %13484 = vst [vmem:[#allocation29_spill] sm:$0xff] %v12153_v15 }
 0x24b   : > { %v2902_v4 = vpop.permute.xlu1 %2901  ;;  %v2904_v51 = vpop.permute.xlu0 %2903  ;;  %v11842_v22 = vld [vmem:[#allocation2 + $0x98] sm:$0xff]  ;;  %v11844_v19 = vld [vmem:[#allocation2 + $0xa8] sm:$0xff] }
 0x24c   : > { %2961 = vst.msk [vmem:[#allocation2 + $0x9] sm:$0xff] %vm2959_vm2, %v2902_v4  ;;  %2962 = vst.msk [vmem:[#allocation2 + $0x19] sm:$0xff] %vm2959_vm2, %v2904_v51  ;;  %9495 = vmatmul.mubr.msk.f32.gmra.mxu1 %vm2959_vm2, %v11842_v22  ;;  %v4112_v4 = vld [vmem:[%s13306_s3 + $0x58] sm:$0xff]  ;;  %v3882_v51 = vld [vmem:[%s13305_s2 + $0x50] sm:$0xff] }
 0x24d   : > { %9497 = vmatprep.mubr.msk.f32.mxu1 %vm2959_vm2, %v11844_v19  ;;  %v12168_v48 = vld [vmem:[#allocation2 + $0x99] sm:$0xff] }
 0x24e   : > { %13487 = vst [vmem:[#allocation34_spill] sm:$0xff] %v12168_v48 }
 0x24f   : > { %v2906_v31 = vpop.permute.xlu1 %2905  ;;  %v2908_v46 = vpop.permute.xlu0 %2907  ;;  %v3000_v27 = vld [vmem:[#allocation2] sm:$0xff]  ;;  %v11853_v42 = vld [vmem:[#allocation2 + $0xb0] sm:$0xff] }
 0x250   : > { %2963 = vst.msk [vmem:[#allocation2 + $0x21] sm:$0xff] %vm2959_vm2, %v2906_v31  ;;  %2964 = vst.msk [vmem:[#allocation2 + $0x31] sm:$0xff] %vm2959_vm2, %v2908_v46  ;;  %9476 = vmatprep.mubr.msk.f32.mxu0 %vm2959_vm2, %v3000_v27  ;;  %9498 = vmatmul.mubr.msk.f32.gmra.mxu1 %vm2959_vm2, %v11853_v42  ;;  %v11981_v31 = vld [vmem:[%s10517_s18 + $0x51] sm:$0xff]  ;;  %v11984_v46 = vld [vmem:[%s10517_s18 + $0xa8] sm:$0xff] }
 0x251   : > { %9508 = vmatprep.mubr.msk.f32.mxu1 %vm2959_vm2, %v8001_v25  ;;  %v11978_v25 = vld [vmem:[%s10517_s18 + $0x98] sm:$0xff]  ;;  %13480 = vst [vmem:[#allocation24_spill] sm:$0xff] %v11984_v46  ;;  %v11987_v27 = vld [vmem:[%s10517_s18 + $0x61] sm:$0xff] }
 0x253   : > { %v2910_v38 = vpop.permute.xlu1 %2909  ;;  %v2932_v8 = vpop.permute.xlu0 %2931  ;;  %v3001_v16 = vld [vmem:[#allocation2 + $0x8] sm:$0xff]  ;;  %v11862_v37 = vld [vmem:[#allocation2 + $0x18] sm:$0xff] }
 0x254   : > { %2965 = vst.msk [vmem:[#allocation2 + $0x39] sm:$0xff] %vm2959_vm2, %v2910_v38  ;;  %2976 = vst.msk [vmem:[#allocation2 + $0xc1] sm:$0xff] %vm2959_vm2, %v2932_v8  ;;  %9477 = vmatmul.mubr.msk.f32.vlgmr.msra.gmra.mxu0 %vm2959_vm2, %v3001_v16  ;;  %9509 = vmatmul.mubr.msk.f32.vlgmr.msra.gmra.mxu1 %vm2959_vm2, %v8002_v3  ;;  %v3881_v3 = vld [vmem:[%s13305_s2 + $0x48] sm:$0xff]  ;;  %v12001_v38 = vld [vmem:[%s10517_s18 + $0xb0] sm:$0xff] }
 0x255   : > { %9479 = vmatprep.mubr.msk.f32.mxu0 %vm2959_vm2, %v11862_v37  ;;  %9565 = vmatpush3.msra.mxu1 %v3654_v59  ;;  %v11955_v59 = vld [vmem:[%s10517_s18 + $0x39] sm:$0xff]  ;;  %v12004_v8 = vld [vmem:[%s10517_s18 + $0x69] sm:$0xff] }
 0x256   : > { %9511 = vmatprep.mubr.msk.f32.mxu1 %vm2959_vm2, %v11865_v29  ;;  %9533 = vmatpush3.msra.mxu0 %v11735_v61  ;;  %v3423_v61 = vld [vmem:[%s13305_s2 + $0x28] sm:$0xff]  ;;  %v12007_v16 = vld [vmem:[%s10517_s18 + $0xc0] sm:$0xff] }
 0x257   : > { %v2934_v34 = vpop.permute.xlu1 %2933  ;;  %v2936_v13 = vpop.permute.xlu0 %2935  ;;  %v11888_v35 = vld [vmem:[#allocation2 + $0x20] sm:$0xff]  ;;  %v11890_v50 = vld [vmem:[#allocation2 + $0x30] sm:$0xff]  ;;  %9534 = vmatprep.subr.mxu0 %v3424_v7  ;;  %9566 = vmatprep.subr.mxu1 %v3653_v20 }
 0x258   : > { %2977 = vst.msk [vmem:[#allocation2 + $0xc9] sm:$0xff] %vm2959_vm2, %v2934_v34  ;;  %2978 = vst.msk [vmem:[#allocation2 + $0xd9] sm:$0xff] %vm2959_vm2, %v2936_v13  ;;  %9480 = vmatmul.mubr.msk.f32.gmra.mxu0 %vm2959_vm2, %v11888_v35  ;;  %9512 = vmatmul.mubr.msk.f32.gmra.mxu1 %vm2959_vm2, %v11880_v21  ;;  %v12024_v34 = vld [vmem:[%s10517_s18 + $0xc8] sm:$0xff] }
 0x259   : > { %9482 = vmatprep.mubr.msk.f32.mxu0 %vm2959_vm2, %v11890_v50  ;;  %9514 = vmatprep.mubr.msk.f32.mxu1 %vm2959_vm2, %v11886_v54  ;;  %v12027_v13 = vld [vmem:[%s10517_s18 + $0x81] sm:$0xff] }
 0x25a   : > { %9535 = vmatpush3.msra.mxu0 %v3424_v7  ;;  %9567 = vmatpush3.msra.mxu1 %v3653_v20  ;;  %v12010_v7 = vld [vmem:[%s10517_s18 + $0x79] sm:$0xff] }
 0x25b   : > { %v2938_v39 = vpop.permute.xlu1 %2937  ;;  %v11914_v26 = vld [vmem:[#allocation2 + $0x38] sm:$0xff]  ;;  %9536 = vmatprep.subr.mxu0 %v3423_v61  ;;  %9568 = vmatprep.subr.mxu1 %v3652_v23  ;;  %v3880_v20 = vld [vmem:[%s13305_s2 + $0x40] sm:$0xff] }
 0x25c   : > { %2979 = vst.msk [vmem:[#allocation2 + $0xe1] sm:$0xff] %vm2959_vm2, %v2938_v39  ;;  %9483 = vmatmul.mubr.msk.f32.gmra.mxu0 %vm2959_vm2, %v11914_v26  ;;  %9515 = vmatmul.mubr.msk.f32.gmra.mxu1 %vm2959_vm2, %v11909_v10  ;;  %v3635_v39 = vld [vmem:[#allocation2 + $0x1] sm:$0xff]  ;;  %v12085_v36 = vld [vmem:[#allocation2 + $0x39] sm:$0xff] }
 0x25d   : > { %9537 = vmatpush3.msra.mxu0 %v3423_v61  ;;  %9517 = vmatprep.mubr.msk.f32.mxu1 %vm2959_vm2, %v11912_v17  ;;  %v12030_v61 = vld [vmem:[%s10517_s18 + $0x91] sm:$0xff] }
 0x25e   : > { %9538 = vmatprep.subr.mxu0 %v3422_v33  ;;  %9540 = vmatprep.mubr.msk.f32.mxu0 %vm2959_vm2, %v8049_v63  ;;  %v3636_v63 = vld [vmem:[#allocation2 + $0x9] sm:$0xff] }
 0x25f   : > { %9539 = vmatpush3.msra.mxu0 %v3422_v33  ;;  %9569 = vmatpush3.msra.mxu1 %v3652_v23  ;;  %v4341_v23 = vld [vmem:[%s13305_s2 + $0x78] sm:$0xff] }
 0x260   : > { %9518 = vmatmul.mubr.msk.f32.gmra.mxu1 %vm2959_vm2, %v11928_v45  ;;  %9541 = vmatmul.mubr.msk.f32.vlgmr.msra.gmra.mxu0 %vm2959_vm2, %v8050_v2  ;;  %v12043_v33 = vld [vmem:[%s10517_s18 + $0x99] sm:$0xff]  ;;  %v12046_v2 = vld [vmem:[%s10517_s18 + $0xa9] sm:$0xff] }
 0x261   : > { %9520 = vmatprep.mubr.msk.f32.mxu1 %vm2959_vm2, %v11933_v28  ;;  %9543 = vmatprep.mubr.msk.f32.mxu0 %vm2959_vm2, %v11936_v55 }
 0x262   : > { %9570 = vmatprep.subr.mxu1 %v3651_v14  ;;  %9596 = vmatprep.subr.mxu0 %v3883_v53 }
 0x263   : > { %9571 = vmatpush3.msra.mxu1 %v3651_v14  ;;  %9597 = vmatpush3.msra.mxu0 %v3883_v53  ;;  %v4111_v14 = vld [vmem:[%s13306_s3 + $0x50] sm:$0xff]  ;;  %v12054_v53 = vld [vmem:[#allocation2 + $0x19] sm:$0xff] }
 0x264   : > { %9521 = vmatmul.mubr.msk.f32.gmra.mxu1 %vm2959_vm2, %v11952_v18  ;;  %9544 = vmatmul.mubr.msk.f32.gmra.mxu0 %vm2959_vm2, %v11955_v59 }
 0x265   : > { %9523 = vmatprep.mubr.msk.f32.mxu1 %vm2959_vm2, %v11958_v52  ;;  %9546 = vmatprep.mubr.msk.f32.mxu0 %vm2959_vm2, %v11961_v11 }
 0x266   : > { %9628 = vmatprep.subr.mxu1 %v4112_v4  ;;  %9598 = vmatprep.subr.mxu0 %v3882_v51 }
 0x267   : > { %9599 = vmatpush3.msra.mxu0 %v3882_v51  ;;  %v12059_v51 = vld [vmem:[%s10517_s18 + $0xb1] sm:$0xff] }
 0x268   : > { %9524 = vmatmul.mubr.msk.f32.gmra.mxu1 %vm2959_vm2, %v11978_v25  ;;  %9547 = vmatmul.mubr.msk.f32.gmra.mxu0 %vm2959_vm2, %v11981_v31 }
 0x269   : > { %9526 = vmatprep.mubr.msk.f32.mxu1 %vm2959_vm2, %v11984_v46  ;;  %9549 = vmatprep.mubr.msk.f32.mxu0 %vm2959_vm2, %v11987_v27 }
 0x26a   : > { %9600 = vmatprep.subr.mxu0 %v3881_v3 }
 0x26b   : > { %9601 = vmatpush3.msra.mxu0 %v3881_v3  ;;  %v12064_v3 = vld [vmem:[%s10517_s18 + $0xc1] sm:$0xff] }
 0x26c   : > { %9527 = vmatmul.mubr.msk.f32.gmra.mxu1 %vm2959_vm2, %v12001_v38  ;;  %9550 = vmatmul.mubr.msk.f32.gmra.mxu0 %vm2959_vm2, %v12004_v8 }
 0x26d   : > { %9529 = vmatprep.mubr.msk.f32.mxu1 %vm2959_vm2, %v12007_v16  ;;  %9552 = vmatprep.mubr.msk.f32.mxu0 %vm2959_vm2, %v12010_v7 }
 0x26e   : > { %9602 = vmatprep.subr.mxu0 %v3880_v20 }
 0x26f   : > { %9603 = vmatpush3.msra.mxu0 %v3880_v20  ;;  %v12066_v20 = vld [vmem:[#allocation2 + $0x21] sm:$0xff] }
 0x270   : > { %9530 = vmatmul.mubr.msk.f32.gmra.mxu1 %vm2959_vm2, %v12024_v34  ;;  %9553 = vmatmul.mubr.msk.f32.gmra.mxu0 %vm2959_vm2, %v12027_v13 }
 0x271   : > { %9572 = vmatprep.mubr.msk.f32.mxu1 %vm2959_vm2, %v3635_v39  ;;  %9555 = vmatprep.mubr.msk.f32.mxu0 %vm2959_vm2, %v12030_v61  ;;  %v4110_v39 = vld [vmem:[%s13306_s3 + $0x48] sm:$0xff] }
 0x272   : > { %9660 = vmatprep.subr.mxu0 %v4341_v23 }
 0x274   : > { %9556 = vmatmul.mubr.msk.f32.gmra.mxu0 %vm2959_vm2, %v12043_v33  ;;  %9573 = vmatmul.mubr.msk.f32.vlgmr.msra.gmra.mxu1 %vm2959_vm2, %v3636_v63  ;;  %v12082_v63 = vld [vmem:[%s10517_s18 + $0xc9] sm:$0xff] }
 0x275   : > { %9575 = vmatprep.mubr.msk.f32.mxu1 %vm2959_vm2, %v12054_v53  ;;  %9629 = vmatpush3.msra.mxu1 %v4112_v4  ;;  %v12075_v4 = vld [vmem:[#allocation2 + $0x31] sm:$0xff] }
 0x276   : > { %9558 = vmatprep.mubr.msk.f32.mxu0 %vm2959_vm2, %v12046_v2  ;;  %9630 = vmatprep.subr.mxu1 %v4111_v14 }
 0x277   : > { %9631 = vmatpush3.msra.mxu1 %v4111_v14  ;;  %v8097_v14 = vld [vmem:[%s10517_s18 + $0x1a] sm:$0xff] }
 0x278   : > { %9559 = vmatmul.mubr.msk.f32.gmra.mxu0 %vm2959_vm2, %v12059_v51  ;;  %9576 = vmatmul.mubr.msk.f32.gmra.mxu1 %vm2959_vm2, %v12066_v20 }
 0x279   : > { %9578 = vmatprep.mubr.msk.f32.mxu1 %vm2959_vm2, %v12075_v4  ;;  %9561 = vmatprep.mubr.msk.f32.mxu0 %vm2959_vm2, %v12064_v3 }
 0x27a   : > { %9632 = vmatprep.subr.mxu1 %v4110_v39 }
 0x27b   : > { %9633 = vmatpush3.msra.mxu1 %v4110_v39  ;;  %v8098_v39 = vld [vmem:[%s10517_s18 + $0x22] sm:$0xff] }
 0x27c   : > { %9562 = vmatmul.mubr.msk.f32.gmra.mxu0 %vm2959_vm2, %v12082_v63  ;;  %9579 = vmatmul.mubr.msk.f32.gmra.mxu1 %vm2959_vm2, %v12085_v36 }
 0x27d   : > { %9581 = vmatprep.mubr.msk.f32.mxu1 %vm2959_vm2, %v12094_v1  ;;  %9604 = vmatprep.mubr.msk.f32.mxu0 %vm2959_vm2, %v8097_v14  ;;  %v4340_v14 = vld [vmem:[%s13305_s2 + $0x70] sm:$0xff] }
 0x27e   : > { %9634 = vmatprep.subr.mxu1 %v4109_v5 }
 0x27f   : > { %9635 = vmatpush3.msra.mxu1 %v4109_v5  ;;  %v12121_v5 = vld [vmem:[%s10517_s18 + $0x3a] sm:$0xff] }
 0x280   : > { %9582 = vmatmul.mubr.msk.f32.gmra.mxu1 %vm2959_vm2, %v12103_v57  ;;  %9605 = vmatmul.mubr.msk.f32.vlgmr.msra.gmra.mxu0 %vm2959_vm2, %v8098_v39  ;;  %v12126_v39 = vld [vmem:[#allocation2 + $0x69] sm:$0xff] }
 0x281   : > { %9584 = vmatprep.mubr.msk.f32.mxu1 %vm2959_vm2, %v12111_v6  ;;  %9607 = vmatprep.mubr.msk.f32.mxu0 %vm2959_vm2, %v12101_v58 }
 0x282   : > { %9661 = vmatpush3.msra.mxu0 %v4341_v23  ;;  %9692 = vmatprep.subr.mxu1 %v4571_v44  ;;  %v12142_v23 = vld [vmem:[%s10517_s18 + $0x52] sm:$0xff] }
 0x283   : > { %9662 = vmatprep.subr.mxu0 %v4340_v14  ;;  %13481 = vst [vmem:[#allocation26_spill] sm:$0xff] %v12142_v23 }
 0x284   : > { %9585 = vmatmul.mubr.msk.f32.gmra.mxu1 %vm2959_vm2, %v12126_v39  ;;  %9608 = vmatmul.mubr.msk.f32.gmra.mxu0 %vm2959_vm2, %v12121_v5 }
 0x285   : > { %9587 = vmatprep.mubr.msk.f32.mxu1 %vm2959_vm2, %v12132_v47  ;;  %9610 = vmatprep.mubr.msk.f32.mxu0 %vm2959_vm2, %v12124_v56 }
 0x286   : > { %9663 = vmatpush3.msra.mxu0 %v4340_v14  ;;  %v12163_v14 = vld [vmem:[%s10517_s18 + $0x6a] sm:$0xff] }
 0x287   : > { %9664 = vmatprep.subr.mxu0 %v4339_v0  ;;  %13485 = vst [vmem:[#allocation32_spill] sm:$0xff] %v12163_v14 }
 0x288   : > { %9588 = vmatmul.mubr.msk.f32.gmra.mxu1 %vm2959_vm2, %v12147_v9  ;;  %9611 = vmatmul.mubr.msk.f32.gmra.mxu0 %vm2959_vm2, %v12142_v23  ;;  %v12174_v23 = vld [vmem:[#allocation2 + $0xa9] sm:$0xff] }
 0x289   : > { %9590 = vmatprep.mubr.msk.f32.mxu1 %vm2959_vm2, %v12153_v15  ;;  %9613 = vmatprep.mubr.msk.f32.mxu0 %vm2959_vm2, %v12145_v32  ;;  %13488 = vst [vmem:[#allocation33_spill] sm:$0xff] %v12174_v23  ;;  %v4800_v32 = vld [vmem:[%s13305_s2 + $0x98] sm:$0xff]  ;;  %v4570_v9 = vld [vmem:[%s13306_s3 + $0x70] sm:$0xff] }
 0x28a   : > { %9665 = vmatpush3.msra.mxu0 %v4339_v0  ;;  %v12184_v0 = vld [vmem:[%s10517_s18 + $0x82] sm:$0xff]  ;;  %v12189_v15 = vld [vmem:[#allocation2 + $0xb1] sm:$0xff] }
 0x28b   : > { %9666 = vmatprep.subr.mxu0 %v4338_v43  ;;  %13489 = vst [vmem:[#allocation35_spill] sm:$0xff] %v12184_v0  ;;  %13491 = vst [vmem:[#allocation45_spill] sm:$0xff] %v12189_v15 }
 0x28c   : > { %9591 = vmatmul.mubr.msk.f32.gmra.mxu1 %vm2959_vm2, %v12168_v48  ;;  %9614 = vmatmul.mubr.msk.f32.gmra.mxu0 %vm2959_vm2, %v12163_v14  ;;  %v12187_v48 = vld [vmem:[%s10517_s18 + $0x92] sm:$0xff]  ;;  %v12202_v14 = vld [vmem:[%s10517_s18 + $0xaa] sm:$0xff] }
 0x28d   : > { %9593 = vmatprep.mubr.msk.f32.mxu1 %vm2959_vm2, %v12174_v23  ;;  %9616 = vmatprep.mubr.msk.f32.mxu0 %vm2959_vm2, %v12166_v40  ;;  %13490 = vst [vmem:[#allocation44_spill] sm:$0xff] %v12187_v48  ;;  %v4093_v23 = vld [vmem:[#allocation2 + $0x2] sm:$0xff]  ;;  %v12199_v40 = vld [vmem:[%s10517_s18 + $0x9a] sm:$0xff]  ;;  %13492 = vst [vmem:[#allocation52_spill] sm:$0xff] %v12202_v14 }
 0x28e   : > { %9667 = vmatpush3.msra.mxu0 %v4338_v43  ;;  %v4094_v43 = vld [vmem:[#allocation2 + $0xa] sm:$0xff] }
 0x28f   : > { %9724 = vmatprep.subr.mxu0 %v4800_v32 }
 0x290   : > { %9594 = vmatmul.mubr.msk.f32.gmra.mxu1 %vm2959_vm2, %v12189_v15  ;;  %9617 = vmatmul.mubr.msk.f32.gmra.mxu0 %vm2959_vm2, %v12184_v0  ;;  %v12210_v0 = vld [vmem:[#allocation2 + $0x1a] sm:$0xff]  ;;  %v12222_v15 = vld [vmem:[#allocation2 + $0x22] sm:$0xff] }
 0x291   : > { %9636 = vmatprep.mubr.msk.f32.mxu1 %vm2959_vm2, %v4093_v23  ;;  %9619 = vmatprep.mubr.msk.f32.mxu0 %vm2959_vm2, %v12187_v48  ;;  %v12215_v23 = vld [vmem:[%s10517_s18 + $0xb2] sm:$0xff]  ;;  %v12220_v48 = vld [vmem:[%s10517_s18 + $0xc2] sm:$0xff] }
 0x292   : > { %13493 = vst [vmem:[#allocation38_spill] sm:$0xff] %v12215_v23  ;;  %13494 = vst [vmem:[#allocation36_spill] sm:$0xff] %v12220_v48 }
 0x294   : > { %9620 = vmatmul.mubr.msk.f32.gmra.mxu0 %vm2959_vm2, %v12199_v40  ;;  %9637 = vmatmul.mubr.msk.f32.vlgmr.msra.gmra.mxu1 %vm2959_vm2, %v4094_v43  ;;  %v4569_v43 = vld [vmem:[%s13306_s3 + $0x68] sm:$0xff] }
 0x295   : > { %9639 = vmatprep.mubr.msk.f32.mxu1 %vm2959_vm2, %v12210_v0  ;;  %9693 = vmatpush3.msra.mxu1 %v4571_v44  ;;  %v12231_v44 = vld [vmem:[#allocation2 + $0x32] sm:$0xff] }
 0x296   : > { %9622 = vmatprep.mubr.msk.f32.mxu0 %vm2959_vm2, %v12202_v14  ;;  %9694 = vmatprep.subr.mxu1 %v4570_v9  ;;  %13495 = vst [vmem:[#allocation37_spill] sm:$0xff] %v12231_v44  ;;  %v12238_v14 = vld [vmem:[%s10517_s18 + $0xca] sm:$0xff] }
 0x297   : > { %9695 = vmatpush3.msra.mxu1 %v4570_v9  ;;  %v12240_v9 = vld [vmem:[#allocation2 + $0x3a] sm:$0xff] }
 0x298   : > { %9623 = vmatmul.mubr.msk.f32.gmra.mxu0 %vm2959_vm2, %v12215_v23  ;;  %9640 = vmatmul.mubr.msk.f32.gmra.mxu1 %vm2959_vm2, %v12222_v15  ;;  %13496 = vst [vmem:[#allocation46_spill] sm:$0xff] %v12240_v9  ;;  %v4568_v23 = vld [vmem:[%s13306_s3 + $0x60] sm:$0xff] }
 0x299   : > { %9642 = vmatprep.mubr.msk.f32.mxu1 %vm2959_vm2, %v12231_v44  ;;  %9625 = vmatprep.mubr.msk.f32.mxu0 %vm2959_vm2, %v12220_v48  ;;  %v12249_v44 = vld [vmem:[#allocation2 + $0x4a] sm:$0xff]  ;;  %v5029_v48 = vld [vmem:[%s13306_s3 + $0x98] sm:$0xff] }
 0x29a   : > { %9696 = vmatprep.subr.mxu1 %v4569_v43 }
 0x29b   : > { %9697 = vmatpush3.msra.mxu1 %v4569_v43  ;;  %v12255_v43 = vld [vmem:[#allocation2 + $0x52] sm:$0xff] }
 0x29c   : > { %9626 = vmatmul.mubr.msk.f32.gmra.mxu0 %vm2959_vm2, %v12238_v14  ;;  %9643 = vmatmul.mubr.msk.f32.gmra.mxu1 %vm2959_vm2, %v12240_v9  ;;  %v12264_v9 = vld [vmem:[#allocation2 + $0x62] sm:$0xff] }
 0x29d   : > { %9645 = vmatprep.mubr.msk.f32.mxu1 %vm2959_vm2, %v12249_v44  ;;  %9668 = vmatprep.mubr.msk.f32.mxu0 %vm2959_vm2, %v11865_v29  ;;  %13497 = vst [vmem:[#allocation41_spill] sm:$0xff] %v12264_v9  ;;  %v4799_v29 = vld [vmem:[%s13305_s2 + $0x90] sm:$0xff] }
 0x29e   : > { %9698 = vmatprep.subr.mxu1 %v4568_v23 }
 0x29f   : > { %9699 = vmatpush3.msra.mxu1 %v4568_v23  ;;  %v12273_v23 = vld [vmem:[#allocation2 + $0x6a] sm:$0xff] }
 0x2a0   : > { %9646 = vmatmul.mubr.msk.f32.gmra.mxu1 %vm2959_vm2, %v12255_v43  ;;  %9669 = vmatmul.mubr.msk.f32.vlgmr.msra.gmra.mxu0 %vm2959_vm2, %v11880_v21  ;;  %13498 = vst [vmem:[#allocation47_spill] sm:$0xff] %v12273_v23  ;;  %v12279_v21 = vld [vmem:[#allocation2 + $0x7a] sm:$0xff] }
 0x2a1   : > { %9648 = vmatprep.mubr.msk.f32.mxu1 %vm2959_vm2, %v12264_v9  ;;  %9671 = vmatprep.mubr.msk.f32.mxu0 %vm2959_vm2, %v11886_v54  ;;  %v4798_v9 = vld [vmem:[%s13305_s2 + $0x88] sm:$0xff] }
 0x2a2   : > { %9725 = vmatpush3.msra.mxu0 %v4800_v32  ;;  %9756 = vmatprep.subr.mxu1 %v5029_v48  ;;  %v12288_v32 = vld [vmem:[#allocation2 + $0x82] sm:$0xff] }
 0x2a3   : > { %9726 = vmatprep.subr.mxu0 %v4799_v29  ;;  %13499 = vst [vmem:[#allocation40_spill] sm:$0xff] %v12288_v32 }
 0x2a4   : > { %9649 = vmatmul.mubr.msk.f32.gmra.mxu1 %vm2959_vm2, %v12273_v23  ;;  %9672 = vmatmul.mubr.msk.f32.gmra.mxu0 %vm2959_vm2, %v11909_v10  ;;  %v12294_v10 = vld [vmem:[#allocation2 + $0x92] sm:$0xff]  ;;  %v4797_v23 = vld [vmem:[%s13305_s2 + $0x80] sm:$0xff] }
 0x2a5   : > { %9651 = vmatprep.mubr.msk.f32.mxu1 %vm2959_vm2, %v12279_v21  ;;  %9674 = vmatprep.mubr.msk.f32.mxu0 %vm2959_vm2, %v11912_v17 }
 0x2a6   : > { %9727 = vmatpush3.msra.mxu0 %v4799_v29  ;;  %v12303_v29 = vld [vmem:[#allocation2 + $0x9a] sm:$0xff] }
 0x2a7   : > { %9728 = vmatprep.subr.mxu0 %v4798_v9 }
 0x2a8   : > { %9652 = vmatmul.mubr.msk.f32.gmra.mxu1 %vm2959_vm2, %v12288_v32  ;;  %9675 = vmatmul.mubr.msk.f32.gmra.mxu0 %vm2959_vm2, %v11928_v45  ;;  %v12309_v45 = vld [vmem:[#allocation2 + $0xaa] sm:$0xff]  ;;  %v5258_v32 = vld [vmem:[%s13305_s2 + $0xb8] sm:$0xff] }
 0x2a9   : > { %9654 = vmatprep.mubr.msk.f32.mxu1 %vm2959_vm2, %v12294_v10  ;;  %9677 = vmatprep.mubr.msk.f32.mxu0 %vm2959_vm2, %v11933_v28 }
 0x2aa   : > { %9729 = vmatpush3.msra.mxu0 %v4798_v9  ;;  %v12318_v9 = vld [vmem:[#allocation2 + $0xb2] sm:$0xff] }
 0x2ab   : > { %9730 = vmatprep.subr.mxu0 %v4797_v23 }
 0x2ac   : > { %9655 = vmatmul.mubr.msk.f32.gmra.mxu1 %vm2959_vm2, %v12303_v29  ;;  %9678 = vmatmul.mubr.msk.f32.gmra.mxu0 %vm2959_vm2, %v11952_v18 }
 0x2ad   : > { %9657 = vmatprep.mubr.msk.f32.mxu1 %vm2959_vm2, %v12309_v45  ;;  %9680 = vmatprep.mubr.msk.f32.mxu0 %vm2959_vm2, %v11958_v52 }
 0x2ae   : > { %9731 = vmatpush3.msra.mxu0 %v4797_v23  ;;  %v5028_v23 = vld [vmem:[%s13306_s3 + $0x90] sm:$0xff] }
 0x2af   : > { %9788 = vmatprep.subr.mxu0 %v5258_v32 }
 0x2b0   : > { %9658 = vmatmul.mubr.msk.f32.gmra.mxu1 %vm2959_vm2, %v12318_v9  ;;  %9681 = vmatmul.mubr.msk.f32.gmra.mxu0 %vm2959_vm2, %v11978_v25 }
 0x2b1   : > { %9700 = vmatprep.mubr.msk.f32.mxu1 %vm2959_vm2, %v11862_v37  ;;  %9683 = vmatprep.mubr.msk.f32.mxu0 %vm2959_vm2, %v11984_v46  ;;  %v12340_v37 = vld [vmem:[%s10517_s18 + $0xd8] sm:$0xff]  ;;  %v5027_v46 = vld [vmem:[%s13306_s3 + $0x88] sm:$0xff] }
 0x2b4   : > { %9684 = vmatmul.mubr.msk.f32.gmra.mxu0 %vm2959_vm2, %v12001_v38  ;;  %9701 = vmatmul.mubr.msk.f32.vlgmr.msra.gmra.mxu1 %vm2959_vm2, %v11888_v35  ;;  %v5026_v35 = vld [vmem:[%s13306_s3 + $0x80] sm:$0xff] }
 0x2b5   : > { %9703 = vmatprep.mubr.msk.f32.mxu1 %vm2959_vm2, %v11890_v50  ;;  %9757 = vmatpush3.msra.mxu1 %v5029_v48  ;;  %v12354_v48 = vld [vmem:[%s10517_s18 + $0xe0] sm:$0xff] }
 0x2b6   : > { %9686 = vmatprep.mubr.msk.f32.mxu0 %vm2959_vm2, %v12007_v16  ;;  %9758 = vmatprep.subr.mxu1 %v5028_v23  ;;  %v12452_v50 = vld [vmem:[%s10517_s18 + $0xe1] sm:$0xff] }
 0x2b7   : > { %9759 = vmatpush3.msra.mxu1 %v5028_v23 }
 0x2b8   : > { %9687 = vmatmul.mubr.msk.f32.gmra.mxu0 %vm2959_vm2, %v12024_v34  ;;  %9704 = vmatmul.mubr.msk.f32.gmra.mxu1 %vm2959_vm2, %v11914_v26  ;;  %v5484_v26 = vld [vmem:[%s13306_s3 + $0xa0] sm:$0xff] }
 0x2b9   : > { %9706 = vmatprep.mubr.msk.f32.mxu1 %vm2959_vm2, %v11793_v49  ;;  %9689 = vmatprep.mubr.msk.f32.mxu0 %vm2959_vm2, %v12340_v37  ;;  %v5487_v49 = vld [vmem:[%s13306_s3 + $0xb8] sm:$0xff] }
 0x2ba   : > { %9760 = vmatprep.subr.mxu1 %v5027_v46 }
 0x2bb   : > { %9761 = vmatpush3.msra.mxu1 %v5027_v46  ;;  %v13507_v46 = vld [vmem:[#allocation49_spill] sm:$0xff] }
 0x2bc   : > { %9690 = vmatmul.mubr.msk.f32.gmra.mxu0 %vm2959_vm2, %v12354_v48  ;;  %9707 = vmatmul.mubr.msk.f32.gmra.mxu1 %vm2959_vm2, %v11799_v60  ;;  %v5257_v60 = vld [vmem:[%s13305_s2 + $0xb0] sm:$0xff] }
 0x2bd   : > { %9709 = vmatprep.mubr.msk.f32.mxu1 %vm2959_vm2, %v11806_v24  ;;  %9732 = vmatprep.mubr.msk.f32.mxu0 %vm2959_vm2, %v11936_v55  ;;  %v5256_v24 = vld [vmem:[%s13305_s2 + $0xa8] sm:$0xff]  ;;  %v13502_v55 = vld [vmem:[#allocation29_spill] sm:$0xff] }
 0x2be   : > { %9762 = vmatprep.subr.mxu1 %v5026_v35 }
 0x2bf   : > { %9763 = vmatpush3.msra.mxu1 %v5026_v35  ;;  %v13519_v35 = vld [vmem:[#allocation40_spill] sm:$0xff] }
 0x2c0   : > { %9710 = vmatmul.mubr.msk.f32.gmra.mxu1 %vm2959_vm2, %v11816_v41  ;;  %9733 = vmatmul.mubr.msk.f32.vlgmr.msra.gmra.mxu0 %vm2959_vm2, %v11955_v59  ;;  %v5255_v41 = vld [vmem:[%s13305_s2 + $0xa0] sm:$0xff]  ;;  %v13505_v59 = vld [vmem:[#allocation32_spill] sm:$0xff] }
 0x2c1   : > { %9712 = vmatprep.mubr.msk.f32.mxu1 %vm2959_vm2, %v11818_v62  ;;  %9735 = vmatprep.mubr.msk.f32.mxu0 %vm2959_vm2, %v11961_v11  ;;  %v12407_v62 = vld [vmem:[#allocation2 + $0xc0] sm:$0xff] }
 0x2c2   : > { %9789 = vmatpush3.msra.mxu0 %v5258_v32  ;;  %9820 = vmatprep.subr.mxu1 %v5487_v49  ;;  %v5716_v11 = vld [vmem:[%s13305_s2 + $0xc0] sm:$0xff]  ;;  %v13518_v32 = vld [vmem:[#allocation23_spill] sm:$0xff] }
 0x2c3   : > { %9790 = vmatprep.subr.mxu0 %v5257_v60 }
 0x2c4   : > { %9713 = vmatmul.mubr.msk.f32.gmra.mxu1 %vm2959_vm2, %v11832_v12  ;;  %9736 = vmatmul.mubr.msk.f32.gmra.mxu0 %vm2959_vm2, %v11981_v31  ;;  %v5719_v12 = vld [vmem:[%s13305_s2 + $0xd8] sm:$0xff]  ;;  %v13506_v31 = vld [vmem:[#allocation33_spill] sm:$0xff] }
 0x2c5   : > { %9715 = vmatprep.mubr.msk.f32.mxu1 %vm2959_vm2, %v11834_v30  ;;  %9738 = vmatprep.mubr.msk.f32.mxu0 %vm2959_vm2, %v11987_v27  ;;  %v12416_v30 = vld [vmem:[#allocation2 + $0xc8] sm:$0xff]  ;;  %v13508_v27 = vld [vmem:[#allocation45_spill] sm:$0xff] }
 0x2c6   : > { %9791 = vmatpush3.msra.mxu0 %v5257_v60 }
 0x2c7   : > { %9792 = vmatprep.subr.mxu0 %v5256_v24 }
 0x2c8   : > { %9716 = vmatmul.mubr.msk.f32.gmra.mxu1 %vm2959_vm2, %v11842_v22  ;;  %9739 = vmatmul.mubr.msk.f32.gmra.mxu0 %vm2959_vm2, %v12004_v8  ;;  %v5486_v22 = vld [vmem:[%s13306_s3 + $0xb0] sm:$0xff] }
 0x2c9   : > { %9718 = vmatprep.mubr.msk.f32.mxu1 %vm2959_vm2, %v11844_v19  ;;  %9741 = vmatprep.mubr.msk.f32.mxu0 %vm2959_vm2, %v12010_v7  ;;  %v12438_v19 = vld [vmem:[%s10517_s18 + $0xd9] sm:$0xff]  ;;  %v13509_v8 = vld [vmem:[#allocation35_spill] sm:$0xff]  ;;  %v12505_v7 = vld [vmem:[#allocation2 + $0xc1] sm:$0xff] }
 0x2ca   : > { %9793 = vmatpush3.msra.mxu0 %v5256_v24  ;;  %v6175_v24 = vld [vmem:[%s13305_s2 + $0xe0] sm:$0xff] }
 0x2cb   : > { %9794 = vmatprep.subr.mxu0 %v5255_v41 }
 0x2cc   : > { %9719 = vmatmul.mubr.msk.f32.gmra.mxu1 %vm2959_vm2, %v11853_v42  ;;  %9742 = vmatmul.mubr.msk.f32.gmra.mxu0 %vm2959_vm2, %v12027_v13  ;;  %v5485_v42 = vld [vmem:[%s13306_s3 + $0xa8] sm:$0xff]  ;;  %v6178_v13 = vld [vmem:[%s13305_s2 + $0xf8] sm:$0xff] }
 0x2cd   : > { %9721 = vmatprep.mubr.msk.f32.mxu1 %vm2959_vm2, %v12407_v62  ;;  %9744 = vmatprep.mubr.msk.f32.mxu0 %vm2959_vm2, %v12030_v61  ;;  %v13510_v61 = vld [vmem:[#allocation44_spill] sm:$0xff] }
 0x2ce   : > { %9795 = vmatpush3.msra.mxu0 %v5255_v41  ;;  %v5930_v41 = vld [vmem:[#allocation2 + $0x30] sm:$0xff] }
 0x2cf   : > { %9852 = vmatprep.subr.mxu0 %v5719_v12 }
 0x2d0   : > { %9722 = vmatmul.mubr.msk.f32.gmra.mxu1 %vm2959_vm2, %v12416_v30  ;;  %9745 = vmatmul.mubr.msk.f32.gmra.mxu0 %vm2959_vm2, %v12043_v33  ;;  %v12514_v33 = vld [vmem:[#allocation2 + $0xc9] sm:$0xff] }
 0x2d1   : > { %9764 = vmatprep.mubr.msk.f32.mxu1 %vm2959_vm2, %v12054_v53  ;;  %9747 = vmatprep.mubr.msk.f32.mxu0 %vm2959_vm2, %v12046_v2  ;;  %v13511_v2 = vld [vmem:[#allocation52_spill] sm:$0xff]  ;;  %v5948_v53 = vld [vmem:[%s13306_s3 + $0xd0] sm:$0xff] }
 0x2d4   : > { %9748 = vmatmul.mubr.msk.f32.gmra.mxu0 %vm2959_vm2, %v12059_v51  ;;  %9765 = vmatmul.mubr.msk.f32.vlgmr.msra.gmra.mxu1 %vm2959_vm2, %v12066_v20  ;;  %v13512_v51 = vld [vmem:[#allocation38_spill] sm:$0xff]  ;;  %v12536_v20 = vld [vmem:[%s10517_s18 + $0xda] sm:$0xff] }
 0x2d5   : > { %9767 = vmatprep.mubr.msk.f32.mxu1 %vm2959_vm2, %v12075_v4  ;;  %9821 = vmatpush3.msra.mxu1 %v5487_v49  ;;  %v5947_v4 = vld [vmem:[%s13306_s3 + $0xc8] sm:$0xff]  ;;  %v13520_v49 = vld [vmem:[#allocation25_spill] sm:$0xff] }
 0x2d6   : > { %9750 = vmatprep.mubr.msk.f32.mxu0 %vm2959_vm2, %v12064_v3  ;;  %9822 = vmatprep.subr.mxu1 %v5486_v22  ;;  %v13513_v3 = vld [vmem:[#allocation37_spill] sm:$0xff] }
 0x2d7   : > { %9823 = vmatpush3.msra.mxu1 %v5486_v22  ;;  %v5931_v22 = vld [vmem:[#allocation2 + $0x38] sm:$0xff] }
 0x2d8   : > { %9751 = vmatmul.mubr.msk.f32.gmra.mxu0 %vm2959_vm2, %v12082_v63  ;;  %9768 = vmatmul.mubr.msk.f32.gmra.mxu1 %vm2959_vm2, %v12085_v36  ;;  %v5717_v36 = vld [vmem:[%s13305_s2 + $0xc8] sm:$0xff] }
 0x2d9   : > { %9770 = vmatprep.mubr.msk.f32.mxu1 %vm2959_vm2, %v12094_v1  ;;  %9753 = vmatprep.mubr.msk.f32.mxu0 %vm2959_vm2, %v12438_v19  ;;  %v5949_v1 = vld [vmem:[%s13306_s3 + $0xd8] sm:$0xff]  ;;  %v13515_v63 = vld [vmem:[#allocation46_spill] sm:$0xff] }
 0x2da   : > { %9824 = vmatprep.subr.mxu1 %v5485_v42 }
 0x2db   : > { %9825 = vmatpush3.msra.mxu1 %v5485_v42  ;;  %v6406_v42 = vld [vmem:[%s13306_s3 + $0xf0] sm:$0xff] }
 0x2dc   : > { %9754 = vmatmul.mubr.msk.f32.gmra.mxu0 %vm2959_vm2, %v12452_v50  ;;  %9771 = vmatmul.mubr.msk.f32.gmra.mxu1 %vm2959_vm2, %v12103_v57  ;;  %v5718_v57 = vld [vmem:[%s13305_s2 + $0xd0] sm:$0xff] }
 0x2dd   : > { %9773 = vmatprep.mubr.msk.f32.mxu1 %vm2959_vm2, %v12111_v6  ;;  %9796 = vmatprep.mubr.msk.f32.mxu0 %vm2959_vm2, %v12101_v58  ;;  %v13500_v6 = vld [vmem:[#allocation27_spill] sm:$0xff]  ;;  %v13501_v58 = vld [vmem:[#allocation26_spill] sm:$0xff] }
 0x2de   : > { %9826 = vmatprep.subr.mxu1 %v5484_v26 }
 0x2df   : > { %9827 = vmatpush3.msra.mxu1 %v5484_v26 }
 0x2e0   : > { %9774 = vmatmul.mubr.msk.f32.gmra.mxu1 %vm2959_vm2, %v12126_v39  ;;  %9797 = vmatmul.mubr.msk.f32.vlgmr.msra.gmra.mxu0 %vm2959_vm2, %v12121_v5  ;;  %v5946_v5 = vld [vmem:[%s13306_s3 + $0xc0] sm:$0xff] }
 0x2e1   : > { %9776 = vmatprep.mubr.msk.f32.mxu1 %vm2959_vm2, %v12132_v47  ;;  %9799 = vmatprep.mubr.msk.f32.mxu0 %vm2959_vm2, %v12124_v56  ;;  %v13503_v47 = vld [vmem:[#allocation28_spill] sm:$0xff]  ;;  %v13504_v56 = vld [vmem:[#allocation34_spill] sm:$0xff]  ;;  %v13516_v39 = vld [vmem:[#allocation41_spill] sm:$0xff] }
 0x2e2   : > { %9853 = vmatpush3.msra.mxu0 %v5719_v12  ;;  %9884 = vmatprep.subr.mxu1 %v5949_v1 }
 0x2e3   : > { %9854 = vmatprep.subr.mxu0 %v5718_v57 }
 0x2e4   : > { %9777 = vmatmul.mubr.msk.f32.gmra.mxu1 %vm2959_vm2, %v13500_v6  ;;  %9800 = vmatmul.mubr.msk.f32.gmra.mxu0 %vm2959_vm2, %v13501_v58  ;;  %v8305_v58 = vld [vmem:[%s10517_s18 + $0xf0] sm:$0xff] }
 0x2e5   : > { %9779 = vmatprep.mubr.msk.f32.mxu1 %vm2959_vm2, %v13502_v55  ;;  %9802 = vmatprep.mubr.msk.f32.mxu0 %vm2959_vm2, %v13503_v47  ;;  %v5933_v55 = vld [vmem:[#allocation2 + $0x50] sm:$0xff] }
 0x2e6   : > { %9855 = vmatpush3.msra.mxu0 %v5718_v57 }
 0x2e7   : > { %9856 = vmatprep.subr.mxu0 %v5717_v36 }
 0x2e8   : > { %9780 = vmatmul.mubr.msk.f32.gmra.mxu1 %vm2959_vm2, %v13504_v56  ;;  %9803 = vmatmul.mubr.msk.f32.gmra.mxu0 %vm2959_vm2, %v13505_v59  ;;  %v5934_v59 = vld [vmem:[#allocation2 + $0x60] sm:$0xff] }
 0x2e9   : > { %9782 = vmatprep.mubr.msk.f32.mxu1 %vm2959_vm2, %v13506_v31  ;;  %9805 = vmatprep.mubr.msk.f32.mxu0 %vm2959_vm2, %v13507_v46 }
 0x2ea   : > { %9857 = vmatpush3.msra.mxu0 %v5717_v36 }
 0x2eb   : > { %9858 = vmatprep.subr.mxu0 %v5716_v11 }
 0x2ec   : > { %9783 = vmatmul.mubr.msk.f32.gmra.mxu1 %vm2959_vm2, %v13508_v27  ;;  %9806 = vmatmul.mubr.msk.f32.gmra.mxu0 %vm2959_vm2, %v13509_v8  ;;  %v8339_v27 = vld [vmem:[%s10517_s18 + $0x49] sm:$0xff] }
 0x2ed   : > { %9785 = vmatprep.mubr.msk.f32.mxu1 %vm2959_vm2, %v12505_v7  ;;  %9808 = vmatprep.mubr.msk.f32.mxu0 %vm2959_vm2, %v13510_v61 }
 0x2ee   : > { %9859 = vmatpush3.msra.mxu0 %v5716_v11 }
 0x2ef   : > { %9916 = vmatprep.subr.mxu0 %v6178_v13 }
 0x2f0   : > { %9786 = vmatmul.mubr.msk.f32.gmra.mxu1 %vm2959_vm2, %v12514_v33  ;;  %9809 = vmatmul.mubr.msk.f32.gmra.mxu0 %vm2959_vm2, %v12199_v40  ;;  %v13514_v40 = vld [vmem:[#allocation36_spill] sm:$0xff] }
 0x2f1   : > { %9828 = vmatprep.mubr.msk.f32.mxu1 %vm2959_vm2, %v12210_v0  ;;  %9811 = vmatprep.mubr.msk.f32.mxu0 %vm2959_vm2, %v13511_v2  ;;  %v6407_v0 = vld [vmem:[%s13306_s3 + $0xf8] sm:$0xff] }
 0x2f4   : > { %9812 = vmatmul.mubr.msk.f32.gmra.mxu0 %vm2959_vm2, %v13512_v51  ;;  %9829 = vmatmul.mubr.msk.f32.vlgmr.msra.gmra.mxu1 %vm2959_vm2, %v12222_v15  ;;  %v12550_v15 = vld [vmem:[%s10517_s18 + $0xe2] sm:$0xff] }
 0x2f5   : > { %9831 = vmatprep.mubr.msk.f32.mxu1 %vm2959_vm2, %v13513_v3  ;;  %9885 = vmatpush3.msra.mxu1 %v5949_v1  ;;  %v8340_v3 = vld [vmem:[%s10517_s18 + $0x51] sm:$0xff] }
 0x2f6   : > { %9814 = vmatprep.mubr.msk.f32.mxu0 %vm2959_vm2, %v13514_v40  ;;  %9886 = vmatprep.subr.mxu1 %v5948_v53 }
 0x2f7   : > { %9887 = vmatpush3.msra.mxu1 %v5948_v53  ;;  %v5936_v53 = vld [vmem:[#allocation2 + $0x78] sm:$0xff] }
 0x2f8   : > { %9815 = vmatmul.mubr.msk.f32.gmra.mxu0 %vm2959_vm2, %v12238_v14  ;;  %9832 = vmatmul.mubr.msk.f32.gmra.mxu1 %vm2959_vm2, %v13515_v63  ;;  %v8341_v63 = vld [vmem:[%s10517_s18 + $0x61] sm:$0xff] }
 0x2f9   : > { %9834 = vmatprep.mubr.msk.f32.mxu1 %vm2959_vm2, %v12249_v44  ;;  %9817 = vmatprep.mubr.msk.f32.mxu0 %vm2959_vm2, %v12536_v20  ;;  %v13517_v44 = vld [vmem:[#allocation47_spill] sm:$0xff] }
 0x2fa   : > { %9888 = vmatprep.subr.mxu1 %v5947_v4 }
 0x2fb   : > { %9889 = vmatpush3.msra.mxu1 %v5947_v4 }
 0x2fc   : > { %9818 = vmatmul.mubr.msk.f32.gmra.mxu0 %vm2959_vm2, %v12550_v15  ;;  %9835 = vmatmul.mubr.msk.f32.gmra.mxu1 %vm2959_vm2, %v12255_v43  ;;  %v6177_v43 = vld [vmem:[%s13305_s2 + $0xf0] sm:$0xff] }
 0x2fd   : > { %9837 = vmatprep.mubr.msk.f32.mxu1 %vm2959_vm2, %v13516_v39  ;;  %9860 = vmatprep.mubr.msk.f32.mxu0 %vm2959_vm2, %v11886_v54  ;;  %v5937_v39 = vld [vmem:[#allocation2 + $0x80] sm:$0xff] }
 0x2fe   : > { %9890 = vmatprep.subr.mxu1 %v5946_v5 }
 0x2ff   : > { %v12563_v14 = vpop.f32.mrf.mxu1  ;;  %9891 = vmatpush3.msra.mxu1 %v5946_v5 }
 0x300   : > { %9838 = vmatmul.mubr.msk.f32.gmra.mxu1 %vm2959_vm2, %v13517_v44  ;;  %9861 = vmatmul.mubr.msk.f32.vlgmr.msra.gmra.mxu0 %vm2959_vm2, %v13518_v32 }
 0x301   : > { %9840 = vmatprep.mubr.msk.f32.mxu1 %vm2959_vm2, %v12279_v21  ;;  %v12577_v54 = vpop.f32.mrf.mxu1  ;;  %9863 = vmatprep.mubr.msk.f32.mxu0 %vm2959_vm2, %v11912_v17  ;;  %v6176_v21 = vld [vmem:[%s13305_s2 + $0xe8] sm:$0xff] }
 0x302   : > { %9917 = vmatpush3.msra.mxu0 %v6178_v13  ;;  %9948 = vmatprep.subr.mxu1 %v6407_v0  ;;  %v5935_v13 = vld [vmem:[#allocation2 + $0x68] sm:$0xff] }
 0x303   : > { %9918 = vmatprep.subr.mxu0 %v6177_v43 }
 0x304   : > { %v12581_v23 = vpop.f32.mrf.mxu1  ;;  %9841 = vmatmul.mubr.msk.f32.gmra.mxu1 %vm2959_vm2, %v13519_v35  ;;  %9864 = vmatmul.mubr.msk.f32.gmra.mxu0 %vm2959_vm2, %v13520_v49  ;;  %v6635_v35 = vld [vmem:[%s13305_s2 + $0x110] sm:$0xff] }
 0x305   : > { %9843 = vmatprep.mubr.msk.f32.mxu1 %vm2959_vm2, %v12294_v10  ;;  %9866 = vmatprep.mubr.msk.f32.mxu0 %vm2959_vm2, %v11933_v28 }
 0x306   : > { %v12594_v17 = vpop.f32.mrf.mxu1  ;;  %9919 = vmatpush3.msra.mxu0 %v6177_v43  ;;  %v5938_v43 = vld [vmem:[#allocation2 + $0x90] sm:$0xff] }
 0x307   : > { %9920 = vmatprep.subr.mxu0 %v6176_v21 }
 0x308   : > { %v12596_v60 = vpop.f32.mrf.mxu1  ;;  %9844 = vmatmul.mubr.msk.f32.gmra.mxu1 %vm2959_vm2, %v12303_v29  ;;  %9867 = vmatmul.mubr.msk.f32.gmra.mxu0 %vm2959_vm2, %v11952_v18  ;;  %v12617_v18 = vld [vmem:[#allocation2 + $0xc2] sm:$0xff] }
 0x309   : > { %9846 = vmatprep.mubr.msk.f32.mxu1 %vm2959_vm2, %v12309_v45  ;;  %9869 = vmatprep.mubr.msk.f32.mxu0 %vm2959_vm2, %v11958_v52  ;;  %v12622_v45 = vld [vmem:[%s13305_s2 + $0x118] sm:$0xff] }
 0x30a   : > { %v12609_v10 = vpop.f32.mrf.mxu1  ;;  %9921 = vmatpush3.msra.mxu0 %v6176_v21  ;;  %v13521_v52 = vld [vmem:[#allocation24_spill] sm:$0xff] }
 0x30b   : > { %9922 = vmatprep.subr.mxu0 %v6175_v24 }
 0x30c   : > { %v12611_v28 = vpop.f32.mrf.mxu1  ;;  %9847 = vmatmul.mubr.msk.f32.gmra.mxu1 %vm2959_vm2, %v12318_v9  ;;  %9870 = vmatmul.mubr.msk.f32.gmra.mxu0 %vm2959_vm2, %v11978_v25  ;;  %v12630_v9 = vld [vmem:[#allocation2 + $0xca] sm:$0xff] }
 0x30d   : > { %9849 = vmatprep.mubr.msk.f32.mxu1 %vm2959_vm2, %v12617_v18  ;;  %9872 = vmatprep.mubr.msk.f32.mxu0 %vm2959_vm2, %v13521_v52 }
 0x30e   : > { %v12628_v29 = vpop.f32.mrf.mxu1  ;;  %9923 = vmatpush3.msra.mxu0 %v6175_v24  ;;  %v8342_v24 = vld [vmem:[%s10517_s18 + $0x69] sm:$0xff] }
 0x30f   : > { %9980 = vmatprep.subr.mxu0 %v12622_v45 }
 0x310   : > { %v12633_v25 = vpop.f32.mrf.mxu1  ;;  %9850 = vmatmul.mubr.msk.f32.gmra.mxu1 %vm2959_vm2, %v12630_v9  ;;  %9873 = vmatmul.mubr.msk.f32.gmra.mxu0 %vm2959_vm2, %v12001_v38  ;;  %v5932_v38 = vld [vmem:[#allocation2 + $0x48] sm:$0xff] }
 0x311   : > { %9892 = vmatprep.mubr.msk.f32.mxu1 %vm2959_vm2, %v5930_v41  ;;  %9875 = vmatprep.mubr.msk.f32.mxu0 %vm2959_vm2, %v12007_v16 }
 0x312   : > { %v12642_v12 = vpop.f32.mrf.mxu1 }
 0x314   : > { %v9478_v26 = vpop.f32.mrf.mxu0  ;;  %v9510_v1 = vpop.f32.mrf.mxu1  ;;  %9876 = vmatmul.mubr.msk.f32.gmra.mxu0 %vm2959_vm2, %v12024_v34  ;;  %9893 = vmatmul.mubr.msk.f32.vlgmr.msra.gmra.mxu1 %vm2959_vm2, %v5931_v22  ;;  %v6405_v34 = vld [vmem:[%s13306_s3 + $0xe8] sm:$0xff]  ;;  %v8343_v22 = vld [vmem:[%s10517_s18 + $0x79] sm:$0xff] }
 0x315   : > { %v3333_v57 = vadd.f32 %v9510_v1, %v9478_v26  ;;  %9895 = vmatprep.mubr.msk.f32.mxu1 %vm2959_vm2, %v5932_v38  ;;  %9949 = vmatpush3.msra.mxu1 %v6407_v0  ;;  %v12676_v0 = vld [vmem:[%s13306_s3 + $0x118] sm:$0xff] }
 0x316   : > { %v3134_v16 = vpop.f32.mrf.mxu0  ;;  %v3327_v6 = vpop.f32.mrf.mxu1  ;;  %9878 = vmatprep.mubr.msk.f32.mxu0 %vm2959_vm2, %v12340_v37  ;;  %9950 = vmatprep.subr.mxu1 %v6406_v42  ;;  %v8306_v37 = vld [vmem:[%s10517_s18 + $0xf8] sm:$0xff] }
 0x317   : > { %v3328_v36 = vadd.f32 %v3327_v6, %v3134_v16  ;;  %9951 = vmatpush3.msra.mxu1 %v6406_v42 }
 0x318   : > { %v9481_v47 = vpop.f32.mrf.mxu0  ;;  %v9513_v56 = vpop.f32.mrf.mxu1  ;;  %9879 = vmatmul.mubr.msk.f32.gmra.mxu0 %vm2959_vm2, %v12354_v48  ;;  %9896 = vmatmul.mubr.msk.f32.gmra.mxu1 %vm2959_vm2, %v5933_v55  ;;  %v6404_v48 = vld [vmem:[%s13306_s3 + $0xe0] sm:$0xff]  ;;  %v8345_v55 = vld [vmem:[%s10517_s18 + $0x91] sm:$0xff] }
 0x319   : > { %v3343_v11 = vadd.f32 %v9513_v56, %v9481_v47  ;;  %9898 = vmatprep.mubr.msk.f32.mxu1 %vm2959_vm2, %v5934_v59  ;;  %9881 = vmatprep.mubr.msk.f32.mxu0 %vm2959_vm2, %v8305_v58  ;;  %v5941_v56 = vld [vmem:[#allocation2 + $0xb0] sm:$0xff] }
 0x31a   : > { %v3144_v31 = vpop.f32.mrf.mxu0  ;;  %v3337_v46 = vpop.f32.mrf.mxu1  ;;  %9952 = vmatprep.subr.mxu1 %v6405_v34 }
 0x31b   : > { %v3338_v8 = vadd.f32 %v3337_v46, %v3144_v31  ;;  %9953 = vmatpush3.msra.mxu1 %v6405_v34 }
 0x31c   : > { %v9484_v61 = vpop.f32.mrf.mxu0  ;;  %v9516_v2 = vpop.f32.mrf.mxu1  ;;  %9882 = vmatmul.mubr.msk.f32.gmra.mxu0 %vm2959_vm2, %v8306_v37  ;;  %9899 = vmatmul.mubr.msk.f32.gmra.mxu1 %vm2959_vm2, %v5935_v13 }
 0x31d   : > { %v3353_v51 = vadd.f32 %v9516_v2, %v9484_v61  ;;  %9901 = vmatprep.mubr.msk.f32.mxu1 %vm2959_vm2, %v5936_v53  ;;  %9924 = vmatprep.mubr.msk.f32.mxu0 %vm2959_vm2, %v8339_v27 }
 0x31e   : > { %v3154_v40 = vpop.f32.mrf.mxu0  ;;  %v3347_v4 = vpop.f32.mrf.mxu1  ;;  %9954 = vmatprep.subr.mxu1 %v6404_v48 }
 0x31f   : > { %v3348_v5 = vadd.f32 %v3347_v4, %v3154_v40  ;;  %9955 = vmatpush3.msra.mxu1 %v6404_v48  ;;  %v8349_v40 = vld [vmem:[%s10517_s18 + $0xc1] sm:$0xff] }
 0x320   : > { %v9519_v44 = vpop.f32.mrf.mxu1  ;;  %v9542_v32 = vpop.f32.mrf.mxu0  ;;  %9902 = vmatmul.mubr.msk.f32.gmra.mxu1 %vm2959_vm2, %v5937_v39  ;;  %9925 = vmatmul.mubr.msk.f32.vlgmr.msra.gmra.mxu0 %vm2959_vm2, %v8340_v3 }
 0x321   : > { %v3363_v49 = vadd.f32 %v9519_v44, %v12563_v14  ;;  %v12684_v21 = vadd.f32 %v9542_v32, %v3333_v57  ;;  %9904 = vmatprep.mubr.msk.f32.mxu1 %vm2959_vm2, %v5938_v43  ;;  %9927 = vmatprep.mubr.msk.f32.mxu0 %vm2959_vm2, %v8341_v63  ;;  %v5939_v14 = vld [vmem:[#allocation2 + $0x98] sm:$0xff]  ;;  %v5940_v57 = vld [vmem:[#allocation2 + $0xa8] sm:$0xff]  ;;  %v5945_v63 = vld [vmem:[#allocation2 + $0xe0] sm:$0xff] }
 0x322   : > { %v3357_v52 = vpop.f32.mrf.mxu1  ;;  %v3540_v41 = vpop.f32.mrf.mxu0  ;;  %9981 = vmatpush3.msra.mxu0 %v12622_v45  ;;  %10012 = vmatprep.subr.mxu1 %v12676_v0  ;;  %v6634_v45 = vld [vmem:[%s13305_s2 + $0x108] sm:$0xff] }
 0x323   : > { %v3358_v42 = vadd.f32 %v3357_v52, %v12577_v54  ;;  %v12693_v26 = vadd.f32 %v3540_v41, %v3328_v36  ;;  %9982 = vmatprep.subr.mxu0 %v6635_v35  ;;  %v8344_v54 = vld [vmem:[%s10517_s18 + $0x81] sm:$0xff]  ;;  %v8350_v43 = vld [vmem:[%s10517_s18 + $0xc9] sm:$0xff]  ;;  %v6389_v52 = vld [vmem:[#allocation2 + $0x39] sm:$0xff] }
 0x324   : > { %v9522_v1 = vpop.f32.mrf.mxu1  ;;  %v9545_v38 = vpop.f32.mrf.mxu0  ;;  %9905 = vmatmul.mubr.msk.f32.gmra.mxu1 %vm2959_vm2, %v5939_v14  ;;  %9928 = vmatmul.mubr.msk.f32.gmra.mxu0 %vm2959_vm2, %v8342_v24  ;;  %v6864_v41 = vld [vmem:[%s13306_s3 + $0x110] sm:$0xff] }
 0x325   : > { %v3373_v16 = vadd.f32 %v9522_v1, %v12581_v23  ;;  %v12701_v6 = vadd.f32 %v9545_v38, %v3343_v11  ;;  %9907 = vmatprep.mubr.msk.f32.mxu1 %vm2959_vm2, %v5940_v57  ;;  %9930 = vmatprep.mubr.msk.f32.mxu0 %vm2959_vm2, %v8343_v22  ;;  %v6633_v11 = vld [vmem:[%s13305_s2 + $0x100] sm:$0xff]  ;;  %v8353_v57 = vld [vmem:[%s10517_s18 + $0xf1] sm:$0xff] }
 0x326   : > { %v3367_v58 = vpop.f32.mrf.mxu1  ;;  %v3550_v36 = vpop.f32.mrf.mxu0  ;;  %9983 = vmatpush3.msra.mxu0 %v6635_v35 }
 0x327   : > { %v3368_v34 = vadd.f32 %v3367_v58, %v12594_v17  ;;  %v12708_v47 = vadd.f32 %v3550_v36, %v3338_v8  ;;  %9984 = vmatprep.subr.mxu0 %v6634_v45  ;;  %v8346_v17 = vld [vmem:[%s10517_s18 + $0x99] sm:$0xff]  ;;  %v8347_v8 = vld [vmem:[%s10517_s18 + $0xa9] sm:$0xff] }
 0x328   : > { %v9525_v23 = vpop.f32.mrf.mxu1  ;;  %v9548_v59 = vpop.f32.mrf.mxu0  ;;  %9908 = vmatmul.mubr.msk.f32.gmra.mxu1 %vm2959_vm2, %v5941_v56  ;;  %9931 = vmatmul.mubr.msk.f32.gmra.mxu0 %vm2959_vm2, %v8344_v54  ;;  %v6391_v54 = vld [vmem:[#allocation2 + $0x51] sm:$0xff] }
 0x329   : > { %v3383_v37 = vadd.f32 %v9525_v23, %v12596_v60  ;;  %v12716_v31 = vadd.f32 %v9548_v59, %v3353_v51  ;;  %9910 = vmatprep.mubr.msk.f32.mxu1 %vm2959_vm2, %v12407_v62  ;;  %9933 = vmatprep.mubr.msk.f32.mxu0 %vm2959_vm2, %v8345_v55  ;;  %v5944_v62 = vld [vmem:[#allocation2 + $0xd8] sm:$0xff]  ;;  %v8387_v23 = vld [vmem:[%s10517_s18 + $0x4a] sm:$0xff] }
 0x32a   : > { %v3377_v46 = vpop.f32.mrf.mxu1  ;;  %v3560_v27 = vpop.f32.mrf.mxu0  ;;  %9985 = vmatpush3.msra.mxu0 %v6634_v45 }
 0x32b   : > { %v3378_v13 = vadd.f32 %v3377_v46, %v12609_v10  ;;  %v12724_v48 = vadd.f32 %v3560_v27, %v3348_v5  ;;  %9986 = vmatprep.subr.mxu0 %v6633_v11  ;;  %v8348_v10 = vld [vmem:[%s10517_s18 + $0xb1] sm:$0xff]  ;;  %v6394_v46 = vld [vmem:[#allocation2 + $0x79] sm:$0xff] }
 0x32c   : > { %v9528_v60 = vpop.f32.mrf.mxu1  ;;  %v9551_v61 = vpop.f32.mrf.mxu0  ;;  %9911 = vmatmul.mubr.msk.f32.gmra.mxu1 %vm2959_vm2, %v12416_v30  ;;  %9934 = vmatmul.mubr.msk.f32.gmra.mxu0 %vm2959_vm2, %v8346_v17 }
 0x32d   : > { %v3393_v2 = vadd.f32 %v9528_v60, %v12611_v28  ;;  %v12730_v53 = vadd.f32 %v9551_v61, %v3363_v49  ;;  %9913 = vmatprep.mubr.msk.f32.mxu1 %vm2959_vm2, %v5944_v62  ;;  %9936 = vmatprep.mubr.msk.f32.mxu0 %vm2959_vm2, %v8347_v8  ;;  %v6388_v28 = vld [vmem:[#allocation2 + $0x31] sm:$0xff]  ;;  %v8389_v61 = vld [vmem:[%s10517_s18 + $0x62] sm:$0xff] }
 0x32e   : > { %v3387_v51 = vpop.f32.mrf.mxu1  ;;  %v3570_v3 = vpop.f32.mrf.mxu0  ;;  %9987 = vmatpush3.msra.mxu0 %v6633_v11  ;;  %v6393_v11 = vld [vmem:[#allocation2 + $0x69] sm:$0xff] }
 0x32f   : > { %v3388_v4 = vadd.f32 %v3387_v51, %v12628_v29  ;;  %v12737_v30 = vadd.f32 %v3570_v3, %v3358_v42  ;;  %v6390_v42 = vld [vmem:[#allocation2 + $0x49] sm:$0xff] }
 0x330   : > { %v9531_v5 = vpop.f32.mrf.mxu1  ;;  %v9554_v39 = vpop.f32.mrf.mxu0  ;;  %9914 = vmatmul.mubr.msk.f32.gmra.mxu1 %vm2959_vm2, %v5945_v63  ;;  %9937 = vmatmul.mubr.msk.f32.gmra.mxu0 %vm2959_vm2, %v8348_v10  ;;  %v6395_v10 = vld [vmem:[#allocation2 + $0x81] sm:$0xff]  ;;  %v8390_v63 = vld [vmem:[%s10517_s18 + $0x6a] sm:$0xff] }
 0x331   : > { %v3403_v44 = vadd.f32 %v9531_v5, %v12633_v25  ;;  %v12742_v32 = vadd.f32 %v9554_v39, %v3373_v16  ;;  %9956 = vmatprep.mubr.msk.f32.mxu1 %vm2959_vm2, %v6388_v28  ;;  %9939 = vmatprep.mubr.msk.f32.mxu0 %vm2959_vm2, %v8349_v40  ;;  %v8391_v39 = vld [vmem:[%s10517_s18 + $0x7a] sm:$0xff] }
 0x332   : > { %v3397_v29 = vpop.f32.mrf.mxu1  ;;  %v3580_v35 = vpop.f32.mrf.mxu0 }
 0x333   : > { %v3398_v49 = vadd.f32 %v3397_v29, %v12642_v12  ;;  %v12748_v24 = vadd.f32 %v3580_v35, %v3368_v34 }
 0x334   : > { %v9557_v25 = vpop.f32.mrf.mxu0  ;;  %v9574_v22 = vpop.f32.mrf.mxu1  ;;  %9940 = vmatmul.mubr.msk.f32.gmra.mxu0 %vm2959_vm2, %v8350_v43  ;;  %9957 = vmatmul.mubr.msk.f32.vlgmr.msra.gmra.mxu1 %vm2959_vm2, %v6389_v52  ;;  %v6397_v43 = vld [vmem:[#allocation2 + $0x99] sm:$0xff] }
 0x335   : > { %v12755_v14 = vadd.f32 %v9557_v25, %v3383_v37  ;;  %v3849_v1 = vadd.f32 %v9574_v22, %v12684_v21  ;;  %9959 = vmatprep.mubr.msk.f32.mxu1 %vm2959_vm2, %v6390_v42  ;;  %10013 = vmatpush3.msra.mxu1 %v12676_v0  ;;  %v6863_v21 = vld [vmem:[%s13306_s3 + $0x108] sm:$0xff]  ;;  %v8393_v22 = vld [vmem:[%s10517_s18 + $0x92] sm:$0xff] }
 0x336   : > { %v3590_v12 = vpop.f32.mrf.mxu0  ;;  %v3769_v38 = vpop.f32.mrf.mxu1  ;;  %9942 = vmatprep.mubr.msk.f32.mxu0 %vm2959_vm2, %v12438_v19  ;;  %10014 = vmatprep.subr.mxu1 %v6864_v41  ;;  %v6392_v19 = vld [vmem:[#allocation2 + $0x61] sm:$0xff] }
 0x337   : > { %v12763_v45 = vadd.f32 %v3590_v12, %v3378_v13  ;;  %v3848_v16 = vadd.f32 %v3769_v38, %v12693_v26  ;;  %10015 = vmatpush3.msra.mxu1 %v6864_v41  ;;  %v8354_v26 = vld [vmem:[%s10517_s18 + $0xf9] sm:$0xff]  ;;  %v6399_v12 = vld [vmem:[#allocation2 + $0xb1] sm:$0xff] }
 0x338   : > { %v9560_v0 = vpop.f32.mrf.mxu0  ;;  %v9577_v58 = vpop.f32.mrf.mxu1  ;;  %9943 = vmatmul.mubr.msk.f32.gmra.mxu0 %vm2959_vm2, %v12452_v50  ;;  %9960 = vmatmul.mubr.msk.f32.gmra.mxu1 %vm2959_vm2, %v6391_v54 }
 0x339   : > { %v12772_v36 = vadd.f32 %v9560_v0, %v3393_v2  ;;  %v3851_v55 = vadd.f32 %v9577_v58, %v12701_v6  ;;  %9962 = vmatprep.mubr.msk.f32.mxu1 %vm2959_vm2, %v6392_v19  ;;  %9945 = vmatprep.mubr.msk.f32.mxu0 %vm2959_vm2, %v8353_v57  ;;  %v6862_v6 = vld [vmem:[%s13306_s3 + $0x100] sm:$0xff]  ;;  %v8395_v0 = vld [vmem:[%s10517_s18 + $0xaa] sm:$0xff] }
 0x33a   : > { %v3600_v34 = vpop.f32.mrf.mxu0  ;;  %v3779_v56 = vpop.f32.mrf.mxu1  ;;  %10016 = vmatprep.subr.mxu1 %v6863_v21 }
 0x33b   : > { %v12779_v59 = vadd.f32 %v3600_v34, %v3388_v4  ;;  %v3850_v50 = vadd.f32 %v3779_v56, %v12708_v47  ;;  %10017 = vmatpush3.msra.mxu1 %v6863_v21  ;;  %v8388_v47 = vld [vmem:[%s10517_s18 + $0x52] sm:$0xff] }
 0x33c   : > { %v9563_v37 = vpop.f32.mrf.mxu0  ;;  %v9580_v17 = vpop.f32.mrf.mxu1  ;;  %9946 = vmatmul.mubr.msk.f32.gmra.mxu0 %vm2959_vm2, %v8354_v26  ;;  %9963 = vmatmul.mubr.msk.f32.gmra.mxu1 %vm2959_vm2, %v6393_v11  ;;  %v8396_v56 = vld [vmem:[%s10517_s18 + $0xb2] sm:$0xff] }
 0x33d   : > { %v12787_v27 = vadd.f32 %v9563_v37, %v3403_v44  ;;  %v3853_v8 = vadd.f32 %v9580_v17, %v12716_v31  ;;  %9965 = vmatprep.mubr.msk.f32.mxu1 %vm2959_vm2, %v6394_v46  ;;  %9988 = vmatprep.mubr.msk.f32.mxu0 %vm2959_vm2, %v8387_v23  ;;  %v6396_v31 = vld [vmem:[#allocation2 + $0x91] sm:$0xff] }
 0x33e   : > { %v3610_v13 = vpop.f32.mrf.mxu0  ;;  %v3789_v60 = vpop.f32.mrf.mxu1  ;;  %10018 = vmatprep.subr.mxu1 %v6862_v6 }
 0x33f   : > { %v12794_v62 = vadd.f32 %v3610_v13, %v3398_v49  ;;  %v3852_v2 = vadd.f32 %v3789_v60, %v12724_v48  ;;  %10019 = vmatpush3.msra.mxu1 %v6862_v6 }
 0x340   : > { %v9583_v51 = vpop.f32.mrf.mxu1  ;;  %v9606_v3 = vpop.f32.mrf.mxu0  ;;  %9966 = vmatmul.mubr.msk.f32.gmra.mxu1 %vm2959_vm2, %v6395_v10  ;;  %9989 = vmatmul.mubr.msk.f32.vlgmr.msra.gmra.mxu0 %vm2959_vm2, %v8388_v47  ;;  %v8398_v47 = vld [vmem:[%s10517_s18 + $0xca] sm:$0xff] }
 0x341   : > { %v3855_v40 = vadd.f32 %v9583_v51, %v12730_v53  ;;  %v12800_v4 = vadd.f32 %v9606_v3, %v3849_v1  ;;  %9968 = vmatprep.mubr.msk.f32.mxu1 %vm2959_vm2, %v6396_v31  ;;  %9991 = vmatprep.mubr.msk.f32.mxu0 %vm2959_vm2, %v8389_v61  ;;  %v6398_v53 = vld [vmem:[#allocation2 + $0xa9] sm:$0xff] }
 0x342   : > { %v3799_v48 = vpop.f32.mrf.mxu1  ;;  %v3998_v5 = vpop.f32.mrf.mxu0 }
 0x343   : > { %v3854_v28 = vadd.f32 %v3799_v48, %v12737_v30  ;;  %v12807_v44 = vadd.f32 %v3998_v5, %v3848_v16  ;;  %v8392_v30 = vld [vmem:[%s10517_s18 + $0x82] sm:$0xff] }
 0x344   : > { %v9586_v29 = vpop.f32.mrf.mxu1  ;;  %v9609_v35 = vpop.f32.mrf.mxu0  ;;  %9969 = vmatmul.mubr.msk.f32.gmra.mxu1 %vm2959_vm2, %v6397_v43  ;;  %9992 = vmatmul.mubr.msk.f32.gmra.mxu0 %vm2959_vm2, %v8390_v63  ;;  %v8401_v63 = vld [vmem:[%s10517_s18 + $0xf2] sm:$0xff] }
 0x345   : > { %v3857_v49 = vadd.f32 %v9586_v29, %v12742_v32  ;;  %v12812_v52 = vadd.f32 %v9609_v35, %v3851_v55  ;;  %9971 = vmatprep.mubr.msk.f32.mxu1 %vm2959_vm2, %v6398_v53  ;;  %9994 = vmatprep.mubr.msk.f32.mxu0 %vm2959_vm2, %v8391_v39  ;;  %v6849_v39 = vld [vmem:[#allocation2 + $0x52] sm:$0xff]  ;;  %v8402_v35 = vld [vmem:[%s10517_s18 + $0xfa] sm:$0xff] }
 0x346   : > { %v3809_v41 = vpop.f32.mrf.mxu1  ;;  %v4008_v25 = vpop.f32.mrf.mxu0 }
 0x347   : > { %v3856_v42 = vadd.f32 %v3809_v41, %v12748_v24  ;;  %v12819_v1 = vadd.f32 %v4008_v25, %v3850_v50  ;;  %v8394_v24 = vld [vmem:[%s10517_s18 + $0x9a] sm:$0xff]  ;;  %v8397_v50 = vld [vmem:[%s10517_s18 + $0xc2] sm:$0xff]  ;;  %v6851_v41 = vld [vmem:[#allocation2 + $0x6a] sm:$0xff]  ;;  %s13247_s18 = scalar_lea.hbm %s13309_s6, %s8439_s24 }
 0x348   : > { %v9589_v38 = vpop.f32.mrf.mxu1  ;;  %v9612_v57 = vpop.f32.mrf.mxu0  ;;  %9972 = vmatmul.mubr.msk.f32.gmra.mxu1 %vm2959_vm2, %v6399_v12  ;;  %9995 = vmatmul.mubr.msk.f32.gmra.mxu0 %vm2959_vm2, %v8392_v30 }
 0x349   : > { %v3859_v32 = vadd.f32 %v9589_v38, %v12755_v14  ;;  %v12824_v16 = vadd.f32 %v9612_v57, %v3853_v8  ;;  %9974 = vmatprep.mubr.msk.f32.mxu1 %vm2959_vm2, %v12505_v7  ;;  %9997 = vmatprep.mubr.msk.f32.mxu0 %vm2959_vm2, %v8393_v22  ;;  %v6402_v7 = vld [vmem:[#allocation2 + $0xd9] sm:$0xff] }
 0x34a   : > { %v3819_v54 = vpop.f32.mrf.mxu1  ;;  %v4018_v21 = vpop.f32.mrf.mxu0 }
 0x34b   : > { %v3858_v58 = vadd.f32 %v3819_v54, %v12763_v45  ;;  %v12832_v19 = vadd.f32 %v4018_v21, %v3852_v2  ;;  %v6847_v2 = vld [vmem:[#allocation2 + $0x3a] sm:$0xff]  ;;  %v6854_v21 = vld [vmem:[#allocation2 + $0x92] sm:$0xff] }
 0x34c   : > { %v9592_v55 = vpop.f32.mrf.mxu1  ;;  %v9615_v26 = vpop.f32.mrf.mxu0  ;;  %9975 = vmatmul.mubr.msk.f32.gmra.mxu1 %vm2959_vm2, %v12514_v33  ;;  %9998 = vmatmul.mubr.msk.f32.gmra.mxu0 %vm2959_vm2, %v8394_v24  ;;  %v6403_v33 = vld [vmem:[#allocation2 + $0xe1] sm:$0xff] }
 0x34d   : > { %v3861_v14 = vadd.f32 %v9592_v55, %v12772_v36  ;;  %v12838_v34 = vadd.f32 %v9615_v26, %v3855_v40  ;;  %9977 = vmatprep.mubr.msk.f32.mxu1 %vm2959_vm2, %v6402_v7  ;;  %10000 = vmatprep.mubr.msk.f32.mxu0 %vm2959_vm2, %v8395_v0  ;;  %v6846_v36 = vld [vmem:[#allocation2 + $0x32] sm:$0xff]  ;;  %v6853_v24 = vld [vmem:[#allocation2 + $0x82] sm:$0xff] }
 0x34e   : > { %v3829_v45 = vpop.f32.mrf.mxu1  ;;  %v4028_v23 = vpop.f32.mrf.mxu0 }
 0x34f   : > { %v3860_v11 = vadd.f32 %v3829_v45, %v12779_v59  ;;  %v12845_v6 = vadd.f32 %v4028_v23, %v3854_v28 }
 0x350   : > { %v9595_v37 = vpop.f32.mrf.mxu1  ;;  %v9618_v17 = vpop.f32.mrf.mxu0  ;;  %9978 = vmatmul.mubr.msk.f32.gmra.mxu1 %vm2959_vm2, %v6403_v33  ;;  %10001 = vmatmul.mubr.msk.f32.gmra.mxu0 %vm2959_vm2, %v8396_v56 }
 0x351   : > { %v3863_v46 = vadd.f32 %v9595_v37, %v12787_v27  ;;  %v12850_v8 = vadd.f32 %v9618_v17, %v3857_v49  ;;  %10020 = vmatprep.mubr.msk.f32.mxu1 %vm2959_vm2, %v6846_v36  ;;  %10003 = vmatprep.mubr.msk.f32.mxu0 %vm2959_vm2, %v8397_v50  ;;  %v6848_v27 = vld [vmem:[#allocation2 + $0x4a] sm:$0xff]  ;;  %v6857_v17 = vld [vmem:[#allocation2 + $0xb2] sm:$0xff] }
 0x352   : > { %v3839_v59 = vpop.f32.mrf.mxu1  ;;  %v4038_v13 = vpop.f32.mrf.mxu0 }
 0x353   : > { %v3862_v60 = vadd.f32 %v3839_v59, %v12794_v62  ;;  %v12856_v61 = vadd.f32 %v4038_v13, %v3856_v42 }
 0x354   : > { %v9621_v10 = vpop.f32.mrf.mxu0  ;;  %v9638_v51 = vpop.f32.mrf.mxu1  ;;  %10004 = vmatmul.mubr.msk.f32.gmra.mxu0 %vm2959_vm2, %v8398_v47  ;;  %10021 = vmatmul.mubr.msk.f32.vlgmr.msra.gmra.mxu1 %vm2959_vm2, %v6847_v2 }
 0x355   : > { %v12860_v3 = vadd.f32 %v9621_v10, %v3859_v32  ;;  %v4307_v31 = vadd.f32 %v9638_v51, %v12800_v4  ;;  %10023 = vmatprep.mubr.msk.f32.mxu1 %vm2959_vm2, %v6848_v27  ;;  %10006 = vmatprep.mubr.msk.f32.mxu0 %vm2959_vm2, %v12536_v20  ;;  %v6850_v4 = vld [vmem:[#allocation2 + $0x62] sm:$0xff] }
 0x356   : > { %v4048_v62 = vpop.f32.mrf.mxu0  ;;  %v4227_v40 = vpop.f32.mrf.mxu1 }
 0x357   : > { %v12867_v48 = vadd.f32 %v4048_v62, %v3858_v58  ;;  %v4306_v5 = vadd.f32 %v4227_v40, %v12807_v44 }
 0x358   : > { %v9624_v28 = vpop.f32.mrf.mxu0  ;;  %v9641_v43 = vpop.f32.mrf.mxu1  ;;  %10007 = vmatmul.mubr.msk.f32.gmra.mxu0 %vm2959_vm2, %v12550_v15  ;;  %10024 = vmatmul.mubr.msk.f32.gmra.mxu1 %vm2959_vm2, %v6849_v39  ;;  %v6852_v15 = vld [vmem:[#allocation2 + $0x7a] sm:$0xff] }
 0x359   : > { %v4090_v29 = vadd.f32 %v9624_v28, %v3861_v14  ;;  %v4309_v20 = vadd.f32 %v9641_v43, %v12812_v52  ;;  %10026 = vmatprep.mubr.msk.f32.mxu1 %vm2959_vm2, %v6850_v4  ;;  %10009 = vmatprep.mubr.msk.f32.mxu0 %vm2959_vm2, %v8401_v63  ;;  %v6855_v14 = vld [vmem:[#allocation2 + $0x9a] sm:$0xff] }
 0x35a   : > { %v4058_v53 = vpop.f32.mrf.mxu0  ;;  %v4237_v49 = vpop.f32.mrf.mxu1 }
 0x35b   : > { %v4089_v44 = vadd.f32 %v4058_v53, %v3860_v11  ;;  %v4308_v30 = vadd.f32 %v4237_v49, %v12819_v1 }
 0x35c   : > { %v9627_v25 = vpop.f32.mrf.mxu0  ;;  %v9644_v22 = vpop.f32.mrf.mxu1  ;;  %10010 = vmatmul.mubr.msk.f32.gmra.mxu0 %vm2959_vm2, %v8402_v35  ;;  %10027 = vmatmul.mubr.msk.f32.gmra.mxu1 %vm2959_vm2, %v6851_v41 }
 0x35d   : > { %v4092_v42 = vadd.f32 %v9627_v25, %v3863_v46  ;;  %v4311_v52 = vadd.f32 %v9644_v22, %v12824_v16  ;;  %10029 = vmatprep.mubr.msk.f32.mxu1 %vm2959_vm2, %v6852_v15 }
 0x35e   : > { %v4068_v12 = vpop.f32.mrf.mxu0  ;;  %v4247_v38 = vpop.f32.mrf.mxu1 }
 0x35f   : > { %v4091_v57 = vadd.f32 %v4068_v12, %v3862_v60  ;;  %v4310_v32 = vadd.f32 %v4247_v38, %v12832_v19  ;;  %v6856_v19 = vld [vmem:[#allocation2 + $0xaa] sm:$0xff] }
 0x360   : > { %v9647_v1 = vpop.f32.mrf.mxu1  ;;  %v9670_v54 = vpop.f32.mrf.mxu0  ;;  %10030 = vmatmul.mubr.msk.f32.gmra.mxu1 %vm2959_vm2, %v6853_v24 }
 0x361   : > { %v4313_v0 = vadd.f32 %v9647_v1, %v12838_v34  ;;  %v4536_v58 = vadd.f32 %v9670_v54, %v4307_v31  ;;  %10032 = vmatprep.mubr.msk.f32.mxu1 %vm2959_vm2, %v6854_v21 }
 0x362   : > { %v4257_v55 = vpop.f32.mrf.mxu1  ;;  %v4456_v16 = vpop.f32.mrf.mxu0 }
 0x363   : > { %v4312_v26 = vadd.f32 %v4257_v55, %v12845_v6  ;;  %v4535_v7 = vadd.f32 %v4456_v16, %v4306_v5 }
 0x364   : > { %v9650_v56 = vpop.f32.mrf.mxu1  ;;  %v9673_v45 = vpop.f32.mrf.mxu0  ;;  %10033 = vmatmul.mubr.msk.f32.gmra.mxu1 %vm2959_vm2, %v6855_v14 }
 0x365   : > { %v4315_v23 = vadd.f32 %v9650_v56, %v12850_v8  ;;  %v4538_v50 = vadd.f32 %v9673_v45, %v4309_v20  ;;  %10035 = vmatprep.mubr.msk.f32.mxu1 %vm2959_vm2, %v6856_v19 }
 0x366   : > { %v4267_v34 = vpop.f32.mrf.mxu1  ;;  %v4466_v11 = vpop.f32.mrf.mxu0 }
 0x367   : > { %v4314_v33 = vadd.f32 %v4267_v34, %v12856_v61  ;;  %v4537_v37 = vadd.f32 %v4466_v11, %v4308_v30  ;;  %v6860_v61 = vld [vmem:[#allocation2 + $0xda] sm:$0xff] }
 0x368   : > { %v9653_v36 = vpop.f32.mrf.mxu1  ;;  %v9676_v6 = vpop.f32.mrf.mxu0  ;;  %10036 = vmatmul.mubr.msk.f32.gmra.mxu1 %vm2959_vm2, %v6857_v17 }
 0x369   : > { %v4317_v46 = vadd.f32 %v9653_v36, %v12860_v3  ;;  %v4540_v47 = vadd.f32 %v9676_v6, %v4311_v52  ;;  %10038 = vmatprep.mubr.msk.f32.mxu1 %vm2959_vm2, %v12617_v18  ;;  %v6861_v18 = vld [vmem:[#allocation2 + $0xe2] sm:$0xff] }
 0x36a   : > { %v4277_v8 = vpop.f32.mrf.mxu1  ;;  %v4476_v59 = vpop.f32.mrf.mxu0 }
 0x36b   : > { %v4316_v13 = vadd.f32 %v4277_v8, %v12867_v48  ;;  %v4539_v60 = vadd.f32 %v4476_v59, %v4310_v32 }
 0x36c   : > { %v9656_v2 = vpop.f32.mrf.mxu1  ;;  %v9679_v10 = vpop.f32.mrf.mxu0  ;;  %10039 = vmatmul.mubr.msk.f32.gmra.mxu1 %vm2959_vm2, %v12630_v9 }
 0x36d   : > { %v4319_v51 = vadd.f32 %v9656_v2, %v4090_v29  ;;  %v4542_v27 = vadd.f32 %v9679_v10, %v4313_v0  ;;  %10041 = vmatprep.mubr.msk.f32.mxu1 %vm2959_vm2, %v6860_v61 }
 0x36e   : > { %v4287_v3 = vpop.f32.mrf.mxu1  ;;  %v4486_v31 = vpop.f32.mrf.mxu0 }
 0x36f   : > { %v4318_v62 = vadd.f32 %v4287_v3, %v4089_v44  ;;  %v4541_v40 = vadd.f32 %v4486_v31, %v4312_v26 }
 0x370   : > { %v9659_v63 = vpop.f32.mrf.mxu1  ;;  %v9682_v5 = vpop.f32.mrf.mxu0  ;;  %10042 = vmatmul.mubr.msk.f32.gmra.mxu1 %vm2959_vm2, %v6861_v18 }
 0x371   : > { %v4321_v48 = vadd.f32 %v9659_v63, %v4092_v42  ;;  %v4544_v39 = vadd.f32 %v9682_v5, %v4315_v23 }
 0x372   : > { %v4297_v28 = vpop.f32.mrf.mxu1  ;;  %v4496_v43 = vpop.f32.mrf.mxu0 }
 0x373   : > { %v4320_v4 = vadd.f32 %v4297_v28, %v4091_v57  ;;  %v4543_v9 = vadd.f32 %v4496_v43, %v4314_v33 }
 0x374   : > { %v9685_v20 = vpop.f32.mrf.mxu0  ;;  %v9702_v29 = vpop.f32.mrf.mxu1 }
 0x375   : > { %v4546_v35 = vadd.f32 %v9685_v20, %v4317_v46  ;;  %v4766_v53 = vadd.f32 %v9702_v29, %v4536_v58 }
 0x376   : > { %v4506_v49 = vpop.f32.mrf.mxu0  ;;  %v4686_v30 = vpop.f32.mrf.mxu1 }
 0x377   : > { %v4545_v41 = vadd.f32 %v4506_v49, %v4316_v13  ;;  %v4765_v44 = vadd.f32 %v4686_v30, %v4535_v7 }
 0x378   : > { %v9688_v25 = vpop.f32.mrf.mxu0  ;;  %v9705_v22 = vpop.f32.mrf.mxu1 }
 0x379   : > { %v4548_v15 = vadd.f32 %v9688_v25, %v4319_v51  ;;  %v4768_v52 = vadd.f32 %v9705_v22, %v4538_v50 }
 0x37a   : > { %v4516_v12 = vpop.f32.mrf.mxu0  ;;  %v4696_v38 = vpop.f32.mrf.mxu1 }
 0x37b   : > { %v4547_v42 = vadd.f32 %v4516_v12, %v4318_v62  ;;  %v4767_v32 = vadd.f32 %v4696_v38, %v4537_v37 }
 0x37c   : > { %v9691_v24 = vpop.f32.mrf.mxu0  ;;  %v9708_v1 = vpop.f32.mrf.mxu1 }
 0x37d   : > { %v4550_v57 = vadd.f32 %v9691_v24, %v4321_v48  ;;  %v4770_v54 = vadd.f32 %v9708_v1, %v4540_v47 }
 0x37e   : > { %v4526_v21 = vpop.f32.mrf.mxu0  ;;  %v4706_v0 = vpop.f32.mrf.mxu1 }
 0x37f   : > { %v4549_v55 = vadd.f32 %v4526_v21, %v4320_v4  ;;  %v4769_v58 = vadd.f32 %v4706_v0, %v4539_v60 }
 0x380   : > { %v9711_v16 = vpop.f32.mrf.mxu1  ;;  %v9734_v26 = vpop.f32.mrf.mxu0 }
 0x381   : > { %v4772_v14 = vadd.f32 %v9711_v16, %v4542_v27  ;;  %v4995_v7 = vadd.f32 %v9734_v26, %v4766_v53 }
 0x382   : > { %v4716_v56 = vpop.f32.mrf.mxu1  ;;  %v4915_v45 = vpop.f32.mrf.mxu0 }
 0x383   : > { %v4771_v19 = vadd.f32 %v4716_v56, %v4541_v40  ;;  %v4994_v23 = vadd.f32 %v4915_v45, %v4765_v44 }
 0x384   : > { %v9714_v50 = vpop.f32.mrf.mxu1  ;;  %v9737_v34 = vpop.f32.mrf.mxu0 }
 0x385   : > { %v4774_v11 = vadd.f32 %v9714_v50, %v4544_v39  ;;  %v4997_v33 = vadd.f32 %v9737_v34, %v4768_v52 }
 0x386   : > { %v4726_v37 = vpop.f32.mrf.mxu1  ;;  %v4925_v17 = vpop.f32.mrf.mxu0 }
 0x387   : > { %v4773_v36 = vadd.f32 %v4726_v37, %v4543_v9  ;;  %v4996_v6 = vadd.f32 %v4925_v17, %v4767_v32 }
 0x388   : > { %v9717_v46 = vpop.f32.mrf.mxu1  ;;  %v9740_v47 = vpop.f32.mrf.mxu0 }
 0x389   : > { %v4776_v8 = vadd.f32 %v9717_v46, %v4546_v35  ;;  %v4999_v59 = vadd.f32 %v9740_v47, %v4770_v54 }
 0x38a   : > { %v4736_v13 = vpop.f32.mrf.mxu1  ;;  %v4935_v60 = vpop.f32.mrf.mxu0 }
 0x38b   : > { %v4775_v2 = vadd.f32 %v4736_v13, %v4545_v41  ;;  %v4998_v10 = vadd.f32 %v4935_v60, %v4769_v58 }
 0x38c   : > { %v9720_v61 = vpop.f32.mrf.mxu1  ;;  %v9743_v51 = vpop.f32.mrf.mxu0 }
 0x38d   : > { %v4778_v27 = vadd.f32 %v9720_v61, %v4548_v15  ;;  %v5001_v3 = vadd.f32 %v9743_v51, %v4772_v14 }
 0x38e   : > { %v4746_v31 = vpop.f32.mrf.mxu1  ;;  %v4945_v62 = vpop.f32.mrf.mxu0 }
 0x38f   : > { %v4777_v40 = vadd.f32 %v4746_v31, %v4547_v42  ;;  %v5000_v18 = vadd.f32 %v4945_v62, %v4771_v19 }
 0x390   : > { %v9723_v63 = vpop.f32.mrf.mxu1  ;;  %v9746_v5 = vpop.f32.mrf.mxu0 }
 0x391   : > { %v4780_v48 = vadd.f32 %v9723_v63, %v4550_v57  ;;  %v5003_v39 = vadd.f32 %v9746_v5, %v4774_v11 }
 0x392   : > { %v4756_v28 = vpop.f32.mrf.mxu1  ;;  %v4955_v43 = vpop.f32.mrf.mxu0 }
 0x393   : > { %v4779_v4 = vadd.f32 %v4756_v28, %v4549_v55  ;;  %v5002_v9 = vadd.f32 %v4955_v43, %v4773_v36 }
 0x394   : > { %v9749_v20 = vpop.f32.mrf.mxu0  ;;  %v9766_v29 = vpop.f32.mrf.mxu1 }
 0x395   : > { %v5005_v35 = vadd.f32 %v9749_v20, %v4776_v8  ;;  %v5224_v53 = vadd.f32 %v9766_v29, %v4995_v7 }
 0x396   : > { %v4965_v49 = vpop.f32.mrf.mxu0  ;;  %v5144_v30 = vpop.f32.mrf.mxu1 }
 0x397   : > { %v5004_v41 = vadd.f32 %v4965_v49, %v4775_v2  ;;  %v5223_v44 = vadd.f32 %v5144_v30, %v4994_v23 }
 0x398   : > { %v9752_v25 = vpop.f32.mrf.mxu0  ;;  %v9769_v22 = vpop.f32.mrf.mxu1 }
 0x399   : > { %v5007_v15 = vadd.f32 %v9752_v25, %v4778_v27  ;;  %v5226_v52 = vadd.f32 %v9769_v22, %v4997_v33 }
 0x39a   : > { %v4975_v12 = vpop.f32.mrf.mxu0  ;;  %v5154_v38 = vpop.f32.mrf.mxu1 }
 0x39b   : > { %v5006_v42 = vadd.f32 %v4975_v12, %v4777_v40  ;;  %v5225_v32 = vadd.f32 %v5154_v38, %v4996_v6 }
 0x39c   : > { %v9755_v24 = vpop.f32.mrf.mxu0  ;;  %v9772_v1 = vpop.f32.mrf.mxu1 }
 0x39d   : > { %v5009_v57 = vadd.f32 %v9755_v24, %v4780_v48  ;;  %v5228_v54 = vadd.f32 %v9772_v1, %v4999_v59 }
 0x39e   : > { %v4985_v21 = vpop.f32.mrf.mxu0  ;;  %v5164_v0 = vpop.f32.mrf.mxu1 }
 0x39f   : > { %v5008_v55 = vadd.f32 %v4985_v21, %v4779_v4  ;;  %v5227_v58 = vadd.f32 %v5164_v0, %v4998_v10 }
 0x3a0   : > { %v9775_v16 = vpop.f32.mrf.mxu1  ;;  %v9798_v26 = vpop.f32.mrf.mxu0 }
 0x3a1   : > { %v5230_v14 = vadd.f32 %v9775_v16, %v5001_v3  ;;  %v5453_v7 = vadd.f32 %v9798_v26, %v5224_v53 }
 0x3a2   : > { %v5174_v56 = vpop.f32.mrf.mxu1  ;;  %v5373_v45 = vpop.f32.mrf.mxu0 }
 0x3a3   : > { %v5229_v19 = vadd.f32 %v5174_v56, %v5000_v18  ;;  %v5452_v23 = vadd.f32 %v5373_v45, %v5223_v44 }
 0x3a4   : > { %v9778_v50 = vpop.f32.mrf.mxu1  ;;  %v9801_v34 = vpop.f32.mrf.mxu0 }
 0x3a5   : > { %v5232_v11 = vadd.f32 %v9778_v50, %v5003_v39  ;;  %v5455_v33 = vadd.f32 %v9801_v34, %v5226_v52 }
 0x3a6   : > { %v5184_v37 = vpop.f32.mrf.mxu1  ;;  %v5383_v17 = vpop.f32.mrf.mxu0 }
 0x3a7   : > { %v5231_v36 = vadd.f32 %v5184_v37, %v5002_v9  ;;  %v5454_v6 = vadd.f32 %v5383_v17, %v5225_v32 }
 0x3a8   : > { %v9781_v46 = vpop.f32.mrf.mxu1  ;;  %v9804_v47 = vpop.f32.mrf.mxu0 }
 0x3a9   : > { %v5234_v8 = vadd.f32 %v9781_v46, %v5005_v35  ;;  %v5457_v59 = vadd.f32 %v9804_v47, %v5228_v54 }
 0x3aa   : > { %v5194_v13 = vpop.f32.mrf.mxu1  ;;  %v5393_v60 = vpop.f32.mrf.mxu0 }
 0x3ab   : > { %v5233_v2 = vadd.f32 %v5194_v13, %v5004_v41  ;;  %v5456_v10 = vadd.f32 %v5393_v60, %v5227_v58 }
 0x3ac   : > { %v9784_v61 = vpop.f32.mrf.mxu1  ;;  %v9807_v51 = vpop.f32.mrf.mxu0 }
 0x3ad   : > { %v5236_v27 = vadd.f32 %v9784_v61, %v5007_v15  ;;  %v5459_v3 = vadd.f32 %v9807_v51, %v5230_v14 }
 0x3ae   : > { %v5204_v31 = vpop.f32.mrf.mxu1  ;;  %v5403_v62 = vpop.f32.mrf.mxu0 }
 0x3af   : > { %v5235_v40 = vadd.f32 %v5204_v31, %v5006_v42  ;;  %v5458_v18 = vadd.f32 %v5403_v62, %v5229_v19 }
 0x3b0   : > { %v9787_v63 = vpop.f32.mrf.mxu1  ;;  %v9810_v5 = vpop.f32.mrf.mxu0 }
 0x3b1   : > { %v5238_v48 = vadd.f32 %v9787_v63, %v5009_v57  ;;  %v5461_v39 = vadd.f32 %v9810_v5, %v5232_v11 }
 0x3b2   : > { %v5214_v28 = vpop.f32.mrf.mxu1  ;;  %v5413_v43 = vpop.f32.mrf.mxu0 }
 0x3b3   : > { %v5237_v4 = vadd.f32 %v5214_v28, %v5008_v55  ;;  %v5460_v9 = vadd.f32 %v5413_v43, %v5231_v36 }
 0x3b4   : > { %v9813_v20 = vpop.f32.mrf.mxu0  ;;  %v9830_v29 = vpop.f32.mrf.mxu1 }
 0x3b5   : > { %v5463_v35 = vadd.f32 %v9813_v20, %v5234_v8  ;;  %v5682_v53 = vadd.f32 %v9830_v29, %v5453_v7 }
 0x3b6   : > { %v5423_v49 = vpop.f32.mrf.mxu0  ;;  %v5602_v30 = vpop.f32.mrf.mxu1 }
 0x3b7   : > { %v5462_v41 = vadd.f32 %v5423_v49, %v5233_v2  ;;  %v5681_v44 = vadd.f32 %v5602_v30, %v5452_v23 }
 0x3b8   : > { %v9816_v25 = vpop.f32.mrf.mxu0  ;;  %v9833_v22 = vpop.f32.mrf.mxu1 }
 0x3b9   : > { %v5465_v15 = vadd.f32 %v9816_v25, %v5236_v27  ;;  %v5684_v52 = vadd.f32 %v9833_v22, %v5455_v33 }
 0x3ba   : > { %v5433_v12 = vpop.f32.mrf.mxu0  ;;  %v5612_v38 = vpop.f32.mrf.mxu1 }
 0x3bb   : > { %v5464_v42 = vadd.f32 %v5433_v12, %v5235_v40  ;;  %v5683_v32 = vadd.f32 %v5612_v38, %v5454_v6 }
 0x3bc   : > { %v9819_v24 = vpop.f32.mrf.mxu0  ;;  %v9836_v1 = vpop.f32.mrf.mxu1 }
 0x3bd   : > { %v5467_v57 = vadd.f32 %v9819_v24, %v5238_v48  ;;  %v5686_v54 = vadd.f32 %v9836_v1, %v5457_v59 }
 0x3be   : > { %v5443_v21 = vpop.f32.mrf.mxu0  ;;  %v5622_v0 = vpop.f32.mrf.mxu1 }
 0x3bf   : > { %v5466_v55 = vadd.f32 %v5443_v21, %v5237_v4  ;;  %v5685_v58 = vadd.f32 %v5622_v0, %v5456_v10 }
 0x3c0   : > { %v9839_v16 = vpop.f32.mrf.mxu1  ;;  %v9862_v26 = vpop.f32.mrf.mxu0 }
 0x3c1   : > { %v5688_v14 = vadd.f32 %v9839_v16, %v5459_v3  ;;  %v5914_v7 = vadd.f32 %v9862_v26, %v5682_v53 }
 0x3c2   : > { %v5632_v56 = vpop.f32.mrf.mxu1  ;;  %v5834_v45 = vpop.f32.mrf.mxu0 }
 0x3c3   : > { %v5687_v19 = vadd.f32 %v5632_v56, %v5458_v18  ;;  %v5913_v23 = vadd.f32 %v5834_v45, %v5681_v44 }
 0x3c4   : > { %v9842_v50 = vpop.f32.mrf.mxu1  ;;  %v9865_v34 = vpop.f32.mrf.mxu0 }
 0x3c5   : > { %v5690_v11 = vadd.f32 %v9842_v50, %v5461_v39  ;;  %v5916_v33 = vadd.f32 %v9865_v34, %v5684_v52 }
 0x3c6   : > { %v5642_v37 = vpop.f32.mrf.mxu1  ;;  %v5844_v17 = vpop.f32.mrf.mxu0 }
 0x3c7   : > { %v5689_v36 = vadd.f32 %v5642_v37, %v5460_v9  ;;  %v5915_v6 = vadd.f32 %v5844_v17, %v5683_v32 }
 0x3c8   : > { %v9845_v46 = vpop.f32.mrf.mxu1  ;;  %v9868_v47 = vpop.f32.mrf.mxu0 }
 0x3c9   : > { %v5692_v8 = vadd.f32 %v9845_v46, %v5463_v35  ;;  %v5918_v59 = vadd.f32 %v9868_v47, %v5686_v54 }
 0x3ca   : > { %v5652_v13 = vpop.f32.mrf.mxu1  ;;  %v5854_v60 = vpop.f32.mrf.mxu0 }
 0x3cb   : > { %v5691_v2 = vadd.f32 %v5652_v13, %v5462_v41  ;;  %v5917_v10 = vadd.f32 %v5854_v60, %v5685_v58 }
 0x3cc   : > { %v9848_v61 = vpop.f32.mrf.mxu1  ;;  %v9871_v51 = vpop.f32.mrf.mxu0 }
 0x3cd   : > { %v12900_v27 = vadd.f32 %v9848_v61, %v5465_v15  ;;  %v5920_v3 = vadd.f32 %v9871_v51, %v5688_v14 }
 0x3ce   : > { %v5662_v31 = vpop.f32.mrf.mxu1  ;;  %v5864_v62 = vpop.f32.mrf.mxu0 }
 0x3cf   : > { %v5693_v40 = vadd.f32 %v5662_v31, %v5464_v42  ;;  %v5919_v18 = vadd.f32 %v5864_v62, %v5687_v19 }
 0x3d0   : > { %v9851_v63 = vpop.f32.mrf.mxu1  ;;  %v9874_v5 = vpop.f32.mrf.mxu0 }
 0x3d1   : > { %v12902_v48 = vadd.f32 %v9851_v63, %v5467_v57  ;;  %v5922_v39 = vadd.f32 %v9874_v5, %v5690_v11 }
 0x3d2   : > { %v5672_v28 = vpop.f32.mrf.mxu1  ;;  %v5874_v43 = vpop.f32.mrf.mxu0 }
 0x3d3   : > { %v12904_v4 = vadd.f32 %v5672_v28, %v5466_v55  ;;  %v5921_v9 = vadd.f32 %v5874_v43, %v5689_v36 }
 0x3d4   : > { %v9877_v20 = vpop.f32.mrf.mxu0  ;;  %v9894_v29 = vpop.f32.mrf.mxu1 }
 0x3d5   : > { %13522 = vst [vmem:[#allocation39_spill] sm:$0xff] %v12904_v4  ;;  %v5924_v35 = vadd.f32 %v9877_v20, %v5692_v8  ;;  %v12906_v53 = vadd.f32 %v9894_v29, %v5914_v7 }
 0x3d6   : > { %v5884_v49 = vpop.f32.mrf.mxu0  ;;  %v6064_v30 = vpop.f32.mrf.mxu1 }
 0x3d7   : > { %v5923_v41 = vadd.f32 %v5884_v49, %v5691_v2  ;;  %v12908_v44 = vadd.f32 %v6064_v30, %v5913_v23 }
 0x3d8   : > { %v12910_v25 = vpop.f32.mrf.mxu0  ;;  %v9897_v22 = vpop.f32.mrf.mxu1 }
 0x3d9   : > { %v12912_v15 = vadd.f32 %v9897_v22, %v5916_v33 }
 0x3da   : > { %v5894_v52 = vpop.f32.mrf.mxu0  ;;  %v6074_v12 = vpop.f32.mrf.mxu1 }
 0x3db   : > { %v5925_v38 = vadd.f32 %v5894_v52, %v5693_v40  ;;  %v12914_v42 = vadd.f32 %v6074_v12, %v5915_v6 }
 0x3dc   : > { %v12916_v32 = vpop.f32.mrf.mxu0  ;;  %v9900_v24 = vpop.f32.mrf.mxu1 }
 0x3dd   : > { %13523 = vst [vmem:[#allocation42_spill] sm:$0xff] %v12916_v32  ;;  %v12918_v1 = vadd.f32 %v9900_v24, %v5918_v59 }
 0x3de   : > { %v12920_v57 = vpop.f32.mrf.mxu0  ;;  %v6084_v54 = vpop.f32.mrf.mxu1 }
 0x3df   : > { %13524 = vst [vmem:[#allocation48_spill] sm:$0xff] %v12920_v57  ;;  %v12922_v21 = vadd.f32 %v6084_v54, %v5917_v10 }
 0x3e0   : > { %v9903_v0 = vpop.f32.mrf.mxu1  ;;  %v9926_v55 = vpop.f32.mrf.mxu0 }
 0x3e1   : > { %v12924_v58 = vadd.f32 %v9903_v0, %v5920_v3 }
 0x3e2   : > { %v6094_v16 = vpop.f32.mrf.mxu1  ;;  %v6293_v26 = vpop.f32.mrf.mxu0 }
 0x3e3   : > { %v12926_v14 = vadd.f32 %v6094_v16, %v5919_v18 }
 0x3e4   : > { %v9906_v7 = vpop.f32.mrf.mxu1  ;;  %v9929_v56 = vpop.f32.mrf.mxu0 }
 0x3e5   : > { %v12928_v45 = vadd.f32 %v9906_v7, %v5922_v39 }
 0x3e6   : > { %v6104_v19 = vpop.f32.mrf.mxu1  ;;  %v12930_v23 = vpop.f32.mrf.mxu0 }
 0x3e7   : > { %v12932_v50 = vadd.f32 %v6104_v19, %v5921_v9  ;;  %v7131_v19 = vpop.permute.xlu0 %7130 }
 0x3e8   : > { %v9909_v34 = vpop.f32.mrf.mxu1  ;;  %v12934_v11 = vpop.f32.mrf.mxu0 }
 0x3e9   : > { %v12936_v33 = vadd.f32 %v9909_v34, %v5924_v35  ;;  %v6373_v34 = vadd.f32 %v9926_v55, %v12906_v53 }
 0x3ea   : > { %v6114_v37 = vpop.f32.mrf.mxu1  ;;  %v12938_v17 = vpop.f32.mrf.mxu0 }
 0x3eb   : > { %v12940_v36 = vadd.f32 %v6114_v37, %v5923_v41  ;;  %v13002_v57 = vpop.permute.xlu0 %7134 }
 0x3ec   : > { %v12942_v6 = vpop.f32.mrf.mxu1  ;;  %v12944_v46 = vpop.f32.mrf.mxu0  ;;  %13538 = vst [vmem:[#allocation33_spill] sm:$0xff] %v13002_v57 }
 0x3ee   : > { %v6124_v47 = vpop.f32.mrf.mxu1  ;;  %v12946_v8 = vpop.f32.mrf.mxu0 }
 0x3ef   : > { %v12948_v59 = vadd.f32 %v6124_v47, %v5925_v38  ;;  %v7133_v47 = vpop.permute.xlu1 %7132 }
 0x3f0   : > { %v12950_v13 = vpop.f32.mrf.mxu1  ;;  %v12952_v60 = vpop.f32.mrf.mxu0 }
 0x3f1   : > { %13525 = vst [vmem:[#allocation43_spill] sm:$0xff] %v12948_v59  ;;  %13526 = vst [vmem:[#allocation50_spill] sm:$0xff] %v12950_v13 }
 0x3f2   : > { %v12954_v2 = vpop.f32.mrf.mxu1  ;;  %v12956_v10 = vpop.f32.mrf.mxu0 }
 0x3f3   : > { %13527 = vst [vmem:[#allocation53_spill] sm:$0xff] %v12954_v2 }
 0x3f4   : > { %v12958_v61 = vpop.f32.mrf.mxu0  ;;  %v9958_v51 = vpop.f32.mrf.mxu1 }
 0x3f6   : > { %v12960_v3 = vpop.f32.mrf.mxu0  ;;  %v6522_v31 = vpop.f32.mrf.mxu1 }
 0x3f8   : > { %v12962_v62 = vpop.f32.mrf.mxu0  ;;  %v9961_v40 = vpop.f32.mrf.mxu1 }
 0x3f9   : > { %13528 = vst [vmem:[#allocation51_spill] sm:$0xff] %v12962_v62 }
 0x3fa   : > { %v12964_v18 = vpop.f32.mrf.mxu0  ;;  %v6532_v63 = vpop.f32.mrf.mxu1 }
 0x3fb   : > { %13529 = vst [vmem:[#allocation31_spill] sm:$0xff] %v12964_v18 }
 0x3fc   : > { %v12966_v5 = vpop.f32.mrf.mxu0  ;;  %v9964_v39 = vpop.f32.mrf.mxu1 }
 0x3fd   : > { %13530 = vst [vmem:[#allocation30_spill] sm:$0xff] %v12966_v5  ;;  %v6602_v5 = vadd.f32 %v9958_v51, %v6373_v34  ;;  %v13543_v34 = vld [vmem:[#allocation7_spill] sm:$0xff] }
 0x3fe   : > { %v12968_v28 = vpop.f32.mrf.mxu0  ;;  %v12970_v43 = vpop.f32.mrf.mxu1  ;;  %v7118_v57 = vsub.f32 1.0, %v13543_v34 }
 0x3ff   : > { %13531 = vst [vmem:[#allocation27_spill] sm:$0xff] %v12968_v28  ;;  %v6372_v28 = vadd.f32 %v6293_v26, %v12908_v44  ;;  %v13009_v44 = vld [vmem:[%s13308_s5] ss:$0 sm:$0xff]  ;;  %v13539_v26 = vld [vmem:[#allocation19_spill] sm:$0xff] }
 0x400   : > { %v12972_v9 = vpop.f32.mrf.mxu1  ;;  %v9990_v20 = vpop.f32.mrf.mxu0  ;;  %v7115_v51 = vsub.f32 1.0, %v13539_v26 }
 0x401   : > { %v6601_v2 = vadd.f32 %v6522_v31, %v6372_v28  ;;  %v6831_v13 = vadd.f32 %v9990_v20, %v6602_v5  ;;  %v13541_v31 = vld [vmem:[#allocation20_spill] sm:$0xff]  ;;  %v6374_v28 = vadd.f32 %v12930_v23, %v12914_v42  ;;  %v6376_v42 = vadd.f32 %v12938_v17, %v12922_v21 }
 0x402   : > { %v12974_v29 = vpop.f32.mrf.mxu1  ;;  %v6751_v35 = vpop.f32.mrf.mxu0  ;;  %v7117_v5 = vsub.f32 1.0, %v13541_v31 }
 0x403   : > { %v6830_v55 = vadd.f32 %v6751_v35, %v6601_v2  ;;  %v13542_v2 = vld [vmem:[#allocation14_spill] sm:$0xff]  ;;  %v6603_v26 = vadd.f32 %v6532_v63, %v6374_v28  ;;  %v7139_v28 = vpop.permute.xlu0 %7138  ;;  %v6605_v21 = vadd.f32 %v12970_v43, %v6376_v42 }
 0x404   : > { %v12976_v49 = vpop.f32.mrf.mxu1  ;;  %v9993_v30 = vpop.f32.mrf.mxu0  ;;  %v7119_v35 = vsub.f32 1.0, %v13542_v2  ;;  %v13042_v43 = vmul.f32 %v7139_v28, %v7118_v57  ;;  %v13548_v28 = vld [vmem:[#allocation39_spill] sm:$0xff] }
 0x406   : > { %v12978_v41 = vpop.f32.mrf.mxu1  ;;  %v6761_v22 = vpop.f32.mrf.mxu0 }
 0x408   : > { %v12980_v52 = vpop.f32.mrf.mxu1  ;;  %v9996_v12 = vpop.f32.mrf.mxu0 }
 0x40a   : > { %v12982_v38 = vpop.f32.mrf.mxu1  ;;  %v6771_v24 = vpop.f32.mrf.mxu0 }
 0x40b   : > { %13532 = vst [vmem:[#allocation26_spill] sm:$0xff] %v12982_v38  ;;  %v13537_v38 = vld [vmem:[#allocation17_spill] sm:$0xff] }
 0x40c   : > { %v12984_v54 = vpop.f32.mrf.mxu1  ;;  %v12986_v0 = vpop.f32.mrf.mxu0  ;;  %v7114_v62 = vsub.f32 1.0, %v13537_v38  ;;  %v13544_v38 = vld [vmem:[#allocation9_spill] sm:$0xff] }
 0x40d   : > { %13533 = vst [vmem:[#allocation29_spill] sm:$0xff] %v12984_v54  ;;  %v6375_v54 = vadd.f32 %v9929_v56, %v12912_v15 }
 0x40e   : > { %v12988_v16 = vpop.f32.mrf.mxu1  ;;  %v12990_v7 = vpop.f32.mrf.mxu0 }
 0x40f   : > { %13534 = vst [vmem:[#allocation28_spill] sm:$0xff] %v12988_v16  ;;  %v6604_v53 = vadd.f32 %v9961_v40, %v6375_v54  ;;  %v7137_v40 = vpop.permute.xlu1 %7136 }
 0x410   : > { %v12993_v37 = vpop.f32.mrf.mxu1  ;;  %v12996_v18 = vpop.f32.mrf.mxu0 }
 0x411   : > { %13535 = vst [vmem:[#allocation34_spill] sm:$0xff] %v12993_v37  ;;  %v6833_v54 = vadd.f32 %v9993_v30, %v6604_v53  ;;  %v13546_v53 = vld [vmem:[#allocation11_spill] sm:$0xff] }
 0x412   : > { %v12998_v59 = vpop.f32.mrf.mxu1  ;;  %v13004_v37 = vpop.f32.mrf.mxu0 }
 0x413   : > { %13536 = vst [vmem:[#allocation32_spill] sm:$0xff] %v12998_v59  ;;  %v7121_v59 = vsub.f32 1.0, %v13544_v38 }
 0x414   : > { %v10022_v16 = vpop.f32.mrf.mxu1  ;;  %v13024_v31 = vpop.f32.mrf.mxu0 }
 0x415   : > { %v7060_v4 = vadd.f32 %v10022_v16, %v6831_v13  ;;  %v6377_v13 = vadd.f32 %v12934_v11, %v12918_v1  ;;  %v13027_v1 = vmul.f32 %v7131_v19, %v7114_v62  ;;  %v13545_v11 = vld [vmem:[#allocation8_spill] sm:$0xff]  ;;  %v6378_v62 = vadd.f32 %v12946_v8, %v12926_v14 }
 0x416   : > { %v6980_v20 = vpop.f32.mrf.mxu1  ;;  %v7120_v30 = vsub.f32 1.0, %v13545_v11 }
 0x417   : > { %v7059_v16 = vadd.f32 %v6980_v20, %v6830_v55  ;;  %v7083_v56 = vadd.f32 %v13009_v44, %v7060_v4  ;;  %v6606_v23 = vadd.f32 %v9964_v39, %v6377_v13  ;;  %v7123_v55 = vsub.f32 1.0, %v13546_v53 }
 0x418   : > { %v10025_v15 = vpop.f32.mrf.mxu1  ;;  %v6832_v20 = vadd.f32 %v6761_v22, %v6603_v26  ;;  %v6379_v4 = vadd.f32 %v12944_v46, %v12924_v58  ;;  %v13035_v13 = vmul.f32 %v7133_v47, %v7115_v51  ;;  %v6834_v26 = vadd.f32 %v6771_v24, %v6605_v21  ;;  %v13550_v21 = vld [vmem:[#allocation51_spill] sm:$0xff] }
 0x419   : > { %v7082_v2 = vadd.f32 %v13009_v44, %v7059_v16  ;;  %v7062_v32 = vadd.f32 %v10025_v15, %v6833_v54  ;;  %v6835_v17 = vadd.f32 %v9996_v12, %v6606_v23  ;;  %10210 = vtanh.f32 %v7083_v56  ;;  %v7141_v54 = vpop.permute.xlu1 %7140  ;;  %v6801_v16 = vpop.f32.mrf.mxu0 }
 0x41a   : > { %v6990_v63 = vpop.f32.mrf.mxu1  ;;  %v6608_v22 = vadd.f32 %v12972_v9, %v6379_v4  ;;  %v13040_v46 = vmul.f32 %v7137_v40, %v7117_v5  ;;  %v6607_v14 = vadd.f32 %v12974_v29, %v6378_v62  ;;  %v13049_v24 = vmul.f32 %v7141_v54, %v7119_v35  ;;  %v13549_v4 = vld [vmem:[#allocation48_spill] sm:$0xff]  ;;  %v13551_v62 = vld [vmem:[#allocation26_spill] sm:$0xff] }
 0x41b   : > { %v7085_v39 = vadd.f32 %v13009_v44, %v7062_v32  ;;  %v7061_v19 = vadd.f32 %v6990_v63, %v6832_v20  ;;  %10212 = vtanh.f32 %v7082_v2  ;;  %v6381_v32 = vadd.f32 %v12952_v60, %v12928_v45  ;;  %v10008_v60 = vpop.f32.mrf.mxu0  ;;  %v13552_v54 = vld [vmem:[#allocation50_spill] sm:$0xff] }
 0x41c   : > { %v10028_v15 = vpop.f32.mrf.mxu1  ;;  %v6837_v8 = vadd.f32 %v12986_v0, %v6608_v22  ;;  %v6380_v51 = vadd.f32 %v12956_v10, %v12932_v50  ;;  %v6836_v45 = vadd.f32 %v12990_v7, %v6607_v14  ;;  %v5926_v40 = vadd.f32 %v12910_v25, %v12900_v27 }
 0x41d   : > { %v7064_v58 = vadd.f32 %v10028_v15, %v6835_v17  ;;  %10214 = vtanh.f32 %v7085_v39  ;;  %v6610_v57 = vadd.f32 %v12976_v49, %v6381_v32  ;;  %v7084_v56 = vadd.f32 %v13009_v44, %v7061_v19  ;;  %v7145_v39 = vpop.permute.xlu1 %7144  ;;  %v13555_v32 = vld [vmem:[#allocation31_spill] sm:$0xff] }
 0x41e   : > { %v7000_v12 = vpop.f32.mrf.mxu1  ;;  %v6383_v2 = vadd.f32 %v12958_v61, %v12936_v33  ;;  %v6609_v50 = vadd.f32 %v12978_v41, %v6380_v51  ;;  %v6156_v42 = vadd.f32 %v12942_v6, %v5926_v40  ;;  %v6382_v23 = vadd.f32 %v12960_v3, %v12940_v36  ;;  %v6811_v33 = vpop.f32.mrf.mxu0  ;;  %v13547_v41 = vld [vmem:[#allocation42_spill] sm:$0xff] }
 0x41f   : > { %v7087_v47 = vadd.f32 %v13009_v44, %v7064_v58  ;;  %v7063_v9 = vadd.f32 %v7000_v12, %v6834_v26  ;;  %v6839_v49 = vadd.f32 %v12996_v18, %v6610_v57  ;;  %v5928_v63 = vadd.f32 %v13547_v41, %v12902_v48  ;;  %v13553_v26 = vld [vmem:[#allocation53_spill] sm:$0xff]  ;;  %v13554_v48 = vld [vmem:[#allocation43_spill] sm:$0xff]  ;;  %v13557_v40 = vld [vmem:[#allocation30_spill] sm:$0xff] }
 0x420   : > { %v10031_v5 = vpop.f32.mrf.mxu1  ;;  %v6612_v20 = vadd.f32 %v12980_v52, %v6383_v2  ;;  %v6838_v25 = vadd.f32 %v13004_v37, %v6609_v50  ;;  %v5927_v6 = vadd.f32 %v13549_v4, %v13548_v28  ;;  %v6385_v17 = vadd.f32 %v13550_v21, %v6156_v42  ;;  %v13558_v50 = vld [vmem:[#allocation27_spill] sm:$0xff]  ;;  %v13559_v42 = vld [vmem:[#allocation28_spill] sm:$0xff] }
 0x421   : > { %10216 = vtanh.f32 %v7087_v47  ;;  %v7086_v29 = vadd.f32 %v13009_v44, %v7063_v9  ;;  %v7066_v0 = vadd.f32 %v10031_v5, %v6837_v8  ;;  %v10358_v3 = vmov 1983009808   ;;  %v13556_v9 = vld [vmem:[#allocation29_spill] sm:$0xff]  ;;  %v13096_v4 = vpop.permute.xlu1 %7148 }
 0x422   : > { %v7010_v10 = vpop.f32.mrf.mxu1  ;;  %v7229_v52 = vunpack.c.l.s4 %v10358_v3  ;;  %v6611_v19 = vadd.f32 %v13551_v62, %v6382_v23  ;;  %v6841_v37 = vadd.f32 %v13024_v31, %v6612_v20  ;;  %v6158_v22 = vadd.f32 %v13552_v54, %v5928_v63  ;;  %v13561_v63 = vld [vmem:[#allocation19_spill] sm:$0xff] }
 0x423   : > { %10218 = vtanh.f32 %v7086_v29  ;;  %v7089_v35 = vadd.f32 %v13009_v44, %v7066_v0  ;;  %v7065_v7 = vadd.f32 %v7010_v10, %v6836_v45  ;;  %v6157_v58 = vadd.f32 %v13553_v26, %v5927_v6  ;;  %v13083_v29 = vpop.permute.xlu0 %7142  ;;  %v13562_v6 = vld [vmem:[#allocation32_spill] sm:$0xff] }
 0x424   : > { %10220 = vtanh.f32 %v7084_v56  ;;  %v10034_v27 = vpop.f32.mrf.mxu1  ;;  %v6384_v12 = vadd.f32 %v13555_v32, %v13554_v48  ;;  %v7231_v8 = vlaneseq  ;;  %v6614_v51 = vadd.f32 %v13556_v9, %v6385_v17  ;;  %v10011_v56 = vpop.f32.mrf.mxu0 }
 0x425   : > { %10222 = vtanh.f32 %v7089_v35  ;;  %v7088_v61 = vadd.f32 %v13009_v44, %v7065_v7  ;;  %v7068_v18 = vadd.f32 %v10034_v27, %v6839_v49  ;;  %v6840_v57 = vadd.f32 %v6801_v16, %v6611_v19  ;;  %v13563_v19 = vld [vmem:[#allocation20_spill] sm:$0xff] }
 0x426   : > { %v7020_v36 = vpop.f32.mrf.mxu1  ;;  %v10211_v47 = vpop.eup %10210  ;;  %v7185_v0 = vmul.f32 %v7145_v39, %v7121_v59  ;;  %v6387_v2 = vadd.f32 %v13557_v40, %v6158_v22  ;;  %v6386_v10 = vadd.f32 %v13558_v50, %v6157_v58  ;;  %v7230_v35 = vunpack.c.0.s8 %v7229_v52  ;;  %v13565_v58 = vld [vmem:[#allocation14_spill] sm:$0xff] }
 0x427   : > { %10224 = vtanh.f32 %v7088_v61  ;;  %v7067_v15 = vadd.f32 %v7020_v36, %v6838_v25  ;;  %v7091_v5 = vadd.f32 %v13009_v44, %v7068_v18  ;;  %v6613_v23 = vadd.f32 %v13559_v42, %v6384_v12  ;;  %v13560_v25 = vld [vmem:[#allocation34_spill] sm:$0xff]  ;;  %v6821_v36 = vpop.f32.mrf.mxu0 }
 0x428   : > { %v10037_v14 = vpop.f32.mrf.mxu1  ;;  %v10213_v31 = vpop.eup %10212  ;;  %v6843_v16 = vadd.f32 %v10008_v60, %v6614_v51  ;;  %v6616_v61 = vadd.f32 %v13560_v25, %v6387_v2  ;;  %v7195_v59 = vmul.f32 %v10211_v47, %v13561_v63  ;;  %v13094_v28 = vshrl.u32 %v7231_v8, 7  ;;  %v13566_v42 = vld [vmem:[#allocation18_spill] sm:$0xff] }
 0x429   : > { %v7070_v45 = vadd.f32 %v10037_v14, %v6841_v37  ;;  %v7090_v20 = vadd.f32 %v13009_v44, %v7067_v15  ;;  %v6615_v21 = vadd.f32 %v13562_v6, %v6386_v10  ;;  %v6842_v17 = vadd.f32 %v6811_v33, %v6613_v23  ;;  %v13564_v15 = vld [vmem:[#allocation17_spill] sm:$0xff]  ;;  %v13104_v33 = vpop.permute.xlu0 %7146 }
 0x42a   : > { %v7030_v49 = vpop.f32.mrf.mxu1  ;;  %v10215_v7 = vpop.eup %10214  ;;  %10226 = vtanh.f32 %v7091_v5  ;;  %v6845_v52 = vadd.f32 %v10011_v56, %v6616_v61  ;;  %v7194_v54 = vmul.f32 %v10213_v31, %v13564_v15  ;;  %v7211_v8 = vadd.f32 %v7195_v59, %v13035_v13  ;;  %v13569_v59 = vld [vmem:[#allocation10_spill] sm:$0xff] }
 0x42b   : > { %v7069_v27 = vadd.f32 %v7030_v49, %v6840_v57  ;;  %v7093_v18 = vadd.f32 %v13009_v44, %v7070_v45  ;;  %v7197_v37 = vmul.f32 %v10215_v7, %v13563_v19  ;;  %10228 = vtanh.f32 %v7090_v20  ;;  %v13115_v13 = vpop.permute.xlu1 %7152 }
 0x42c   : > { %v10040_v41 = vpop.f32.mrf.mxu1  ;;  %v6844_v12 = vadd.f32 %v6821_v36, %v6615_v21  ;;  %v13108_v47 = vsub.s32 %v7230_v35, %v13094_v28  ;;  %v7210_v2 = vadd.f32 %v7194_v54, %v13027_v1  ;;  %v13567_v20 = vsub.f32 1.0, %v13566_v42 }
 0x42d   : > { %v7072_v60 = vadd.f32 %v10040_v41, %v6843_v16  ;;  %v7092_v39 = vadd.f32 %v13009_v44, %v7069_v27  ;;  %10230 = vtanh.f32 %v7093_v18  ;;  %v7213_v31 = vadd.f32 %v7197_v37, %v13040_v46  ;;  %v13568_v27 = vld [vmem:[#allocation33_spill] sm:$0xff]  ;;  %v13129_v61 = vpop.permute.xlu0 %7150 }
 0x42e   : > { %v10217_v3 = vpop.eup %10216  ;;  %v7040_v62 = vpop.f32.mrf.mxu1  ;;  %v7180_v25 = vmul.f32 %v13568_v27, %v13567_v20 }
 0x42f   : > { %v7095_v22 = vadd.f32 %v13009_v44, %v7072_v60  ;;  %v7071_v26 = vadd.f32 %v7040_v62, %v6842_v17  ;;  %v7199_v48 = vmul.f32 %v10217_v3, %v13565_v58  ;;  %v7157_v36 = vpop.permute.xlu1 %7156  ;;  %v10359_v62 = vmov 1934713408  }
 0x430   : > { %v10219_v32 = vpop.eup %10218  ;;  %v10043_v14 = vpop.f32.mrf.mxu1  ;;  %v7293_v19 = vunpack.c.l.s4 %v10359_v62 }
 0x431   : > { %v10221_v9 = vpop.eup %10220  ;;  %10232 = vtanh.f32 %v7095_v22  ;;  %v7094_v51 = vadd.f32 %v13009_v44, %v7071_v26  ;;  %v7074_v57 = vadd.f32 %v10043_v14, %v6845_v52  ;;  %v7215_v56 = vadd.f32 %v7199_v48, %v13049_v24  ;;  %v13571_v52 = vld [vmem:[#allocation16_spill] sm:$0xff] }
 0x432   : > { %v10223_v5 = vpop.eup %10222  ;;  %10234 = vtanh.f32 %v7092_v39  ;;  %v7050_v45 = vpop.f32.mrf.mxu1  ;;  %v7198_v40 = vmul.f32 %v10219_v32, %v13543_v34  ;;  %v7196_v23 = vmul.f32 %v10221_v9, %v13566_v42  ;;  %v7124_v39 = vsub.f32 1.0, %v13571_v52 }
 0x433   : > { %10236 = vtanh.f32 %v7094_v51  ;;  %v7097_v50 = vadd.f32 %v13009_v44, %v7074_v57  ;;  %v7073_v10 = vadd.f32 %v7050_v45, %v6844_v12  ;;  %v7201_v49 = vmul.f32 %v10223_v5, %v13544_v38  ;;  %v7155_v32 = vpop.permute.xlu0 %7154  ;;  %v13572_v57 = vld [vmem:[#allocation12_spill] sm:$0xff]  ;;  %v13573_v5 = vld [vmem:[#allocation13_spill] sm:$0xff] }
 0x434   : > { %v10225_v35 = vpop.eup %10224  ;;  %v7363_v7 = vcombine.high %v7211_v8, %v7215_v56  ;;  %v7362_v24 = vcombine.low %v7211_v8, %v7215_v56  ;;  %v7214_v16 = vadd.f32 %v7198_v40, %v13042_v43  ;;  %v7184_v38 = vmul.f32 %v13083_v29, %v7120_v30 }
 0x435   : > { %10238 = vtanh.f32 %v7097_v50  ;;  %v7096_v34 = vadd.f32 %v13009_v44, %v7073_v10  ;;  %v7217_v46 = vadd.f32 %v7201_v49, %v7185_v0  ;;  %v7200_v1 = vmul.f32 %v10225_v35, %v13545_v11  ;;  %v13570_v0 = vld [vmem:[#allocation15_spill] sm:$0xff] }
 0x436   : > { %v7227_v18 = vcombine.high %v7210_v2, %v7214_v16  ;;  %v7226_v41 = vcombine.low %v7210_v2, %v7214_v16  ;;  %v7122_v44 = vsub.f32 1.0, %v13569_v59  ;;  %v7125_v6 = vsub.f32 1.0, %v13570_v0 }
 0x437   : > { %10240 = vtanh.f32 %v7096_v34  ;;  %v7379_v43 = vcombine.high %v7213_v31, %v7217_v46  ;;  %v7378_v63 = vcombine.low %v7213_v31, %v7217_v46  ;;  %v7212_v21 = vadd.f32 %v7196_v23, %v7180_v25  ;;  %v10227_v3 = vpop.eup %10226  ;;  %v13574_v31 = vld [vmem:[#allocation21_spill] sm:$0xff]  ;;  %v7161_v23 = vpop.permute.xlu1 %7160 }
 0x438   : > { %v7216_v17 = vadd.f32 %v7200_v1, %v7184_v38  ;;  %v13134_v60 = vrot.slane %v7363_v7, %v13108_v47  ;;  %v13140_v30 = vrot.slane %v7362_v24, %v13108_v47  ;;  %v13153_v58 = vrot.slane %v7227_v18, %v13108_v47  ;;  %v10229_v48 = vpop.eup %10228  ;;  %v13575_v1 = vld [vmem:[#allocation22_spill] sm:$0xff] }
 0x439   : > { %v13137_v11 = vrot.slane %v7379_v43, %v13108_v47  ;;  %v13143_v29 = vrot.slane %v7378_v63, %v13108_v47  ;;  %v13161_v8 = vrot.slane %v7226_v41, %v13108_v47  ;;  %v7126_v56 = vsub.f32 1.0, %v13572_v57 }
 0x43a   : > { %v7243_v37 = vcombine.high %v7212_v21, %v7216_v17  ;;  %v7242_v15 = vcombine.low %v7212_v21, %v7216_v17  ;;  %v10231_v51 = vpop.eup %10230  ;;  %v7127_v45 = vsub.f32 1.0, %v13573_v5  ;;  %v7129_v40 = vsub.f32 1.0, %v13574_v31  ;;  %v7159_v21 = vpop.permute.xlu0 %7158 }
 0x43b   : > { %v7442_v54 = vcombine.low %v13134_v60, %v13137_v11  ;;  %v7426_v22 = vcombine.low %v13140_v30, %v13143_v29  ;;  %v7443_v26 = vcombine.high %v13134_v60, %v13137_v11  ;;  %v7427_v12 = vcombine.high %v13140_v30, %v13143_v29 }
 0x43c   : > { %v13158_v14 = vrot.slane %v7243_v37, %v13108_v47  ;;  %v13164_v9 = vrot.slane %v7242_v15, %v13108_v47  ;;  %v7203_v2 = vmul.f32 %v10227_v3, %v13546_v53  ;;  %v7187_v10 = vmul.f32 %v13096_v4, %v7123_v55 }
 0x43d   : > { %v7294_v49 = vunpack.c.0.s8 %v7293_v19  ;;  %v7191_v42 = vmul.f32 %v7157_v36, %v7127_v45  ;;  %v7186_v55 = vmul.f32 %v13104_v33, %v7122_v44  ;;  %v7190_v4 = vmul.f32 %v7155_v32, %v7126_v56 }
 0x43e   : > { %v10233_v50 = vpop.eup %10232  ;;  %v7306_v35 = vcombine.low %v13153_v58, %v13158_v14  ;;  %v7290_v7 = vcombine.low %v13161_v8, %v13164_v9  ;;  %v7307_v34 = vcombine.high %v13153_v58, %v13158_v14  ;;  %v7291_v53 = vcombine.high %v13161_v8, %v13164_v9 }
 0x43f   : > { %v10235_v24 = vpop.eup %10234  ;;  %v7207_v16 = vmul.f32 %v10233_v50, %v13573_v5  ;;  %v7128_v20 = vsub.f32 1.0, %v13575_v1  ;;  %v7202_v27 = vmul.f32 %v10229_v48, %v13569_v59  ;;  %v7205_v25 = vmul.f32 %v10231_v51, %v13570_v0 }
 0x440   : > { %v10237_v46 = vpop.eup %10236  ;;  %v7219_v38 = vadd.f32 %v7203_v2, %v7187_v10  ;;  %v7189_v63 = vmul.f32 %v13115_v13, %v7125_v6  ;;  %v7193_v17 = vmul.f32 %v7161_v23, %v7129_v40  ;;  %v7297_v36 = vsub.s32 %v7294_v49, %v13094_v28 }
 0x441   : > { %v7223_v18 = vadd.f32 %v7207_v16, %v7191_v42  ;;  %v7206_v41 = vmul.f32 %v10237_v46, %v13572_v57  ;;  %v7204_v33 = vmul.f32 %v10235_v24, %v13571_v52  ;;  %v7188_v0 = vmul.f32 %v13129_v61, %v7124_v39 }
 0x442   : > { %v10239_v43 = vpop.eup %10238  ;;  %v7218_v29 = vadd.f32 %v7202_v27, %v7186_v55  ;;  %v7192_v3 = vmul.f32 %v7159_v21, %v7128_v20  ;;  %v7221_v62 = vadd.f32 %v7205_v25, %v7189_v63  ;;  %v13193_v6 = vrot.slane %v7442_v54, %v7297_v36 }
 0x443   : > { %v7209_v44 = vmul.f32 %v10239_v43, %v13574_v31  ;;  %v7395_v60 = vcombine.high %v7219_v38, %v7223_v18  ;;  %v7394_v11 = vcombine.low %v7219_v38, %v7223_v18  ;;  %v7222_v59 = vadd.f32 %v7206_v41, %v7190_v4 }
 0x444   : > { %v10241_v30 = vpop.eup %10240  ;;  %v13195_v37 = vrot.slane %v7426_v22, %v7297_v36  ;;  %v7220_v48 = vadd.f32 %v7204_v33, %v7188_v0  ;;  %v7457_v39 = vrot.slane %v7443_v26, %v7297_v36  ;;  %v7441_v8 = vrot.slane %v7427_v12, %v7297_v36 }
 0x445   : > { %v7225_v19 = vadd.f32 %v7209_v44, %v7193_v17  ;;  %v7208_v13 = vmul.f32 %v10241_v30, %v13575_v1  ;;  %v7259_v28 = vcombine.high %v7218_v29, %v7222_v59  ;;  %v7258_v52 = vcombine.low %v7218_v29, %v7222_v59 }
 0x446   : > { %v7409_v14 = vrot.slane %v7395_v60, %v13108_v47  ;;  %v7402_v61 = vrot.slane %v7394_v11, %v13108_v47  ;;  %v13201_v22 = vrot.slane %v7306_v35, %v7297_v36  ;;  %v13203_v56 = vrot.slane %v7290_v7, %v7297_v36 }
 0x447   : > { %v7411_v15 = vcombine.high %v7221_v62, %v7225_v19  ;;  %v7410_v58 = vcombine.low %v7221_v62, %v7225_v19  ;;  %v7224_v32 = vadd.f32 %v7208_v13, %v7192_v3  ;;  %v7321_v5 = vrot.slane %v7307_v34, %v7297_v36 }
 0x448   : > { %v7305_v45 = vrot.slane %v7291_v53, %v7297_v36  ;;  %v7273_v10 = vrot.slane %v7259_v28, %v13108_v47  ;;  %v7266_v12 = vrot.slane %v7258_v52, %v13108_v47 }
 0x449   : > { %v7425_v9 = vrot.slane %v7411_v15, %v13108_v47  ;;  %v7418_v51 = vrot.slane %v7410_v58, %v13108_v47  ;;  %v7275_v54 = vcombine.high %v7220_v48, %v7224_v32  ;;  %v7274_v57 = vcombine.low %v7220_v48, %v7224_v32 }
 0x44b   : > { %v7474_v31 = vcombine.low %v7409_v14, %v7425_v9  ;;  %v7458_v40 = vcombine.low %v7402_v61, %v7418_v51  ;;  %v7475_v2 = vcombine.high %v7409_v14, %v7425_v9  ;;  %v7459_v50 = vcombine.high %v7402_v61, %v7418_v51 }
 0x44c   : > { %v7289_v26 = vrot.slane %v7275_v54, %v13108_v47  ;;  %v7282_v49 = vrot.slane %v7274_v57, %v13108_v47 }
 0x44d   : > { %v13209_v24 = vrot.slane %v7474_v31, %v7297_v36  ;;  %v13211_v35 = vrot.slane %v7458_v40, %v7297_v36  ;;  %v7489_v7 = vrot.slane %v7475_v2, %v7297_v36  ;;  %v7473_v42 = vrot.slane %v7459_v50, %v7297_v36 }
 0x44e   : > { %v7338_v23 = vcombine.low %v7273_v10, %v7289_v26  ;;  %v7322_v16 = vcombine.low %v7266_v12, %v7282_v49  ;;  %v7339_v34 = vcombine.high %v7273_v10, %v7289_v26  ;;  %v7323_v53 = vcombine.high %v7266_v12, %v7282_v49 }
 0x44f   : > { %v7495_v46 = vcombine.high %v13193_v6, %v13209_v24  ;;  %v7491_v55 = vcombine.high %v13195_v37, %v13211_v35  ;;  %v7496_v4 = vcombine.low %v7457_v39, %v7489_v7  ;;  %v7492_v1 = vcombine.low %v7441_v8, %v7473_v42 }
 0x450   : > { %v7346_v20 = vrot.slane %v7338_v23, %v7297_v36  ;;  %v7330_v47 = vrot.slane %v7322_v16, %v7297_v36  ;;  %v7353_v27 = vrot.slane %v7339_v34, %v7297_v36  ;;  %v7337_v25 = vrot.slane %v7323_v53, %v7297_v36 }
 0x451   : > { %7535 = vrot.lane.b32.xlu1 %v7495_v46, %s10360_s17  ;;  %7523 = vrot.lane.b32.xlu0 %v7491_v55, %s10360_s17  ;;  %v7497_v38 = vcombine.high %v7457_v39, %v7489_v7  ;;  %v7493_v18 = vcombine.high %v7441_v8, %v7473_v42  ;;  %v7494_v41 = vcombine.low %v13193_v6, %v13209_v24 }
 0x452   : > { %v7359_v43 = vcombine.high %v13201_v22, %v7346_v20  ;;  %v7355_v63 = vcombine.high %v13203_v56, %v7330_v47  ;;  %v7360_v21 = vcombine.low %v7321_v5, %v7353_v27  ;;  %v7356_v17 = vcombine.low %v7305_v45, %v7337_v25 }
 0x453   : > { %v7361_v33 = vcombine.high %v7321_v5, %v7353_v27  ;;  %v7357_v44 = vcombine.high %v7305_v45, %v7337_v25  ;;  %v7490_v60 = vcombine.low %v13195_v37, %v13211_v35  ;;  %v7358_v36 = vcombine.low %v13201_v22, %v7346_v20 }
 0x454   : > { %v7354_v11 = vcombine.low %v13203_v56, %v7330_v47 }
 0x455   : > { %7539 = vrot.lane.b32.xlu1 %v7496_v4, %s10361_s29  ;;  %7527 = vrot.lane.b32.xlu0 %v7492_v1, %s10361_s29 }
 0x459   : > { %7511 = vrot.lane.b32.xlu1 %v7359_v43, %s10360_s17  ;;  %7499 = vrot.lane.b32.xlu0 %v7355_v63, %s10360_s17 }
 0x45d   : > { %7515 = vrot.lane.b32.xlu1 %v7360_v21, %s10361_s29  ;;  %7503 = vrot.lane.b32.xlu0 %v7356_v17, %s10361_s29  ;;  %s10362_s29 = smov [#allocation3]  }
 0x45e   : > { %s10266_s9 = sshll.u32 %s10362_s29, 4  ;;  %s10267_s9 = int_to_ptr.vmem [resolvable:$false] %s10266_s9 }
 0x45f   : > { %s10268_s12 = scalar_lea.vmem %s10267_s9, 1024 }
 0x461   : > { %7519 = vrot.lane.b32.xlu1 %v7361_v33, %s10357_s20  ;;  %7507 = vrot.lane.b32.xlu0 %v7357_v44, %s10357_s20 }
 0x465   : > { %7543 = vrot.lane.b32.xlu1 %v7497_v38, %s10357_s20  ;;  %7531 = vrot.lane.b32.xlu0 %v7493_v18, %s10357_s20  ;;  %s7580_s20 = sshll.u32 %s258_s25, 4  ;;  %s13249_s20 = int_to_ptr.vmem [resolvable:$true] %s7580_s20 }
 0x466   : > { %s10262_s17 = scalar_lea.vmem %s13249_s20, 512  ;;  %p10269_p2 = scmp.lt.s32.totalorder %s13249_s20, %s10267_s9 }
 0x467   : > { %p10263_p13 = scmp.ne.s32.totalorder %s13249_s20, %s10262_s17  ;;  %p10270_p4 = scmp.lt.s32.totalorder %s10268_s12, %s10262_s17 }
 0x469   : > { %p10264_p0 = pnand %p10263_p13, %p10449_p3  ;;  %p10271_p5 = por %p10270_p4, %p10269_p2 }
 0x46b   : > { %p10265_p1 = pneg %p10264_p0 }
 0x46d   : > { %p10272_p6 = pnand %p10271_p5, %p10265_p1 }
 0x4c3   : > { %v7536_v59 = vpop.permute.xlu1 %7535  ;;  %v7524_v30 = vpop.permute.xlu0 %7523 }
 0x4c4   : > { %v7556_v14 = vsel %vm2959_vm2, %v7494_v41, %v7536_v59  ;;  %v7553_v61 = vsel %vm2959_vm2, %v7490_v60, %v7524_v30 }
 0x4c7   : > { %v7540_v0 = vpop.permute.xlu1 %7539  ;;  %v7528_v29 = vpop.permute.xlu0 %7527 }
 0x4c8   : > { %v7557_v39 = vsel %vm323_vm0, %v7556_v14, %v7540_v0  ;;  %v7554_v8 = vsel %vm323_vm0, %v7553_v61, %v7528_v29 }
 0x4cb   : > { %v7512_v3 = vpop.permute.xlu1 %7511  ;;  %v7500_v62 = vpop.permute.xlu0 %7499 }
 0x4cc   : > { %v7550_v6 = vsel %vm2959_vm2, %v7358_v36, %v7512_v3  ;;  %v7546_v37 = vsel %vm2959_vm2, %v7354_v11, %v7500_v62 }
 0x4cf   : > { %v7516_v19 = vpop.permute.xlu1 %7515  ;;  %v7504_v13 = vpop.permute.xlu0 %7503 }
 0x4d0   : > { %v7551_v28 = vsel %vm323_vm0, %v7550_v6, %v7516_v19  ;;  %v7547_v52 = vsel %vm323_vm0, %v7546_v37, %v7504_v13 }
 0x4d3   : > { %v7520_v15 = vpop.permute.xlu1 %7519  ;;  %v7508_v58 = vpop.permute.xlu0 %7507 }
 0x4d4   : > { %v7552_v48 = vsel %vm7548_vm3, %v7551_v28, %v7520_v15  ;;  %v7549_v32 = vsel %vm7548_vm3, %v7547_v52, %v7508_v58 }
 0x4d5   : > { %7560 = vst [vmem:[%s258_s25 + $0x8] sm:$0xff] %v7552_v48  ;;  %7559 = vst [vmem:[%s258_s25] sm:$0xff] %v7549_v32 }
 0x4d7   : > { %v7544_v9 = vpop.permute.xlu1 %7543  ;;  %v7532_v51 = vpop.permute.xlu0 %7531 }
 0x4d8   : > { %v7558_v54 = vsel %vm7548_vm3, %v7557_v39, %v7544_v9  ;;  %v7555_v57 = vsel %vm7548_vm3, %v7554_v8, %v7532_v51 }
 0x4d9   : > { %7562 = vst [vmem:[%s258_s25 + $0x18] sm:$0xff] %v7558_v54  ;;  %7561 = vst [vmem:[%s258_s25 + $0x10] sm:$0xff] %v7555_v57 }
 0x4da   : > { %10275 = shalt.err (!%p10272_p6)
}
 0x4db   : > { %s10276_s13 = scalar_lea.hbm %s13247_s18, 512  ;;  %s10280_s24 = scalar_lea.hbm %s13309_s6, 2048 }
 0x4dc   : > { %p10277_p7 = scmp.ne.s32.totalorder %s13247_s18, %s10276_s13  ;;  %p10281_p11 = scmp.lt.s32.totalorder %s13247_s18, %s13309_s6 }
 0x4dd   : > { %p10282_p12 = scmp.lt.s32.totalorder %s10280_s24, %s10276_s13 }
 0x4de   : > { %p10278_p9 = pnand %p10277_p7, %p10449_p3 }
 0x4df   : > { %p10283_p13 = por %p10282_p12, %p10281_p11 }
 0x4e0   : > { %p10279_p10 = pneg %p10278_p9 }
 0x4e2   : > { %p10284_p0 = pnand %p10283_p13, %p10279_p10 }
 0x4e4   : > { %10287 = shalt.err (!%p10284_p0)
}
 0x4e5   : > { %10053 = dma.vmem_to_hbm [thread:$0]  (%p10449_p3), %s13249_s20, 512, %s13247_s18, %s7564_s19  }
 0x4e6 PF: > { %p10059_p1 = scmp.ge.s32.totalorder %s10354_s28, 2  ;;  %s7592_s8 = sand.u32 1, %s10326_s21  }
 0x4e7   : > { %s7593_s17 = scalar_lea.sflag [#allocation4], %s7592_s8 }
 0x4e8   : > { %p10056_p2 = pnand %p10059_p1, %p10458_p8 }
 0x4ea   : > { %p10057_p4 = pneg %p10056_p2 }
 0x4ec   : > { %10321 = dma.done.wait (%p10057_p4), %s7593_s17, 512  }
 0x4ed   : > { %10323 = vsyncadd (%p10057_p4), %s7593_s17, 4294966784  ;;  %s19_s28 = sadd.s32 1, %s10354_s28   ;;  %s13576_s10 = sld [smem:[#allocation6_spill]] }
 0x4ee   : > { %p16_p5 = scmp.ge.s32.totalorder %s19_s28, 6   ;;  %s13577_s21 = smov %s10330_s22 }
 0x4ef   : > { %s13578_s22 = smov %s10334_s23  ;;  %s13579_s23 = smov %s10467_s15 }
 0x4f0   : > { %s13580_s24 = smov %s10346_s26  ;;  %s13581_s25 = smov %s10350_s27 }
 0x4f1   : > { %s13582_s26 = smov %s13585_s7  ;;  %18 = sbr.rel (!%p16_p5) target bundleno = 5 (0x5), region = 85 }
 0x4f3   : > { %s13583_s27 = smov %s13576_s10 }
 0x4f6   :  { %7598 = vsyncpa [#allocation4], 1 }
 0x4f7   :  { %7600 = vsyncpa [#allocation4 + $0x1], 1 }

// kernel: tpu_custom_call.1
= control target key start
LH: loop header
LB: loop body
LE: loop exit
PB: predicated region body
PF: predicated region fallthrough
CT: control target
= control target key end

     0   :  { %11 = vsyncpa [#allocation4], 0  ;;  %s13303_s0 = inlined_call_operand.vmem [shape: f32[2,20,18,64], index: 0, kind: input, shape index: {}]   ;;  %s13304_s1 = inlined_call_operand.vmem [shape: f32[576,64], index: 1, kind: input, shape index: {}]   ;;  %s13305_s2 = inlined_call_operand.vmem [shape: f32[288,32], index: 2, kind: input, shape index: {}]   ;;  %s13306_s3 = inlined_call_operand.vmem [shape: f32[288,32], index: 3, kind: input, shape index: {}]   ;;  %s13307_s4 = inlined_call_operand.vmem [shape: f32[1,64], index: 4, kind: input, shape index: {}]   ;;  %s13308_s5 = inlined_call_operand.vmem [shape: f32[1,32], index: 5, kind: input, shape index: {}]   ;;  %s13309_s6 = inlined_call_operand.hbm [shape: f32[2,16,512], index: 6, kind: output, shape index: {}]  }
   0x1   :  { %13 = vsyncpa [#allocation4 + $0x1], 0  ;;  %s10398_s21 = smov 0   ;;  %s10400_s22 = smov 0  }
   0x2   :  { %s10402_s23 = smov 0   ;;  %s10404_s24 = smov 0  }
   0x3   :  { %s10406_s25 = smov 0   ;;  %s10408_s26 = smov 0  }
   0x4   :  { %s10410_s27 = smov 0   ;;  %s10412_s28 = smov 0  }
   0x5 LB: > { %s7667_s29 = sadd.s32 4294967295, %s10354_s28   ;;  %s7668_s30 = sadd.s32 4294967294, %s10354_s28   ;;  %s10354_s28 = sphi %s10412_s28, %s19_s28   ;;  %s10350_s27 = sphi %s10410_s27, %s13583_s27   ;;  %s10346_s26 = sphi %s10408_s26, %s13582_s26   ;;  %s10342_s25 = sphi %s10406_s25, %s13581_s25   ;;  %s10338_s24 = sphi %s10404_s24, %s13580_s24   ;;  %s10334_s23 = sphi %s10402_s23, %s13579_s23   ;;  %s10330_s22 = sphi %s10400_s22, %s13578_s22   ;;  %s10326_s21 = sphi %s10398_s21, %s13577_s21  }
   0x6   : > { %s28_s7 = sadd.s32 1, %s10346_s26  ;;  %s31_s8 = sadd.s32 1, %s10350_s27 }
   0x7   : > { %p29_p0 = scmp.ge.s32.totalorder %s28_s7, 2  ;;  %p181_p1 = scmp.ne.s32.totalorder %s10334_s23, %s10330_s22 }
   0x8   : > { %p182_p2 = scmp.eq.s32.totalorder %s7667_s29, 3  ;;  %p187_p5 = scmp.ne.s32.totalorder %s10330_s22, %s10326_s21 }
   0x9   : > { %s13585_s7 = smov (%p29_p0, %s28_s7), 0  ;;  %s13587_s8 = smov (!%p29_p0, %s31_s8), %s10350_s27 }
   0xa   : > { %s167_s9 = ssub.s32 %s10346_s26, %s13585_s7  ;;  %p10449_p3 = por %p182_p2, %p181_p1 }
   0xb   : > { %p33_p4 = scmp.ge.s32.totalorder %s13587_s8, 2  ;;  %p188_p6 = scmp.eq.s32.totalorder %s7668_s30, 3 }
   0xc   : > { %p7671_p7 = scmp.ge.s32.totalorder %s10354_s28, 1  ;;  %p229_p9 = scmp.lt.s32.totalorder %s10354_s28, 5 }
   0xd   : > { %s13589_s8 = smov (%p33_p4, %s13587_s8), 0  ;;  %p10458_p8 = por %p188_p6, %p187_p5 }
   0xe   : > { %13366 = sst [smem:[#allocation6_spill]] %s13589_s8  ;;  %s166_s12 = ssub.s32 %s10350_s27, %s13589_s8 }
   0xf   : > { %s171_s13 = sadd.s32 1, %s10334_s23  ;;  %s168_s14 = sor.u32 %s167_s9, %s166_s12 }
  0x10   : > { %p230_p10 = pnand %p7671_p7, %p229_p9  ;;  %p169_p11 = scmp.eq.s32.totalorder %s168_s14, 0 }
  0x12   : > { %s10467_s15 = scalar_select %p169_p11, %s10334_s23, %s171_s13  }
  0x13   : > { %233 = sbr.rel (%p230_p10) target bundleno = 1254 (0x4e6), region = 44 }
  0x18   : > { %v322_v0 = vld [vmem:[%s13304_s1 + $0x78] sm:$0xff]  ;;  %v321_v2 = vld [vmem:[%s13304_s1 + $0x70] sm:$0xff]  ;;  %p259_p12 = scmp.lt.s32.totalorder %s10342_s25, 1  ;;  %v320_v4 = vld [vmem:[%s13304_s1 + $0x68] sm:$0xff]  ;;  %s7675_s16 = smul.u32 192, %s10338_s24  ;;  %vm323_vm0 = vcmask 523264  }
  0x19   : > { %v294_v1 = vld [vmem:[%s13304_s1 + $0x38] sm:$0xff]  ;;  %9054 = vmatprep.subr.mxu0 %v322_v0  ;;  %v293_v3 = vld [vmem:[%s13304_s1 + $0x30] sm:$0xff]  ;;  %v292_v5 = vld [vmem:[%s13304_s1 + $0x28] sm:$0xff]  ;;  %vm2858_vm1 = vcmask 253952   ;;  %vm2959_vm2 = vcmask 261120   ;;  %s10361_s29 = smov 64  }
  0x1a   : > { %9100 = vmatprep.subr.mxu1 %v294_v1  ;;  %9055 = vmatpush3.msra.mxu0 %v322_v0  ;;  %s260_s17 = scalar_select %p259_p12, %s10342_s25, 1  ;;  %v319_v6 = vld [vmem:[%s13304_s1 + $0x60] sm:$0xff]  ;;  %v318_v8 = vld [vmem:[%s13304_s1 + $0x58] sm:$0xff]  ;;  %v317_v10 = vld [vmem:[%s13304_s1 + $0x50] sm:$0xff]  ;;  %vm7548_vm3 = vcmask 785408  }
  0x1b   : > { %9101 = vmatpush3.msra.mxu1 %v294_v1  ;;  %9056 = vmatprep.subr.mxu0 %v321_v2  ;;  %v291_v7 = vld [vmem:[%s13304_s1 + $0x20] sm:$0xff]  ;;  %v290_v9 = vld [vmem:[%s13304_s1 + $0x18] sm:$0xff]  ;;  %v289_v11 = vld [vmem:[%s13304_s1 + $0x10] sm:$0xff]  ;;  %s8437_s9 = sshll.u32 %s10338_s24, 2  ;;  %s8438_s12 = sshll.u32 %s10342_s25, 3 }
  0x1c   : > { %9102 = vmatprep.subr.mxu1 %v293_v3  ;;  %9057 = vmatpush3.msra.mxu0 %v321_v2  ;;  %s10052_s30 = smul.u32 480, %s260_s17  ;;  %v316_v12 = vld [vmem:[%s13304_s1 + $0x48] sm:$0xff]  ;;  %v315_v14 = vld [vmem:[%s13304_s1 + $0x40] sm:$0xff]  ;;  %v801_v20 = vld [vmem:[%s13304_s1 + $0xb8] sm:$0xff]  ;;  %s10360_s17 = smov 32  }
  0x1d   : > { %9103 = vmatpush3.msra.mxu1 %v293_v3  ;;  %9058 = vmatprep.subr.mxu0 %v320_v4  ;;  %v288_v13 = vld [vmem:[%s13304_s1 + $0x8] sm:$0xff]  ;;  %v287_v15 = vld [vmem:[%s13304_s1] sm:$0xff]  ;;  %v800_v23 = vld [vmem:[%s13304_s1 + $0xb0] sm:$0xff]  ;;  %s7576_s14 = sadd.s32 %s8438_s12, %s8437_s9 }
  0x1e   : > { %9104 = vmatprep.subr.mxu1 %v292_v5  ;;  %9059 = vmatpush3.msra.mxu0 %v320_v4  ;;  %s263_s20 = scalar_lea.vmem %s13303_s0, %s10052_s30  ;;  %v1077_v24 = vld [vmem:[%s13304_s1 + $0xf8] sm:$0xff]  ;;  %v799_v29 = vld [vmem:[%s13304_s1 + $0xa8] sm:$0xff]  ;;  %v798_v34 = vld [vmem:[%s13304_s1 + $0xa0] sm:$0xff]  ;;  %s8439_s24 = sshll.u32 %s7576_s14, 7 }
  0x1f   : > { %9105 = vmatpush3.msra.mxu1 %v292_v5  ;;  %9060 = vmatprep.subr.mxu0 %v319_v6  ;;  %s10517_s18 = scalar_lea.vmem %s263_s20, %s7675_s16  ;;  %v1076_v35 = vld [vmem:[%s13304_s1 + $0xf0] sm:$0xff]  ;;  %v797_v40 = vld [vmem:[%s13304_s1 + $0x98] sm:$0xff]  ;;  %v1075_v41 = vld [vmem:[%s13304_s1 + $0xe8] sm:$0xff]  ;;  %s10357_s20 = smov 96  }
  0x20   : > { %9106 = vmatprep.subr.mxu1 %v291_v7  ;;  %9061 = vmatpush3.msra.mxu0 %v319_v6  ;;  %v295_v16 = vld [vmem:[%s10517_s18 + $0x1] sm:$0xff]  ;;  %v296_v18 = vld [vmem:[%s10517_s18 + $0x9] sm:$0xff]  ;;  %v10534_v21 = vld [vmem:[%s10517_s18 + $0x19] sm:$0xff]  ;;  %s256_s16 = sand.u32 1, %s10330_s22  }
  0x21   : > { %9107 = vmatpush3.msra.mxu1 %v291_v7  ;;  %9062 = vmatprep.subr.mxu0 %v318_v8  ;;  %v267_v17 = vld [vmem:[%s10517_s18] sm:$0xff]  ;;  %v268_v19 = vld [vmem:[%s10517_s18 + $0x8] sm:$0xff]  ;;  %v10538_v22 = vld [vmem:[%s10517_s18 + $0x18] sm:$0xff]  ;;  %s7672_s13 = sshll.u32 %s256_s16, 5  ;;  %s7564_s19 = scalar_lea.sflag [#allocation4], %s256_s16 }
  0x22   : > { %9108 = vmatprep.subr.mxu1 %v290_v9  ;;  %9063 = vmatpush3.msra.mxu0 %v318_v8  ;;  %v10551_v25 = vld [vmem:[%s10517_s18 + $0x21] sm:$0xff]  ;;  %v10559_v27 = vld [vmem:[%s10517_s18 + $0x31] sm:$0xff]  ;;  %v10574_v30 = vld [vmem:[%s10517_s18 + $0x39] sm:$0xff]  ;;  %s258_s25 = scalar_lea.vmem [#allocation3], %s7672_s13 }
  0x23   : > { %9109 = vmatpush3.msra.mxu1 %v290_v9  ;;  %9064 = vmatprep.subr.mxu0 %v317_v10  ;;  %v10554_v26 = vld [vmem:[%s10517_s18 + $0x20] sm:$0xff]  ;;  %v10562_v28 = vld [vmem:[%s10517_s18 + $0x30] sm:$0xff]  ;;  %v10577_v31 = vld [vmem:[%s10517_s18 + $0x38] sm:$0xff] }
  0x24   : > { %9110 = vmatprep.subr.mxu1 %v289_v11  ;;  %9065 = vmatpush3.msra.mxu0 %v317_v10  ;;  %v10582_v32 = vld [vmem:[%s10517_s18 + $0x49] sm:$0xff]  ;;  %v10602_v36 = vld [vmem:[%s10517_s18 + $0x51] sm:$0xff]  ;;  %v10608_v38 = vld [vmem:[%s10517_s18 + $0x61] sm:$0xff] }
  0x25   : > { %9111 = vmatpush3.msra.mxu1 %v289_v11  ;;  %9066 = vmatprep.subr.mxu0 %v316_v12  ;;  %v10585_v33 = vld [vmem:[%s10517_s18 + $0x48] sm:$0xff]  ;;  %v10605_v37 = vld [vmem:[%s10517_s18 + $0x50] sm:$0xff]  ;;  %v10611_v39 = vld [vmem:[%s10517_s18 + $0x60] sm:$0xff] }
  0x26   : > { %9112 = vmatprep.subr.mxu1 %v288_v13  ;;  %9067 = vmatpush3.msra.mxu0 %v316_v12  ;;  %v10628_v42 = vld [vmem:[%s10517_s18 + $0x69] sm:$0xff]  ;;  %v10634_v44 = vld [vmem:[%s10517_s18 + $0x79] sm:$0xff]  ;;  %v10654_v48 = vld [vmem:[%s10517_s18 + $0x81] sm:$0xff] }
  0x27   : > { %9113 = vmatpush3.msra.mxu1 %v288_v13  ;;  %9068 = vmatprep.subr.mxu0 %v315_v14  ;;  %v10631_v43 = vld [vmem:[%s10517_s18 + $0x68] sm:$0xff]  ;;  %v10637_v45 = vld [vmem:[%s10517_s18 + $0x78] sm:$0xff]  ;;  %v796_v46 = vld [vmem:[%s13304_s1 + $0x90] sm:$0xff] }
  0x28   : > { %9114 = vmatprep.subr.mxu1 %v287_v15  ;;  %9069 = vmatpush3.msra.mxu0 %v315_v14  ;;  %v1074_v47 = vld [vmem:[%s13304_s1 + $0xe0] sm:$0xff]  ;;  %v10660_v50 = vld [vmem:[%s10517_s18 + $0x91] sm:$0xff]  ;;  %v795_v52 = vld [vmem:[%s13304_s1 + $0x88] sm:$0xff] }
  0x29   : > { %9070 = vmatprep.mubr.msk.f32.mxu0 %vm323_vm0, %v295_v16  ;;  %9115 = vmatpush3.msra.mxu1 %v287_v15  ;;  %v10657_v49 = vld [vmem:[%s10517_s18 + $0x80] sm:$0xff]  ;;  %v10663_v51 = vld [vmem:[%s10517_s18 + $0x90] sm:$0xff]  ;;  %v1073_v53 = vld [vmem:[%s13304_s1 + $0xd8] sm:$0xff] }
  0x2a   : > { %9116 = vmatprep.mubr.msk.f32.mxu1 %vm323_vm0, %v267_v17  ;;  %9071 = vmatmul.mubr.msk.f32.vlgmr.msra.gmra.mxu0 %vm323_vm0, %v296_v18  ;;  %v10680_v54 = vld [vmem:[%s10517_s18 + $0x99] sm:$0xff]  ;;  %v10686_v56 = vld [vmem:[%s10517_s18 + $0xa9] sm:$0xff]  ;;  %v10706_v60 = vld [vmem:[%s10517_s18 + $0xb1] sm:$0xff] }
  0x2b   : > { %9117 = vmatmul.mubr.msk.f32.vlgmr.msra.gmra.mxu1 %vm323_vm0, %v268_v19  ;;  %9146 = vmatprep.subr.mxu0 %v801_v20  ;;  %v10683_v55 = vld [vmem:[%s10517_s18 + $0x98] sm:$0xff]  ;;  %v10689_v57 = vld [vmem:[%s10517_s18 + $0xa8] sm:$0xff]  ;;  %v794_v58 = vld [vmem:[%s13304_s1 + $0x80] sm:$0xff] }
  0x2c   : > { %9073 = vmatprep.mubr.msk.f32.mxu0 %vm323_vm0, %v10534_v21  ;;  %9147 = vmatpush3.msra.mxu0 %v801_v20  ;;  %v1072_v59 = vld [vmem:[%s13304_s1 + $0xd0] sm:$0xff]  ;;  %v10712_v62 = vld [vmem:[%s10517_s18 + $0xc1] sm:$0xff]  ;;  %v1350_v1 = vld [vmem:[%s13304_s1 + $0x138] sm:$0xff] }
  0x2d   : > { %9119 = vmatprep.mubr.msk.f32.mxu1 %vm323_vm0, %v10538_v22  ;;  %9148 = vmatprep.subr.mxu0 %v800_v23  ;;  %v10709_v61 = vld [vmem:[%s10517_s18 + $0xb0] sm:$0xff]  ;;  %v10715_v63 = vld [vmem:[%s10517_s18 + $0xc0] sm:$0xff]  ;;  %v1071_v0 = vld [vmem:[%s13304_s1 + $0xc8] sm:$0xff] }
  0x2e   : > { %9192 = vmatprep.subr.mxu1 %v1077_v24  ;;  %9074 = vmatmul.mubr.msk.f32.gmra.mxu0 %vm323_vm0, %v10551_v25  ;;  %v10732_v2 = vld [vmem:[%s10517_s18 + $0xc9] sm:$0xff]  ;;  %v10738_v4 = vld [vmem:[%s10517_s18 + $0xd9] sm:$0xff]  ;;  %v10755_v7 = vld [vmem:[%s10517_s18 + $0xe1] sm:$0xff] }
  0x2f   : > { %9120 = vmatmul.mubr.msk.f32.gmra.mxu1 %vm323_vm0, %v10554_v26  ;;  %9149 = vmatpush3.msra.mxu0 %v800_v23  ;;  %v10735_v3 = vld [vmem:[%s10517_s18 + $0xc8] sm:$0xff]  ;;  %v10741_v5 = vld [vmem:[%s10517_s18 + $0xd8] sm:$0xff]  ;;  %v1070_v6 = vld [vmem:[%s13304_s1 + $0xc0] sm:$0xff] }
  0x30   : > { %9076 = vmatprep.mubr.msk.f32.mxu0 %vm323_vm0, %v10559_v27  ;;  %9122 = vmatprep.mubr.msk.f32.mxu1 %vm323_vm0, %v10562_v28  ;;  %v10758_v8 = vld [vmem:[%s10517_s18 + $0xe0] sm:$0xff]  ;;  %v1623_v10 = vld [vmem:[%s13304_s1 + $0x178] sm:$0xff]  ;;  %v775_v11 = vld [vmem:[%s10517_s18 + $0xa] sm:$0xff] }
  0x31   : > { %9150 = vmatprep.subr.mxu0 %v799_v29  ;;  %9193 = vmatpush3.msra.mxu1 %v1077_v24  ;;  %v774_v9 = vld [vmem:[%s10517_s18 + $0x2] sm:$0xff]  ;;  %v10773_v12 = vld [vmem:[%s10517_s18 + $0x1a] sm:$0xff]  ;;  %v1349_v13 = vld [vmem:[%s13304_s1 + $0x130] sm:$0xff] }
  0x32   : > { %9151 = vmatpush3.msra.mxu0 %v799_v29  ;;  %9194 = vmatprep.subr.mxu1 %v1076_v35  ;;  %v10784_v14 = vld [vmem:[%s10517_s18 + $0x22] sm:$0xff]  ;;  %v10789_v15 = vld [vmem:[%s10517_s18 + $0x32] sm:$0xff]  ;;  %v10804_v18 = vld [vmem:[%s10517_s18 + $0x3a] sm:$0xff] }
  0x33   : > { %9077 = vmatmul.mubr.msk.f32.gmra.mxu0 %vm323_vm0, %v10574_v30  ;;  %9123 = vmatmul.mubr.msk.f32.gmra.mxu1 %vm323_vm0, %v10577_v31  ;;  %v1348_v16 = vld [vmem:[%s13304_s1 + $0x128] sm:$0xff]  ;;  %v1622_v17 = vld [vmem:[%s13304_s1 + $0x170] sm:$0xff]  ;;  %v1347_v20 = vld [vmem:[%s13304_s1 + $0x120] sm:$0xff] }
  0x34   : > { %9079 = vmatprep.mubr.msk.f32.mxu0 %vm323_vm0, %v10582_v32  ;;  %9125 = vmatprep.mubr.msk.f32.mxu1 %vm323_vm0, %v10585_v33  ;;  %v10809_v19 = vld [vmem:[%s10517_s18 + $0x4a] sm:$0xff]  ;;  %v10824_v23 = vld [vmem:[%s10517_s18 + $0x52] sm:$0xff]  ;;  %v10829_v24 = vld [vmem:[%s10517_s18 + $0x62] sm:$0xff] }
  0x35   : > { %9152 = vmatprep.subr.mxu0 %v798_v34  ;;  %9195 = vmatpush3.msra.mxu1 %v1076_v35  ;;  %v1620_v29 = vld [vmem:[%s13304_s1 + $0x160] sm:$0xff] }
  0x36   : > { %9153 = vmatpush3.msra.mxu0 %v798_v34  ;;  %9196 = vmatprep.subr.mxu1 %v1075_v41  ;;  %v10844_v34 = vld [vmem:[%s10517_s18 + $0x6a] sm:$0xff]  ;;  %v10849_v35 = vld [vmem:[%s10517_s18 + $0x7a] sm:$0xff] }
  0x37   : > { %9080 = vmatmul.mubr.msk.f32.gmra.mxu0 %vm323_vm0, %v10602_v36  ;;  %9126 = vmatmul.mubr.msk.f32.gmra.mxu1 %vm323_vm0, %v10605_v37 }
  0x38   : > { %9082 = vmatprep.mubr.msk.f32.mxu0 %vm323_vm0, %v10608_v38  ;;  %9128 = vmatprep.mubr.msk.f32.mxu1 %vm323_vm0, %v10611_v39 }
  0x39   : > { %9154 = vmatprep.subr.mxu0 %v797_v40  ;;  %9197 = vmatpush3.msra.mxu1 %v1075_v41  ;;  %v1619_v41 = vld [vmem:[%s13304_s1 + $0x158] sm:$0xff] }
  0x3a   : > { %9155 = vmatpush3.msra.mxu0 %v797_v40  ;;  %9198 = vmatprep.subr.mxu1 %v1074_v47  ;;  %v1345_v40 = vld [vmem:[%s13304_s1 + $0x110] sm:$0xff] }
  0x3b   : > { %9083 = vmatmul.mubr.msk.f32.gmra.mxu0 %vm323_vm0, %v10628_v42  ;;  %9129 = vmatmul.mubr.msk.f32.gmra.mxu1 %vm323_vm0, %v10631_v43 }
  0x3c   : > { %9085 = vmatprep.mubr.msk.f32.mxu0 %vm323_vm0, %v10634_v44  ;;  %9131 = vmatprep.mubr.msk.f32.mxu1 %vm323_vm0, %v10637_v45 }
  0x3d   : > { %9156 = vmatprep.subr.mxu0 %v796_v46  ;;  %9199 = vmatpush3.msra.mxu1 %v1074_v47  ;;  %v10869_v47 = vld [vmem:[%s10517_s18 + $0x92] sm:$0xff] }
  0x3e   : > { %9157 = vmatpush3.msra.mxu0 %v796_v46  ;;  %9200 = vmatprep.subr.mxu1 %v1073_v53  ;;  %v10864_v46 = vld [vmem:[%s10517_s18 + $0x82] sm:$0xff] }
  0x3f   : > { %9086 = vmatmul.mubr.msk.f32.gmra.mxu0 %vm323_vm0, %v10654_v48  ;;  %9132 = vmatmul.mubr.msk.f32.gmra.mxu1 %vm323_vm0, %v10657_v49 }
  0x40   : > { %9088 = vmatprep.mubr.msk.f32.mxu0 %vm323_vm0, %v10660_v50  ;;  %9134 = vmatprep.mubr.msk.f32.mxu1 %vm323_vm0, %v10663_v51 }
  0x41   : > { %9158 = vmatprep.subr.mxu0 %v795_v52  ;;  %9201 = vmatpush3.msra.mxu1 %v1073_v53  ;;  %v1618_v53 = vld [vmem:[%s13304_s1 + $0x150] sm:$0xff] }
  0x42   : > { %9159 = vmatpush3.msra.mxu0 %v795_v52  ;;  %9202 = vmatprep.subr.mxu1 %v1072_v59  ;;  %v1344_v52 = vld [vmem:[%s13304_s1 + $0x108] sm:$0xff] }
  0x43   : > { %9089 = vmatmul.mubr.msk.f32.gmra.mxu0 %vm323_vm0, %v10680_v54  ;;  %9135 = vmatmul.mubr.msk.f32.gmra.mxu1 %vm323_vm0, %v10683_v55 }
  0x44   : > { %9091 = vmatprep.mubr.msk.f32.mxu0 %vm323_vm0, %v10686_v56  ;;  %9137 = vmatprep.mubr.msk.f32.mxu1 %vm323_vm0, %v10689_v57 }
  0x45   : > { %9160 = vmatprep.subr.mxu0 %v794_v58  ;;  %9203 = vmatpush3.msra.mxu1 %v1072_v59  ;;  %v10889_v59 = vld [vmem:[%s10517_s18 + $0xaa] sm:$0xff] }
  0x46   : > { %9161 = vmatpush3.msra.mxu0 %v794_v58  ;;  %9204 = vmatprep.subr.mxu1 %v1071_v0  ;;  %v10884_v58 = vld [vmem:[%s10517_s18 + $0x9a] sm:$0xff] }
  0x47   : > { %9092 = vmatmul.mubr.msk.f32.gmra.mxu0 %vm323_vm0, %v10706_v60  ;;  %9138 = vmatmul.mubr.msk.f32.gmra.mxu1 %vm323_vm0, %v10709_v61 }
  0x48   : > { %9094 = vmatprep.mubr.msk.f32.mxu0 %vm323_vm0, %v10712_v62  ;;  %9140 = vmatprep.mubr.msk.f32.mxu1 %vm323_vm0, %v10715_v63 }
  0x49   : > { %9238 = vmatprep.subr.mxu0 %v1350_v1  ;;  %9205 = vmatpush3.msra.mxu1 %v1071_v0  ;;  %v1343_v0 = vld [vmem:[%s13304_s1 + $0x100] sm:$0xff] }
  0x4a   : > { %9206 = vmatprep.subr.mxu1 %v1070_v6 }
  0x4b   : > { %9095 = vmatmul.mubr.msk.f32.gmra.mxu0 %vm323_vm0, %v10732_v2  ;;  %9141 = vmatmul.mubr.msk.f32.gmra.mxu1 %vm323_vm0, %v10735_v3 }
  0x4c   : > { %9097 = vmatprep.mubr.msk.f32.mxu0 %vm323_vm0, %v10738_v4  ;;  %9143 = vmatprep.mubr.msk.f32.mxu1 %vm323_vm0, %v10741_v5 }
  0x4d   : > { %9207 = vmatpush3.msra.mxu1 %v1070_v6  ;;  %v10904_v6 = vld [vmem:[%s10517_s18 + $0xb2] sm:$0xff] }
  0x4e   : > { %9284 = vmatprep.subr.mxu1 %v1623_v10 }
  0x4f   : > { %9098 = vmatmul.mubr.msk.f32.gmra.mxu0 %vm323_vm0, %v10755_v7  ;;  %9144 = vmatmul.mubr.msk.f32.gmra.mxu1 %vm323_vm0, %v10758_v8 }
  0x50   : > { %9162 = vmatprep.mubr.msk.f32.mxu0 %vm323_vm0, %v774_v9  ;;  %9208 = vmatprep.mubr.msk.f32.mxu1 %vm323_vm0, %v10538_v22  ;;  %v1621_v22 = vld [vmem:[%s13304_s1 + $0x168] sm:$0xff] }
  0x51   : > { %v10909_v9 = vld [vmem:[%s10517_s18 + $0xc2] sm:$0xff] }
  0x53   : > { %9163 = vmatmul.mubr.msk.f32.vlgmr.msra.gmra.mxu0 %vm323_vm0, %v775_v11  ;;  %9209 = vmatmul.mubr.msk.f32.vlgmr.msra.gmra.mxu1 %vm323_vm0, %v10554_v26  ;;  %v1346_v26 = vld [vmem:[%s13304_s1 + $0x118] sm:$0xff] }
  0x54   : > { %9239 = vmatpush3.msra.mxu0 %v1350_v1  ;;  %9165 = vmatprep.mubr.msk.f32.mxu0 %vm323_vm0, %v10773_v12  ;;  %v1617_v1 = vld [vmem:[%s13304_s1 + $0x148] sm:$0xff]  ;;  %v1899_v11 = vld [vmem:[%s13304_s1 + $0x1b8] sm:$0xff] }
  0x55   : > { %9211 = vmatprep.mubr.msk.f32.mxu1 %vm323_vm0, %v10562_v28  ;;  %9240 = vmatprep.subr.mxu0 %v1349_v13 }
  0x56   : > { %9241 = vmatpush3.msra.mxu0 %v1349_v13  ;;  %9285 = vmatpush3.msra.mxu1 %v1623_v10  ;;  %v1616_v10 = vld [vmem:[%s13304_s1 + $0x140] sm:$0xff]  ;;  %v10924_v13 = vld [vmem:[%s10517_s18 + $0xca] sm:$0xff] }
  0x57   : > { %9166 = vmatmul.mubr.msk.f32.gmra.mxu0 %vm323_vm0, %v10784_v14  ;;  %9212 = vmatmul.mubr.msk.f32.gmra.mxu1 %vm323_vm0, %v10577_v31 }
  0x58   : > { %9168 = vmatprep.mubr.msk.f32.mxu0 %vm323_vm0, %v10789_v15  ;;  %9214 = vmatprep.mubr.msk.f32.mxu1 %vm323_vm0, %v10585_v33 }
  0x59   : > { %9242 = vmatprep.subr.mxu0 %v1348_v16  ;;  %9286 = vmatprep.subr.mxu1 %v1622_v17 }
  0x5a   : > { %9243 = vmatpush3.msra.mxu0 %v1348_v16  ;;  %9287 = vmatpush3.msra.mxu1 %v1622_v17  ;;  %v10929_v16 = vld [vmem:[%s10517_s18 + $0xda] sm:$0xff]  ;;  %v10932_v17 = vld [vmem:[%s10517_s18 + $0xf0] sm:$0xff] }
  0x5b   : > { %9169 = vmatmul.mubr.msk.f32.gmra.mxu0 %vm323_vm0, %v10804_v18  ;;  %9215 = vmatmul.mubr.msk.f32.gmra.mxu1 %vm323_vm0, %v10605_v37 }
  0x5c   : > { %9171 = vmatprep.mubr.msk.f32.mxu0 %vm323_vm0, %v10809_v19  ;;  %9217 = vmatprep.mubr.msk.f32.mxu1 %vm323_vm0, %v10611_v39 }
  0x5d   : > { %9244 = vmatprep.subr.mxu0 %v1347_v20  ;;  %9288 = vmatprep.subr.mxu1 %v1621_v22 }
  0x5e   : > { %9245 = vmatpush3.msra.mxu0 %v1347_v20  ;;  %9289 = vmatpush3.msra.mxu1 %v1621_v22  ;;  %v2172_v20 = vld [vmem:[%s13304_s1 + $0x1f8] sm:$0xff]  ;;  %v10944_v22 = vld [vmem:[%s10517_s18 + $0xe2] sm:$0xff] }
  0x5f   : > { %9172 = vmatmul.mubr.msk.f32.gmra.mxu0 %vm323_vm0, %v10824_v23  ;;  %9218 = vmatmul.mubr.msk.f32.gmra.mxu1 %vm323_vm0, %v10631_v43 }
  0x60   : > { %9174 = vmatprep.mubr.msk.f32.mxu0 %vm323_vm0, %v10829_v24  ;;  %9220 = vmatprep.mubr.msk.f32.mxu1 %vm323_vm0, %v10637_v45 }
  0x61   : > { %9246 = vmatprep.subr.mxu0 %v1346_v26  ;;  %9290 = vmatprep.subr.mxu1 %v1620_v29 }
  0x62   : > { %9247 = vmatpush3.msra.mxu0 %v1346_v26  ;;  %9291 = vmatpush3.msra.mxu1 %v1620_v29  ;;  %v10949_v26 = vld [vmem:[%s10517_s18 + $0xf8] sm:$0xff]  ;;  %v1898_v29 = vld [vmem:[%s13304_s1 + $0x1b0] sm:$0xff] }
  0x63   : > { %9175 = vmatmul.mubr.msk.f32.gmra.mxu0 %vm323_vm0, %v10844_v34  ;;  %9221 = vmatmul.mubr.msk.f32.gmra.mxu1 %vm323_vm0, %v10657_v49 }
  0x64   : > { %9177 = vmatprep.mubr.msk.f32.mxu0 %vm323_vm0, %v10849_v35  ;;  %9223 = vmatprep.mubr.msk.f32.mxu1 %vm323_vm0, %v10663_v51 }
  0x65   : > { %9248 = vmatprep.subr.mxu0 %v1345_v40  ;;  %9292 = vmatprep.subr.mxu1 %v1619_v41 }
  0x66   : > { %9249 = vmatpush3.msra.mxu0 %v1345_v40  ;;  %9293 = vmatpush3.msra.mxu1 %v1619_v41  ;;  %v1895_v40 = vld [vmem:[%s13304_s1 + $0x198] sm:$0xff]  ;;  %v2169_v41 = vld [vmem:[%s13304_s1 + $0x1e0] sm:$0xff] }
  0x67   : > { %9178 = vmatmul.mubr.msk.f32.gmra.mxu0 %vm323_vm0, %v10864_v46  ;;  %9224 = vmatmul.mubr.msk.f32.gmra.mxu1 %vm323_vm0, %v10683_v55 }
  0x68   : > { %9180 = vmatprep.mubr.msk.f32.mxu0 %vm323_vm0, %v10869_v47  ;;  %9226 = vmatprep.mubr.msk.f32.mxu1 %vm323_vm0, %v10689_v57 }
  0x69   : > { %9250 = vmatprep.subr.mxu0 %v1344_v52  ;;  %9294 = vmatprep.subr.mxu1 %v1618_v53 }
  0x6a   : > { %9251 = vmatpush3.msra.mxu0 %v1344_v52  ;;  %9295 = vmatpush3.msra.mxu1 %v1618_v53  ;;  %v1894_v52 = vld [vmem:[%s13304_s1 + $0x190] sm:$0xff]  ;;  %v2168_v53 = vld [vmem:[%s13304_s1 + $0x1d8] sm:$0xff] }
  0x6b   : > { %9181 = vmatmul.mubr.msk.f32.gmra.mxu0 %vm323_vm0, %v10884_v58  ;;  %9227 = vmatmul.mubr.msk.f32.gmra.mxu1 %vm323_vm0, %v10709_v61 }
  0x6c   : > { %9183 = vmatprep.mubr.msk.f32.mxu0 %vm323_vm0, %v10889_v59  ;;  %9229 = vmatprep.mubr.msk.f32.mxu1 %vm323_vm0, %v10715_v63 }
  0x6d   : > { %9252 = vmatprep.subr.mxu0 %v1343_v0  ;;  %9296 = vmatprep.subr.mxu1 %v1617_v1 }
  0x6e   : > { %9253 = vmatpush3.msra.mxu0 %v1343_v0  ;;  %9297 = vmatpush3.msra.mxu1 %v1617_v1  ;;  %v1893_v0 = vld [vmem:[%s13304_s1 + $0x188] sm:$0xff]  ;;  %v2167_v1 = vld [vmem:[%s13304_s1 + $0x1d0] sm:$0xff] }
  0x6f   : > { %9184 = vmatmul.mubr.msk.f32.gmra.mxu0 %vm323_vm0, %v10904_v6  ;;  %9230 = vmatmul.mubr.msk.f32.gmra.mxu1 %vm323_vm0, %v10735_v3 }
  0x70   : > { %9186 = vmatprep.mubr.msk.f32.mxu0 %vm323_vm0, %v10909_v9  ;;  %9232 = vmatprep.mubr.msk.f32.mxu1 %vm323_vm0, %v10741_v5 }
  0x71   : > { %9298 = vmatprep.subr.mxu1 %v1616_v10  ;;  %9330 = vmatprep.subr.mxu0 %v1899_v11 }
  0x72   : > { %9299 = vmatpush3.msra.mxu1 %v1616_v10  ;;  %v1892_v10 = vld [vmem:[%s13304_s1 + $0x180] sm:$0xff] }
  0x73   : > { %9187 = vmatmul.mubr.msk.f32.gmra.mxu0 %vm323_vm0, %v10924_v13  ;;  %9233 = vmatmul.mubr.msk.f32.gmra.mxu1 %vm323_vm0, %v10758_v8 }
  0x74   : > { %9189 = vmatprep.mubr.msk.f32.mxu0 %vm323_vm0, %v10929_v16  ;;  %9235 = vmatprep.mubr.msk.f32.mxu1 %vm323_vm0, %v10932_v17 }
  0x75   : > { %9376 = vmatprep.subr.mxu1 %v2172_v20 }
  0x77   : > { %9190 = vmatmul.mubr.msk.f32.gmra.mxu0 %vm323_vm0, %v10944_v22  ;;  %9236 = vmatmul.mubr.msk.f32.gmra.mxu1 %vm323_vm0, %v10949_v26 }
  0x78   : > { %9254 = vmatprep.mubr.msk.f32.mxu0 %vm323_vm0, %v10534_v21  ;;  %9300 = vmatprep.mubr.msk.f32.mxu1 %vm323_vm0, %v10773_v12  ;;  %v1897_v21 = vld [vmem:[%s13304_s1 + $0x1a8] sm:$0xff]  ;;  %v1896_v12 = vld [vmem:[%s13304_s1 + $0x1a0] sm:$0xff] }
  0x7b   : > { %9255 = vmatmul.mubr.msk.f32.vlgmr.msra.gmra.mxu0 %vm323_vm0, %v10551_v25  ;;  %9301 = vmatmul.mubr.msk.f32.vlgmr.msra.gmra.mxu1 %vm323_vm0, %v10784_v14  ;;  %v2171_v25 = vld [vmem:[%s13304_s1 + $0x1f0] sm:$0xff]  ;;  %v2170_v14 = vld [vmem:[%s13304_s1 + $0x1e8] sm:$0xff] }
  0x7c   : > { %9331 = vmatpush3.msra.mxu0 %v1899_v11  ;;  %9257 = vmatprep.mubr.msk.f32.mxu0 %vm323_vm0, %v10559_v27  ;;  %v2166_v11 = vld [vmem:[%s13304_s1 + $0x1c8] sm:$0xff] }
  0x7d   : > { %9303 = vmatprep.mubr.msk.f32.mxu1 %vm323_vm0, %v10789_v15  ;;  %9332 = vmatprep.subr.mxu0 %v1898_v29 }
  0x7e   : > { %9333 = vmatpush3.msra.mxu0 %v1898_v29  ;;  %9377 = vmatpush3.msra.mxu1 %v2172_v20  ;;  %v2165_v20 = vld [vmem:[%s13304_s1 + $0x1c0] sm:$0xff]  ;;  %v2445_v29 = vld [vmem:[%s13304_s1 + $0x238] sm:$0xff] }
  0x7f   : > { %9258 = vmatmul.mubr.msk.f32.gmra.mxu0 %vm323_vm0, %v10574_v30  ;;  %9304 = vmatmul.mubr.msk.f32.gmra.mxu1 %vm323_vm0, %v10804_v18 }
  0x80   : > { %9260 = vmatprep.mubr.msk.f32.mxu0 %vm323_vm0, %v10582_v32  ;;  %9306 = vmatprep.mubr.msk.f32.mxu1 %vm323_vm0, %v10809_v19 }
  0x81   : > { %9334 = vmatprep.subr.mxu0 %v1897_v21  ;;  %9378 = vmatprep.subr.mxu1 %v2171_v25 }
  0x82   : > { %9335 = vmatpush3.msra.mxu0 %v1897_v21  ;;  %9379 = vmatpush3.msra.mxu1 %v2171_v25  ;;  %v11069_v21 = vld [vmem:[%s10517_s18 + $0xf1] sm:$0xff] }
  0x83   : > { %9261 = vmatmul.mubr.msk.f32.gmra.mxu0 %vm323_vm0, %v10602_v36  ;;  %9307 = vmatmul.mubr.msk.f32.gmra.mxu1 %vm323_vm0, %v10824_v23  ;;  %v11072_v25 = vld [vmem:[%s10517_s18 + $0xf2] sm:$0xff] }
  0x84   : > { %9263 = vmatprep.mubr.msk.f32.mxu0 %vm323_vm0, %v10608_v38  ;;  %9309 = vmatprep.mubr.msk.f32.mxu1 %vm323_vm0, %v10829_v24 }
  0x85   : > { %9336 = vmatprep.subr.mxu0 %v1896_v12  ;;  %9380 = vmatprep.subr.mxu1 %v2170_v14 }
  0x86   : > { %9337 = vmatpush3.msra.mxu0 %v1896_v12  ;;  %9381 = vmatpush3.msra.mxu1 %v2170_v14  ;;  %v11081_v12 = vld [vmem:[%s10517_s18 + $0xf9] sm:$0xff] }
  0x87   : > { %9264 = vmatmul.mubr.msk.f32.gmra.mxu0 %vm323_vm0, %v10628_v42  ;;  %9310 = vmatmul.mubr.msk.f32.gmra.mxu1 %vm323_vm0, %v10844_v34  ;;  %v11086_v14 = vld [vmem:[%s10517_s18 + $0xfa] sm:$0xff] }
  0x88   : > { %9266 = vmatprep.mubr.msk.f32.mxu0 %vm323_vm0, %v10634_v44  ;;  %9312 = vmatprep.mubr.msk.f32.mxu1 %vm323_vm0, %v10849_v35 }
  0x89   : > { %9338 = vmatprep.subr.mxu0 %v1895_v40  ;;  %9382 = vmatprep.subr.mxu1 %v2169_v41 }
  0x8a   : > { %9339 = vmatpush3.msra.mxu0 %v1895_v40  ;;  %9383 = vmatpush3.msra.mxu1 %v2169_v41  ;;  %v2444_v40 = vld [vmem:[%s13304_s1 + $0x230] sm:$0xff] }
  0x8b   : > { %9267 = vmatmul.mubr.msk.f32.gmra.mxu0 %vm323_vm0, %v10654_v48  ;;  %9313 = vmatmul.mubr.msk.f32.gmra.mxu1 %vm323_vm0, %v10864_v46 }
  0x8c   : > { %9269 = vmatprep.mubr.msk.f32.mxu0 %vm323_vm0, %v10660_v50  ;;  %9315 = vmatprep.mubr.msk.f32.mxu1 %vm323_vm0, %v10869_v47 }
  0x8d   : > { %9340 = vmatprep.subr.mxu0 %v1894_v52  ;;  %9384 = vmatprep.subr.mxu1 %v2168_v53 }
  0x8e   : > { %9341 = vmatpush3.msra.mxu0 %v1894_v52  ;;  %9385 = vmatpush3.msra.mxu1 %v2168_v53 }
  0x8f   : > { %9270 = vmatmul.mubr.msk.f32.gmra.mxu0 %vm323_vm0, %v10680_v54  ;;  %9316 = vmatmul.mubr.msk.f32.gmra.mxu1 %vm323_vm0, %v10884_v58 }
  0x90   : > { %9272 = vmatprep.mubr.msk.f32.mxu0 %vm323_vm0, %v10686_v56  ;;  %9318 = vmatprep.mubr.msk.f32.mxu1 %vm323_vm0, %v10889_v59 }
  0x91   : > { %9342 = vmatprep.subr.mxu0 %v1893_v0  ;;  %9386 = vmatprep.subr.mxu1 %v2167_v1 }
  0x92   : > { %9343 = vmatpush3.msra.mxu0 %v1893_v0  ;;  %9387 = vmatpush3.msra.mxu1 %v2167_v1 }
  0x93   : > { %9273 = vmatmul.mubr.msk.f32.gmra.mxu0 %vm323_vm0, %v10706_v60  ;;  %9319 = vmatmul.mubr.msk.f32.gmra.mxu1 %vm323_vm0, %v10904_v6 }
  0x94   : > { %9275 = vmatprep.mubr.msk.f32.mxu0 %vm323_vm0, %v10712_v62  ;;  %9321 = vmatprep.mubr.msk.f32.mxu1 %vm323_vm0, %v10909_v9 }
  0x95   : > { %9344 = vmatprep.subr.mxu0 %v1892_v10  ;;  %9388 = vmatprep.subr.mxu1 %v2166_v11 }
  0x96   : > { %9345 = vmatpush3.msra.mxu0 %v1892_v10  ;;  %9389 = vmatpush3.msra.mxu1 %v2166_v11 }
  0x97   : > { %9276 = vmatmul.mubr.msk.f32.gmra.mxu0 %vm323_vm0, %v10732_v2  ;;  %9322 = vmatmul.mubr.msk.f32.gmra.mxu1 %vm323_vm0, %v10924_v13 }
  0x98   : > { %9278 = vmatprep.mubr.msk.f32.mxu0 %vm323_vm0, %v10738_v4  ;;  %9324 = vmatprep.mubr.msk.f32.mxu1 %vm323_vm0, %v10929_v16 }
  0x99   : > { %9390 = vmatprep.subr.mxu1 %v2165_v20  ;;  %9422 = vmatprep.subr.mxu0 %v2445_v29 }
  0x9a   : > { %9391 = vmatpush3.msra.mxu1 %v2165_v20 }
  0x9b   : > { %9279 = vmatmul.mubr.msk.f32.gmra.mxu0 %vm323_vm0, %v10755_v7  ;;  %9325 = vmatmul.mubr.msk.f32.gmra.mxu1 %vm323_vm0, %v10944_v22 }
  0x9c   : > { %9281 = vmatprep.mubr.msk.f32.mxu0 %vm323_vm0, %v11069_v21  ;;  %9327 = vmatprep.mubr.msk.f32.mxu1 %vm323_vm0, %v11072_v25 }
  0x9f   : > { %9282 = vmatmul.mubr.msk.f32.gmra.mxu0 %vm323_vm0, %v11081_v12  ;;  %9328 = vmatmul.mubr.msk.f32.gmra.mxu1 %vm323_vm0, %v11086_v14 }
  0xa0   : > { %9346 = vmatprep.mubr.msk.f32.mxu0 %vm323_vm0, %v10562_v28  ;;  %9392 = vmatprep.mubr.msk.f32.mxu1 %vm323_vm0, %v10559_v27  ;;  %v2443_v27 = vld [vmem:[%s13304_s1 + $0x228] sm:$0xff]  ;;  %v2442_v28 = vld [vmem:[%s13304_s1 + $0x220] sm:$0xff] }
  0xa3   : > { %9347 = vmatmul.mubr.msk.f32.vlgmr.msra.gmra.mxu0 %vm323_vm0, %v10577_v31  ;;  %9393 = vmatmul.mubr.msk.f32.vlgmr.msra.gmra.mxu1 %vm323_vm0, %v10574_v30  ;;  %v2441_v30 = vld [vmem:[%s13304_s1 + $0x218] sm:$0xff]  ;;  %v2440_v31 = vld [vmem:[%s13304_s1 + $0x210] sm:$0xff] }
  0xa4   : > { %9423 = vmatpush3.msra.mxu0 %v2445_v29  ;;  %9349 = vmatprep.mubr.msk.f32.mxu0 %vm323_vm0, %v10585_v33  ;;  %v2438_v33 = vld [vmem:[%s13304_s1 + $0x200] sm:$0xff] }
  0xa5   : > { %9395 = vmatprep.mubr.msk.f32.mxu1 %vm323_vm0, %v10582_v32  ;;  %9424 = vmatprep.subr.mxu0 %v2444_v40  ;;  %v2439_v32 = vld [vmem:[%s13304_s1 + $0x208] sm:$0xff] }
  0xa6   : > { %9425 = vmatpush3.msra.mxu0 %v2444_v40 }
  0xa7   : > { %9350 = vmatmul.mubr.msk.f32.gmra.mxu0 %vm323_vm0, %v10605_v37  ;;  %9396 = vmatmul.mubr.msk.f32.gmra.mxu1 %vm323_vm0, %v10602_v36  ;;  %v7878_v36 = vld [vmem:[%s10517_s18 + $0x108] sm:$0xff] }
  0xa8   : > { %9352 = vmatprep.mubr.msk.f32.mxu0 %vm323_vm0, %v10611_v39  ;;  %9398 = vmatprep.mubr.msk.f32.mxu1 %vm323_vm0, %v10608_v38  ;;  %v7918_v37 = vld [vmem:[%s10517_s18 + $0x109] sm:$0xff]  ;;  %v7919_v39 = vld [vmem:[%s10517_s18 + $0x111] sm:$0xff] }
  0xa9   : > { %9426 = vmatprep.subr.mxu0 %v2443_v27  ;;  %v7879_v38 = vld [vmem:[%s10517_s18 + $0x110] sm:$0xff] }
  0xaa   : > { %9427 = vmatpush3.msra.mxu0 %v2443_v27 }
  0xab   : > { %9353 = vmatmul.mubr.msk.f32.gmra.mxu0 %vm323_vm0, %v10631_v43  ;;  %9399 = vmatmul.mubr.msk.f32.gmra.mxu1 %vm323_vm0, %v10628_v42  ;;  %v7958_v42 = vld [vmem:[%s10517_s18 + $0x10a] sm:$0xff] }
  0xac   : > { %9355 = vmatprep.mubr.msk.f32.mxu0 %vm323_vm0, %v10637_v45  ;;  %9401 = vmatprep.mubr.msk.f32.mxu1 %vm323_vm0, %v10634_v44 }
  0xad   : > { %9428 = vmatprep.subr.mxu0 %v2442_v28 }
  0xae   : > { %9429 = vmatpush3.msra.mxu0 %v2442_v28 }
  0xaf   : > { %9356 = vmatmul.mubr.msk.f32.gmra.mxu0 %vm323_vm0, %v10657_v49  ;;  %9402 = vmatmul.mubr.msk.f32.gmra.mxu1 %vm323_vm0, %v10654_v48  ;;  %v7959_v48 = vld [vmem:[%s10517_s18 + $0x112] sm:$0xff] }
  0xb0   : > { %9358 = vmatprep.mubr.msk.f32.mxu0 %vm323_vm0, %v10663_v51  ;;  %9404 = vmatprep.mubr.msk.f32.mxu1 %vm323_vm0, %v10660_v50 }
  0xb1   : > { %9430 = vmatprep.subr.mxu0 %v2441_v30 }
  0xb2   : > { %9431 = vmatpush3.msra.mxu0 %v2441_v30 }
  0xb3   : > { %9359 = vmatmul.mubr.msk.f32.gmra.mxu0 %vm323_vm0, %v10683_v55  ;;  %9405 = vmatmul.mubr.msk.f32.gmra.mxu1 %vm323_vm0, %v10680_v54 }
  0xb4   : > { %9361 = vmatprep.mubr.msk.f32.mxu0 %vm323_vm0, %v10689_v57  ;;  %9407 = vmatprep.mubr.msk.f32.mxu1 %vm323_vm0, %v10686_v56 }
  0xb5   : > { %9432 = vmatprep.subr.mxu0 %v2440_v31 }
  0xb6   : > { %9433 = vmatpush3.msra.mxu0 %v2440_v31 }
  0xb7   : > { %9362 = vmatmul.mubr.msk.f32.gmra.mxu0 %vm323_vm0, %v10709_v61  ;;  %9408 = vmatmul.mubr.msk.f32.gmra.mxu1 %vm323_vm0, %v10706_v60 }
  0xb8   : > { %9364 = vmatprep.mubr.msk.f32.mxu0 %vm323_vm0, %v10715_v63  ;;  %9410 = vmatprep.mubr.msk.f32.mxu1 %vm323_vm0, %v10712_v62 }
  0xb9   : > { %9434 = vmatprep.subr.mxu0 %v2439_v32 }
  0xba   : > { %9435 = vmatpush3.msra.mxu0 %v2439_v32 }
  0xbb   : > { %9365 = vmatmul.mubr.msk.f32.gmra.mxu0 %vm323_vm0, %v10735_v3  ;;  %9411 = vmatmul.mubr.msk.f32.gmra.mxu1 %vm323_vm0, %v10732_v2 }
  0xbc   : > { %9367 = vmatprep.mubr.msk.f32.mxu0 %vm323_vm0, %v10741_v5  ;;  %9413 = vmatprep.mubr.msk.f32.mxu1 %vm323_vm0, %v10738_v4 }
  0xbd   : > { %9436 = vmatprep.subr.mxu0 %v2438_v33 }
  0xbe   : > { %9437 = vmatpush3.msra.mxu0 %v2438_v33 }
  0xbf   : > { %9368 = vmatmul.mubr.msk.f32.gmra.mxu0 %vm323_vm0, %v10758_v8  ;;  %9414 = vmatmul.mubr.msk.f32.gmra.mxu1 %vm323_vm0, %v10755_v7 }
  0xc0   : > { %9370 = vmatprep.mubr.msk.f32.mxu0 %vm323_vm0, %v10932_v17  ;;  %9416 = vmatprep.mubr.msk.f32.mxu1 %vm323_vm0, %v11069_v21 }
  0xc3   : > { %9371 = vmatmul.mubr.msk.f32.gmra.mxu0 %vm323_vm0, %v10949_v26  ;;  %9417 = vmatmul.mubr.msk.f32.gmra.mxu1 %vm323_vm0, %v11081_v12 }
  0xc4   : > { %9373 = vmatprep.mubr.msk.f32.mxu0 %vm323_vm0, %v7878_v36  ;;  %9419 = vmatprep.mubr.msk.f32.mxu1 %vm323_vm0, %v7918_v37 }
  0xc7   : > { %9374 = vmatmul.mubr.msk.f32.gmra.mxu0 %vm323_vm0, %v7879_v38  ;;  %9420 = vmatmul.mubr.msk.f32.gmra.mxu1 %vm323_vm0, %v7919_v39 }
  0xc8   : > { %9438 = vmatprep.mubr.msk.f32.mxu0 %vm323_vm0, %v10789_v15 }
  0xcb   : > { %9439 = vmatmul.mubr.msk.f32.vlgmr.msra.gmra.mxu0 %vm323_vm0, %v10804_v18 }
  0xcc   : > { %9441 = vmatprep.mubr.msk.f32.mxu0 %vm323_vm0, %v10809_v19 }
  0xcf   : > { %9442 = vmatmul.mubr.msk.f32.gmra.mxu0 %vm323_vm0, %v10824_v23 }
  0xd0   : > { %9444 = vmatprep.mubr.msk.f32.mxu0 %vm323_vm0, %v10829_v24 }
  0xd3   : > { %9445 = vmatmul.mubr.msk.f32.gmra.mxu0 %vm323_vm0, %v10844_v34 }
  0xd4   : > { %9447 = vmatprep.mubr.msk.f32.mxu0 %vm323_vm0, %v10849_v35 }
  0xd7   : > { %9448 = vmatmul.mubr.msk.f32.gmra.mxu0 %vm323_vm0, %v10864_v46 }
  0xd8   : > { %9450 = vmatprep.mubr.msk.f32.mxu0 %vm323_vm0, %v10869_v47 }
  0xdb   : > { %9451 = vmatmul.mubr.msk.f32.gmra.mxu0 %vm323_vm0, %v10884_v58 }
  0xdc   : > { %9453 = vmatprep.mubr.msk.f32.mxu0 %vm323_vm0, %v10889_v59 }
  0xdf   : > { %9454 = vmatmul.mubr.msk.f32.gmra.mxu0 %vm323_vm0, %v10904_v6 }
  0xe0   : > { %9456 = vmatprep.mubr.msk.f32.mxu0 %vm323_vm0, %v10909_v9 }
  0xe3   : > { %9457 = vmatmul.mubr.msk.f32.gmra.mxu0 %vm323_vm0, %v10924_v13 }
  0xe4   : > { %9459 = vmatprep.mubr.msk.f32.mxu0 %vm323_vm0, %v10929_v16 }
  0xe7   : > { %9460 = vmatmul.mubr.msk.f32.gmra.mxu0 %vm323_vm0, %v10944_v22 }
  0xe8   : > { %9462 = vmatprep.mubr.msk.f32.mxu0 %vm323_vm0, %v11072_v25 }
  0xea   : > { %v9072_v43 = vpop.f32.mrf.mxu0 }
  0xeb   : > { %v9118_v44 = vpop.f32.mrf.mxu1  ;;  %9463 = vmatmul.mubr.msk.f32.gmra.mxu0 %vm323_vm0, %v11086_v14 }
  0xec   : > { %v681_v45 = vadd.f32 %v9118_v44, %v9072_v43  ;;  %9465 = vmatprep.mubr.msk.f32.mxu0 %vm323_vm0, %v7958_v42  ;;  %v11232_v49 = vpop.f32.mrf.mxu0 }
  0xed   : > { %v11234_v50 = vpop.f32.mrf.mxu1 }
  0xee   : > { %v9075_v51 = vpop.f32.mrf.mxu0 }
  0xef   : > { %v9121_v54 = vpop.f32.mrf.mxu1  ;;  %9466 = vmatmul.mubr.msk.f32.gmra.mxu0 %vm323_vm0, %v7959_v48 }
  0xf0   : > { %v691_v55 = vadd.f32 %v9121_v54, %v9075_v51  ;;  %v11237_v56 = vpop.f32.mrf.mxu0 }
  0xf1   : > { %v11239_v57 = vpop.f32.mrf.mxu1 }
  0xf3   : > { %v9078_v60 = vpop.f32.mrf.mxu0  ;;  %v9124_v61 = vpop.f32.mrf.mxu1 }
  0xf4   : > { %v701_v62 = vadd.f32 %v9124_v61, %v9078_v60 }
  0xf5   : > { %v11241_v63 = vpop.f32.mrf.mxu0  ;;  %v11243_v2 = vpop.f32.mrf.mxu1 }
  0xf7   : > { %v9081_v3 = vpop.f32.mrf.mxu0  ;;  %v9127_v4 = vpop.f32.mrf.mxu1 }
  0xf8   : > { %v711_v5 = vadd.f32 %v9127_v4, %v9081_v3 }
  0xf9   : > { %v11245_v7 = vpop.f32.mrf.mxu0  ;;  %v11247_v8 = vpop.f32.mrf.mxu1 }
  0xfb   : > { %v9084_v15 = vpop.f32.mrf.mxu0  ;;  %v9130_v18 = vpop.f32.mrf.mxu1 }
  0xfc   : > { %v721_v19 = vadd.f32 %v9130_v18, %v9084_v15 }
  0xfd   : > { %v11249_v23 = vpop.f32.mrf.mxu0  ;;  %v11251_v24 = vpop.f32.mrf.mxu1 }
  0xff   : > { %v9087_v34 = vpop.f32.mrf.mxu0  ;;  %v9133_v35 = vpop.f32.mrf.mxu1 }
 0x100   : > { %v731_v46 = vadd.f32 %v9133_v35, %v9087_v34 }
 0x101   : > { %v11253_v47 = vpop.f32.mrf.mxu0  ;;  %v11255_v58 = vpop.f32.mrf.mxu1 }
 0x103   : > { %v9090_v59 = vpop.f32.mrf.mxu0  ;;  %v9136_v6 = vpop.f32.mrf.mxu1 }
 0x104   : > { %v741_v9 = vadd.f32 %v9136_v6, %v9090_v59 }
 0x105   : > { %v11257_v13 = vpop.f32.mrf.mxu0  ;;  %v11259_v16 = vpop.f32.mrf.mxu1 }
 0x107   : > { %v9093_v17 = vpop.f32.mrf.mxu0  ;;  %v9139_v22 = vpop.f32.mrf.mxu1 }
 0x108   : > { %v751_v26 = vadd.f32 %v9139_v22, %v9093_v17 }
 0x109   : > { %v11261_v41 = vpop.f32.mrf.mxu0  ;;  %v11263_v52 = vpop.f32.mrf.mxu1 }
 0x10b   : > { %v9096_v53 = vpop.f32.mrf.mxu0  ;;  %v9142_v0 = vpop.f32.mrf.mxu1 }
 0x10c   : > { %v761_v1 = vadd.f32 %v9142_v0, %v9096_v53 }
 0x10d   : > { %v11265_v10 = vpop.f32.mrf.mxu0  ;;  %v11267_v11 = vpop.f32.mrf.mxu1 }
 0x10f   : > { %v9099_v20 = vpop.f32.mrf.mxu0  ;;  %v9145_v29 = vpop.f32.mrf.mxu1 }
 0x110   : > { %v771_v21 = vadd.f32 %v9145_v29, %v9099_v20 }
 0x111   : > { %v11269_v25 = vpop.f32.mrf.mxu0  ;;  %v11271_v12 = vpop.f32.mrf.mxu1 }
 0x113   : > { %v9164_v14 = vpop.f32.mrf.mxu0  ;;  %v9210_v40 = vpop.f32.mrf.mxu1 }
 0x114   : > { %v1028_v27 = vadd.f32 %v9164_v14, %v681_v45 }
 0x115   : > { %v11273_v28 = vpop.f32.mrf.mxu0  ;;  %v11275_v30 = vpop.f32.mrf.mxu1 }
 0x116   : > { %v1304_v31 = vadd.f32 %v9210_v40, %v1028_v27 }
 0x117   : > { %v9167_v32 = vpop.f32.mrf.mxu0  ;;  %v9213_v33 = vpop.f32.mrf.mxu1 }
 0x118   : > { %v1030_v36 = vadd.f32 %v9167_v32, %v691_v55 }
 0x119   : > { %v11277_v37 = vpop.f32.mrf.mxu0  ;;  %v11279_v38 = vpop.f32.mrf.mxu1 }
 0x11a   : > { %v1306_v39 = vadd.f32 %v9213_v33, %v1030_v36 }
 0x11b   : > { %v9170_v42 = vpop.f32.mrf.mxu0  ;;  %v9216_v43 = vpop.f32.mrf.mxu1 }
 0x11c   : > { %v1032_v44 = vadd.f32 %v9170_v42, %v701_v62 }
 0x11d   : > { %v11281_v48 = vpop.f32.mrf.mxu0  ;;  %v11283_v51 = vpop.f32.mrf.mxu1 }
 0x11e   : > { %v1308_v45 = vadd.f32 %v9216_v43, %v1032_v44 }
 0x11f   : > { %v9173_v54 = vpop.f32.mrf.mxu0  ;;  %v9219_v60 = vpop.f32.mrf.mxu1 }
 0x120   : > { %v1034_v61 = vadd.f32 %v9173_v54, %v711_v5 }
 0x121   : > { %v11285_v3 = vpop.f32.mrf.mxu0  ;;  %v11287_v4 = vpop.f32.mrf.mxu1 }
 0x122   : > { %v1310_v55 = vadd.f32 %v9219_v60, %v1034_v61 }
 0x123   : > { %v9176_v15 = vpop.f32.mrf.mxu0  ;;  %v9222_v18 = vpop.f32.mrf.mxu1 }
 0x124   : > { %v1036_v34 = vadd.f32 %v9176_v15, %v721_v19 }
 0x125   : > { %v11289_v35 = vpop.f32.mrf.mxu0  ;;  %v11291_v59 = vpop.f32.mrf.mxu1 }
 0x126   : > { %v1312_v62 = vadd.f32 %v9222_v18, %v1036_v34 }
 0x127   : > { %v9179_v6 = vpop.f32.mrf.mxu0  ;;  %v9225_v17 = vpop.f32.mrf.mxu1 }
 0x128   : > { %v1038_v22 = vadd.f32 %v9179_v6, %v731_v46 }
 0x129   : > { %v11293_v53 = vpop.f32.mrf.mxu0  ;;  %v11295_v0 = vpop.f32.mrf.mxu1 }
 0x12a   : > { %v1314_v5 = vadd.f32 %v9225_v17, %v1038_v22 }
 0x12b   : > { %v9182_v20 = vpop.f32.mrf.mxu0  ;;  %v9228_v29 = vpop.f32.mrf.mxu1 }
 0x12c   : > { %v1040_v14 = vadd.f32 %v9182_v20, %v741_v9 }
 0x12d   : > { %v11297_v40 = vpop.f32.mrf.mxu0  ;;  %v11299_v27 = vpop.f32.mrf.mxu1 }
 0x12e   : > { %13368 = vst [vmem:[#allocation7_spill] sm:$0xff] %v11299_v27  ;;  %v1316_v19 = vadd.f32 %v9228_v29, %v1040_v14 }
 0x12f   : > { %v9185_v32 = vpop.f32.mrf.mxu0  ;;  %v9231_v33 = vpop.f32.mrf.mxu1 }
 0x130   : > { %v1042_v36 = vadd.f32 %v9185_v32, %v751_v26 }
 0x131   : > { %v11301_v42 = vpop.f32.mrf.mxu0  ;;  %v11303_v43 = vpop.f32.mrf.mxu1 }
 0x132   : > { %13369 = vst [vmem:[#allocation8_spill] sm:$0xff] %v11303_v43  ;;  %v1318_v46 = vadd.f32 %v9231_v33, %v1042_v36 }
 0x133   : > { %v9188_v44 = vpop.f32.mrf.mxu0  ;;  %v9234_v54 = vpop.f32.mrf.mxu1 }
 0x134   : > { %v1044_v60 = vadd.f32 %v9188_v44, %v761_v1 }
 0x135   : > { %v11305_v61 = vpop.f32.mrf.mxu0  ;;  %v11307_v15 = vpop.f32.mrf.mxu1 }
 0x136   : > { %13370 = vst [vmem:[#allocation9_spill] sm:$0xff] %v11307_v15  ;;  %v1320_v9 = vadd.f32 %v9234_v54, %v1044_v60 }
 0x137   : > { %v9191_v18 = vpop.f32.mrf.mxu0  ;;  %v9237_v34 = vpop.f32.mrf.mxu1 }
 0x138   : > { %v1046_v6 = vadd.f32 %v9191_v18, %v771_v21 }
 0x139   : > { %v11309_v17 = vpop.f32.mrf.mxu0  ;;  %v11311_v22 = vpop.f32.mrf.mxu1 }
 0x13a   : > { %13371 = vst [vmem:[#allocation10_spill] sm:$0xff] %v11311_v22  ;;  %v1322_v26 = vadd.f32 %v9237_v34, %v1046_v6 }
 0x13b   : > { %v9256_v20 = vpop.f32.mrf.mxu0  ;;  %v9302_v29 = vpop.f32.mrf.mxu1 }
 0x13c   : > { %v1577_v14 = vadd.f32 %v9256_v20, %v1304_v31 }
 0x13d   : > { %v11313_v32 = vpop.f32.mrf.mxu0  ;;  %v11315_v33 = vpop.f32.mrf.mxu1 }
 0x13e   : > { %13372 = vst [vmem:[#allocation11_spill] sm:$0xff] %v11315_v33  ;;  %v1850_v1 = vadd.f32 %v9302_v29, %v1577_v14 }
 0x13f   : > { %v9259_v36 = vpop.f32.mrf.mxu0  ;;  %v9305_v44 = vpop.f32.mrf.mxu1 }
 0x140   : > { %v1579_v15 = vadd.f32 %v9259_v36, %v1306_v39 }
 0x141   : > { %v11317_v54 = vpop.f32.mrf.mxu0  ;;  %v11319_v60 = vpop.f32.mrf.mxu1 }
 0x142   : > { %13373 = vst [vmem:[#allocation12_spill] sm:$0xff] %v11319_v60  ;;  %v1852_v21 = vadd.f32 %v9305_v44, %v1579_v15 }
 0x143   : > { %v9262_v18 = vpop.f32.mrf.mxu0  ;;  %v9308_v43 = vpop.f32.mrf.mxu1 }
 0x144   : > { %v1581_v22 = vadd.f32 %v9262_v18, %v1308_v45 }
 0x145   : > { %v11321_v34 = vpop.f32.mrf.mxu0  ;;  %v11323_v6 = vpop.f32.mrf.mxu1 }
 0x146   : > { %13374 = vst [vmem:[#allocation13_spill] sm:$0xff] %v11323_v6  ;;  %v1854_v31 = vadd.f32 %v9308_v43, %v1581_v22 }
 0x147   : > { %v9265_v20 = vpop.f32.mrf.mxu0  ;;  %v11325_v27 = vpop.f32.mrf.mxu1 }
 0x148   : > { %v11327_v29 = vadd.f32 %v9265_v20, %v1310_v55 }
 0x149   : > { %v11329_v14 = vpop.f32.mrf.mxu0  ;;  %v11331_v39 = vpop.f32.mrf.mxu1 }
 0x14a   : > { %13375 = vst [vmem:[#allocation14_spill] sm:$0xff] %v11331_v39 }
 0x14b   : > { %v9268_v36 = vpop.f32.mrf.mxu0  ;;  %v11333_v60 = vpop.f32.mrf.mxu1 }
 0x14c   : > { %13376 = vst [vmem:[#allocation15_spill] sm:$0xff] %v11333_v60  ;;  %v11335_v15 = vadd.f32 %v9268_v36, %v1312_v62 }
 0x14d   : > { %v11337_v45 = vpop.f32.mrf.mxu0  ;;  %v11339_v44 = vpop.f32.mrf.mxu1 }
 0x14e   : > { %13377 = vst [vmem:[#allocation16_spill] sm:$0xff] %v11335_v15  ;;  %13378 = vst [vmem:[#allocation17_spill] sm:$0xff] %v11339_v44 }
 0x14f   : > { %v9271_v18 = vpop.f32.mrf.mxu0  ;;  %v11341_v43 = vpop.f32.mrf.mxu1 }
 0x150   : > { %13379 = vst [vmem:[#allocation18_spill] sm:$0xff] %v11341_v43  ;;  %v11343_v22 = vadd.f32 %v9271_v18, %v1314_v5 }
 0x151   : > { %v11345_v55 = vpop.f32.mrf.mxu0  ;;  %v11347_v20 = vpop.f32.mrf.mxu1 }
 0x152   : > { %13380 = vst [vmem:[#allocation19_spill] sm:$0xff] %v11343_v22  ;;  %13381 = vst [vmem:[#allocation20_spill] sm:$0xff] %v11347_v20 }
 0x153   : > { %v9274_v6 = vpop.f32.mrf.mxu0  ;;  %v11349_v33 = vpop.f32.mrf.mxu1 }
 0x154   : > { %13382 = vst [vmem:[#allocation21_spill] sm:$0xff] %v11349_v33  ;;  %v11351_v39 = vadd.f32 %v9274_v6, %v1316_v19 }
 0x155   : > { %v11353_v62 = vpop.f32.mrf.mxu0  ;;  %v11355_v36 = vpop.f32.mrf.mxu1 }
 0x156   : > { %13383 = vst [vmem:[#allocation22_spill] sm:$0xff] %v11351_v39  ;;  %13384 = vst [vmem:[#allocation23_spill] sm:$0xff] %v11355_v36 }
 0x157   : > { %v9277_v60 = vpop.f32.mrf.mxu0  ;;  %v11357_v44 = vpop.f32.mrf.mxu1 }
 0x158   : > { %13385 = vst [vmem:[#allocation24_spill] sm:$0xff] %v11357_v44  ;;  %v11359_v15 = vadd.f32 %v9277_v60, %v1318_v46 }
 0x159   : > { %v11361_v5 = vpop.f32.mrf.mxu0  ;;  %v11363_v18 = vpop.f32.mrf.mxu1 }
 0x15a   : > { %13386 = vst [vmem:[#allocation25_spill] sm:$0xff] %v11359_v15  ;;  %13387 = vst [vmem:[#allocation26_spill] sm:$0xff] %v11363_v18 }
 0x15b   : > { %v9280_v43 = vpop.f32.mrf.mxu0  ;;  %v11365_v20 = vpop.f32.mrf.mxu1 }
 0x15c   : > { %13388 = vst [vmem:[#allocation27_spill] sm:$0xff] %v11365_v20  ;;  %v11367_v22 = vadd.f32 %v9280_v43, %v1320_v9 }
 0x15d   : > { %v11369_v19 = vpop.f32.mrf.mxu0  ;;  %v11371_v6 = vpop.f32.mrf.mxu1 }
 0x15e   : > { %13389 = vst [vmem:[#allocation28_spill] sm:$0xff] %v11367_v22  ;;  %13390 = vst [vmem:[#allocation29_spill] sm:$0xff] %v11371_v6 }
 0x15f   : > { %v9283_v33 = vpop.f32.mrf.mxu0  ;;  %v11373_v36 = vpop.f32.mrf.mxu1 }
 0x160   : > { %13391 = vst [vmem:[#allocation30_spill] sm:$0xff] %v11373_v36  ;;  %v11375_v39 = vadd.f32 %v9283_v33, %v1322_v26 }
 0x161   : > { %v11377_v46 = vpop.f32.mrf.mxu0  ;;  %v11379_v60 = vpop.f32.mrf.mxu1 }
 0x162   : > { %13392 = vst [vmem:[#allocation31_spill] sm:$0xff] %v11375_v39  ;;  %13393 = vst [vmem:[#allocation32_spill] sm:$0xff] %v11379_v60 }
 0x163   : > { %v9348_v44 = vpop.f32.mrf.mxu0  ;;  %v11381_v18 = vpop.f32.mrf.mxu1 }
 0x164   : > { %13394 = vst [vmem:[#allocation33_spill] sm:$0xff] %v11381_v18  ;;  %v11383_v15 = vadd.f32 %v9348_v44, %v1850_v1 }
 0x165   : > { %v11385_v9 = vpop.f32.mrf.mxu0  ;;  %v11387_v43 = vpop.f32.mrf.mxu1 }
 0x166   : > { %13395 = vst [vmem:[#allocation34_spill] sm:$0xff] %v11383_v15  ;;  %13396 = vst [vmem:[#allocation35_spill] sm:$0xff] %v11387_v43 }
 0x167   : > { %v9351_v20 = vpop.f32.mrf.mxu0  ;;  %v11391_v22 = vpop.f32.mrf.mxu1 }
 0x168   : > { %v11389_v6 = vadd.f32 %v9351_v20, %v1852_v21  ;;  %13398 = vst [vmem:[#allocation37_spill] sm:$0xff] %v11391_v22 }
 0x169   : > { %v11393_v26 = vpop.f32.mrf.mxu0  ;;  %v11397_v39 = vpop.f32.mrf.mxu1 }
 0x16a   : > { %13397 = vst [vmem:[#allocation36_spill] sm:$0xff] %v11389_v6  ;;  %13399 = vst [vmem:[#allocation38_spill] sm:$0xff] %v11393_v26 }
 0x16b   : > { %v9354_v33 = vpop.f32.mrf.mxu0  ;;  %13401 = vst [vmem:[#allocation40_spill] sm:$0xff] %v11397_v39  ;;  %v11403_v44 = vpop.f32.mrf.mxu1 }
 0x16c   : > { %v11395_v36 = vadd.f32 %v9354_v33, %v1854_v31  ;;  %13403 = vst [vmem:[#allocation42_spill] sm:$0xff] %v11403_v44 }
 0x16d   : > { %v11399_v60 = vpop.f32.mrf.mxu0  ;;  %v11409_v21 = vpop.f32.mrf.mxu1 }
 0x16e   : > { %13400 = vst [vmem:[#allocation39_spill] sm:$0xff] %v11395_v36  ;;  %13402 = vst [vmem:[#allocation41_spill] sm:$0xff] %v11399_v60 }
 0x16f   : > { %v11401_v1 = vpop.f32.mrf.mxu0  ;;  %13404 = vst [vmem:[#allocation43_spill] sm:$0xff] %v11409_v21  ;;  %v11415_v31 = vpop.f32.mrf.mxu1 }
 0x171   : > { %v11405_v18 = vpop.f32.mrf.mxu0  ;;  %v11421_v39 = vpop.f32.mrf.mxu1 }
 0x173   : > { %v11407_v43 = vpop.f32.mrf.mxu0  ;;  %v11427_v6 = vpop.f32.mrf.mxu1 }
 0x174   : > { %13410 = vst [vmem:[#allocation49_spill] sm:$0xff] %v11427_v6 }
 0x175   : > { %v11411_v20 = vpop.f32.mrf.mxu0  ;;  %v11433_v15 = vpop.f32.mrf.mxu1 }
 0x176   : > { %13413 = vst [vmem:[#allocation52_spill] sm:$0xff] %v11433_v15 }
 0x177   : > { %v11413_v22 = vpop.f32.mrf.mxu0  ;;  %v11448_v6 = vpop.f32.mrf.mxu1 }
 0x178   : > { %13405 = vst [vmem:[#allocation44_spill] sm:$0xff] %v11413_v22 }
 0x179   : > { %v11417_v33 = vpop.f32.mrf.mxu0 }
 0x17a   : > { %13406 = vst [vmem:[#allocation45_spill] sm:$0xff] %v11417_v33  ;;  %v706_v33 = vadd.f32 %v11247_v8, %v11245_v7  ;;  %v746_v8 = vadd.f32 %v11263_v52, %v11261_v41 }
 0x17b   : > { %v11419_v36 = vpop.f32.mrf.mxu0 }
 0x17c   : > { %13407 = vst [vmem:[#allocation46_spill] sm:$0xff] %v11419_v36  ;;  %v676_v36 = vadd.f32 %v11234_v50, %v11232_v49  ;;  %v3019_v49 = vld [vmem:[%s13306_s3 + $0x18] sm:$0xff]  ;;  %v3018_v50 = vld [vmem:[%s13306_s3 + $0x10] sm:$0xff] }
 0x17d   : > { %v11423_v60 = vpop.f32.mrf.mxu0  ;;  %10044 = vmatprep.subr.mxu1 %v3019_v49  ;;  %9468 = vmatprep.subr.mxu0 %v3019_v49 }
 0x17e   : > { %13408 = vst [vmem:[#allocation47_spill] sm:$0xff] %v11423_v60  ;;  %v686_v60 = vadd.f32 %v11239_v57, %v11237_v56  ;;  %v716_v56 = vadd.f32 %v11251_v24, %v11249_v23  ;;  %v726_v57 = vadd.f32 %v11255_v58, %v11253_v47  ;;  %10048 = vmatpush3.msra.mxu1 %v3019_v49  ;;  %v3017_v23 = vld [vmem:[%s13306_s3 + $0x8] sm:$0xff] }
 0x17f   : > { %v11425_v44 = vpop.f32.mrf.mxu0  ;;  %9469 = vmatpush3.msra.mxu0 %v3019_v49  ;;  %v766_v24 = vadd.f32 %v11271_v12, %v11269_v25  ;;  %10045 = vmatprep.subr.mxu1 %v3018_v50 }
 0x180   : > { %13409 = vst [vmem:[#allocation48_spill] sm:$0xff] %v11425_v44  ;;  %v1029_v15 = vadd.f32 %v11277_v37, %v686_v60  ;;  %v1035_v58 = vadd.f32 %v11289_v35, %v716_v56  ;;  %9470 = vmatprep.subr.mxu0 %v3018_v50  ;;  %v1037_v52 = vadd.f32 %v11293_v53, %v726_v57  ;;  %v13417_v60 = vld [vmem:[#allocation8_spill] sm:$0xff]  ;;  %v13422_v56 = vld [vmem:[#allocation15_spill] sm:$0xff] }
 0x181   : > { %v11429_v26 = vpop.f32.mrf.mxu0  ;;  %10049 = vmatpush3.msra.mxu1 %v3018_v50  ;;  %9471 = vmatpush3.msra.mxu0 %v3018_v50  ;;  %v1856_v35 = vadd.f32 %v11325_v27, %v11327_v29  ;;  %v13418_v29 = vld [vmem:[#allocation9_spill] sm:$0xff]  ;;  %v13421_v50 = vld [vmem:[#allocation16_spill] sm:$0xff] }
 0x182   : > { %13411 = vst [vmem:[#allocation50_spill] sm:$0xff] %v11429_v26  ;;  %v696_v26 = vadd.f32 %v11243_v2, %v11241_v63  ;;  %v736_v2 = vadd.f32 %v11259_v16, %v11257_v13  ;;  %v11480_v13 = vpop.f32.mrf.mxu1  ;;  %v1305_v41 = vadd.f32 %v11279_v38, %v1029_v15  ;;  %10046 = vmatprep.subr.mxu1 %v3017_v23 }
 0x183   : > { %v11431_v21 = vpop.f32.mrf.mxu0  ;;  %9472 = vmatprep.subr.mxu0 %v3017_v23  ;;  %v1045_v38 = vadd.f32 %v11309_v17, %v766_v24  ;;  %10050 = vmatpush3.msra.mxu1 %v3017_v23  ;;  %v1858_v57 = vadd.f32 %v13422_v56, %v13421_v50  ;;  %v13442_v56 = vld [vmem:[#allocation35_spill] sm:$0xff] }
 0x184   : > { %13412 = vst [vmem:[#allocation51_spill] sm:$0xff] %v11431_v21  ;;  %v1033_v21 = vadd.f32 %v11285_v3, %v706_v33  ;;  %v1031_v63 = vadd.f32 %v11281_v48, %v696_v26  ;;  %v1039_v25 = vadd.f32 %v11297_v40, %v736_v2  ;;  %v1041_v48 = vadd.f32 %v11301_v42, %v746_v8  ;;  %v11499_v53 = vpop.f32.mrf.mxu1  ;;  %v13423_v2 = vld [vmem:[#allocation12_spill] sm:$0xff] }
 0x185   : > { %v11435_v22 = vpop.f32.mrf.mxu0  ;;  %9473 = vmatpush3.msra.mxu0 %v3017_v23  ;;  %v1313_v40 = vadd.f32 %v11295_v0, %v1037_v52  ;;  %v1578_v42 = vadd.f32 %v11317_v54, %v1305_v41  ;;  %v13426_v52 = vld [vmem:[#allocation19_spill] sm:$0xff] }
 0x186   : > { %13414 = vst [vmem:[#allocation53_spill] sm:$0xff] %v11435_v22  ;;  %v1027_v22 = vadd.f32 %v11273_v28, %v676_v36  ;;  %v756_v28 = vadd.f32 %v11267_v11, %v11265_v10  ;;  %v1309_v47 = vadd.f32 %v11287_v4, %v1033_v21  ;;  %v1307_v11 = vadd.f32 %v11283_v51, %v1031_v63  ;;  %v13419_v21 = vld [vmem:[#allocation10_spill] sm:$0xff] }
 0x187   : > { %v11443_v44 = vpop.f32.mrf.mxu0  ;;  %v1311_v4 = vadd.f32 %v11291_v59, %v1035_v58  ;;  %v1317_v27 = vadd.f32 %v13417_v60, %v1041_v48  ;;  %v1321_v0 = vadd.f32 %v13419_v21, %v1045_v38  ;;  %v1586_v54 = vadd.f32 %v11345_v55, %v1313_v40  ;;  %v13425_v58 = vld [vmem:[#allocation17_spill] sm:$0xff] }
 0x188   : > { %v1303_v16 = vadd.f32 %v11275_v30, %v1027_v22  ;;  %v1582_v12 = vadd.f32 %v11329_v14, %v1309_v47  ;;  %v1043_v30 = vadd.f32 %v11305_v61, %v756_v28  ;;  %v1580_v61 = vadd.f32 %v11321_v34, %v1307_v11  ;;  %v13415_v14 = vld [vmem:[#allocation7_spill] sm:$0xff]  ;;  %v13416_v22 = vld [vmem:[#allocation14_spill] sm:$0xff]  ;;  %v13424_v28 = vld [vmem:[#allocation13_spill] sm:$0xff] }
 0x189   : > { %v11452_v7 = vpop.f32.mrf.mxu0  ;;  %v1315_v15 = vadd.f32 %v13415_v14, %v1039_v25  ;;  %v1584_v59 = vadd.f32 %v11337_v45, %v1311_v4  ;;  %v13420_v34 = vld [vmem:[#allocation11_spill] sm:$0xff]  ;;  %v1851_v8 = vadd.f32 %v13423_v2, %v1578_v42  ;;  %v1590_v24 = vadd.f32 %v11361_v5, %v1317_v27  ;;  %v13427_v11 = vld [vmem:[#allocation18_spill] sm:$0xff]  ;;  %v13430_v38 = vld [vmem:[#allocation21_spill] sm:$0xff] }
 0x18a   : > { %v1576_v51 = vadd.f32 %v11313_v32, %v1303_v16  ;;  %v1855_v36 = vadd.f32 %v13416_v22, %v1582_v12  ;;  %v2132_v32 = vadd.f32 %v11401_v1, %v1856_v35  ;;  %v1319_v26 = vadd.f32 %v13418_v29, %v1043_v30  ;;  %v11521_v1 = vpop.f32.mrf.mxu1  ;;  %v13428_v12 = vld [vmem:[#allocation20_spill] sm:$0xff]  ;;  %v13429_v30 = vld [vmem:[#allocation22_spill] sm:$0xff]  ;;  %v13437_v60 = vld [vmem:[#allocation29_spill] sm:$0xff] }
 0x18b   : > { %v11471_v37 = vpop.f32.mrf.mxu0  ;;  %v1588_v63 = vadd.f32 %v11353_v62, %v1315_v15  ;;  %v1853_v23 = vadd.f32 %v13424_v28, %v1580_v61  ;;  %v1857_v16 = vadd.f32 %v13425_v58, %v1584_v59  ;;  %v1594_v41 = vadd.f32 %v11377_v46, %v1321_v0  ;;  %v13433_v61 = vld [vmem:[#allocation24_spill] sm:$0xff]  ;;  %v13434_v15 = vld [vmem:[#allocation26_spill] sm:$0xff]  ;;  %v13436_v59 = vld [vmem:[#allocation27_spill] sm:$0xff] }
 0x18c   : > { %v1849_v49 = vadd.f32 %v13420_v34, %v1576_v51  ;;  %v2131_v45 = vadd.f32 %v11405_v18, %v1855_v36  ;;  %v1592_v55 = vadd.f32 %v11369_v19, %v1319_v26  ;;  %v2405_v62 = vadd.f32 %v11415_v31, %v2132_v32  ;;  %v13431_v51 = vld [vmem:[#allocation23_spill] sm:$0xff]  ;;  %v9415_v31 = vpop.f32.mrf.mxu1  ;;  %v13435_v36 = vld [vmem:[#allocation28_spill] sm:$0xff]  ;;  %v13439_v26 = vld [vmem:[#allocation49_spill] sm:$0xff] }
 0x18d   : > { %v11485_v10 = vpop.f32.mrf.mxu0  ;;  %v2134_v18 = vadd.f32 %v11407_v43, %v1858_v57  ;;  %v1860_v25 = vadd.f32 %v13427_v11, %v13426_v52  ;;  %v1859_v48 = vadd.f32 %v13428_v12, %v1586_v54  ;;  %v1862_v5 = vadd.f32 %v13430_v38, %v13429_v30  ;;  %v13432_v43 = vld [vmem:[#allocation25_spill] sm:$0xff]  ;;  %v13438_v29 = vld [vmem:[#allocation32_spill] sm:$0xff]  ;;  %v13440_v34 = vld [vmem:[#allocation34_spill] sm:$0xff] }
 0x18e   : > { %v2125_v19 = vadd.f32 %v11385_v9, %v1849_v49  ;;  %v1861_v35 = vadd.f32 %v13431_v51, %v1588_v63  ;;  %v2404_v40 = vadd.f32 %v11421_v39, %v2131_v45  ;;  %v2133_v46 = vadd.f32 %v11411_v20, %v1857_v16  ;;  %v11551_v9 = vld [vmem:[%s13307_s4] ss:$0 sm:$0xff]  ;;  %v13443_v63 = vld [vmem:[#allocation44_spill] sm:$0xff]  ;;  %v2369_v16 = vpop.f32.mrf.mxu1  ;;  %v13446_v52 = vld [vmem:[#allocation38_spill] sm:$0xff] }
 0x18f   : > { %v11493_v3 = vpop.f32.mrf.mxu0  ;;  %v1864_v14 = vadd.f32 %v13433_v61, %v13432_v43  ;;  %v1863_v22 = vadd.f32 %v13434_v15, %v1590_v24  ;;  %v1866_v32 = vadd.f32 %v13436_v59, %v13435_v36  ;;  %v1865_v27 = vadd.f32 %v13437_v60, %v1592_v55  ;;  %v13441_v49 = vld [vmem:[#allocation33_spill] sm:$0xff]  ;;  %v13445_v55 = vld [vmem:[#allocation52_spill] sm:$0xff] }
 0x190   : > { %v11554_v20 = vadd.f32 %v13438_v29, %v1594_v41  ;;  %v2407_v21 = vadd.f32 %v13439_v26, %v2134_v18  ;;  %v2399_v50 = vadd.f32 %v13441_v49, %v13440_v34  ;;  %v2398_v57 = vadd.f32 %v13442_v56, %v2125_v19  ;;  %v13444_v2 = vld [vmem:[#allocation45_spill] sm:$0xff]  ;;  %v13447_v12 = vld [vmem:[#allocation36_spill] sm:$0xff]  ;;  %v11575_v60 = vpop.f32.mrf.mxu1 }
 0x191   : > { %v11504_v17 = vpop.f32.mrf.mxu0  ;;  %v2136_v45 = vadd.f32 %v13443_v63, %v1860_v25  ;;  %v2135_v28 = vadd.f32 %v13444_v2, %v1859_v48  ;;  %v2406_v58 = vadd.f32 %v13445_v55, %v2133_v46  ;;  %v2127_v11 = vadd.f32 %v13446_v52, %v1851_v8  ;;  %v13448_v30 = vld [vmem:[#allocation37_spill] sm:$0xff]  ;;  %v13451_v8 = vld [vmem:[#allocation47_spill] sm:$0xff]  ;;  %v13452_v29 = vld [vmem:[#allocation40_spill] sm:$0xff] }
 0x192   : > { %v2401_v38 = vadd.f32 %v13448_v30, %v13447_v12  ;;  %v2672_v19 = vadd.f32 %v11471_v37, %v2399_v50  ;;  %v2137_v36 = vadd.f32 %v13451_v8, %v1861_v35  ;;  %v2379_v55 = vpop.f32.mrf.mxu1  ;;  %v13459_v12 = vld [vmem:[#allocation51_spill] sm:$0xff] }
 0x193   : > { %v11514_v33 = vpop.f32.mrf.mxu0  ;;  %v2409_v61 = vadd.f32 %v11448_v6, %v2136_v45  ;;  %v2408_v15 = vadd.f32 %v11480_v13, %v2135_v28  ;;  %v2400_v26 = vadd.f32 %v13452_v29, %v2127_v11  ;;  %v13457_v28 = vld [vmem:[#allocation50_spill] sm:$0xff] }
 0x194   : > { %v2699_v49 = vadd.f32 %v11551_v9, %v2672_v19  ;;  %v2410_v63 = vadd.f32 %v11521_v1, %v2137_v36  ;;  %v2142_v1 = vadd.f32 %v13459_v12, %v1866_v32 }
 0x195   : > { %v11527_v47 = vpop.f32.mrf.mxu0  ;;  %v2673_v19 = vadd.f32 %v11504_v17, %v2400_v26  ;;  %v13461_v26 = vld [vmem:[#allocation30_spill] sm:$0xff] }
 0x196   : > { %v7982_v30 = vmul.f32 -1.442695, %v2699_v49 }
 0x197   : > { %v9449_v4 = vpop.f32.mrf.mxu0  ;;  %v2700_v36 = vadd.f32 %v11551_v9, %v2673_v19 }
 0x198   : > { %v2678_v42 = vadd.f32 %v9449_v4, %v2405_v62  ;;  %v13449_v4 = vld [vmem:[#allocation46_spill] sm:$0xff] }
 0x199   : > { %v2602_v39 = vpop.f32.mrf.mxu0  ;;  %v2138_v51 = vadd.f32 %v13449_v4, %v1862_v5  ;;  %v2671_v5 = vadd.f32 %v11485_v10, %v2398_v57  ;;  %v13456_v10 = vld [vmem:[#allocation43_spill] sm:$0xff] }
 0x19a   : > { %v2705_v0 = vadd.f32 %v11551_v9, %v2678_v42  ;;  %v2677_v54 = vadd.f32 %v2602_v39, %v2404_v40  ;;  %v13450_v42 = vld [vmem:[#allocation41_spill] sm:$0xff] }
 0x19b   : > { %v9452_v24 = vpop.f32.mrf.mxu0  ;;  %v2129_v43 = vadd.f32 %v13450_v42, %v1853_v23  ;;  %v2411_v35 = vadd.f32 %v11499_v53, %v2138_v51 }
 0x19c   : > { %v7988_v41 = vmul.f32 -1.442695, %v2705_v0  ;;  %v2704_v62 = vadd.f32 %v11551_v9, %v2677_v54  ;;  %v2680_v18 = vadd.f32 %v9452_v24, %v2407_v21  ;;  %v13453_v21 = vld [vmem:[#allocation39_spill] sm:$0xff]  ;;  %v13454_v0 = vld [vmem:[#allocation42_spill] sm:$0xff]  ;;  %v13455_v54 = vld [vmem:[#allocation48_spill] sm:$0xff]  ;;  %v2139_v24 = vadd.f32 %v13457_v28, %v1863_v22 }
 0x19d   : > { %v2612_v25 = vpop.f32.mrf.mxu0  ;;  %v2403_v23 = vadd.f32 %v13454_v0, %v13453_v21  ;;  %v2140_v6 = vadd.f32 %v13455_v54, %v1864_v14  ;;  %v2402_v57 = vadd.f32 %v13456_v10, %v2129_v43  ;;  %v2698_v14 = vadd.f32 %v11551_v9, %v2671_v5 }
 0x19e   : > { %10130 = vpow2.f32 %v7988_v41  ;;  %v7987_v48 = vmul.f32 -1.442695, %v2704_v62  ;;  %v2707_v40 = vadd.f32 %v11551_v9, %v2680_v18  ;;  %v2679_v46 = vadd.f32 %v2612_v25, %v2406_v58  ;;  %v13458_v62 = vld [vmem:[#allocation53_spill] sm:$0xff] }
 0x19f   : > { %v9455_v59 = vpop.f32.mrf.mxu0  ;;  %v2413_v41 = vadd.f32 %v9415_v31, %v2140_v6  ;;  %v2141_v18 = vadd.f32 %v13458_v62, %v1865_v27  ;;  %v2674_v22 = vadd.f32 %v11493_v3, %v2401_v38  ;;  %v9421_v31 = vpop.f32.mrf.mxu1  ;;  %v2143_v3 = vadd.f32 %v11452_v7, %v11554_v20  ;;  %v13460_v20 = vld [vmem:[#allocation31_spill] sm:$0xff] }
 0x1a0   : > { %10132 = vpow2.f32 %v7987_v48  ;;  %v7990_v37 = vmul.f32 -1.442695, %v2707_v40  ;;  %v2706_v39 = vadd.f32 %v11551_v9, %v2679_v46  ;;  %v2682_v34 = vadd.f32 %v9455_v59, %v2409_v61 }
 0x1a1   : > { %v2622_v13 = vpop.f32.mrf.mxu0  ;;  %v2412_v40 = vadd.f32 %v2369_v16, %v2139_v24  ;;  %v7981_v46 = vmul.f32 -1.442695, %v2698_v14  ;;  %v2414_v43 = vadd.f32 %v2379_v55, %v2141_v18  ;;  %v2675_v61 = vadd.f32 %v11527_v47, %v2402_v57  ;;  %v2389_v47 = vpop.f32.mrf.mxu1 }
 0x1a2   : > { %v7989_v50 = vmul.f32 -1.442695, %v2706_v39  ;;  %v2681_v56 = vadd.f32 %v2622_v13, %v2408_v15  ;;  %10134 = vpow2.f32 %v7990_v37  ;;  %v2709_v45 = vadd.f32 %v11551_v9, %v2682_v34 }
 0x1a3   : > { %v9458_v2 = vpop.f32.mrf.mxu0  ;;  %v2701_v16 = vadd.f32 %v11551_v9, %v2674_v22  ;;  %v2676_v37 = vadd.f32 %v11514_v33, %v2403_v23  ;;  %v1868_v21 = vadd.f32 %v13461_v26, %v13460_v20  ;;  %v2415_v0 = vadd.f32 %v11575_v60, %v2142_v1  ;;  %v11662_v26 = vld [vmem:[%s10517_s18 + $0x79] sm:$0xff] }
 0x1a4   : > { %v2708_v58 = vadd.f32 %v11551_v9, %v2681_v56  ;;  %v2684_v53 = vadd.f32 %v9458_v2, %v2411_v35  ;;  %10136 = vpow2.f32 %v7989_v50  ;;  %v7992_v52 = vmul.f32 -1.442695, %v2709_v45 }
 0x1a5   : > { %v2632_v11 = vpop.f32.mrf.mxu0  ;;  %v2702_v54 = vadd.f32 %v11551_v9, %v2675_v61  ;;  %v2144_v50 = vadd.f32 %v11443_v44, %v1868_v21  ;;  %v2416_v33 = vadd.f32 %v2389_v47, %v2143_v3  ;;  %v7983_v23 = vmul.f32 -1.442695, %v2700_v36 }
 0x1a6   : > { %v7991_v4 = vmul.f32 -1.442695, %v2708_v58  ;;  %v2711_v51 = vadd.f32 %v11551_v9, %v2684_v53  ;;  %10138 = vpow2.f32 %v7992_v52  ;;  %v2683_v25 = vadd.f32 %v2632_v11, %v2410_v63  ;;  %v3016_v58 = vld [vmem:[%s13306_s3] sm:$0xff] }
 0x1a7   : > { %v9461_v48 = vpop.f32.mrf.mxu0  ;;  %v7984_v57 = vmul.f32 -1.442695, %v2701_v16  ;;  %v2703_v63 = vadd.f32 %v11551_v9, %v2676_v37  ;;  %v7985_v28 = vmul.f32 -1.442695, %v2702_v54  ;;  %10047 = vmatprep.subr.mxu1 %v3016_v58  ;;  %9474 = vmatprep.subr.mxu0 %v3016_v58 }
 0x1a8   : > { %v7994_v27 = vmul.f32 -1.442695, %v2711_v51  ;;  %v2686_v42 = vadd.f32 %v9461_v48, %v2413_v41  ;;  %10140 = vpow2.f32 %v7991_v4  ;;  %v2710_v32 = vadd.f32 %v11551_v9, %v2683_v25  ;;  %10051 = vmatpush3.msra.mxu1 %v3016_v58  ;;  %9475 = vmatpush3.msra.mxu0 %v3016_v58 }
 0x1a9   : > { %v2642_v15 = vpop.f32.mrf.mxu0  ;;  %10142 = vpow2.f32 %v7982_v30  ;;  %v2417_v41 = vadd.f32 %v9421_v31, %v2144_v50  ;;  %v7986_v62 = vmul.f32 -1.442695, %v2703_v63  ;;  %v10356_v30 = vmov 0.0  }
 0x1aa   : > { %v2713_v17 = vadd.f32 %v11551_v9, %v2686_v42  ;;  %v2685_v38 = vadd.f32 %v2642_v15, %v2412_v40  ;;  %10144 = vpow2.f32 %v7994_v27  ;;  %v7993_v59 = vmul.f32 -1.442695, %v2710_v32  ;;  %2862 = vst.msk [vmem:[#allocation2 + $0x48] sm:$0x1] %vm2858_vm1, %v10356_v30  ;;  %2859 = vst.msk [vmem:[#allocation2] sm:$0x1] %vm2858_vm1, %v10356_v30 }
 0x1ab   : > { %v10131_v8 = vpop.eup %10130  ;;  %v9464_v5 = vpop.f32.mrf.mxu0  ;;  %10146 = vpow2.f32 %v7981_v46  ;;  %2860 = vst.msk [vmem:[#allocation2 + $0x18] sm:$0x1] %vm2858_vm1, %v10356_v30  ;;  %2861 = vst.msk [vmem:[#allocation2 + $0x30] sm:$0x1] %vm2858_vm1, %v10356_v30 }
 0x1ac   : > { %v7996_v39 = vmul.f32 -1.442695, %v2713_v17  ;;  %v2712_v29 = vadd.f32 %v11551_v9, %v2685_v38  ;;  %10148 = vpow2.f32 %v7993_v59  ;;  %v2785_v34 = vadd.f32 1.0, %v10131_v8  ;;  %2863 = vst.msk [vmem:[#allocation2 + $0x60] sm:$0x1] %vm2858_vm1, %v10356_v30  ;;  %v11641_v17 = vld [vmem:[%s10517_s18 + $0x61] sm:$0xff] }
 0x1ad   : > { %v10133_v7 = vpop.eup %10132  ;;  %v2652_v6 = vpop.f32.mrf.mxu0  ;;  %v2688_v60 = vadd.f32 %v9464_v5, %v2415_v0  ;;  %2864 = vst.msk [vmem:[#allocation2 + $0x78] sm:$0x1] %vm2858_vm1, %v10356_v30  ;;  %2865 = vst.msk [vmem:[#allocation2 + $0x90] sm:$0x1] %vm2858_vm1, %v10356_v30  ;;  %v11651_v59 = vld [vmem:[%s13305_s2 + $0x18] sm:$0xff] }
 0x1ae   : > { %v2784_v13 = vadd.f32 1.0, %v10133_v7  ;;  %v7995_v35 = vmul.f32 -1.442695, %v2712_v29  ;;  %v2687_v49 = vadd.f32 %v2652_v6, %v2414_v43  ;;  %10150 = vpow2.f32 %v7996_v39  ;;  %2866 = vst.msk [vmem:[#allocation2 + $0xa8] sm:$0x1] %vm2858_vm1, %v10356_v30  ;;  %9500 = vmatprep.subr.mxu1 %v11651_v59  ;;  %v11657_v39 = vld [vmem:[%s10517_s18 + $0x69] sm:$0xff] }
 0x1af   : > { %v9467_v56 = vpop.f32.mrf.mxu0  ;;  %v10135_v10 = vpop.eup %10134  ;;  %v2715_v18 = vadd.f32 %v11551_v9, %v2688_v60  ;;  %2867 = vst.msk [vmem:[#allocation2 + $0xc0] sm:$0x1] %vm2858_vm1, %v10356_v30  ;;  %2868 = vst.msk [vmem:[#allocation2 + $0xd8] sm:$0x1] %vm2858_vm1, %v10356_v30 }
 0x1b0   : > { %10152 = vrcp.f32 %v2784_v13  ;;  %v2714_v24 = vadd.f32 %v11551_v9, %v2687_v49  ;;  %v2787_v44 = vadd.f32 1.0, %v10135_v10  ;;  %v2690_v12 = vadd.f32 %v9467_v56, %v2417_v41  ;;  %2869 = vst.msk [vmem:[#allocation2 + $0x11] sm:$0x1] %vm2858_vm1, %v10356_v30  ;;  %2870 = vst.msk [vmem:[#allocation2 + $0x29] sm:$0x1] %vm2858_vm1, %v10356_v30  ;;  %v11673_v49 = vld [vmem:[%s10517_s18 + $0x81] sm:$0xff] }
 0x1b1   : > { %10154 = vpow2.f32 %v7995_v35  ;;  %v2662_v45 = vpop.f32.mrf.mxu0  ;;  %v10137_v2 = vpop.eup %10136  ;;  %2871 = vst.msk [vmem:[#allocation2 + $0x41] sm:$0x1] %vm2858_vm1, %v10356_v30  ;;  %2872 = vst.msk [vmem:[#allocation2 + $0x59] sm:$0x1] %vm2858_vm1, %v10356_v30  ;;  %v7998_v25 = vmul.f32 -1.442695, %v2715_v18 }
 0x1b2   : > { %10156 = vrcp.f32 %v2785_v34  ;;  %v2689_v55 = vadd.f32 %v2662_v45, %v2416_v33  ;;  %v2786_v14 = vadd.f32 1.0, %v10137_v2  ;;  %v7997_v11 = vmul.f32 -1.442695, %v2714_v24  ;;  %2873 = vst.msk [vmem:[#allocation2 + $0x71] sm:$0x1] %vm2858_vm1, %v10356_v30  ;;  %v11678_v33 = vld [vmem:[%s10517_s18 + $0x91] sm:$0xff] }
 0x1b3   : > { %10158 = vpow2.f32 %v7983_v23  ;;  %v10139_v53 = vpop.eup %10138  ;;  %2874 = vst.msk [vmem:[#allocation2 + $0x89] sm:$0x1] %vm2858_vm1, %v10356_v30  ;;  %2875 = vst.msk [vmem:[#allocation2 + $0xa1] sm:$0x1] %vm2858_vm1, %v10356_v30  ;;  %v2717_v31 = vadd.f32 %v11551_v9, %v2690_v12  ;;  %v11689_v2 = vld [vmem:[%s10517_s18 + $0x99] sm:$0xff]  ;;  %v11694_v24 = vld [vmem:[%s10517_s18 + $0xa9] sm:$0xff] }
 0x1b4   : > { %10160 = vpow2.f32 %v7984_v57  ;;  %v2716_v1 = vadd.f32 %v11551_v9, %v2689_v55  ;;  %2876 = vst.msk [vmem:[#allocation2 + $0xb9] sm:$0x1] %vm2858_vm1, %v10356_v30  ;;  %2877 = vst.msk [vmem:[#allocation2 + $0xd1] sm:$0x1] %vm2858_vm1, %v10356_v30  ;;  %v2789_v51 = vadd.f32 1.0, %v10139_v53  ;;  %v11705_v18 = vld [vmem:[%s10517_s18 + $0xb1] sm:$0xff] }
 0x1b5   : > { %10162 = vrcp.f32 %v2786_v14  ;;  %v10141_v52 = vpop.eup %10140  ;;  %2878 = vst.msk [vmem:[#allocation2 + $0xe9] sm:$0x1] %vm2858_vm1, %v10356_v30  ;;  %v8000_v3 = vmul.f32 -1.442695, %v2717_v31  ;;  %v10253_v31 = vld [vmem:[%s10517_s18 + $0x21] sm:$0xff] }
 0x1b6   : > { %10164 = vpow2.f32 %v7985_v28  ;;  %v10143_v4 = vpop.eup %10142  ;;  %v2788_v22 = vadd.f32 1.0, %v10141_v52  ;;  %v7999_v46 = vmul.f32 -1.442695, %v2716_v1 }
 0x1b7   : > { %10166 = vrcp.f32 %v2787_v44  ;;  %v10145_v19 = vpop.eup %10144  ;;  %v2779_v37 = vadd.f32 1.0, %v10143_v4 }
 0x1b8   : > { %10168 = vpow2.f32 %v7986_v62  ;;  %v10147_v48 = vpop.eup %10146  ;;  %v2791_v27 = vadd.f32 1.0, %v10145_v19  ;;  %v10252_v19 = vld [vmem:[%s10517_s18 + $0x19] sm:$0xff] }
 0x1b9   : > { %10170 = vrcp.f32 %v2788_v22  ;;  %v10149_v40 = vpop.eup %10148  ;;  %v2778_v61 = vadd.f32 1.0, %v10147_v48 }
 0x1ba   : > { %10172 = vpow2.f32 %v7997_v11  ;;  %v2790_v42 = vadd.f32 1.0, %v10149_v40  ;;  %v11710_v11 = vld [vmem:[%s10517_s18 + $0xc1] sm:$0xff] }
 0x1bb   : > { %10174 = vrcp.f32 %v2789_v51  ;;  %v10151_v43 = vpop.eup %10150  ;;  %v10251_v51 = vld [vmem:[%s10517_s18 + $0xc9] sm:$0xff] }
 0x1bc   : > { %10176 = vpow2.f32 %v7998_v25  ;;  %v2793_v8 = vadd.f32 1.0, %v10151_v43 }
 0x1bd   : > { %v11638_v32 = vpop.eup %10152  ;;  %10178 = vrcp.f32 %v2790_v42 }
 0x1be   : > { %13462 = vst [vmem:[#allocation7_spill] sm:$0xff] %v11638_v32  ;;  %v10155_v15 = vpop.eup %10154  ;;  %10180 = vpow2.f32 %v7999_v46  ;;  %v2844_v38 = vmul.f32 %v11641_v17, %v11638_v32  ;;  %v12145_v32 = vld [vmem:[%s10517_s18 + $0x62] sm:$0xff] }
 0x1bf   : > { %v11645_v9 = vpop.eup %10156  ;;  %10182 = vrcp.f32 %v2791_v27  ;;  %v2792_v16 = vadd.f32 1.0, %v10155_v15  ;;  %v10254_v27 = vld [vmem:[%s10517_s18 + $0x31] sm:$0xff]  ;;  %13482 = vst [vmem:[#allocation28_spill] sm:$0xff] %v12145_v32 }
 0x1c0   : > { %13463 = vst [vmem:[#allocation14_spill] sm:$0xff] %v11645_v9  ;;  %v10159_v36 = vpop.eup %10158  ;;  %10184 = vrcp.f32 %v2778_v61  ;;  %2911 = vrot.lane.b32.xlu0 %v2844_v38, %s10357_s20  ;;  %v2845_v29 = vmul.f32 %v11657_v39, %v11645_v9  ;;  %v11735_v61 = vld [vmem:[%s13305_s2 + $0x38] sm:$0xff] }
 0x1c1   : > { %v10161_v5 = vpop.eup %10160  ;;  %10186 = vrcp.f32 %v2792_v16  ;;  %v2780_v20 = vadd.f32 1.0, %v10159_v36  ;;  %9532 = vmatprep.subr.mxu0 %v11735_v61 }
 0x1c2   : > { %v11654_v47 = vpop.eup %10162  ;;  %10188 = vpow2.f32 %v8000_v3  ;;  %v2781_v34 = vadd.f32 1.0, %v10161_v5  ;;  %v10255_v3 = vld [vmem:[%s10517_s18 + $0x39] sm:$0xff] }
 0x1c3   : > { %13464 = vst [vmem:[#allocation8_spill] sm:$0xff] %v11654_v47  ;;  %v10165_v7 = vpop.eup %10164  ;;  %10190 = vrcp.f32 %v2793_v8  ;;  %v2846_v21 = vmul.f32 %v11662_v26, %v11654_v47  ;;  %v10256_v8 = vld [vmem:[%s10517_s18 + $0x49] sm:$0xff] }
 0x1c4   : > { %v11666_v0 = vpop.eup %10166  ;;  %2913 = vrot.lane.b32.xlu0 %v2845_v29, %s10357_s20  ;;  %10192 = vrcp.f32 %v2779_v37  ;;  %v2782_v35 = vadd.f32 1.0, %v10165_v7  ;;  %v10257_v37 = vld [vmem:[%s10517_s18 + $0x51] sm:$0xff]  ;;  %v10258_v7 = vld [vmem:[%s10517_s18 + $0xd9] sm:$0xff] }
 0x1c5   : > { %13465 = vst [vmem:[#allocation9_spill] sm:$0xff] %v11666_v0  ;;  %v10169_v54 = vpop.eup %10168  ;;  %2915 = vrot.lane.b32.xlu1 %v2846_v21, %s10357_s20  ;;  %10194 = vrcp.f32 %v2780_v20  ;;  %v2847_v50 = vmul.f32 %v11673_v49, %v11666_v0  ;;  %v4339_v0 = vld [vmem:[%s13305_s2 + $0x68] sm:$0xff] }
 0x1c6   : > { %v11670_v6 = vpop.eup %10170  ;;  %10196 = vrcp.f32 %v2781_v34  ;;  %v2783_v63 = vadd.f32 1.0, %v10169_v54  ;;  %v10259_v54 = vld [vmem:[%s10517_s18 + $0xe1] sm:$0xff] }
 0x1c7   : > { %13466 = vst [vmem:[#allocation10_spill] sm:$0xff] %v11670_v6  ;;  %v10173_v13 = vpop.eup %10172  ;;  %v2848_v23 = vmul.f32 %v11678_v33, %v11670_v6  ;;  %10198 = vrcp.f32 %v2782_v35 }
 0x1c8   : > { %v11682_v56 = vpop.eup %10174  ;;  %v2794_v45 = vadd.f32 1.0, %v10173_v13  ;;  %10200 = vrcp.f32 %v2783_v63  ;;  %v10260_v13 = vld [vmem:[%s10517_s18 + $0xf1] sm:$0xff] }
 0x1c9   : > { %13467 = vst [vmem:[#allocation11_spill] sm:$0xff] %v11682_v56  ;;  %v10177_v10 = vpop.eup %10176  ;;  %2917 = vrot.lane.b32.xlu1 %v2847_v50, %s10357_s20  ;;  %2919 = vrot.lane.b32.xlu0 %v2848_v23, %s10357_s20  ;;  %v2849_v28 = vmul.f32 %v11689_v2, %v11682_v56  ;;  %v10261_v23 = vld [vmem:[%s10517_s18 + $0xf9] sm:$0xff]  ;;  %v12124_v56 = vld [vmem:[%s10517_s18 + $0x4a] sm:$0xff] }
 0x1ca   : > { %v11686_v57 = vpop.eup %10178  ;;  %v2795_v53 = vadd.f32 1.0, %v10177_v10  ;;  %10202 = vrcp.f32 %v2794_v45  ;;  %v2998_v45 = vld [vmem:[%s13305_s2 + $0x10] sm:$0xff] }
 0x1cb   : > { %13468 = vst [vmem:[#allocation16_spill] sm:$0xff] %v11686_v57  ;;  %v10181_v60 = vpop.eup %10180  ;;  %v2850_v55 = vmul.f32 %v11694_v24, %v11686_v57 }
 0x1cc   : > { %v11698_v44 = vpop.eup %10182  ;;  %v2796_v62 = vadd.f32 1.0, %v10181_v60  ;;  %10204 = vrcp.f32 %v2795_v53 }
 0x1cd   : > { %13469 = vst [vmem:[#allocation15_spill] sm:$0xff] %v11698_v44  ;;  %v10185_v14 = vpop.eup %10184  ;;  %2921 = vrot.lane.b32.xlu1 %v2849_v28, %s10357_s20  ;;  %2923 = vrot.lane.b32.xlu0 %v2850_v55, %s10357_s20  ;;  %v2851_v52 = vmul.f32 %v11705_v18, %v11698_v44  ;;  %v2997_v55 = vld [vmem:[%s13305_s2 + $0x8] sm:$0xff]  ;;  %v4571_v44 = vld [vmem:[%s13306_s3 + $0x78] sm:$0xff] }
 0x1ce   : > { %v11702_v58 = vpop.eup %10186  ;;  %10206 = vrcp.f32 %v2796_v62  ;;  %v2838_v25 = vmul.f32 %v10252_v19, %v10185_v14 }
 0x1cf   : > { %13470 = vst [vmem:[#allocation12_spill] sm:$0xff] %v11702_v58  ;;  %v10189_v41 = vpop.eup %10188  ;;  %v2852_v12 = vmul.f32 %v11710_v11, %v11702_v58  ;;  %v12101_v58 = vld [vmem:[%s10517_s18 + $0x32] sm:$0xff] }
 0x1d0   : > { %v11714_v1 = vpop.eup %10190  ;;  %v2797_v4 = vadd.f32 1.0, %v10189_v41 }
 0x1d1   : > { %13471 = vst [vmem:[#allocation13_spill] sm:$0xff] %v11714_v1  ;;  %2925 = vrot.lane.b32.xlu1 %v2851_v52, %s10357_s20  ;;  %2927 = vrot.lane.b32.xlu0 %v2852_v12, %s10357_s20  ;;  %v10193_v30 = vpop.eup %10192  ;;  %v2853_v22 = vmul.f32 %v10251_v51, %v11714_v1 }
 0x1d2   : > { %v11721_v48 = vpop.eup %10194  ;;  %10208 = vrcp.f32 %v2797_v4  ;;  %v2839_v46 = vmul.f32 %v10253_v31, %v10193_v30 }
 0x1d3   : > { %13472 = vst [vmem:[#allocation17_spill] sm:$0xff] %v11721_v48  ;;  %v11725_v40 = vpop.eup %10196  ;;  %v2840_v42 = vmul.f32 %v10254_v27, %v11721_v48 }
 0x1d4   : > { %13473 = vst [vmem:[#allocation19_spill] sm:$0xff] %v11725_v40  ;;  %v11730_v43 = vpop.eup %10198  ;;  %v2841_v38 = vmul.f32 %v10255_v3, %v11725_v40  ;;  %v12166_v40 = vld [vmem:[%s10517_s18 + $0x7a] sm:$0xff] }
 0x1d5   : > { %2929 = vrot.lane.b32.xlu1 %v2853_v22, %s10357_s20  ;;  %2899 = vrot.lane.b32.xlu0 %v2838_v25, %s10357_s20  ;;  %13474 = vst [vmem:[#allocation18_spill] sm:$0xff] %v11730_v43  ;;  %v11740_v15 = vpop.eup %10200  ;;  %v2842_v16 = vmul.f32 %v10256_v8, %v11730_v43  ;;  %v8001_v25 = vld [vmem:[%s10517_s18 + $0x18] sm:$0xff]  ;;  %v4338_v43 = vld [vmem:[%s13305_s2 + $0x60] sm:$0xff]  ;;  %13486 = vst [vmem:[#allocation49_spill] sm:$0xff] %v12166_v40 }
 0x1d6   : > { %13475 = vst [vmem:[#allocation20_spill] sm:$0xff] %v11740_v15  ;;  %v2843_v29 = vmul.f32 %v10257_v37, %v11740_v15 }
 0x1d7   : > { %v11746_v36 = vpop.eup %10202 }
 0x1d8   : > { %13476 = vst [vmem:[#allocation22_spill] sm:$0xff] %v11746_v36  ;;  %v2854_v20 = vmul.f32 %v10258_v7, %v11746_v36 }
 0x1d9   : > { %2901 = vrot.lane.b32.xlu1 %v2839_v46, %s10357_s20  ;;  %2903 = vrot.lane.b32.xlu0 %v2840_v42, %s10357_s20  ;;  %v11750_v5 = vpop.eup %10204 }
 0x1da   : > { %13477 = vst [vmem:[#allocation21_spill] sm:$0xff] %v11750_v5  ;;  %v2855_v34 = vmul.f32 %v10259_v54, %v11750_v5  ;;  %v4109_v5 = vld [vmem:[%s13306_s3 + $0x40] sm:$0xff] }
 0x1db   : > { %v10207_v21 = vpop.eup %10206 }
 0x1dc   : > { %v2856_v35 = vmul.f32 %v10260_v13, %v10207_v21  ;;  %v11880_v21 = vld [vmem:[%s10517_s18 + $0x38] sm:$0xff] }
 0x1dd   : > { %2905 = vrot.lane.b32.xlu1 %v2841_v38, %s10357_s20  ;;  %2907 = vrot.lane.b32.xlu0 %v2842_v16, %s10357_s20 }
 0x1df   : > { %v10209_v50 = vpop.eup %10208 }
 0x1e0   : > { %v2857_v10 = vmul.f32 %v10261_v23, %v10209_v50  ;;  %v3652_v23 = vld [vmem:[%s13306_s3 + $0x28] sm:$0xff] }
 0x1e1   : > { %2909 = vrot.lane.b32.xlu1 %v2843_v29, %s10357_s20  ;;  %2931 = vrot.lane.b32.xlu0 %v2854_v20, %s10357_s20  ;;  %v11865_v29 = vld [vmem:[%s10517_s18 + $0x30] sm:$0xff] }
 0x1e2   : > { %v3653_v20 = vld [vmem:[%s13306_s3 + $0x30] sm:$0xff] }
 0x1e5   : > { %2933 = vrot.lane.b32.xlu1 %v2855_v34, %s10357_s20  ;;  %2935 = vrot.lane.b32.xlu0 %v2856_v35, %s10357_s20 }
 0x1e9   : > { %2937 = vrot.lane.b32.xlu1 %v2857_v10, %s10357_s20  ;;  %7130 = vrot.lane.b32.xlu0 %v10254_v27, %s10357_s20  ;;  %v11909_v10 = vld [vmem:[%s10517_s18 + $0x50] sm:$0xff] }
 0x1ea   : > { %13478 = vst [vmem:[#allocation23_spill] sm:$0xff] %v11909_v10 }
 0x1ed   : > { %7132 = vrot.lane.b32.xlu1 %v10255_v3, %s10357_s20  ;;  %7134 = vrot.lane.b32.xlu0 %v10256_v8, %s10357_s20  ;;  %v8002_v3 = vld [vmem:[%s10517_s18 + $0x20] sm:$0xff] }
 0x1f1   : > { %7136 = vrot.lane.b32.xlu1 %v10257_v37, %s10357_s20  ;;  %7138 = vrot.lane.b32.xlu0 %v11641_v17, %s10357_s20 }
 0x1f5   : > { %7140 = vrot.lane.b32.xlu1 %v11657_v39, %s10357_s20  ;;  %7142 = vrot.lane.b32.xlu0 %v11662_v26, %s10357_s20 }
 0x1f9   : > { %7144 = vrot.lane.b32.xlu1 %v11673_v49, %s10357_s20  ;;  %7146 = vrot.lane.b32.xlu0 %v11678_v33, %s10357_s20 }
 0x1fd   : > { %7148 = vrot.lane.b32.xlu1 %v11689_v2, %s10357_s20  ;;  %7150 = vrot.lane.b32.xlu0 %v11694_v24, %s10357_s20 }
 0x201   : > { %7152 = vrot.lane.b32.xlu1 %v11705_v18, %s10357_s20  ;;  %7154 = vrot.lane.b32.xlu0 %v11710_v11, %s10357_s20  ;;  %v2996_v18 = vld [vmem:[%s13305_s2] sm:$0xff] }
 0x205   : > { %7156 = vrot.lane.b32.xlu1 %v10251_v51, %s10357_s20  ;;  %7158 = vrot.lane.b32.xlu0 %v10258_v7, %s10357_s20  ;;  %v3424_v7 = vld [vmem:[%s13305_s2 + $0x30] sm:$0xff] }
 0x209   : > { %7160 = vrot.lane.b32.xlu1 %v10259_v54, %s10357_s20  ;;  %v11886_v54 = vld [vmem:[%s10517_s18 + $0x48] sm:$0xff] }
 0x232   : > { %v2912_v17 = vpop.permute.xlu0 %2911 }
 0x233   : > { %2966 = vst.msk [vmem:[#allocation2 + $0x49] sm:$0xff] %vm2959_vm2, %v2912_v17  ;;  %v11912_v17 = vld [vmem:[%s10517_s18 + $0x60] sm:$0xff] }
 0x236   : > { %v2914_v39 = vpop.permute.xlu0 %2913 }
 0x237   : > { %v2916_v26 = vpop.permute.xlu1 %2915  ;;  %2967 = vst.msk [vmem:[#allocation2 + $0x51] sm:$0xff] %vm2959_vm2, %v2914_v39 }
 0x238   : > { %2968 = vst.msk [vmem:[#allocation2 + $0x61] sm:$0xff] %vm2959_vm2, %v2916_v26 }
 0x23a   : > { %v11793_v49 = vld [vmem:[#allocation2 + $0x48] sm:$0xff] }
 0x23b   : > { %v2918_v33 = vpop.permute.xlu1 %2917  ;;  %v2920_v63 = vpop.permute.xlu0 %2919  ;;  %9485 = vmatprep.mubr.msk.f32.mxu1 %vm2959_vm2, %v11793_v49  ;;  %v12094_v1 = vld [vmem:[#allocation2 + $0x49] sm:$0xff] }
 0x23c   : > { %2969 = vst.msk [vmem:[#allocation2 + $0x69] sm:$0xff] %vm2959_vm2, %v2918_v33  ;;  %2970 = vst.msk [vmem:[#allocation2 + $0x79] sm:$0xff] %vm2959_vm2, %v2920_v63  ;;  %v3422_v33 = vld [vmem:[%s13305_s2 + $0x20] sm:$0xff] }
 0x23d   : > { %v8049_v63 = vld [vmem:[%s10517_s18 + $0x19] sm:$0xff] }
 0x23e   : > { %v11799_v60 = vld [vmem:[#allocation2 + $0x50] sm:$0xff] }
 0x23f   : > { %v2922_v2 = vpop.permute.xlu1 %2921  ;;  %v2924_v28 = vpop.permute.xlu0 %2923  ;;  %9486 = vmatmul.mubr.msk.f32.vlgmr.msra.gmra.mxu1 %vm2959_vm2, %v11799_v60  ;;  %v11806_v24 = vld [vmem:[#allocation2 + $0x60] sm:$0xff]  ;;  %v12103_v57 = vld [vmem:[#allocation2 + $0x51] sm:$0xff] }
 0x240   : > { %2971 = vst.msk [vmem:[#allocation2 + $0x81] sm:$0xff] %vm2959_vm2, %v2922_v2  ;;  %2972 = vst.msk [vmem:[#allocation2 + $0x91] sm:$0xff] %vm2959_vm2, %v2924_v28  ;;  %9488 = vmatprep.mubr.msk.f32.mxu1 %vm2959_vm2, %v11806_v24  ;;  %9501 = vmatpush3.msra.mxu1 %v11651_v59  ;;  %v3654_v59 = vld [vmem:[%s13306_s3 + $0x38] sm:$0xff]  ;;  %v8050_v2 = vld [vmem:[%s10517_s18 + $0x21] sm:$0xff] }
 0x241   : > { %9502 = vmatprep.subr.mxu1 %v2998_v45  ;;  %v11933_v28 = vld [vmem:[%s10517_s18 + $0x78] sm:$0xff]  ;;  %v12111_v6 = vld [vmem:[#allocation2 + $0x61] sm:$0xff] }
 0x242   : > { %9503 = vmatpush3.msra.mxu1 %v2998_v45  ;;  %v11928_v45 = vld [vmem:[%s10517_s18 + $0x68] sm:$0xff] }
 0x243   : > { %v2926_v14 = vpop.permute.xlu1 %2925  ;;  %v2928_v53 = vpop.permute.xlu0 %2927  ;;  %v11816_v41 = vld [vmem:[#allocation2 + $0x68] sm:$0xff]  ;;  %v11818_v62 = vld [vmem:[#allocation2 + $0x78] sm:$0xff]  ;;  %9504 = vmatprep.subr.mxu1 %v2997_v55  ;;  %13479 = vst [vmem:[#allocation25_spill] sm:$0xff] %v11928_v45 }
 0x244   : > { %2973 = vst.msk [vmem:[#allocation2 + $0x99] sm:$0xff] %vm2959_vm2, %v2926_v14  ;;  %2974 = vst.msk [vmem:[#allocation2 + $0xa9] sm:$0xff] %vm2959_vm2, %v2928_v53  ;;  %9489 = vmatmul.mubr.msk.f32.gmra.mxu1 %vm2959_vm2, %v11816_v41  ;;  %v3651_v14 = vld [vmem:[%s13306_s3 + $0x20] sm:$0xff]  ;;  %v3883_v53 = vld [vmem:[%s13305_s2 + $0x58] sm:$0xff] }
 0x245   : > { %9491 = vmatprep.mubr.msk.f32.mxu1 %vm2959_vm2, %v11818_v62  ;;  %9505 = vmatpush3.msra.mxu1 %v2997_v55  ;;  %v11936_v55 = vld [vmem:[%s10517_s18 + $0x31] sm:$0xff]  ;;  %v12132_v47 = vld [vmem:[#allocation2 + $0x79] sm:$0xff] }
 0x246   : > { %9506 = vmatprep.subr.mxu1 %v2996_v18 }
 0x247   : > { %v2930_v52 = vpop.permute.xlu1 %2929  ;;  %v2900_v11 = vpop.permute.xlu0 %2899  ;;  %v11832_v12 = vld [vmem:[#allocation2 + $0x80] sm:$0xff]  ;;  %v11834_v30 = vld [vmem:[#allocation2 + $0x90] sm:$0xff]  ;;  %9507 = vmatpush3.msra.mxu1 %v2996_v18 }
 0x248   : > { %2975 = vst.msk [vmem:[#allocation2 + $0xb1] sm:$0xff] %vm2959_vm2, %v2930_v52  ;;  %2960 = vst.msk [vmem:[#allocation2 + $0x1] sm:$0xff] %vm2959_vm2, %v2900_v11  ;;  %9492 = vmatmul.mubr.msk.f32.gmra.mxu1 %vm2959_vm2, %v11832_v12  ;;  %9564 = vmatprep.subr.mxu1 %v3654_v59  ;;  %v11952_v18 = vld [vmem:[%s10517_s18 + $0x80] sm:$0xff]  ;;  %v11958_v52 = vld [vmem:[%s10517_s18 + $0x90] sm:$0xff] }
 0x249   : > { %9494 = vmatprep.mubr.msk.f32.mxu1 %vm2959_vm2, %v11834_v30  ;;  %v11961_v11 = vld [vmem:[%s10517_s18 + $0x49] sm:$0xff]  ;;  %v12147_v9 = vld [vmem:[#allocation2 + $0x81] sm:$0xff]  ;;  %v12153_v15 = vld [vmem:[#allocation2 + $0x91] sm:$0xff] }
 0x24a   : > { %13483 = vst [vmem:[#allocation27_spill] sm:$0xff] %v12147_v9  ;;  %13484 = vst [vmem:[#allocation29_spill] sm:$0xff] %v12153_v15 }
 0x24b   : > { %v2902_v4 = vpop.permute.xlu1 %2901  ;;  %v2904_v51 = vpop.permute.xlu0 %2903  ;;  %v11842_v22 = vld [vmem:[#allocation2 + $0x98] sm:$0xff]  ;;  %v11844_v19 = vld [vmem:[#allocation2 + $0xa8] sm:$0xff] }
 0x24c   : > { %2961 = vst.msk [vmem:[#allocation2 + $0x9] sm:$0xff] %vm2959_vm2, %v2902_v4  ;;  %2962 = vst.msk [vmem:[#allocation2 + $0x19] sm:$0xff] %vm2959_vm2, %v2904_v51  ;;  %9495 = vmatmul.mubr.msk.f32.gmra.mxu1 %vm2959_vm2, %v11842_v22  ;;  %v4112_v4 = vld [vmem:[%s13306_s3 + $0x58] sm:$0xff]  ;;  %v3882_v51 = vld [vmem:[%s13305_s2 + $0x50] sm:$0xff] }
 0x24d   : > { %9497 = vmatprep.mubr.msk.f32.mxu1 %vm2959_vm2, %v11844_v19  ;;  %v12168_v48 = vld [vmem:[#allocation2 + $0x99] sm:$0xff] }
 0x24e   : > { %13487 = vst [vmem:[#allocation34_spill] sm:$0xff] %v12168_v48 }
 0x24f   : > { %v2906_v31 = vpop.permute.xlu1 %2905  ;;  %v2908_v46 = vpop.permute.xlu0 %2907  ;;  %v3000_v27 = vld [vmem:[#allocation2] sm:$0xff]  ;;  %v11853_v42 = vld [vmem:[#allocation2 + $0xb0] sm:$0xff] }
 0x250   : > { %2963 = vst.msk [vmem:[#allocation2 + $0x21] sm:$0xff] %vm2959_vm2, %v2906_v31  ;;  %2964 = vst.msk [vmem:[#allocation2 + $0x31] sm:$0xff] %vm2959_vm2, %v2908_v46  ;;  %9476 = vmatprep.mubr.msk.f32.mxu0 %vm2959_vm2, %v3000_v27  ;;  %9498 = vmatmul.mubr.msk.f32.gmra.mxu1 %vm2959_vm2, %v11853_v42  ;;  %v11981_v31 = vld [vmem:[%s10517_s18 + $0x51] sm:$0xff]  ;;  %v11984_v46 = vld [vmem:[%s10517_s18 + $0xa8] sm:$0xff] }
 0x251   : > { %9508 = vmatprep.mubr.msk.f32.mxu1 %vm2959_vm2, %v8001_v25  ;;  %v11978_v25 = vld [vmem:[%s10517_s18 + $0x98] sm:$0xff]  ;;  %13480 = vst [vmem:[#allocation24_spill] sm:$0xff] %v11984_v46  ;;  %v11987_v27 = vld [vmem:[%s10517_s18 + $0x61] sm:$0xff] }
 0x253   : > { %v2910_v38 = vpop.permute.xlu1 %2909  ;;  %v2932_v8 = vpop.permute.xlu0 %2931  ;;  %v3001_v16 = vld [vmem:[#allocation2 + $0x8] sm:$0xff]  ;;  %v11862_v37 = vld [vmem:[#allocation2 + $0x18] sm:$0xff] }
 0x254   : > { %2965 = vst.msk [vmem:[#allocation2 + $0x39] sm:$0xff] %vm2959_vm2, %v2910_v38  ;;  %2976 = vst.msk [vmem:[#allocation2 + $0xc1] sm:$0xff] %vm2959_vm2, %v2932_v8  ;;  %9477 = vmatmul.mubr.msk.f32.vlgmr.msra.gmra.mxu0 %vm2959_vm2, %v3001_v16  ;;  %9509 = vmatmul.mubr.msk.f32.vlgmr.msra.gmra.mxu1 %vm2959_vm2, %v8002_v3  ;;  %v3881_v3 = vld [vmem:[%s13305_s2 + $0x48] sm:$0xff]  ;;  %v12001_v38 = vld [vmem:[%s10517_s18 + $0xb0] sm:$0xff] }
 0x255   : > { %9479 = vmatprep.mubr.msk.f32.mxu0 %vm2959_vm2, %v11862_v37  ;;  %9565 = vmatpush3.msra.mxu1 %v3654_v59  ;;  %v11955_v59 = vld [vmem:[%s10517_s18 + $0x39] sm:$0xff]  ;;  %v12004_v8 = vld [vmem:[%s10517_s18 + $0x69] sm:$0xff] }
 0x256   : > { %9511 = vmatprep.mubr.msk.f32.mxu1 %vm2959_vm2, %v11865_v29  ;;  %9533 = vmatpush3.msra.mxu0 %v11735_v61  ;;  %v3423_v61 = vld [vmem:[%s13305_s2 + $0x28] sm:$0xff]  ;;  %v12007_v16 = vld [vmem:[%s10517_s18 + $0xc0] sm:$0xff] }
 0x257   : > { %v2934_v34 = vpop.permute.xlu1 %2933  ;;  %v2936_v13 = vpop.permute.xlu0 %2935  ;;  %v11888_v35 = vld [vmem:[#allocation2 + $0x20] sm:$0xff]  ;;  %v11890_v50 = vld [vmem:[#allocation2 + $0x30] sm:$0xff]  ;;  %9534 = vmatprep.subr.mxu0 %v3424_v7  ;;  %9566 = vmatprep.subr.mxu1 %v3653_v20 }
 0x258   : > { %2977 = vst.msk [vmem:[#allocation2 + $0xc9] sm:$0xff] %vm2959_vm2, %v2934_v34  ;;  %2978 = vst.msk [vmem:[#allocation2 + $0xd9] sm:$0xff] %vm2959_vm2, %v2936_v13  ;;  %9480 = vmatmul.mubr.msk.f32.gmra.mxu0 %vm2959_vm2, %v11888_v35  ;;  %9512 = vmatmul.mubr.msk.f32.gmra.mxu1 %vm2959_vm2, %v11880_v21  ;;  %v12024_v34 = vld [vmem:[%s10517_s18 + $0xc8] sm:$0xff] }
 0x259   : > { %9482 = vmatprep.mubr.msk.f32.mxu0 %vm2959_vm2, %v11890_v50  ;;  %9514 = vmatprep.mubr.msk.f32.mxu1 %vm2959_vm2, %v11886_v54  ;;  %v12027_v13 = vld [vmem:[%s10517_s18 + $0x81] sm:$0xff] }
 0x25a   : > { %9535 = vmatpush3.msra.mxu0 %v3424_v7  ;;  %9567 = vmatpush3.msra.mxu1 %v3653_v20  ;;  %v12010_v7 = vld [vmem:[%s10517_s18 + $0x79] sm:$0xff] }
 0x25b   : > { %v2938_v39 = vpop.permute.xlu1 %2937  ;;  %v11914_v26 = vld [vmem:[#allocation2 + $0x38] sm:$0xff]  ;;  %9536 = vmatprep.subr.mxu0 %v3423_v61  ;;  %9568 = vmatprep.subr.mxu1 %v3652_v23  ;;  %v3880_v20 = vld [vmem:[%s13305_s2 + $0x40] sm:$0xff] }
 0x25c   : > { %2979 = vst.msk [vmem:[#allocation2 + $0xe1] sm:$0xff] %vm2959_vm2, %v2938_v39  ;;  %9483 = vmatmul.mubr.msk.f32.gmra.mxu0 %vm2959_vm2, %v11914_v26  ;;  %9515 = vmatmul.mubr.msk.f32.gmra.mxu1 %vm2959_vm2, %v11909_v10  ;;  %v3635_v39 = vld [vmem:[#allocation2 + $0x1] sm:$0xff]  ;;  %v12085_v36 = vld [vmem:[#allocation2 + $0x39] sm:$0xff] }
 0x25d   : > { %9537 = vmatpush3.msra.mxu0 %v3423_v61  ;;  %9517 = vmatprep.mubr.msk.f32.mxu1 %vm2959_vm2, %v11912_v17  ;;  %v12030_v61 = vld [vmem:[%s10517_s18 + $0x91] sm:$0xff] }
 0x25e   : > { %9538 = vmatprep.subr.mxu0 %v3422_v33  ;;  %9540 = vmatprep.mubr.msk.f32.mxu0 %vm2959_vm2, %v8049_v63  ;;  %v3636_v63 = vld [vmem:[#allocation2 + $0x9] sm:$0xff] }
 0x25f   : > { %9539 = vmatpush3.msra.mxu0 %v3422_v33  ;;  %9569 = vmatpush3.msra.mxu1 %v3652_v23  ;;  %v4341_v23 = vld [vmem:[%s13305_s2 + $0x78] sm:$0xff] }
 0x260   : > { %9518 = vmatmul.mubr.msk.f32.gmra.mxu1 %vm2959_vm2, %v11928_v45  ;;  %9541 = vmatmul.mubr.msk.f32.vlgmr.msra.gmra.mxu0 %vm2959_vm2, %v8050_v2  ;;  %v12043_v33 = vld [vmem:[%s10517_s18 + $0x99] sm:$0xff]  ;;  %v12046_v2 = vld [vmem:[%s10517_s18 + $0xa9] sm:$0xff] }
 0x261   : > { %9520 = vmatprep.mubr.msk.f32.mxu1 %vm2959_vm2, %v11933_v28  ;;  %9543 = vmatprep.mubr.msk.f32.mxu0 %vm2959_vm2, %v11936_v55 }
 0x262   : > { %9570 = vmatprep.subr.mxu1 %v3651_v14  ;;  %9596 = vmatprep.subr.mxu0 %v3883_v53 }
 0x263   : > { %9571 = vmatpush3.msra.mxu1 %v3651_v14  ;;  %9597 = vmatpush3.msra.mxu0 %v3883_v53  ;;  %v4111_v14 = vld [vmem:[%s13306_s3 + $0x50] sm:$0xff]  ;;  %v12054_v53 = vld [vmem:[#allocation2 + $0x19] sm:$0xff] }
 0x264   : > { %9521 = vmatmul.mubr.msk.f32.gmra.mxu1 %vm2959_vm2, %v11952_v18  ;;  %9544 = vmatmul.mubr.msk.f32.gmra.mxu0 %vm2959_vm2, %v11955_v59 }
 0x265   : > { %9523 = vmatprep.mubr.msk.f32.mxu1 %vm2959_vm2, %v11958_v52  ;;  %9546 = vmatprep.mubr.msk.f32.mxu0 %vm2959_vm2, %v11961_v11 }
 0x266   : > { %9628 = vmatprep.subr.mxu1 %v4112_v4  ;;  %9598 = vmatprep.subr.mxu0 %v3882_v51 }
 0x267   : > { %9599 = vmatpush3.msra.mxu0 %v3882_v51  ;;  %v12059_v51 = vld [vmem:[%s10517_s18 + $0xb1] sm:$0xff] }
 0x268   : > { %9524 = vmatmul.mubr.msk.f32.gmra.mxu1 %vm2959_vm2, %v11978_v25  ;;  %9547 = vmatmul.mubr.msk.f32.gmra.mxu0 %vm2959_vm2, %v11981_v31 }
 0x269   : > { %9526 = vmatprep.mubr.msk.f32.mxu1 %vm2959_vm2, %v11984_v46  ;;  %9549 = vmatprep.mubr.msk.f32.mxu0 %vm2959_vm2, %v11987_v27 }
 0x26a   : > { %9600 = vmatprep.subr.mxu0 %v3881_v3 }
 0x26b   : > { %9601 = vmatpush3.msra.mxu0 %v3881_v3  ;;  %v12064_v3 = vld [vmem:[%s10517_s18 + $0xc1] sm:$0xff] }
 0x26c   : > { %9527 = vmatmul.mubr.msk.f32.gmra.mxu1 %vm2959_vm2, %v12001_v38  ;;  %9550 = vmatmul.mubr.msk.f32.gmra.mxu0 %vm2959_vm2, %v12004_v8 }
 0x26d   : > { %9529 = vmatprep.mubr.msk.f32.mxu1 %vm2959_vm2, %v12007_v16  ;;  %9552 = vmatprep.mubr.msk.f32.mxu0 %vm2959_vm2, %v12010_v7 }
 0x26e   : > { %9602 = vmatprep.subr.mxu0 %v3880_v20 }
 0x26f   : > { %9603 = vmatpush3.msra.mxu0 %v3880_v20  ;;  %v12066_v20 = vld [vmem:[#allocation2 + $0x21] sm:$0xff] }
 0x270   : > { %9530 = vmatmul.mubr.msk.f32.gmra.mxu1 %vm2959_vm2, %v12024_v34  ;;  %9553 = vmatmul.mubr.msk.f32.gmra.mxu0 %vm2959_vm2, %v12027_v13 }
 0x271   : > { %9572 = vmatprep.mubr.msk.f32.mxu1 %vm2959_vm2, %v3635_v39  ;;  %9555 = vmatprep.mubr.msk.f32.mxu0 %vm2959_vm2, %v12030_v61  ;;  %v4110_v39 = vld [vmem:[%s13306_s3 + $0x48] sm:$0xff] }
 0x272   : > { %9660 = vmatprep.subr.mxu0 %v4341_v23 }
 0x274   : > { %9556 = vmatmul.mubr.msk.f32.gmra.mxu0 %vm2959_vm2, %v12043_v33  ;;  %9573 = vmatmul.mubr.msk.f32.vlgmr.msra.gmra.mxu1 %vm2959_vm2, %v3636_v63  ;;  %v12082_v63 = vld [vmem:[%s10517_s18 + $0xc9] sm:$0xff] }
 0x275   : > { %9575 = vmatprep.mubr.msk.f32.mxu1 %vm2959_vm2, %v12054_v53  ;;  %9629 = vmatpush3.msra.mxu1 %v4112_v4  ;;  %v12075_v4 = vld [vmem:[#allocation2 + $0x31] sm:$0xff] }
 0x276   : > { %9558 = vmatprep.mubr.msk.f32.mxu0 %vm2959_vm2, %v12046_v2  ;;  %9630 = vmatprep.subr.mxu1 %v4111_v14 }
 0x277   : > { %9631 = vmatpush3.msra.mxu1 %v4111_v14  ;;  %v8097_v14 = vld [vmem:[%s10517_s18 + $0x1a] sm:$0xff] }
 0x278   : > { %9559 = vmatmul.mubr.msk.f32.gmra.mxu0 %vm2959_vm2, %v12059_v51  ;;  %9576 = vmatmul.mubr.msk.f32.gmra.mxu1 %vm2959_vm2, %v12066_v20 }
 0x279   : > { %9578 = vmatprep.mubr.msk.f32.mxu1 %vm2959_vm2, %v12075_v4  ;;  %9561 = vmatprep.mubr.msk.f32.mxu0 %vm2959_vm2, %v12064_v3 }
 0x27a   : > { %9632 = vmatprep.subr.mxu1 %v4110_v39 }
 0x27b   : > { %9633 = vmatpush3.msra.mxu1 %v4110_v39  ;;  %v8098_v39 = vld [vmem:[%s10517_s18 + $0x22] sm:$0xff] }
 0x27c   : > { %9562 = vmatmul.mubr.msk.f32.gmra.mxu0 %vm2959_vm2, %v12082_v63  ;;  %9579 = vmatmul.mubr.msk.f32.gmra.mxu1 %vm2959_vm2, %v12085_v36 }
 0x27d   : > { %9581 = vmatprep.mubr.msk.f32.mxu1 %vm2959_vm2, %v12094_v1  ;;  %9604 = vmatprep.mubr.msk.f32.mxu0 %vm2959_vm2, %v8097_v14  ;;  %v4340_v14 = vld [vmem:[%s13305_s2 + $0x70] sm:$0xff] }
 0x27e   : > { %9634 = vmatprep.subr.mxu1 %v4109_v5 }
 0x27f   : > { %9635 = vmatpush3.msra.mxu1 %v4109_v5  ;;  %v12121_v5 = vld [vmem:[%s10517_s18 + $0x3a] sm:$0xff] }
 0x280   : > { %9582 = vmatmul.mubr.msk.f32.gmra.mxu1 %vm2959_vm2, %v12103_v57  ;;  %9605 = vmatmul.mubr.msk.f32.vlgmr.msra.gmra.mxu0 %vm2959_vm2, %v8098_v39  ;;  %v12126_v39 = vld [vmem:[#allocation2 + $0x69] sm:$0xff] }
 0x281   : > { %9584 = vmatprep.mubr.msk.f32.mxu1 %vm2959_vm2, %v12111_v6  ;;  %9607 = vmatprep.mubr.msk.f32.mxu0 %vm2959_vm2, %v12101_v58 }
 0x282   : > { %9661 = vmatpush3.msra.mxu0 %v4341_v23  ;;  %9692 = vmatprep.subr.mxu1 %v4571_v44  ;;  %v12142_v23 = vld [vmem:[%s10517_s18 + $0x52] sm:$0xff] }
 0x283   : > { %9662 = vmatprep.subr.mxu0 %v4340_v14  ;;  %13481 = vst [vmem:[#allocation26_spill] sm:$0xff] %v12142_v23 }
 0x284   : > { %9585 = vmatmul.mubr.msk.f32.gmra.mxu1 %vm2959_vm2, %v12126_v39  ;;  %9608 = vmatmul.mubr.msk.f32.gmra.mxu0 %vm2959_vm2, %v12121_v5 }
 0x285   : > { %9587 = vmatprep.mubr.msk.f32.mxu1 %vm2959_vm2, %v12132_v47  ;;  %9610 = vmatprep.mubr.msk.f32.mxu0 %vm2959_vm2, %v12124_v56 }
 0x286   : > { %9663 = vmatpush3.msra.mxu0 %v4340_v14  ;;  %v12163_v14 = vld [vmem:[%s10517_s18 + $0x6a] sm:$0xff] }
 0x287   : > { %9664 = vmatprep.subr.mxu0 %v4339_v0  ;;  %13485 = vst [vmem:[#allocation32_spill] sm:$0xff] %v12163_v14 }
 0x288   : > { %9588 = vmatmul.mubr.msk.f32.gmra.mxu1 %vm2959_vm2, %v12147_v9  ;;  %9611 = vmatmul.mubr.msk.f32.gmra.mxu0 %vm2959_vm2, %v12142_v23  ;;  %v12174_v23 = vld [vmem:[#allocation2 + $0xa9] sm:$0xff] }
 0x289   : > { %9590 = vmatprep.mubr.msk.f32.mxu1 %vm2959_vm2, %v12153_v15  ;;  %9613 = vmatprep.mubr.msk.f32.mxu0 %vm2959_vm2, %v12145_v32  ;;  %13488 = vst [vmem:[#allocation33_spill] sm:$0xff] %v12174_v23  ;;  %v4800_v32 = vld [vmem:[%s13305_s2 + $0x98] sm:$0xff]  ;;  %v4570_v9 = vld [vmem:[%s13306_s3 + $0x70] sm:$0xff] }
 0x28a   : > { %9665 = vmatpush3.msra.mxu0 %v4339_v0  ;;  %v12184_v0 = vld [vmem:[%s10517_s18 + $0x82] sm:$0xff]  ;;  %v12189_v15 = vld [vmem:[#allocation2 + $0xb1] sm:$0xff] }
 0x28b   : > { %9666 = vmatprep.subr.mxu0 %v4338_v43  ;;  %13489 = vst [vmem:[#allocation35_spill] sm:$0xff] %v12184_v0  ;;  %13491 = vst [vmem:[#allocation45_spill] sm:$0xff] %v12189_v15 }
 0x28c   : > { %9591 = vmatmul.mubr.msk.f32.gmra.mxu1 %vm2959_vm2, %v12168_v48  ;;  %9614 = vmatmul.mubr.msk.f32.gmra.mxu0 %vm2959_vm2, %v12163_v14  ;;  %v12187_v48 = vld [vmem:[%s10517_s18 + $0x92] sm:$0xff]  ;;  %v12202_v14 = vld [vmem:[%s10517_s18 + $0xaa] sm:$0xff] }
 0x28d   : > { %9593 = vmatprep.mubr.msk.f32.mxu1 %vm2959_vm2, %v12174_v23  ;;  %9616 = vmatprep.mubr.msk.f32.mxu0 %vm2959_vm2, %v12166_v40  ;;  %13490 = vst [vmem:[#allocation44_spill] sm:$0xff] %v12187_v48  ;;  %v4093_v23 = vld [vmem:[#allocation2 + $0x2] sm:$0xff]  ;;  %v12199_v40 = vld [vmem:[%s10517_s18 + $0x9a] sm:$0xff]  ;;  %13492 = vst [vmem:[#allocation52_spill] sm:$0xff] %v12202_v14 }
 0x28e   : > { %9667 = vmatpush3.msra.mxu0 %v4338_v43  ;;  %v4094_v43 = vld [vmem:[#allocation2 + $0xa] sm:$0xff] }
 0x28f   : > { %9724 = vmatprep.subr.mxu0 %v4800_v32 }
 0x290   : > { %9594 = vmatmul.mubr.msk.f32.gmra.mxu1 %vm2959_vm2, %v12189_v15  ;;  %9617 = vmatmul.mubr.msk.f32.gmra.mxu0 %vm2959_vm2, %v12184_v0  ;;  %v12210_v0 = vld [vmem:[#allocation2 + $0x1a] sm:$0xff]  ;;  %v12222_v15 = vld [vmem:[#allocation2 + $0x22] sm:$0xff] }
 0x291   : > { %9636 = vmatprep.mubr.msk.f32.mxu1 %vm2959_vm2, %v4093_v23  ;;  %9619 = vmatprep.mubr.msk.f32.mxu0 %vm2959_vm2, %v12187_v48  ;;  %v12215_v23 = vld [vmem:[%s10517_s18 + $0xb2] sm:$0xff]  ;;  %v12220_v48 = vld [vmem:[%s10517_s18 + $0xc2] sm:$0xff] }
 0x292   : > { %13493 = vst [vmem:[#allocation38_spill] sm:$0xff] %v12215_v23  ;;  %13494 = vst [vmem:[#allocation36_spill] sm:$0xff] %v12220_v48 }
 0x294   : > { %9620 = vmatmul.mubr.msk.f32.gmra.mxu0 %vm2959_vm2, %v12199_v40  ;;  %9637 = vmatmul.mubr.msk.f32.vlgmr.msra.gmra.mxu1 %vm2959_vm2, %v4094_v43  ;;  %v4569_v43 = vld [vmem:[%s13306_s3 + $0x68] sm:$0xff] }
 0x295   : > { %9639 = vmatprep.mubr.msk.f32.mxu1 %vm2959_vm2, %v12210_v0  ;;  %9693 = vmatpush3.msra.mxu1 %v4571_v44  ;;  %v12231_v44 = vld [vmem:[#allocation2 + $0x32] sm:$0xff] }
 0x296   : > { %9622 = vmatprep.mubr.msk.f32.mxu0 %vm2959_vm2, %v12202_v14  ;;  %9694 = vmatprep.subr.mxu1 %v4570_v9  ;;  %13495 = vst [vmem:[#allocation37_spill] sm:$0xff] %v12231_v44  ;;  %v12238_v14 = vld [vmem:[%s10517_s18 + $0xca] sm:$0xff] }
 0x297   : > { %9695 = vmatpush3.msra.mxu1 %v4570_v9  ;;  %v12240_v9 = vld [vmem:[#allocation2 + $0x3a] sm:$0xff] }
 0x298   : > { %9623 = vmatmul.mubr.msk.f32.gmra.mxu0 %vm2959_vm2, %v12215_v23  ;;  %9640 = vmatmul.mubr.msk.f32.gmra.mxu1 %vm2959_vm2, %v12222_v15  ;;  %13496 = vst [vmem:[#allocation46_spill] sm:$0xff] %v12240_v9  ;;  %v4568_v23 = vld [vmem:[%s13306_s3 + $0x60] sm:$0xff] }
 0x299   : > { %9642 = vmatprep.mubr.msk.f32.mxu1 %vm2959_vm2, %v12231_v44  ;;  %9625 = vmatprep.mubr.msk.f32.mxu0 %vm2959_vm2, %v12220_v48  ;;  %v12249_v44 = vld [vmem:[#allocation2 + $0x4a] sm:$0xff]  ;;  %v5029_v48 = vld [vmem:[%s13306_s3 + $0x98] sm:$0xff] }
 0x29a   : > { %9696 = vmatprep.subr.mxu1 %v4569_v43 }
 0x29b   : > { %9697 = vmatpush3.msra.mxu1 %v4569_v43  ;;  %v12255_v43 = vld [vmem:[#allocation2 + $0x52] sm:$0xff] }
 0x29c   : > { %9626 = vmatmul.mubr.msk.f32.gmra.mxu0 %vm2959_vm2, %v12238_v14  ;;  %9643 = vmatmul.mubr.msk.f32.gmra.mxu1 %vm2959_vm2, %v12240_v9  ;;  %v12264_v9 = vld [vmem:[#allocation2 + $0x62] sm:$0xff] }
 0x29d   : > { %9645 = vmatprep.mubr.msk.f32.mxu1 %vm2959_vm2, %v12249_v44  ;;  %9668 = vmatprep.mubr.msk.f32.mxu0 %vm2959_vm2, %v11865_v29  ;;  %13497 = vst [vmem:[#allocation41_spill] sm:$0xff] %v12264_v9  ;;  %v4799_v29 = vld [vmem:[%s13305_s2 + $0x90] sm:$0xff] }
 0x29e   : > { %9698 = vmatprep.subr.mxu1 %v4568_v23 }
 0x29f   : > { %9699 = vmatpush3.msra.mxu1 %v4568_v23  ;;  %v12273_v23 = vld [vmem:[#allocation2 + $0x6a] sm:$0xff] }
 0x2a0   : > { %9646 = vmatmul.mubr.msk.f32.gmra.mxu1 %vm2959_vm2, %v12255_v43  ;;  %9669 = vmatmul.mubr.msk.f32.vlgmr.msra.gmra.mxu0 %vm2959_vm2, %v11880_v21  ;;  %13498 = vst [vmem:[#allocation47_spill] sm:$0xff] %v12273_v23  ;;  %v12279_v21 = vld [vmem:[#allocation2 + $0x7a] sm:$0xff] }
 0x2a1   : > { %9648 = vmatprep.mubr.msk.f32.mxu1 %vm2959_vm2, %v12264_v9  ;;  %9671 = vmatprep.mubr.msk.f32.mxu0 %vm2959_vm2, %v11886_v54  ;;  %v4798_v9 = vld [vmem:[%s13305_s2 + $0x88] sm:$0xff] }
 0x2a2   : > { %9725 = vmatpush3.msra.mxu0 %v4800_v32  ;;  %9756 = vmatprep.subr.mxu1 %v5029_v48  ;;  %v12288_v32 = vld [vmem:[#allocation2 + $0x82] sm:$0xff] }
 0x2a3   : > { %9726 = vmatprep.subr.mxu0 %v4799_v29  ;;  %13499 = vst [vmem:[#allocation40_spill] sm:$0xff] %v12288_v32 }
 0x2a4   : > { %9649 = vmatmul.mubr.msk.f32.gmra.mxu1 %vm2959_vm2, %v12273_v23  ;;  %9672 = vmatmul.mubr.msk.f32.gmra.mxu0 %vm2959_vm2, %v11909_v10  ;;  %v12294_v10 = vld [vmem:[#allocation2 + $0x92] sm:$0xff]  ;;  %v4797_v23 = vld [vmem:[%s13305_s2 + $0x80] sm:$0xff] }
 0x2a5   : > { %9651 = vmatprep.mubr.msk.f32.mxu1 %vm2959_vm2, %v12279_v21  ;;  %9674 = vmatprep.mubr.msk.f32.mxu0 %vm2959_vm2, %v11912_v17 }
 0x2a6   : > { %9727 = vmatpush3.msra.mxu0 %v4799_v29  ;;  %v12303_v29 = vld [vmem:[#allocation2 + $0x9a] sm:$0xff] }
 0x2a7   : > { %9728 = vmatprep.subr.mxu0 %v4798_v9 }
 0x2a8   : > { %9652 = vmatmul.mubr.msk.f32.gmra.mxu1 %vm2959_vm2, %v12288_v32  ;;  %9675 = vmatmul.mubr.msk.f32.gmra.mxu0 %vm2959_vm2, %v11928_v45  ;;  %v12309_v45 = vld [vmem:[#allocation2 + $0xaa] sm:$0xff]  ;;  %v5258_v32 = vld [vmem:[%s13305_s2 + $0xb8] sm:$0xff] }
 0x2a9   : > { %9654 = vmatprep.mubr.msk.f32.mxu1 %vm2959_vm2, %v12294_v10  ;;  %9677 = vmatprep.mubr.msk.f32.mxu0 %vm2959_vm2, %v11933_v28 }
 0x2aa   : > { %9729 = vmatpush3.msra.mxu0 %v4798_v9  ;;  %v12318_v9 = vld [vmem:[#allocation2 + $0xb2] sm:$0xff] }
 0x2ab   : > { %9730 = vmatprep.subr.mxu0 %v4797_v23 }
 0x2ac   : > { %9655 = vmatmul.mubr.msk.f32.gmra.mxu1 %vm2959_vm2, %v12303_v29  ;;  %9678 = vmatmul.mubr.msk.f32.gmra.mxu0 %vm2959_vm2, %v11952_v18 }
 0x2ad   : > { %9657 = vmatprep.mubr.msk.f32.mxu1 %vm2959_vm2, %v12309_v45  ;;  %9680 = vmatprep.mubr.msk.f32.mxu0 %vm2959_vm2, %v11958_v52 }
 0x2ae   : > { %9731 = vmatpush3.msra.mxu0 %v4797_v23  ;;  %v5028_v23 = vld [vmem:[%s13306_s3 + $0x90] sm:$0xff] }
 0x2af   : > { %9788 = vmatprep.subr.mxu0 %v5258_v32 }
 0x2b0   : > { %9658 = vmatmul.mubr.msk.f32.gmra.mxu1 %vm2959_vm2, %v12318_v9  ;;  %9681 = vmatmul.mubr.msk.f32.gmra.mxu0 %vm2959_vm2, %v11978_v25 }
 0x2b1   : > { %9700 = vmatprep.mubr.msk.f32.mxu1 %vm2959_vm2, %v11862_v37  ;;  %9683 = vmatprep.mubr.msk.f32.mxu0 %vm2959_vm2, %v11984_v46  ;;  %v12340_v37 = vld [vmem:[%s10517_s18 + $0xd8] sm:$0xff]  ;;  %v5027_v46 = vld [vmem:[%s13306_s3 + $0x88] sm:$0xff] }
 0x2b4   : > { %9684 = vmatmul.mubr.msk.f32.gmra.mxu0 %vm2959_vm2, %v12001_v38  ;;  %9701 = vmatmul.mubr.msk.f32.vlgmr.msra.gmra.mxu1 %vm2959_vm2, %v11888_v35  ;;  %v5026_v35 = vld [vmem:[%s13306_s3 + $0x80] sm:$0xff] }
 0x2b5   : > { %9703 = vmatprep.mubr.msk.f32.mxu1 %vm2959_vm2, %v11890_v50  ;;  %9757 = vmatpush3.msra.mxu1 %v5029_v48  ;;  %v12354_v48 = vld [vmem:[%s10517_s18 + $0xe0] sm:$0xff] }
 0x2b6   : > { %9686 = vmatprep.mubr.msk.f32.mxu0 %vm2959_vm2, %v12007_v16  ;;  %9758 = vmatprep.subr.mxu1 %v5028_v23  ;;  %v12452_v50 = vld [vmem:[%s10517_s18 + $0xe1] sm:$0xff] }
 0x2b7   : > { %9759 = vmatpush3.msra.mxu1 %v5028_v23 }
 0x2b8   : > { %9687 = vmatmul.mubr.msk.f32.gmra.mxu0 %vm2959_vm2, %v12024_v34  ;;  %9704 = vmatmul.mubr.msk.f32.gmra.mxu1 %vm2959_vm2, %v11914_v26  ;;  %v5484_v26 = vld [vmem:[%s13306_s3 + $0xa0] sm:$0xff] }
 0x2b9   : > { %9706 = vmatprep.mubr.msk.f32.mxu1 %vm2959_vm2, %v11793_v49  ;;  %9689 = vmatprep.mubr.msk.f32.mxu0 %vm2959_vm2, %v12340_v37  ;;  %v5487_v49 = vld [vmem:[%s13306_s3 + $0xb8] sm:$0xff] }
 0x2ba   : > { %9760 = vmatprep.subr.mxu1 %v5027_v46 }
 0x2bb   : > { %9761 = vmatpush3.msra.mxu1 %v5027_v46  ;;  %v13507_v46 = vld [vmem:[#allocation49_spill] sm:$0xff] }
 0x2bc   : > { %9690 = vmatmul.mubr.msk.f32.gmra.mxu0 %vm2959_vm2, %v12354_v48  ;;  %9707 = vmatmul.mubr.msk.f32.gmra.mxu1 %vm2959_vm2, %v11799_v60  ;;  %v5257_v60 = vld [vmem:[%s13305_s2 + $0xb0] sm:$0xff] }
 0x2bd   : > { %9709 = vmatprep.mubr.msk.f32.mxu1 %vm2959_vm2, %v11806_v24  ;;  %9732 = vmatprep.mubr.msk.f32.mxu0 %vm2959_vm2, %v11936_v55  ;;  %v5256_v24 = vld [vmem:[%s13305_s2 + $0xa8] sm:$0xff]  ;;  %v13502_v55 = vld [vmem:[#allocation29_spill] sm:$0xff] }
 0x2be   : > { %9762 = vmatprep.subr.mxu1 %v5026_v35 }
 0x2bf   : > { %9763 = vmatpush3.msra.mxu1 %v5026_v35  ;;  %v13519_v35 = vld [vmem:[#allocation40_spill] sm:$0xff] }
 0x2c0   : > { %9710 = vmatmul.mubr.msk.f32.gmra.mxu1 %vm2959_vm2, %v11816_v41  ;;  %9733 = vmatmul.mubr.msk.f32.vlgmr.msra.gmra.mxu0 %vm2959_vm2, %v11955_v59  ;;  %v5255_v41 = vld [vmem:[%s13305_s2 + $0xa0] sm:$0xff]  ;;  %v13505_v59 = vld [vmem:[#allocation32_spill] sm:$0xff] }
 0x2c1   : > { %9712 = vmatprep.mubr.msk.f32.mxu1 %vm2959_vm2, %v11818_v62  ;;  %9735 = vmatprep.mubr.msk.f32.mxu0 %vm2959_vm2, %v11961_v11  ;;  %v12407_v62 = vld [vmem:[#allocation2 + $0xc0] sm:$0xff] }
 0x2c2   : > { %9789 = vmatpush3.msra.mxu0 %v5258_v32  ;;  %9820 = vmatprep.subr.mxu1 %v5487_v49  ;;  %v5716_v11 = vld [vmem:[%s13305_s2 + $0xc0] sm:$0xff]  ;;  %v13518_v32 = vld [vmem:[#allocation23_spill] sm:$0xff] }
 0x2c3   : > { %9790 = vmatprep.subr.mxu0 %v5257_v60 }
 0x2c4   : > { %9713 = vmatmul.mubr.msk.f32.gmra.mxu1 %vm2959_vm2, %v11832_v12  ;;  %9736 = vmatmul.mubr.msk.f32.gmra.mxu0 %vm2959_vm2, %v11981_v31  ;;  %v5719_v12 = vld [vmem:[%s13305_s2 + $0xd8] sm:$0xff]  ;;  %v13506_v31 = vld [vmem:[#allocation33_spill] sm:$0xff] }
 0x2c5   : > { %9715 = vmatprep.mubr.msk.f32.mxu1 %vm2959_vm2, %v11834_v30  ;;  %9738 = vmatprep.mubr.msk.f32.mxu0 %vm2959_vm2, %v11987_v27  ;;  %v12416_v30 = vld [vmem:[#allocation2 + $0xc8] sm:$0xff]  ;;  %v13508_v27 = vld [vmem:[#allocation45_spill] sm:$0xff] }
 0x2c6   : > { %9791 = vmatpush3.msra.mxu0 %v5257_v60 }
 0x2c7   : > { %9792 = vmatprep.subr.mxu0 %v5256_v24 }
 0x2c8   : > { %9716 = vmatmul.mubr.msk.f32.gmra.mxu1 %vm2959_vm2, %v11842_v22  ;;  %9739 = vmatmul.mubr.msk.f32.gmra.mxu0 %vm2959_vm2, %v12004_v8  ;;  %v5486_v22 = vld [vmem:[%s13306_s3 + $0xb0] sm:$0xff] }
 0x2c9   : > { %9718 = vmatprep.mubr.msk.f32.mxu1 %vm2959_vm2, %v11844_v19  ;;  %9741 = vmatprep.mubr.msk.f32.mxu0 %vm2959_vm2, %v12010_v7  ;;  %v12438_v19 = vld [vmem:[%s10517_s18 + $0xd9] sm:$0xff]  ;;  %v13509_v8 = vld [vmem:[#allocation35_spill] sm:$0xff]  ;;  %v12505_v7 = vld [vmem:[#allocation2 + $0xc1] sm:$0xff] }
 0x2ca   : > { %9793 = vmatpush3.msra.mxu0 %v5256_v24  ;;  %v6175_v24 = vld [vmem:[%s13305_s2 + $0xe0] sm:$0xff] }
 0x2cb   : > { %9794 = vmatprep.subr.mxu0 %v5255_v41 }
 0x2cc   : > { %9719 = vmatmul.mubr.msk.f32.gmra.mxu1 %vm2959_vm2, %v11853_v42  ;;  %9742 = vmatmul.mubr.msk.f32.gmra.mxu0 %vm2959_vm2, %v12027_v13  ;;  %v5485_v42 = vld [vmem:[%s13306_s3 + $0xa8] sm:$0xff]  ;;  %v6178_v13 = vld [vmem:[%s13305_s2 + $0xf8] sm:$0xff] }
 0x2cd   : > { %9721 = vmatprep.mubr.msk.f32.mxu1 %vm2959_vm2, %v12407_v62  ;;  %9744 = vmatprep.mubr.msk.f32.mxu0 %vm2959_vm2, %v12030_v61  ;;  %v13510_v61 = vld [vmem:[#allocation44_spill] sm:$0xff] }
 0x2ce   : > { %9795 = vmatpush3.msra.mxu0 %v5255_v41  ;;  %v5930_v41 = vld [vmem:[#allocation2 + $0x30] sm:$0xff] }
 0x2cf   : > { %9852 = vmatprep.subr.mxu0 %v5719_v12 }
 0x2d0   : > { %9722 = vmatmul.mubr.msk.f32.gmra.mxu1 %vm2959_vm2, %v12416_v30  ;;  %9745 = vmatmul.mubr.msk.f32.gmra.mxu0 %vm2959_vm2, %v12043_v33  ;;  %v12514_v33 = vld [vmem:[#allocation2 + $0xc9] sm:$0xff] }
 0x2d1   : > { %9764 = vmatprep.mubr.msk.f32.mxu1 %vm2959_vm2, %v12054_v53  ;;  %9747 = vmatprep.mubr.msk.f32.mxu0 %vm2959_vm2, %v12046_v2  ;;  %v13511_v2 = vld [vmem:[#allocation52_spill] sm:$0xff]  ;;  %v5948_v53 = vld [vmem:[%s13306_s3 + $0xd0] sm:$0xff] }
 0x2d4   : > { %9748 = vmatmul.mubr.msk.f32.gmra.mxu0 %vm2959_vm2, %v12059_v51  ;;  %9765 = vmatmul.mubr.msk.f32.vlgmr.msra.gmra.mxu1 %vm2959_vm2, %v12066_v20  ;;  %v13512_v51 = vld [vmem:[#allocation38_spill] sm:$0xff]  ;;  %v12536_v20 = vld [vmem:[%s10517_s18 + $0xda] sm:$0xff] }
 0x2d5   : > { %9767 = vmatprep.mubr.msk.f32.mxu1 %vm2959_vm2, %v12075_v4  ;;  %9821 = vmatpush3.msra.mxu1 %v5487_v49  ;;  %v5947_v4 = vld [vmem:[%s13306_s3 + $0xc8] sm:$0xff]  ;;  %v13520_v49 = vld [vmem:[#allocation25_spill] sm:$0xff] }
 0x2d6   : > { %9750 = vmatprep.mubr.msk.f32.mxu0 %vm2959_vm2, %v12064_v3  ;;  %9822 = vmatprep.subr.mxu1 %v5486_v22  ;;  %v13513_v3 = vld [vmem:[#allocation37_spill] sm:$0xff] }
 0x2d7   : > { %9823 = vmatpush3.msra.mxu1 %v5486_v22  ;;  %v5931_v22 = vld [vmem:[#allocation2 + $0x38] sm:$0xff] }
 0x2d8   : > { %9751 = vmatmul.mubr.msk.f32.gmra.mxu0 %vm2959_vm2, %v12082_v63  ;;  %9768 = vmatmul.mubr.msk.f32.gmra.mxu1 %vm2959_vm2, %v12085_v36  ;;  %v5717_v36 = vld [vmem:[%s13305_s2 + $0xc8] sm:$0xff] }
 0x2d9   : > { %9770 = vmatprep.mubr.msk.f32.mxu1 %vm2959_vm2, %v12094_v1  ;;  %9753 = vmatprep.mubr.msk.f32.mxu0 %vm2959_vm2, %v12438_v19  ;;  %v5949_v1 = vld [vmem:[%s13306_s3 + $0xd8] sm:$0xff]  ;;  %v13515_v63 = vld [vmem:[#allocation46_spill] sm:$0xff] }
 0x2da   : > { %9824 = vmatprep.subr.mxu1 %v5485_v42 }
 0x2db   : > { %9825 = vmatpush3.msra.mxu1 %v5485_v42  ;;  %v6406_v42 = vld [vmem:[%s13306_s3 + $0xf0] sm:$0xff] }
 0x2dc   : > { %9754 = vmatmul.mubr.msk.f32.gmra.mxu0 %vm2959_vm2, %v12452_v50  ;;  %9771 = vmatmul.mubr.msk.f32.gmra.mxu1 %vm2959_vm2, %v12103_v57  ;;  %v5718_v57 = vld [vmem:[%s13305_s2 + $0xd0] sm:$0xff] }
 0x2dd   : > { %9773 = vmatprep.mubr.msk.f32.mxu1 %vm2959_vm2, %v12111_v6  ;;  %9796 = vmatprep.mubr.msk.f32.mxu0 %vm2959_vm2, %v12101_v58  ;;  %v13500_v6 = vld [vmem:[#allocation27_spill] sm:$0xff]  ;;  %v13501_v58 = vld [vmem:[#allocation26_spill] sm:$0xff] }
 0x2de   : > { %9826 = vmatprep.subr.mxu1 %v5484_v26 }
 0x2df   : > { %9827 = vmatpush3.msra.mxu1 %v5484_v26 }
 0x2e0   : > { %9774 = vmatmul.mubr.msk.f32.gmra.mxu1 %vm2959_vm2, %v12126_v39  ;;  %9797 = vmatmul.mubr.msk.f32.vlgmr.msra.gmra.mxu0 %vm2959_vm2, %v12121_v5  ;;  %v5946_v5 = vld [vmem:[%s13306_s3 + $0xc0] sm:$0xff] }
 0x2e1   : > { %9776 = vmatprep.mubr.msk.f32.mxu1 %vm2959_vm2, %v12132_v47  ;;  %9799 = vmatprep.mubr.msk.f32.mxu0 %vm2959_vm2, %v12124_v56  ;;  %v13503_v47 = vld [vmem:[#allocation28_spill] sm:$0xff]  ;;  %v13504_v56 = vld [vmem:[#allocation34_spill] sm:$0xff]  ;;  %v13516_v39 = vld [vmem:[#allocation41_spill] sm:$0xff] }
 0x2e2   : > { %9853 = vmatpush3.msra.mxu0 %v5719_v12  ;;  %9884 = vmatprep.subr.mxu1 %v5949_v1 }
 0x2e3   : > { %9854 = vmatprep.subr.mxu0 %v5718_v57 }
 0x2e4   : > { %9777 = vmatmul.mubr.msk.f32.gmra.mxu1 %vm2959_vm2, %v13500_v6  ;;  %9800 = vmatmul.mubr.msk.f32.gmra.mxu0 %vm2959_vm2, %v13501_v58  ;;  %v8305_v58 = vld [vmem:[%s10517_s18 + $0xf0] sm:$0xff] }
 0x2e5   : > { %9779 = vmatprep.mubr.msk.f32.mxu1 %vm2959_vm2, %v13502_v55  ;;  %9802 = vmatprep.mubr.msk.f32.mxu0 %vm2959_vm2, %v13503_v47  ;;  %v5933_v55 = vld [vmem:[#allocation2 + $0x50] sm:$0xff] }
 0x2e6   : > { %9855 = vmatpush3.msra.mxu0 %v5718_v57 }
 0x2e7   : > { %9856 = vmatprep.subr.mxu0 %v5717_v36 }
 0x2e8   : > { %9780 = vmatmul.mubr.msk.f32.gmra.mxu1 %vm2959_vm2, %v13504_v56  ;;  %9803 = vmatmul.mubr.msk.f32.gmra.mxu0 %vm2959_vm2, %v13505_v59  ;;  %v5934_v59 = vld [vmem:[#allocation2 + $0x60] sm:$0xff] }
 0x2e9   : > { %9782 = vmatprep.mubr.msk.f32.mxu1 %vm2959_vm2, %v13506_v31  ;;  %9805 = vmatprep.mubr.msk.f32.mxu0 %vm2959_vm2, %v13507_v46 }
 0x2ea   : > { %9857 = vmatpush3.msra.mxu0 %v5717_v36 }
 0x2eb   : > { %9858 = vmatprep.subr.mxu0 %v5716_v11 }
 0x2ec   : > { %9783 = vmatmul.mubr.msk.f32.gmra.mxu1 %vm2959_vm2, %v13508_v27  ;;  %9806 = vmatmul.mubr.msk.f32.gmra.mxu0 %vm2959_vm2, %v13509_v8  ;;  %v8339_v27 = vld [vmem:[%s10517_s18 + $0x49] sm:$0xff] }
 0x2ed   : > { %9785 = vmatprep.mubr.msk.f32.mxu1 %vm2959_vm2, %v12505_v7  ;;  %9808 = vmatprep.mubr.msk.f32.mxu0 %vm2959_vm2, %v13510_v61 }
 0x2ee   : > { %9859 = vmatpush3.msra.mxu0 %v5716_v11 }
 0x2ef   : > { %9916 = vmatprep.subr.mxu0 %v6178_v13 }
 0x2f0   : > { %9786 = vmatmul.mubr.msk.f32.gmra.mxu1 %vm2959_vm2, %v12514_v33  ;;  %9809 = vmatmul.mubr.msk.f32.gmra.mxu0 %vm2959_vm2, %v12199_v40  ;;  %v13514_v40 = vld [vmem:[#allocation36_spill] sm:$0xff] }
 0x2f1   : > { %9828 = vmatprep.mubr.msk.f32.mxu1 %vm2959_vm2, %v12210_v0  ;;  %9811 = vmatprep.mubr.msk.f32.mxu0 %vm2959_vm2, %v13511_v2  ;;  %v6407_v0 = vld [vmem:[%s13306_s3 + $0xf8] sm:$0xff] }
 0x2f4   : > { %9812 = vmatmul.mubr.msk.f32.gmra.mxu0 %vm2959_vm2, %v13512_v51  ;;  %9829 = vmatmul.mubr.msk.f32.vlgmr.msra.gmra.mxu1 %vm2959_vm2, %v12222_v15  ;;  %v12550_v15 = vld [vmem:[%s10517_s18 + $0xe2] sm:$0xff] }
 0x2f5   : > { %9831 = vmatprep.mubr.msk.f32.mxu1 %vm2959_vm2, %v13513_v3  ;;  %9885 = vmatpush3.msra.mxu1 %v5949_v1  ;;  %v8340_v3 = vld [vmem:[%s10517_s18 + $0x51] sm:$0xff] }
 0x2f6   : > { %9814 = vmatprep.mubr.msk.f32.mxu0 %vm2959_vm2, %v13514_v40  ;;  %9886 = vmatprep.subr.mxu1 %v5948_v53 }
 0x2f7   : > { %9887 = vmatpush3.msra.mxu1 %v5948_v53  ;;  %v5936_v53 = vld [vmem:[#allocation2 + $0x78] sm:$0xff] }
 0x2f8   : > { %9815 = vmatmul.mubr.msk.f32.gmra.mxu0 %vm2959_vm2, %v12238_v14  ;;  %9832 = vmatmul.mubr.msk.f32.gmra.mxu1 %vm2959_vm2, %v13515_v63  ;;  %v8341_v63 = vld [vmem:[%s10517_s18 + $0x61] sm:$0xff] }
 0x2f9   : > { %9834 = vmatprep.mubr.msk.f32.mxu1 %vm2959_vm2, %v12249_v44  ;;  %9817 = vmatprep.mubr.msk.f32.mxu0 %vm2959_vm2, %v12536_v20  ;;  %v13517_v44 = vld [vmem:[#allocation47_spill] sm:$0xff] }
 0x2fa   : > { %9888 = vmatprep.subr.mxu1 %v5947_v4 }
 0x2fb   : > { %9889 = vmatpush3.msra.mxu1 %v5947_v4 }
 0x2fc   : > { %9818 = vmatmul.mubr.msk.f32.gmra.mxu0 %vm2959_vm2, %v12550_v15  ;;  %9835 = vmatmul.mubr.msk.f32.gmra.mxu1 %vm2959_vm2, %v12255_v43  ;;  %v6177_v43 = vld [vmem:[%s13305_s2 + $0xf0] sm:$0xff] }
 0x2fd   : > { %9837 = vmatprep.mubr.msk.f32.mxu1 %vm2959_vm2, %v13516_v39  ;;  %9860 = vmatprep.mubr.msk.f32.mxu0 %vm2959_vm2, %v11886_v54  ;;  %v5937_v39 = vld [vmem:[#allocation2 + $0x80] sm:$0xff] }
 0x2fe   : > { %9890 = vmatprep.subr.mxu1 %v5946_v5 }
 0x2ff   : > { %v12563_v14 = vpop.f32.mrf.mxu1  ;;  %9891 = vmatpush3.msra.mxu1 %v5946_v5 }
 0x300   : > { %9838 = vmatmul.mubr.msk.f32.gmra.mxu1 %vm2959_vm2, %v13517_v44  ;;  %9861 = vmatmul.mubr.msk.f32.vlgmr.msra.gmra.mxu0 %vm2959_vm2, %v13518_v32 }
 0x301   : > { %9840 = vmatprep.mubr.msk.f32.mxu1 %vm2959_vm2, %v12279_v21  ;;  %v12577_v54 = vpop.f32.mrf.mxu1  ;;  %9863 = vmatprep.mubr.msk.f32.mxu0 %vm2959_vm2, %v11912_v17  ;;  %v6176_v21 = vld [vmem:[%s13305_s2 + $0xe8] sm:$0xff] }
 0x302   : > { %9917 = vmatpush3.msra.mxu0 %v6178_v13  ;;  %9948 = vmatprep.subr.mxu1 %v6407_v0  ;;  %v5935_v13 = vld [vmem:[#allocation2 + $0x68] sm:$0xff] }
 0x303   : > { %9918 = vmatprep.subr.mxu0 %v6177_v43 }
 0x304   : > { %v12581_v23 = vpop.f32.mrf.mxu1  ;;  %9841 = vmatmul.mubr.msk.f32.gmra.mxu1 %vm2959_vm2, %v13519_v35  ;;  %9864 = vmatmul.mubr.msk.f32.gmra.mxu0 %vm2959_vm2, %v13520_v49  ;;  %v6635_v35 = vld [vmem:[%s13305_s2 + $0x110] sm:$0xff] }
 0x305   : > { %9843 = vmatprep.mubr.msk.f32.mxu1 %vm2959_vm2, %v12294_v10  ;;  %9866 = vmatprep.mubr.msk.f32.mxu0 %vm2959_vm2, %v11933_v28 }
 0x306   : > { %v12594_v17 = vpop.f32.mrf.mxu1  ;;  %9919 = vmatpush3.msra.mxu0 %v6177_v43  ;;  %v5938_v43 = vld [vmem:[#allocation2 + $0x90] sm:$0xff] }
 0x307   : > { %9920 = vmatprep.subr.mxu0 %v6176_v21 }
 0x308   : > { %v12596_v60 = vpop.f32.mrf.mxu1  ;;  %9844 = vmatmul.mubr.msk.f32.gmra.mxu1 %vm2959_vm2, %v12303_v29  ;;  %9867 = vmatmul.mubr.msk.f32.gmra.mxu0 %vm2959_vm2, %v11952_v18  ;;  %v12617_v18 = vld [vmem:[#allocation2 + $0xc2] sm:$0xff] }
 0x309   : > { %9846 = vmatprep.mubr.msk.f32.mxu1 %vm2959_vm2, %v12309_v45  ;;  %9869 = vmatprep.mubr.msk.f32.mxu0 %vm2959_vm2, %v11958_v52  ;;  %v12622_v45 = vld [vmem:[%s13305_s2 + $0x118] sm:$0xff] }
 0x30a   : > { %v12609_v10 = vpop.f32.mrf.mxu1  ;;  %9921 = vmatpush3.msra.mxu0 %v6176_v21  ;;  %v13521_v52 = vld [vmem:[#allocation24_spill] sm:$0xff] }
 0x30b   : > { %9922 = vmatprep.subr.mxu0 %v6175_v24 }
 0x30c   : > { %v12611_v28 = vpop.f32.mrf.mxu1  ;;  %9847 = vmatmul.mubr.msk.f32.gmra.mxu1 %vm2959_vm2, %v12318_v9  ;;  %9870 = vmatmul.mubr.msk.f32.gmra.mxu0 %vm2959_vm2, %v11978_v25  ;;  %v12630_v9 = vld [vmem:[#allocation2 + $0xca] sm:$0xff] }
 0x30d   : > { %9849 = vmatprep.mubr.msk.f32.mxu1 %vm2959_vm2, %v12617_v18  ;;  %9872 = vmatprep.mubr.msk.f32.mxu0 %vm2959_vm2, %v13521_v52 }
 0x30e   : > { %v12628_v29 = vpop.f32.mrf.mxu1  ;;  %9923 = vmatpush3.msra.mxu0 %v6175_v24  ;;  %v8342_v24 = vld [vmem:[%s10517_s18 + $0x69] sm:$0xff] }
 0x30f   : > { %9980 = vmatprep.subr.mxu0 %v12622_v45 }
 0x310   : > { %v12633_v25 = vpop.f32.mrf.mxu1  ;;  %9850 = vmatmul.mubr.msk.f32.gmra.mxu1 %vm2959_vm2, %v12630_v9  ;;  %9873 = vmatmul.mubr.msk.f32.gmra.mxu0 %vm2959_vm2, %v12001_v38  ;;  %v5932_v38 = vld [vmem:[#allocation2 + $0x48] sm:$0xff] }
 0x311   : > { %9892 = vmatprep.mubr.msk.f32.mxu1 %vm2959_vm2, %v5930_v41  ;;  %9875 = vmatprep.mubr.msk.f32.mxu0 %vm2959_vm2, %v12007_v16 }
 0x312   : > { %v12642_v12 = vpop.f32.mrf.mxu1 }
 0x314   : > { %v9478_v26 = vpop.f32.mrf.mxu0  ;;  %v9510_v1 = vpop.f32.mrf.mxu1  ;;  %9876 = vmatmul.mubr.msk.f32.gmra.mxu0 %vm2959_vm2, %v12024_v34  ;;  %9893 = vmatmul.mubr.msk.f32.vlgmr.msra.gmra.mxu1 %vm2959_vm2, %v5931_v22  ;;  %v6405_v34 = vld [vmem:[%s13306_s3 + $0xe8] sm:$0xff]  ;;  %v8343_v22 = vld [vmem:[%s10517_s18 + $0x79] sm:$0xff] }
 0x315   : > { %v3333_v57 = vadd.f32 %v9510_v1, %v9478_v26  ;;  %9895 = vmatprep.mubr.msk.f32.mxu1 %vm2959_vm2, %v5932_v38  ;;  %9949 = vmatpush3.msra.mxu1 %v6407_v0  ;;  %v12676_v0 = vld [vmem:[%s13306_s3 + $0x118] sm:$0xff] }
 0x316   : > { %v3134_v16 = vpop.f32.mrf.mxu0  ;;  %v3327_v6 = vpop.f32.mrf.mxu1  ;;  %9878 = vmatprep.mubr.msk.f32.mxu0 %vm2959_vm2, %v12340_v37  ;;  %9950 = vmatprep.subr.mxu1 %v6406_v42  ;;  %v8306_v37 = vld [vmem:[%s10517_s18 + $0xf8] sm:$0xff] }
 0x317   : > { %v3328_v36 = vadd.f32 %v3327_v6, %v3134_v16  ;;  %9951 = vmatpush3.msra.mxu1 %v6406_v42 }
 0x318   : > { %v9481_v47 = vpop.f32.mrf.mxu0  ;;  %v9513_v56 = vpop.f32.mrf.mxu1  ;;  %9879 = vmatmul.mubr.msk.f32.gmra.mxu0 %vm2959_vm2, %v12354_v48  ;;  %9896 = vmatmul.mubr.msk.f32.gmra.mxu1 %vm2959_vm2, %v5933_v55  ;;  %v6404_v48 = vld [vmem:[%s13306_s3 + $0xe0] sm:$0xff]  ;;  %v8345_v55 = vld [vmem:[%s10517_s18 + $0x91] sm:$0xff] }
 0x319   : > { %v3343_v11 = vadd.f32 %v9513_v56, %v9481_v47  ;;  %9898 = vmatprep.mubr.msk.f32.mxu1 %vm2959_vm2, %v5934_v59  ;;  %9881 = vmatprep.mubr.msk.f32.mxu0 %vm2959_vm2, %v8305_v58  ;;  %v5941_v56 = vld [vmem:[#allocation2 + $0xb0] sm:$0xff] }
 0x31a   : > { %v3144_v31 = vpop.f32.mrf.mxu0  ;;  %v3337_v46 = vpop.f32.mrf.mxu1  ;;  %9952 = vmatprep.subr.mxu1 %v6405_v34 }
 0x31b   : > { %v3338_v8 = vadd.f32 %v3337_v46, %v3144_v31  ;;  %9953 = vmatpush3.msra.mxu1 %v6405_v34 }
 0x31c   : > { %v9484_v61 = vpop.f32.mrf.mxu0  ;;  %v9516_v2 = vpop.f32.mrf.mxu1  ;;  %9882 = vmatmul.mubr.msk.f32.gmra.mxu0 %vm2959_vm2, %v8306_v37  ;;  %9899 = vmatmul.mubr.msk.f32.gmra.mxu1 %vm2959_vm2, %v5935_v13 }
 0x31d   : > { %v3353_v51 = vadd.f32 %v9516_v2, %v9484_v61  ;;  %9901 = vmatprep.mubr.msk.f32.mxu1 %vm2959_vm2, %v5936_v53  ;;  %9924 = vmatprep.mubr.msk.f32.mxu0 %vm2959_vm2, %v8339_v27 }
 0x31e   : > { %v3154_v40 = vpop.f32.mrf.mxu0  ;;  %v3347_v4 = vpop.f32.mrf.mxu1  ;;  %9954 = vmatprep.subr.mxu1 %v6404_v48 }
 0x31f   : > { %v3348_v5 = vadd.f32 %v3347_v4, %v3154_v40  ;;  %9955 = vmatpush3.msra.mxu1 %v6404_v48  ;;  %v8349_v40 = vld [vmem:[%s10517_s18 + $0xc1] sm:$0xff] }
 0x320   : > { %v9519_v44 = vpop.f32.mrf.mxu1  ;;  %v9542_v32 = vpop.f32.mrf.mxu0  ;;  %9902 = vmatmul.mubr.msk.f32.gmra.mxu1 %vm2959_vm2, %v5937_v39  ;;  %9925 = vmatmul.mubr.msk.f32.vlgmr.msra.gmra.mxu0 %vm2959_vm2, %v8340_v3 }
 0x321   : > { %v3363_v49 = vadd.f32 %v9519_v44, %v12563_v14  ;;  %v12684_v21 = vadd.f32 %v9542_v32, %v3333_v57  ;;  %9904 = vmatprep.mubr.msk.f32.mxu1 %vm2959_vm2, %v5938_v43  ;;  %9927 = vmatprep.mubr.msk.f32.mxu0 %vm2959_vm2, %v8341_v63  ;;  %v5939_v14 = vld [vmem:[#allocation2 + $0x98] sm:$0xff]  ;;  %v5940_v57 = vld [vmem:[#allocation2 + $0xa8] sm:$0xff]  ;;  %v5945_v63 = vld [vmem:[#allocation2 + $0xe0] sm:$0xff] }
 0x322   : > { %v3357_v52 = vpop.f32.mrf.mxu1  ;;  %v3540_v41 = vpop.f32.mrf.mxu0  ;;  %9981 = vmatpush3.msra.mxu0 %v12622_v45  ;;  %10012 = vmatprep.subr.mxu1 %v12676_v0  ;;  %v6634_v45 = vld [vmem:[%s13305_s2 + $0x108] sm:$0xff] }
 0x323   : > { %v3358_v42 = vadd.f32 %v3357_v52, %v12577_v54  ;;  %v12693_v26 = vadd.f32 %v3540_v41, %v3328_v36  ;;  %9982 = vmatprep.subr.mxu0 %v6635_v35  ;;  %v8344_v54 = vld [vmem:[%s10517_s18 + $0x81] sm:$0xff]  ;;  %v8350_v43 = vld [vmem:[%s10517_s18 + $0xc9] sm:$0xff]  ;;  %v6389_v52 = vld [vmem:[#allocation2 + $0x39] sm:$0xff] }
 0x324   : > { %v9522_v1 = vpop.f32.mrf.mxu1  ;;  %v9545_v38 = vpop.f32.mrf.mxu0  ;;  %9905 = vmatmul.mubr.msk.f32.gmra.mxu1 %vm2959_vm2, %v5939_v14  ;;  %9928 = vmatmul.mubr.msk.f32.gmra.mxu0 %vm2959_vm2, %v8342_v24  ;;  %v6864_v41 = vld [vmem:[%s13306_s3 + $0x110] sm:$0xff] }
 0x325   : > { %v3373_v16 = vadd.f32 %v9522_v1, %v12581_v23  ;;  %v12701_v6 = vadd.f32 %v9545_v38, %v3343_v11  ;;  %9907 = vmatprep.mubr.msk.f32.mxu1 %vm2959_vm2, %v5940_v57  ;;  %9930 = vmatprep.mubr.msk.f32.mxu0 %vm2959_vm2, %v8343_v22  ;;  %v6633_v11 = vld [vmem:[%s13305_s2 + $0x100] sm:$0xff]  ;;  %v8353_v57 = vld [vmem:[%s10517_s18 + $0xf1] sm:$0xff] }
 0x326   : > { %v3367_v58 = vpop.f32.mrf.mxu1  ;;  %v3550_v36 = vpop.f32.mrf.mxu0  ;;  %9983 = vmatpush3.msra.mxu0 %v6635_v35 }
 0x327   : > { %v3368_v34 = vadd.f32 %v3367_v58, %v12594_v17  ;;  %v12708_v47 = vadd.f32 %v3550_v36, %v3338_v8  ;;  %9984 = vmatprep.subr.mxu0 %v6634_v45  ;;  %v8346_v17 = vld [vmem:[%s10517_s18 + $0x99] sm:$0xff]  ;;  %v8347_v8 = vld [vmem:[%s10517_s18 + $0xa9] sm:$0xff] }
 0x328   : > { %v9525_v23 = vpop.f32.mrf.mxu1  ;;  %v9548_v59 = vpop.f32.mrf.mxu0  ;;  %9908 = vmatmul.mubr.msk.f32.gmra.mxu1 %vm2959_vm2, %v5941_v56  ;;  %9931 = vmatmul.mubr.msk.f32.gmra.mxu0 %vm2959_vm2, %v8344_v54  ;;  %v6391_v54 = vld [vmem:[#allocation2 + $0x51] sm:$0xff] }
 0x329   : > { %v3383_v37 = vadd.f32 %v9525_v23, %v12596_v60  ;;  %v12716_v31 = vadd.f32 %v9548_v59, %v3353_v51  ;;  %9910 = vmatprep.mubr.msk.f32.mxu1 %vm2959_vm2, %v12407_v62  ;;  %9933 = vmatprep.mubr.msk.f32.mxu0 %vm2959_vm2, %v8345_v55  ;;  %v5944_v62 = vld [vmem:[#allocation2 + $0xd8] sm:$0xff]  ;;  %v8387_v23 = vld [vmem:[%s10517_s18 + $0x4a] sm:$0xff] }
 0x32a   : > { %v3377_v46 = vpop.f32.mrf.mxu1  ;;  %v3560_v27 = vpop.f32.mrf.mxu0  ;;  %9985 = vmatpush3.msra.mxu0 %v6634_v45 }
 0x32b   : > { %v3378_v13 = vadd.f32 %v3377_v46, %v12609_v10  ;;  %v12724_v48 = vadd.f32 %v3560_v27, %v3348_v5  ;;  %9986 = vmatprep.subr.mxu0 %v6633_v11  ;;  %v8348_v10 = vld [vmem:[%s10517_s18 + $0xb1] sm:$0xff]  ;;  %v6394_v46 = vld [vmem:[#allocation2 + $0x79] sm:$0xff] }
 0x32c   : > { %v9528_v60 = vpop.f32.mrf.mxu1  ;;  %v9551_v61 = vpop.f32.mrf.mxu0  ;;  %9911 = vmatmul.mubr.msk.f32.gmra.mxu1 %vm2959_vm2, %v12416_v30  ;;  %9934 = vmatmul.mubr.msk.f32.gmra.mxu0 %vm2959_vm2, %v8346_v17 }
 0x32d   : > { %v3393_v2 = vadd.f32 %v9528_v60, %v12611_v28  ;;  %v12730_v53 = vadd.f32 %v9551_v61, %v3363_v49  ;;  %9913 = vmatprep.mubr.msk.f32.mxu1 %vm2959_vm2, %v5944_v62  ;;  %9936 = vmatprep.mubr.msk.f32.mxu0 %vm2959_vm2, %v8347_v8  ;;  %v6388_v28 = vld [vmem:[#allocation2 + $0x31] sm:$0xff]  ;;  %v8389_v61 = vld [vmem:[%s10517_s18 + $0x62] sm:$0xff] }
 0x32e   : > { %v3387_v51 = vpop.f32.mrf.mxu1  ;;  %v3570_v3 = vpop.f32.mrf.mxu0  ;;  %9987 = vmatpush3.msra.mxu0 %v6633_v11  ;;  %v6393_v11 = vld [vmem:[#allocation2 + $0x69] sm:$0xff] }
 0x32f   : > { %v3388_v4 = vadd.f32 %v3387_v51, %v12628_v29  ;;  %v12737_v30 = vadd.f32 %v3570_v3, %v3358_v42  ;;  %v6390_v42 = vld [vmem:[#allocation2 + $0x49] sm:$0xff] }
 0x330   : > { %v9531_v5 = vpop.f32.mrf.mxu1  ;;  %v9554_v39 = vpop.f32.mrf.mxu0  ;;  %9914 = vmatmul.mubr.msk.f32.gmra.mxu1 %vm2959_vm2, %v5945_v63  ;;  %9937 = vmatmul.mubr.msk.f32.gmra.mxu0 %vm2959_vm2, %v8348_v10  ;;  %v6395_v10 = vld [vmem:[#allocation2 + $0x81] sm:$0xff]  ;;  %v8390_v63 = vld [vmem:[%s10517_s18 + $0x6a] sm:$0xff] }
 0x331   : > { %v3403_v44 = vadd.f32 %v9531_v5, %v12633_v25  ;;  %v12742_v32 = vadd.f32 %v9554_v39, %v3373_v16  ;;  %9956 = vmatprep.mubr.msk.f32.mxu1 %vm2959_vm2, %v6388_v28  ;;  %9939 = vmatprep.mubr.msk.f32.mxu0 %vm2959_vm2, %v8349_v40  ;;  %v8391_v39 = vld [vmem:[%s10517_s18 + $0x7a] sm:$0xff] }
 0x332   : > { %v3397_v29 = vpop.f32.mrf.mxu1  ;;  %v3580_v35 = vpop.f32.mrf.mxu0 }
 0x333   : > { %v3398_v49 = vadd.f32 %v3397_v29, %v12642_v12  ;;  %v12748_v24 = vadd.f32 %v3580_v35, %v3368_v34 }
 0x334   : > { %v9557_v25 = vpop.f32.mrf.mxu0  ;;  %v9574_v22 = vpop.f32.mrf.mxu1  ;;  %9940 = vmatmul.mubr.msk.f32.gmra.mxu0 %vm2959_vm2, %v8350_v43  ;;  %9957 = vmatmul.mubr.msk.f32.vlgmr.msra.gmra.mxu1 %vm2959_vm2, %v6389_v52  ;;  %v6397_v43 = vld [vmem:[#allocation2 + $0x99] sm:$0xff] }
 0x335   : > { %v12755_v14 = vadd.f32 %v9557_v25, %v3383_v37  ;;  %v3849_v1 = vadd.f32 %v9574_v22, %v12684_v21  ;;  %9959 = vmatprep.mubr.msk.f32.mxu1 %vm2959_vm2, %v6390_v42  ;;  %10013 = vmatpush3.msra.mxu1 %v12676_v0  ;;  %v6863_v21 = vld [vmem:[%s13306_s3 + $0x108] sm:$0xff]  ;;  %v8393_v22 = vld [vmem:[%s10517_s18 + $0x92] sm:$0xff] }
 0x336   : > { %v3590_v12 = vpop.f32.mrf.mxu0  ;;  %v3769_v38 = vpop.f32.mrf.mxu1  ;;  %9942 = vmatprep.mubr.msk.f32.mxu0 %vm2959_vm2, %v12438_v19  ;;  %10014 = vmatprep.subr.mxu1 %v6864_v41  ;;  %v6392_v19 = vld [vmem:[#allocation2 + $0x61] sm:$0xff] }
 0x337   : > { %v12763_v45 = vadd.f32 %v3590_v12, %v3378_v13  ;;  %v3848_v16 = vadd.f32 %v3769_v38, %v12693_v26  ;;  %10015 = vmatpush3.msra.mxu1 %v6864_v41  ;;  %v8354_v26 = vld [vmem:[%s10517_s18 + $0xf9] sm:$0xff]  ;;  %v6399_v12 = vld [vmem:[#allocation2 + $0xb1] sm:$0xff] }
 0x338   : > { %v9560_v0 = vpop.f32.mrf.mxu0  ;;  %v9577_v58 = vpop.f32.mrf.mxu1  ;;  %9943 = vmatmul.mubr.msk.f32.gmra.mxu0 %vm2959_vm2, %v12452_v50  ;;  %9960 = vmatmul.mubr.msk.f32.gmra.mxu1 %vm2959_vm2, %v6391_v54 }
 0x339   : > { %v12772_v36 = vadd.f32 %v9560_v0, %v3393_v2  ;;  %v3851_v55 = vadd.f32 %v9577_v58, %v12701_v6  ;;  %9962 = vmatprep.mubr.msk.f32.mxu1 %vm2959_vm2, %v6392_v19  ;;  %9945 = vmatprep.mubr.msk.f32.mxu0 %vm2959_vm2, %v8353_v57  ;;  %v6862_v6 = vld [vmem:[%s13306_s3 + $0x100] sm:$0xff]  ;;  %v8395_v0 = vld [vmem:[%s10517_s18 + $0xaa] sm:$0xff] }
 0x33a   : > { %v3600_v34 = vpop.f32.mrf.mxu0  ;;  %v3779_v56 = vpop.f32.mrf.mxu1  ;;  %10016 = vmatprep.subr.mxu1 %v6863_v21 }
 0x33b   : > { %v12779_v59 = vadd.f32 %v3600_v34, %v3388_v4  ;;  %v3850_v50 = vadd.f32 %v3779_v56, %v12708_v47  ;;  %10017 = vmatpush3.msra.mxu1 %v6863_v21  ;;  %v8388_v47 = vld [vmem:[%s10517_s18 + $0x52] sm:$0xff] }
 0x33c   : > { %v9563_v37 = vpop.f32.mrf.mxu0  ;;  %v9580_v17 = vpop.f32.mrf.mxu1  ;;  %9946 = vmatmul.mubr.msk.f32.gmra.mxu0 %vm2959_vm2, %v8354_v26  ;;  %9963 = vmatmul.mubr.msk.f32.gmra.mxu1 %vm2959_vm2, %v6393_v11  ;;  %v8396_v56 = vld [vmem:[%s10517_s18 + $0xb2] sm:$0xff] }
 0x33d   : > { %v12787_v27 = vadd.f32 %v9563_v37, %v3403_v44  ;;  %v3853_v8 = vadd.f32 %v9580_v17, %v12716_v31  ;;  %9965 = vmatprep.mubr.msk.f32.mxu1 %vm2959_vm2, %v6394_v46  ;;  %9988 = vmatprep.mubr.msk.f32.mxu0 %vm2959_vm2, %v8387_v23  ;;  %v6396_v31 = vld [vmem:[#allocation2 + $0x91] sm:$0xff] }
 0x33e   : > { %v3610_v13 = vpop.f32.mrf.mxu0  ;;  %v3789_v60 = vpop.f32.mrf.mxu1  ;;  %10018 = vmatprep.subr.mxu1 %v6862_v6 }
 0x33f   : > { %v12794_v62 = vadd.f32 %v3610_v13, %v3398_v49  ;;  %v3852_v2 = vadd.f32 %v3789_v60, %v12724_v48  ;;  %10019 = vmatpush3.msra.mxu1 %v6862_v6 }
 0x340   : > { %v9583_v51 = vpop.f32.mrf.mxu1  ;;  %v9606_v3 = vpop.f32.mrf.mxu0  ;;  %9966 = vmatmul.mubr.msk.f32.gmra.mxu1 %vm2959_vm2, %v6395_v10  ;;  %9989 = vmatmul.mubr.msk.f32.vlgmr.msra.gmra.mxu0 %vm2959_vm2, %v8388_v47  ;;  %v8398_v47 = vld [vmem:[%s10517_s18 + $0xca] sm:$0xff] }
 0x341   : > { %v3855_v40 = vadd.f32 %v9583_v51, %v12730_v53  ;;  %v12800_v4 = vadd.f32 %v9606_v3, %v3849_v1  ;;  %9968 = vmatprep.mubr.msk.f32.mxu1 %vm2959_vm2, %v6396_v31  ;;  %9991 = vmatprep.mubr.msk.f32.mxu0 %vm2959_vm2, %v8389_v61  ;;  %v6398_v53 = vld [vmem:[#allocation2 + $0xa9] sm:$0xff] }
 0x342   : > { %v3799_v48 = vpop.f32.mrf.mxu1  ;;  %v3998_v5 = vpop.f32.mrf.mxu0 }
 0x343   : > { %v3854_v28 = vadd.f32 %v3799_v48, %v12737_v30  ;;  %v12807_v44 = vadd.f32 %v3998_v5, %v3848_v16  ;;  %v8392_v30 = vld [vmem:[%s10517_s18 + $0x82] sm:$0xff] }
 0x344   : > { %v9586_v29 = vpop.f32.mrf.mxu1  ;;  %v9609_v35 = vpop.f32.mrf.mxu0  ;;  %9969 = vmatmul.mubr.msk.f32.gmra.mxu1 %vm2959_vm2, %v6397_v43  ;;  %9992 = vmatmul.mubr.msk.f32.gmra.mxu0 %vm2959_vm2, %v8390_v63  ;;  %v8401_v63 = vld [vmem:[%s10517_s18 + $0xf2] sm:$0xff] }
 0x345   : > { %v3857_v49 = vadd.f32 %v9586_v29, %v12742_v32  ;;  %v12812_v52 = vadd.f32 %v9609_v35, %v3851_v55  ;;  %9971 = vmatprep.mubr.msk.f32.mxu1 %vm2959_vm2, %v6398_v53  ;;  %9994 = vmatprep.mubr.msk.f32.mxu0 %vm2959_vm2, %v8391_v39  ;;  %v6849_v39 = vld [vmem:[#allocation2 + $0x52] sm:$0xff]  ;;  %v8402_v35 = vld [vmem:[%s10517_s18 + $0xfa] sm:$0xff] }
 0x346   : > { %v3809_v41 = vpop.f32.mrf.mxu1  ;;  %v4008_v25 = vpop.f32.mrf.mxu0 }
 0x347   : > { %v3856_v42 = vadd.f32 %v3809_v41, %v12748_v24  ;;  %v12819_v1 = vadd.f32 %v4008_v25, %v3850_v50  ;;  %v8394_v24 = vld [vmem:[%s10517_s18 + $0x9a] sm:$0xff]  ;;  %v8397_v50 = vld [vmem:[%s10517_s18 + $0xc2] sm:$0xff]  ;;  %v6851_v41 = vld [vmem:[#allocation2 + $0x6a] sm:$0xff]  ;;  %s13247_s18 = scalar_lea.hbm %s13309_s6, %s8439_s24 }
 0x348   : > { %v9589_v38 = vpop.f32.mrf.mxu1  ;;  %v9612_v57 = vpop.f32.mrf.mxu0  ;;  %9972 = vmatmul.mubr.msk.f32.gmra.mxu1 %vm2959_vm2, %v6399_v12  ;;  %9995 = vmatmul.mubr.msk.f32.gmra.mxu0 %vm2959_vm2, %v8392_v30 }
 0x349   : > { %v3859_v32 = vadd.f32 %v9589_v38, %v12755_v14  ;;  %v12824_v16 = vadd.f32 %v9612_v57, %v3853_v8  ;;  %9974 = vmatprep.mubr.msk.f32.mxu1 %vm2959_vm2, %v12505_v7  ;;  %9997 = vmatprep.mubr.msk.f32.mxu0 %vm2959_vm2, %v8393_v22  ;;  %v6402_v7 = vld [vmem:[#allocation2 + $0xd9] sm:$0xff] }
 0x34a   : > { %v3819_v54 = vpop.f32.mrf.mxu1  ;;  %v4018_v21 = vpop.f32.mrf.mxu0 }
 0x34b   : > { %v3858_v58 = vadd.f32 %v3819_v54, %v12763_v45  ;;  %v12832_v19 = vadd.f32 %v4018_v21, %v3852_v2  ;;  %v6847_v2 = vld [vmem:[#allocation2 + $0x3a] sm:$0xff]  ;;  %v6854_v21 = vld [vmem:[#allocation2 + $0x92] sm:$0xff] }
 0x34c   : > { %v9592_v55 = vpop.f32.mrf.mxu1  ;;  %v9615_v26 = vpop.f32.mrf.mxu0  ;;  %9975 = vmatmul.mubr.msk.f32.gmra.mxu1 %vm2959_vm2, %v12514_v33  ;;  %9998 = vmatmul.mubr.msk.f32.gmra.mxu0 %vm2959_vm2, %v8394_v24  ;;  %v6403_v33 = vld [vmem:[#allocation2 + $0xe1] sm:$0xff] }
 0x34d   : > { %v3861_v14 = vadd.f32 %v9592_v55, %v12772_v36  ;;  %v12838_v34 = vadd.f32 %v9615_v26, %v3855_v40  ;;  %9977 = vmatprep.mubr.msk.f32.mxu1 %vm2959_vm2, %v6402_v7  ;;  %10000 = vmatprep.mubr.msk.f32.mxu0 %vm2959_vm2, %v8395_v0  ;;  %v6846_v36 = vld [vmem:[#allocation2 + $0x32] sm:$0xff]  ;;  %v6853_v24 = vld [vmem:[#allocation2 + $0x82] sm:$0xff] }
 0x34e   : > { %v3829_v45 = vpop.f32.mrf.mxu1  ;;  %v4028_v23 = vpop.f32.mrf.mxu0 }
 0x34f   : > { %v3860_v11 = vadd.f32 %v3829_v45, %v12779_v59  ;;  %v12845_v6 = vadd.f32 %v4028_v23, %v3854_v28 }
 0x350   : > { %v9595_v37 = vpop.f32.mrf.mxu1  ;;  %v9618_v17 = vpop.f32.mrf.mxu0  ;;  %9978 = vmatmul.mubr.msk.f32.gmra.mxu1 %vm2959_vm2, %v6403_v33  ;;  %10001 = vmatmul.mubr.msk.f32.gmra.mxu0 %vm2959_vm2, %v8396_v56 }
 0x351   : > { %v3863_v46 = vadd.f32 %v9595_v37, %v12787_v27  ;;  %v12850_v8 = vadd.f32 %v9618_v17, %v3857_v49  ;;  %10020 = vmatprep.mubr.msk.f32.mxu1 %vm2959_vm2, %v6846_v36  ;;  %10003 = vmatprep.mubr.msk.f32.mxu0 %vm2959_vm2, %v8397_v50  ;;  %v6848_v27 = vld [vmem:[#allocation2 + $0x4a] sm:$0xff]  ;;  %v6857_v17 = vld [vmem:[#allocation2 + $0xb2] sm:$0xff] }
 0x352   : > { %v3839_v59 = vpop.f32.mrf.mxu1  ;;  %v4038_v13 = vpop.f32.mrf.mxu0 }
 0x353   : > { %v3862_v60 = vadd.f32 %v3839_v59, %v12794_v62  ;;  %v12856_v61 = vadd.f32 %v4038_v13, %v3856_v42 }
 0x354   : > { %v9621_v10 = vpop.f32.mrf.mxu0  ;;  %v9638_v51 = vpop.f32.mrf.mxu1  ;;  %10004 = vmatmul.mubr.msk.f32.gmra.mxu0 %vm2959_vm2, %v8398_v47  ;;  %10021 = vmatmul.mubr.msk.f32.vlgmr.msra.gmra.mxu1 %vm2959_vm2, %v6847_v2 }
 0x355   : > { %v12860_v3 = vadd.f32 %v9621_v10, %v3859_v32  ;;  %v4307_v31 = vadd.f32 %v9638_v51, %v12800_v4  ;;  %10023 = vmatprep.mubr.msk.f32.mxu1 %vm2959_vm2, %v6848_v27  ;;  %10006 = vmatprep.mubr.msk.f32.mxu0 %vm2959_vm2, %v12536_v20  ;;  %v6850_v4 = vld [vmem:[#allocation2 + $0x62] sm:$0xff] }
 0x356   : > { %v4048_v62 = vpop.f32.mrf.mxu0  ;;  %v4227_v40 = vpop.f32.mrf.mxu1 }
 0x357   : > { %v12867_v48 = vadd.f32 %v4048_v62, %v3858_v58  ;;  %v4306_v5 = vadd.f32 %v4227_v40, %v12807_v44 }
 0x358   : > { %v9624_v28 = vpop.f32.mrf.mxu0  ;;  %v9641_v43 = vpop.f32.mrf.mxu1  ;;  %10007 = vmatmul.mubr.msk.f32.gmra.mxu0 %vm2959_vm2, %v12550_v15  ;;  %10024 = vmatmul.mubr.msk.f32.gmra.mxu1 %vm2959_vm2, %v6849_v39  ;;  %v6852_v15 = vld [vmem:[#allocation2 + $0x7a] sm:$0xff] }
 0x359   : > { %v4090_v29 = vadd.f32 %v9624_v28, %v3861_v14  ;;  %v4309_v20 = vadd.f32 %v9641_v43, %v12812_v52  ;;  %10026 = vmatprep.mubr.msk.f32.mxu1 %vm2959_vm2, %v6850_v4  ;;  %10009 = vmatprep.mubr.msk.f32.mxu0 %vm2959_vm2, %v8401_v63  ;;  %v6855_v14 = vld [vmem:[#allocation2 + $0x9a] sm:$0xff] }
 0x35a   : > { %v4058_v53 = vpop.f32.mrf.mxu0  ;;  %v4237_v49 = vpop.f32.mrf.mxu1 }
 0x35b   : > { %v4089_v44 = vadd.f32 %v4058_v53, %v3860_v11  ;;  %v4308_v30 = vadd.f32 %v4237_v49, %v12819_v1 }
 0x35c   : > { %v9627_v25 = vpop.f32.mrf.mxu0  ;;  %v9644_v22 = vpop.f32.mrf.mxu1  ;;  %10010 = vmatmul.mubr.msk.f32.gmra.mxu0 %vm2959_vm2, %v8402_v35  ;;  %10027 = vmatmul.mubr.msk.f32.gmra.mxu1 %vm2959_vm2, %v6851_v41 }
 0x35d   : > { %v4092_v42 = vadd.f32 %v9627_v25, %v3863_v46  ;;  %v4311_v52 = vadd.f32 %v9644_v22, %v12824_v16  ;;  %10029 = vmatprep.mubr.msk.f32.mxu1 %vm2959_vm2, %v6852_v15 }
 0x35e   : > { %v4068_v12 = vpop.f32.mrf.mxu0  ;;  %v4247_v38 = vpop.f32.mrf.mxu1 }
 0x35f   : > { %v4091_v57 = vadd.f32 %v4068_v12, %v3862_v60  ;;  %v4310_v32 = vadd.f32 %v4247_v38, %v12832_v19  ;;  %v6856_v19 = vld [vmem:[#allocation2 + $0xaa] sm:$0xff] }
 0x360   : > { %v9647_v1 = vpop.f32.mrf.mxu1  ;;  %v9670_v54 = vpop.f32.mrf.mxu0  ;;  %10030 = vmatmul.mubr.msk.f32.gmra.mxu1 %vm2959_vm2, %v6853_v24 }
 0x361   : > { %v4313_v0 = vadd.f32 %v9647_v1, %v12838_v34  ;;  %v4536_v58 = vadd.f32 %v9670_v54, %v4307_v31  ;;  %10032 = vmatprep.mubr.msk.f32.mxu1 %vm2959_vm2, %v6854_v21 }
 0x362   : > { %v4257_v55 = vpop.f32.mrf.mxu1  ;;  %v4456_v16 = vpop.f32.mrf.mxu0 }
 0x363   : > { %v4312_v26 = vadd.f32 %v4257_v55, %v12845_v6  ;;  %v4535_v7 = vadd.f32 %v4456_v16, %v4306_v5 }
 0x364   : > { %v9650_v56 = vpop.f32.mrf.mxu1  ;;  %v9673_v45 = vpop.f32.mrf.mxu0  ;;  %10033 = vmatmul.mubr.msk.f32.gmra.mxu1 %vm2959_vm2, %v6855_v14 }
 0x365   : > { %v4315_v23 = vadd.f32 %v9650_v56, %v12850_v8  ;;  %v4538_v50 = vadd.f32 %v9673_v45, %v4309_v20  ;;  %10035 = vmatprep.mubr.msk.f32.mxu1 %vm2959_vm2, %v6856_v19 }
 0x366   : > { %v4267_v34 = vpop.f32.mrf.mxu1  ;;  %v4466_v11 = vpop.f32.mrf.mxu0 }
 0x367   : > { %v4314_v33 = vadd.f32 %v4267_v34, %v12856_v61  ;;  %v4537_v37 = vadd.f32 %v4466_v11, %v4308_v30  ;;  %v6860_v61 = vld [vmem:[#allocation2 + $0xda] sm:$0xff] }
 0x368   : > { %v9653_v36 = vpop.f32.mrf.mxu1  ;;  %v9676_v6 = vpop.f32.mrf.mxu0  ;;  %10036 = vmatmul.mubr.msk.f32.gmra.mxu1 %vm2959_vm2, %v6857_v17 }
 0x369   : > { %v4317_v46 = vadd.f32 %v9653_v36, %v12860_v3  ;;  %v4540_v47 = vadd.f32 %v9676_v6, %v4311_v52  ;;  %10038 = vmatprep.mubr.msk.f32.mxu1 %vm2959_vm2, %v12617_v18  ;;  %v6861_v18 = vld [vmem:[#allocation2 + $0xe2] sm:$0xff] }
 0x36a   : > { %v4277_v8 = vpop.f32.mrf.mxu1  ;;  %v4476_v59 = vpop.f32.mrf.mxu0 }
 0x36b   : > { %v4316_v13 = vadd.f32 %v4277_v8, %v12867_v48  ;;  %v4539_v60 = vadd.f32 %v4476_v59, %v4310_v32 }
 0x36c   : > { %v9656_v2 = vpop.f32.mrf.mxu1  ;;  %v9679_v10 = vpop.f32.mrf.mxu0  ;;  %10039 = vmatmul.mubr.msk.f32.gmra.mxu1 %vm2959_vm2, %v12630_v9 }
 0x36d   : > { %v4319_v51 = vadd.f32 %v9656_v2, %v4090_v29  ;;  %v4542_v27 = vadd.f32 %v9679_v10, %v4313_v0  ;;  %10041 = vmatprep.mubr.msk.f32.mxu1 %vm2959_vm2, %v6860_v61 }
 0x36e   : > { %v4287_v3 = vpop.f32.mrf.mxu1  ;;  %v4486_v31 = vpop.f32.mrf.mxu0 }
 0x36f   : > { %v4318_v62 = vadd.f32 %v4287_v3, %v4089_v44  ;;  %v4541_v40 = vadd.f32 %v4486_v31, %v4312_v26 }
 0x370   : > { %v9659_v63 = vpop.f32.mrf.mxu1  ;;  %v9682_v5 = vpop.f32.mrf.mxu0  ;;  %10042 = vmatmul.mubr.msk.f32.gmra.mxu1 %vm2959_vm2, %v6861_v18 }
 0x371   : > { %v4321_v48 = vadd.f32 %v9659_v63, %v4092_v42  ;;  %v4544_v39 = vadd.f32 %v9682_v5, %v4315_v23 }
 0x372   : > { %v4297_v28 = vpop.f32.mrf.mxu1  ;;  %v4496_v43 = vpop.f32.mrf.mxu0 }
 0x373   : > { %v4320_v4 = vadd.f32 %v4297_v28, %v4091_v57  ;;  %v4543_v9 = vadd.f32 %v4496_v43, %v4314_v33 }
 0x374   : > { %v9685_v20 = vpop.f32.mrf.mxu0  ;;  %v9702_v29 = vpop.f32.mrf.mxu1 }
 0x375   : > { %v4546_v35 = vadd.f32 %v9685_v20, %v4317_v46  ;;  %v4766_v53 = vadd.f32 %v9702_v29, %v4536_v58 }
 0x376   : > { %v4506_v49 = vpop.f32.mrf.mxu0  ;;  %v4686_v30 = vpop.f32.mrf.mxu1 }
 0x377   : > { %v4545_v41 = vadd.f32 %v4506_v49, %v4316_v13  ;;  %v4765_v44 = vadd.f32 %v4686_v30, %v4535_v7 }
 0x378   : > { %v9688_v25 = vpop.f32.mrf.mxu0  ;;  %v9705_v22 = vpop.f32.mrf.mxu1 }
 0x379   : > { %v4548_v15 = vadd.f32 %v9688_v25, %v4319_v51  ;;  %v4768_v52 = vadd.f32 %v9705_v22, %v4538_v50 }
 0x37a   : > { %v4516_v12 = vpop.f32.mrf.mxu0  ;;  %v4696_v38 = vpop.f32.mrf.mxu1 }
 0x37b   : > { %v4547_v42 = vadd.f32 %v4516_v12, %v4318_v62  ;;  %v4767_v32 = vadd.f32 %v4696_v38, %v4537_v37 }
 0x37c   : > { %v9691_v24 = vpop.f32.mrf.mxu0  ;;  %v9708_v1 = vpop.f32.mrf.mxu1 }
 0x37d   : > { %v4550_v57 = vadd.f32 %v9691_v24, %v4321_v48  ;;  %v4770_v54 = vadd.f32 %v9708_v1, %v4540_v47 }
 0x37e   : > { %v4526_v21 = vpop.f32.mrf.mxu0  ;;  %v4706_v0 = vpop.f32.mrf.mxu1 }
 0x37f   : > { %v4549_v55 = vadd.f32 %v4526_v21, %v4320_v4  ;;  %v4769_v58 = vadd.f32 %v4706_v0, %v4539_v60 }
 0x380   : > { %v9711_v16 = vpop.f32.mrf.mxu1  ;;  %v9734_v26 = vpop.f32.mrf.mxu0 }
 0x381   : > { %v4772_v14 = vadd.f32 %v9711_v16, %v4542_v27  ;;  %v4995_v7 = vadd.f32 %v9734_v26, %v4766_v53 }
 0x382   : > { %v4716_v56 = vpop.f32.mrf.mxu1  ;;  %v4915_v45 = vpop.f32.mrf.mxu0 }
 0x383   : > { %v4771_v19 = vadd.f32 %v4716_v56, %v4541_v40  ;;  %v4994_v23 = vadd.f32 %v4915_v45, %v4765_v44 }
 0x384   : > { %v9714_v50 = vpop.f32.mrf.mxu1  ;;  %v9737_v34 = vpop.f32.mrf.mxu0 }
 0x385   : > { %v4774_v11 = vadd.f32 %v9714_v50, %v4544_v39  ;;  %v4997_v33 = vadd.f32 %v9737_v34, %v4768_v52 }
 0x386   : > { %v4726_v37 = vpop.f32.mrf.mxu1  ;;  %v4925_v17 = vpop.f32.mrf.mxu0 }
 0x387   : > { %v4773_v36 = vadd.f32 %v4726_v37, %v4543_v9  ;;  %v4996_v6 = vadd.f32 %v4925_v17, %v4767_v32 }
 0x388   : > { %v9717_v46 = vpop.f32.mrf.mxu1  ;;  %v9740_v47 = vpop.f32.mrf.mxu0 }
 0x389   : > { %v4776_v8 = vadd.f32 %v9717_v46, %v4546_v35  ;;  %v4999_v59 = vadd.f32 %v9740_v47, %v4770_v54 }
 0x38a   : > { %v4736_v13 = vpop.f32.mrf.mxu1  ;;  %v4935_v60 = vpop.f32.mrf.mxu0 }
 0x38b   : > { %v4775_v2 = vadd.f32 %v4736_v13, %v4545_v41  ;;  %v4998_v10 = vadd.f32 %v4935_v60, %v4769_v58 }
 0x38c   : > { %v9720_v61 = vpop.f32.mrf.mxu1  ;;  %v9743_v51 = vpop.f32.mrf.mxu0 }
 0x38d   : > { %v4778_v27 = vadd.f32 %v9720_v61, %v4548_v15  ;;  %v5001_v3 = vadd.f32 %v9743_v51, %v4772_v14 }
 0x38e   : > { %v4746_v31 = vpop.f32.mrf.mxu1  ;;  %v4945_v62 = vpop.f32.mrf.mxu0 }
 0x38f   : > { %v4777_v40 = vadd.f32 %v4746_v31, %v4547_v42  ;;  %v5000_v18 = vadd.f32 %v4945_v62, %v4771_v19 }
 0x390   : > { %v9723_v63 = vpop.f32.mrf.mxu1  ;;  %v9746_v5 = vpop.f32.mrf.mxu0 }
 0x391   : > { %v4780_v48 = vadd.f32 %v9723_v63, %v4550_v57  ;;  %v5003_v39 = vadd.f32 %v9746_v5, %v4774_v11 }
 0x392   : > { %v4756_v28 = vpop.f32.mrf.mxu1  ;;  %v4955_v43 = vpop.f32.mrf.mxu0 }
 0x393   : > { %v4779_v4 = vadd.f32 %v4756_v28, %v4549_v55  ;;  %v5002_v9 = vadd.f32 %v4955_v43, %v4773_v36 }
 0x394   : > { %v9749_v20 = vpop.f32.mrf.mxu0  ;;  %v9766_v29 = vpop.f32.mrf.mxu1 }
 0x395   : > { %v5005_v35 = vadd.f32 %v9749_v20, %v4776_v8  ;;  %v5224_v53 = vadd.f32 %v9766_v29, %v4995_v7 }
 0x396   : > { %v4965_v49 = vpop.f32.mrf.mxu0  ;;  %v5144_v30 = vpop.f32.mrf.mxu1 }
 0x397   : > { %v5004_v41 = vadd.f32 %v4965_v49, %v4775_v2  ;;  %v5223_v44 = vadd.f32 %v5144_v30, %v4994_v23 }
 0x398   : > { %v9752_v25 = vpop.f32.mrf.mxu0  ;;  %v9769_v22 = vpop.f32.mrf.mxu1 }
 0x399   : > { %v5007_v15 = vadd.f32 %v9752_v25, %v4778_v27  ;;  %v5226_v52 = vadd.f32 %v9769_v22, %v4997_v33 }
 0x39a   : > { %v4975_v12 = vpop.f32.mrf.mxu0  ;;  %v5154_v38 = vpop.f32.mrf.mxu1 }
 0x39b   : > { %v5006_v42 = vadd.f32 %v4975_v12, %v4777_v40  ;;  %v5225_v32 = vadd.f32 %v5154_v38, %v4996_v6 }
 0x39c   : > { %v9755_v24 = vpop.f32.mrf.mxu0  ;;  %v9772_v1 = vpop.f32.mrf.mxu1 }
 0x39d   : > { %v5009_v57 = vadd.f32 %v9755_v24, %v4780_v48  ;;  %v5228_v54 = vadd.f32 %v9772_v1, %v4999_v59 }
 0x39e   : > { %v4985_v21 = vpop.f32.mrf.mxu0  ;;  %v5164_v0 = vpop.f32.mrf.mxu1 }
 0x39f   : > { %v5008_v55 = vadd.f32 %v4985_v21, %v4779_v4  ;;  %v5227_v58 = vadd.f32 %v5164_v0, %v4998_v10 }
 0x3a0   : > { %v9775_v16 = vpop.f32.mrf.mxu1  ;;  %v9798_v26 = vpop.f32.mrf.mxu0 }
 0x3a1   : > { %v5230_v14 = vadd.f32 %v9775_v16, %v5001_v3  ;;  %v5453_v7 = vadd.f32 %v9798_v26, %v5224_v53 }
 0x3a2   : > { %v5174_v56 = vpop.f32.mrf.mxu1  ;;  %v5373_v45 = vpop.f32.mrf.mxu0 }
 0x3a3   : > { %v5229_v19 = vadd.f32 %v5174_v56, %v5000_v18  ;;  %v5452_v23 = vadd.f32 %v5373_v45, %v5223_v44 }
 0x3a4   : > { %v9778_v50 = vpop.f32.mrf.mxu1  ;;  %v9801_v34 = vpop.f32.mrf.mxu0 }
 0x3a5   : > { %v5232_v11 = vadd.f32 %v9778_v50, %v5003_v39  ;;  %v5455_v33 = vadd.f32 %v9801_v34, %v5226_v52 }
 0x3a6   : > { %v5184_v37 = vpop.f32.mrf.mxu1  ;;  %v5383_v17 = vpop.f32.mrf.mxu0 }
 0x3a7   : > { %v5231_v36 = vadd.f32 %v5184_v37, %v5002_v9  ;;  %v5454_v6 = vadd.f32 %v5383_v17, %v5225_v32 }
 0x3a8   : > { %v9781_v46 = vpop.f32.mrf.mxu1  ;;  %v9804_v47 = vpop.f32.mrf.mxu0 }
 0x3a9   : > { %v5234_v8 = vadd.f32 %v9781_v46, %v5005_v35  ;;  %v5457_v59 = vadd.f32 %v9804_v47, %v5228_v54 }
 0x3aa   : > { %v5194_v13 = vpop.f32.mrf.mxu1  ;;  %v5393_v60 = vpop.f32.mrf.mxu0 }
 0x3ab   : > { %v5233_v2 = vadd.f32 %v5194_v13, %v5004_v41  ;;  %v5456_v10 = vadd.f32 %v5393_v60, %v5227_v58 }
 0x3ac   : > { %v9784_v61 = vpop.f32.mrf.mxu1  ;;  %v9807_v51 = vpop.f32.mrf.mxu0 }
 0x3ad   : > { %v5236_v27 = vadd.f32 %v9784_v61, %v5007_v15  ;;  %v5459_v3 = vadd.f32 %v9807_v51, %v5230_v14 }
 0x3ae   : > { %v5204_v31 = vpop.f32.mrf.mxu1  ;;  %v5403_v62 = vpop.f32.mrf.mxu0 }
 0x3af   : > { %v5235_v40 = vadd.f32 %v5204_v31, %v5006_v42  ;;  %v5458_v18 = vadd.f32 %v5403_v62, %v5229_v19 }
 0x3b0   : > { %v9787_v63 = vpop.f32.mrf.mxu1  ;;  %v9810_v5 = vpop.f32.mrf.mxu0 }
 0x3b1   : > { %v5238_v48 = vadd.f32 %v9787_v63, %v5009_v57  ;;  %v5461_v39 = vadd.f32 %v9810_v5, %v5232_v11 }
 0x3b2   : > { %v5214_v28 = vpop.f32.mrf.mxu1  ;;  %v5413_v43 = vpop.f32.mrf.mxu0 }
 0x3b3   : > { %v5237_v4 = vadd.f32 %v5214_v28, %v5008_v55  ;;  %v5460_v9 = vadd.f32 %v5413_v43, %v5231_v36 }
 0x3b4   : > { %v9813_v20 = vpop.f32.mrf.mxu0  ;;  %v9830_v29 = vpop.f32.mrf.mxu1 }
 0x3b5   : > { %v5463_v35 = vadd.f32 %v9813_v20, %v5234_v8  ;;  %v5682_v53 = vadd.f32 %v9830_v29, %v5453_v7 }
 0x3b6   : > { %v5423_v49 = vpop.f32.mrf.mxu0  ;;  %v5602_v30 = vpop.f32.mrf.mxu1 }
 0x3b7   : > { %v5462_v41 = vadd.f32 %v5423_v49, %v5233_v2  ;;  %v5681_v44 = vadd.f32 %v5602_v30, %v5452_v23 }
 0x3b8   : > { %v9816_v25 = vpop.f32.mrf.mxu0  ;;  %v9833_v22 = vpop.f32.mrf.mxu1 }
 0x3b9   : > { %v5465_v15 = vadd.f32 %v9816_v25, %v5236_v27  ;;  %v5684_v52 = vadd.f32 %v9833_v22, %v5455_v33 }
 0x3ba   : > { %v5433_v12 = vpop.f32.mrf.mxu0  ;;  %v5612_v38 = vpop.f32.mrf.mxu1 }
 0x3bb   : > { %v5464_v42 = vadd.f32 %v5433_v12, %v5235_v40  ;;  %v5683_v32 = vadd.f32 %v5612_v38, %v5454_v6 }
 0x3bc   : > { %v9819_v24 = vpop.f32.mrf.mxu0  ;;  %v9836_v1 = vpop.f32.mrf.mxu1 }
 0x3bd   : > { %v5467_v57 = vadd.f32 %v9819_v24, %v5238_v48  ;;  %v5686_v54 = vadd.f32 %v9836_v1, %v5457_v59 }
 0x3be   : > { %v5443_v21 = vpop.f32.mrf.mxu0  ;;  %v5622_v0 = vpop.f32.mrf.mxu1 }
 0x3bf   : > { %v5466_v55 = vadd.f32 %v5443_v21, %v5237_v4  ;;  %v5685_v58 = vadd.f32 %v5622_v0, %v5456_v10 }
 0x3c0   : > { %v9839_v16 = vpop.f32.mrf.mxu1  ;;  %v9862_v26 = vpop.f32.mrf.mxu0 }
 0x3c1   : > { %v5688_v14 = vadd.f32 %v9839_v16, %v5459_v3  ;;  %v5914_v7 = vadd.f32 %v9862_v26, %v5682_v53 }
 0x3c2   : > { %v5632_v56 = vpop.f32.mrf.mxu1  ;;  %v5834_v45 = vpop.f32.mrf.mxu0 }
 0x3c3   : > { %v5687_v19 = vadd.f32 %v5632_v56, %v5458_v18  ;;  %v5913_v23 = vadd.f32 %v5834_v45, %v5681_v44 }
 0x3c4   : > { %v9842_v50 = vpop.f32.mrf.mxu1  ;;  %v9865_v34 = vpop.f32.mrf.mxu0 }
 0x3c5   : > { %v5690_v11 = vadd.f32 %v9842_v50, %v5461_v39  ;;  %v5916_v33 = vadd.f32 %v9865_v34, %v5684_v52 }
 0x3c6   : > { %v5642_v37 = vpop.f32.mrf.mxu1  ;;  %v5844_v17 = vpop.f32.mrf.mxu0 }
 0x3c7   : > { %v5689_v36 = vadd.f32 %v5642_v37, %v5460_v9  ;;  %v5915_v6 = vadd.f32 %v5844_v17, %v5683_v32 }
 0x3c8   : > { %v9845_v46 = vpop.f32.mrf.mxu1  ;;  %v9868_v47 = vpop.f32.mrf.mxu0 }
 0x3c9   : > { %v5692_v8 = vadd.f32 %v9845_v46, %v5463_v35  ;;  %v5918_v59 = vadd.f32 %v9868_v47, %v5686_v54 }
 0x3ca   : > { %v5652_v13 = vpop.f32.mrf.mxu1  ;;  %v5854_v60 = vpop.f32.mrf.mxu0 }
 0x3cb   : > { %v5691_v2 = vadd.f32 %v5652_v13, %v5462_v41  ;;  %v5917_v10 = vadd.f32 %v5854_v60, %v5685_v58 }
 0x3cc   : > { %v9848_v61 = vpop.f32.mrf.mxu1  ;;  %v9871_v51 = vpop.f32.mrf.mxu0 }
 0x3cd   : > { %v12900_v27 = vadd.f32 %v9848_v61, %v5465_v15  ;;  %v5920_v3 = vadd.f32 %v9871_v51, %v5688_v14 }
 0x3ce   : > { %v5662_v31 = vpop.f32.mrf.mxu1  ;;  %v5864_v62 = vpop.f32.mrf.mxu0 }
 0x3cf   : > { %v5693_v40 = vadd.f32 %v5662_v31, %v5464_v42  ;;  %v5919_v18 = vadd.f32 %v5864_v62, %v5687_v19 }
 0x3d0   : > { %v9851_v63 = vpop.f32.mrf.mxu1  ;;  %v9874_v5 = vpop.f32.mrf.mxu0 }
 0x3d1   : > { %v12902_v48 = vadd.f32 %v9851_v63, %v5467_v57  ;;  %v5922_v39 = vadd.f32 %v9874_v5, %v5690_v11 }
 0x3d2   : > { %v5672_v28 = vpop.f32.mrf.mxu1  ;;  %v5874_v43 = vpop.f32.mrf.mxu0 }
 0x3d3   : > { %v12904_v4 = vadd.f32 %v5672_v28, %v5466_v55  ;;  %v5921_v9 = vadd.f32 %v5874_v43, %v5689_v36 }
 0x3d4   : > { %v9877_v20 = vpop.f32.mrf.mxu0  ;;  %v9894_v29 = vpop.f32.mrf.mxu1 }
 0x3d5   : > { %13522 = vst [vmem:[#allocation39_spill] sm:$0xff] %v12904_v4  ;;  %v5924_v35 = vadd.f32 %v9877_v20, %v5692_v8  ;;  %v12906_v53 = vadd.f32 %v9894_v29, %v5914_v7 }
 0x3d6   : > { %v5884_v49 = vpop.f32.mrf.mxu0  ;;  %v6064_v30 = vpop.f32.mrf.mxu1 }
 0x3d7   : > { %v5923_v41 = vadd.f32 %v5884_v49, %v5691_v2  ;;  %v12908_v44 = vadd.f32 %v6064_v30, %v5913_v23 }
 0x3d8   : > { %v12910_v25 = vpop.f32.mrf.mxu0  ;;  %v9897_v22 = vpop.f32.mrf.mxu1 }
 0x3d9   : > { %v12912_v15 = vadd.f32 %v9897_v22, %v5916_v33 }
 0x3da   : > { %v5894_v52 = vpop.f32.mrf.mxu0  ;;  %v6074_v12 = vpop.f32.mrf.mxu1 }
 0x3db   : > { %v5925_v38 = vadd.f32 %v5894_v52, %v5693_v40  ;;  %v12914_v42 = vadd.f32 %v6074_v12, %v5915_v6 }
 0x3dc   : > { %v12916_v32 = vpop.f32.mrf.mxu0  ;;  %v9900_v24 = vpop.f32.mrf.mxu1 }
 0x3dd   : > { %13523 = vst [vmem:[#allocation42_spill] sm:$0xff] %v12916_v32  ;;  %v12918_v1 = vadd.f32 %v9900_v24, %v5918_v59 }
 0x3de   : > { %v12920_v57 = vpop.f32.mrf.mxu0  ;;  %v6084_v54 = vpop.f32.mrf.mxu1 }
 0x3df   : > { %13524 = vst [vmem:[#allocation48_spill] sm:$0xff] %v12920_v57  ;;  %v12922_v21 = vadd.f32 %v6084_v54, %v5917_v10 }
 0x3e0   : > { %v9903_v0 = vpop.f32.mrf.mxu1  ;;  %v9926_v55 = vpop.f32.mrf.mxu0 }
 0x3e1   : > { %v12924_v58 = vadd.f32 %v9903_v0, %v5920_v3 }
 0x3e2   : > { %v6094_v16 = vpop.f32.mrf.mxu1  ;;  %v6293_v26 = vpop.f32.mrf.mxu0 }
 0x3e3   : > { %v12926_v14 = vadd.f32 %v6094_v16, %v5919_v18 }
 0x3e4   : > { %v9906_v7 = vpop.f32.mrf.mxu1  ;;  %v9929_v56 = vpop.f32.mrf.mxu0 }
 0x3e5   : > { %v12928_v45 = vadd.f32 %v9906_v7, %v5922_v39 }
 0x3e6   : > { %v6104_v19 = vpop.f32.mrf.mxu1  ;;  %v12930_v23 = vpop.f32.mrf.mxu0 }
 0x3e7   : > { %v12932_v50 = vadd.f32 %v6104_v19, %v5921_v9  ;;  %v7131_v19 = vpop.permute.xlu0 %7130 }
 0x3e8   : > { %v9909_v34 = vpop.f32.mrf.mxu1  ;;  %v12934_v11 = vpop.f32.mrf.mxu0 }
 0x3e9   : > { %v12936_v33 = vadd.f32 %v9909_v34, %v5924_v35  ;;  %v6373_v34 = vadd.f32 %v9926_v55, %v12906_v53 }
 0x3ea   : > { %v6114_v37 = vpop.f32.mrf.mxu1  ;;  %v12938_v17 = vpop.f32.mrf.mxu0 }
 0x3eb   : > { %v12940_v36 = vadd.f32 %v6114_v37, %v5923_v41  ;;  %v13002_v57 = vpop.permute.xlu0 %7134 }
 0x3ec   : > { %v12942_v6 = vpop.f32.mrf.mxu1  ;;  %v12944_v46 = vpop.f32.mrf.mxu0  ;;  %13538 = vst [vmem:[#allocation33_spill] sm:$0xff] %v13002_v57 }
 0x3ee   : > { %v6124_v47 = vpop.f32.mrf.mxu1  ;;  %v12946_v8 = vpop.f32.mrf.mxu0 }
 0x3ef   : > { %v12948_v59 = vadd.f32 %v6124_v47, %v5925_v38  ;;  %v7133_v47 = vpop.permute.xlu1 %7132 }
 0x3f0   : > { %v12950_v13 = vpop.f32.mrf.mxu1  ;;  %v12952_v60 = vpop.f32.mrf.mxu0 }
 0x3f1   : > { %13525 = vst [vmem:[#allocation43_spill] sm:$0xff] %v12948_v59  ;;  %13526 = vst [vmem:[#allocation50_spill] sm:$0xff] %v12950_v13 }
 0x3f2   : > { %v12954_v2 = vpop.f32.mrf.mxu1  ;;  %v12956_v10 = vpop.f32.mrf.mxu0 }
 0x3f3   : > { %13527 = vst [vmem:[#allocation53_spill] sm:$0xff] %v12954_v2 }
 0x3f4   : > { %v12958_v61 = vpop.f32.mrf.mxu0  ;;  %v9958_v51 = vpop.f32.mrf.mxu1 }
 0x3f6   : > { %v12960_v3 = vpop.f32.mrf.mxu0  ;;  %v6522_v31 = vpop.f32.mrf.mxu1 }
 0x3f8   : > { %v12962_v62 = vpop.f32.mrf.mxu0  ;;  %v9961_v40 = vpop.f32.mrf.mxu1 }
 0x3f9   : > { %13528 = vst [vmem:[#allocation51_spill] sm:$0xff] %v12962_v62 }
 0x3fa   : > { %v12964_v18 = vpop.f32.mrf.mxu0  ;;  %v6532_v63 = vpop.f32.mrf.mxu1 }
 0x3fb   : > { %13529 = vst [vmem:[#allocation31_spill] sm:$0xff] %v12964_v18 }
 0x3fc   : > { %v12966_v5 = vpop.f32.mrf.mxu0  ;;  %v9964_v39 = vpop.f32.mrf.mxu1 }
 0x3fd   : > { %13530 = vst [vmem:[#allocation30_spill] sm:$0xff] %v12966_v5  ;;  %v6602_v5 = vadd.f32 %v9958_v51, %v6373_v34  ;;  %v13543_v34 = vld [vmem:[#allocation7_spill] sm:$0xff] }
 0x3fe   : > { %v12968_v28 = vpop.f32.mrf.mxu0  ;;  %v12970_v43 = vpop.f32.mrf.mxu1  ;;  %v7118_v57 = vsub.f32 1.0, %v13543_v34 }
 0x3ff   : > { %13531 = vst [vmem:[#allocation27_spill] sm:$0xff] %v12968_v28  ;;  %v6372_v28 = vadd.f32 %v6293_v26, %v12908_v44  ;;  %v13009_v44 = vld [vmem:[%s13308_s5] ss:$0 sm:$0xff]  ;;  %v13539_v26 = vld [vmem:[#allocation19_spill] sm:$0xff] }
 0x400   : > { %v12972_v9 = vpop.f32.mrf.mxu1  ;;  %v9990_v20 = vpop.f32.mrf.mxu0  ;;  %v7115_v51 = vsub.f32 1.0, %v13539_v26 }
 0x401   : > { %v6601_v2 = vadd.f32 %v6522_v31, %v6372_v28  ;;  %v6831_v13 = vadd.f32 %v9990_v20, %v6602_v5  ;;  %v13541_v31 = vld [vmem:[#allocation20_spill] sm:$0xff]  ;;  %v6374_v28 = vadd.f32 %v12930_v23, %v12914_v42  ;;  %v6376_v42 = vadd.f32 %v12938_v17, %v12922_v21 }
 0x402   : > { %v12974_v29 = vpop.f32.mrf.mxu1  ;;  %v6751_v35 = vpop.f32.mrf.mxu0  ;;  %v7117_v5 = vsub.f32 1.0, %v13541_v31 }
 0x403   : > { %v6830_v55 = vadd.f32 %v6751_v35, %v6601_v2  ;;  %v13542_v2 = vld [vmem:[#allocation14_spill] sm:$0xff]  ;;  %v6603_v26 = vadd.f32 %v6532_v63, %v6374_v28  ;;  %v7139_v28 = vpop.permute.xlu0 %7138  ;;  %v6605_v21 = vadd.f32 %v12970_v43, %v6376_v42 }
 0x404   : > { %v12976_v49 = vpop.f32.mrf.mxu1  ;;  %v9993_v30 = vpop.f32.mrf.mxu0  ;;  %v7119_v35 = vsub.f32 1.0, %v13542_v2  ;;  %v13042_v43 = vmul.f32 %v7139_v28, %v7118_v57  ;;  %v13548_v28 = vld [vmem:[#allocation39_spill] sm:$0xff] }
 0x406   : > { %v12978_v41 = vpop.f32.mrf.mxu1  ;;  %v6761_v22 = vpop.f32.mrf.mxu0 }
 0x408   : > { %v12980_v52 = vpop.f32.mrf.mxu1  ;;  %v9996_v12 = vpop.f32.mrf.mxu0 }
 0x40a   : > { %v12982_v38 = vpop.f32.mrf.mxu1  ;;  %v6771_v24 = vpop.f32.mrf.mxu0 }
 0x40b   : > { %13532 = vst [vmem:[#allocation26_spill] sm:$0xff] %v12982_v38  ;;  %v13537_v38 = vld [vmem:[#allocation17_spill] sm:$0xff] }
 0x40c   : > { %v12984_v54 = vpop.f32.mrf.mxu1  ;;  %v12986_v0 = vpop.f32.mrf.mxu0  ;;  %v7114_v62 = vsub.f32 1.0, %v13537_v38  ;;  %v13544_v38 = vld [vmem:[#allocation9_spill] sm:$0xff] }
 0x40d   : > { %13533 = vst [vmem:[#allocation29_spill] sm:$0xff] %v12984_v54  ;;  %v6375_v54 = vadd.f32 %v9929_v56, %v12912_v15 }
 0x40e   : > { %v12988_v16 = vpop.f32.mrf.mxu1  ;;  %v12990_v7 = vpop.f32.mrf.mxu0 }
 0x40f   : > { %13534 = vst [vmem:[#allocation28_spill] sm:$0xff] %v12988_v16  ;;  %v6604_v53 = vadd.f32 %v9961_v40, %v6375_v54  ;;  %v7137_v40 = vpop.permute.xlu1 %7136 }
 0x410   : > { %v12993_v37 = vpop.f32.mrf.mxu1  ;;  %v12996_v18 = vpop.f32.mrf.mxu0 }
 0x411   : > { %13535 = vst [vmem:[#allocation34_spill] sm:$0xff] %v12993_v37  ;;  %v6833_v54 = vadd.f32 %v9993_v30, %v6604_v53  ;;  %v13546_v53 = vld [vmem:[#allocation11_spill] sm:$0xff] }
 0x412   : > { %v12998_v59 = vpop.f32.mrf.mxu1  ;;  %v13004_v37 = vpop.f32.mrf.mxu0 }
 0x413   : > { %13536 = vst [vmem:[#allocation32_spill] sm:$0xff] %v12998_v59  ;;  %v7121_v59 = vsub.f32 1.0, %v13544_v38 }
 0x414   : > { %v10022_v16 = vpop.f32.mrf.mxu1  ;;  %v13024_v31 = vpop.f32.mrf.mxu0 }
 0x415   : > { %v7060_v4 = vadd.f32 %v10022_v16, %v6831_v13  ;;  %v6377_v13 = vadd.f32 %v12934_v11, %v12918_v1  ;;  %v13027_v1 = vmul.f32 %v7131_v19, %v7114_v62  ;;  %v13545_v11 = vld [vmem:[#allocation8_spill] sm:$0xff]  ;;  %v6378_v62 = vadd.f32 %v12946_v8, %v12926_v14 }
 0x416   : > { %v6980_v20 = vpop.f32.mrf.mxu1  ;;  %v7120_v30 = vsub.f32 1.0, %v13545_v11 }
 0x417   : > { %v7059_v16 = vadd.f32 %v6980_v20, %v6830_v55  ;;  %v7083_v56 = vadd.f32 %v13009_v44, %v7060_v4  ;;  %v6606_v23 = vadd.f32 %v9964_v39, %v6377_v13  ;;  %v7123_v55 = vsub.f32 1.0, %v13546_v53 }
 0x418   : > { %v10025_v15 = vpop.f32.mrf.mxu1  ;;  %v6832_v20 = vadd.f32 %v6761_v22, %v6603_v26  ;;  %v6379_v4 = vadd.f32 %v12944_v46, %v12924_v58  ;;  %v13035_v13 = vmul.f32 %v7133_v47, %v7115_v51  ;;  %v6834_v26 = vadd.f32 %v6771_v24, %v6605_v21  ;;  %v13550_v21 = vld [vmem:[#allocation51_spill] sm:$0xff] }
 0x419   : > { %v7082_v2 = vadd.f32 %v13009_v44, %v7059_v16  ;;  %v7062_v32 = vadd.f32 %v10025_v15, %v6833_v54  ;;  %v6835_v17 = vadd.f32 %v9996_v12, %v6606_v23  ;;  %10210 = vtanh.f32 %v7083_v56  ;;  %v7141_v54 = vpop.permute.xlu1 %7140  ;;  %v6801_v16 = vpop.f32.mrf.mxu0 }
 0x41a   : > { %v6990_v63 = vpop.f32.mrf.mxu1  ;;  %v6608_v22 = vadd.f32 %v12972_v9, %v6379_v4  ;;  %v13040_v46 = vmul.f32 %v7137_v40, %v7117_v5  ;;  %v6607_v14 = vadd.f32 %v12974_v29, %v6378_v62  ;;  %v13049_v24 = vmul.f32 %v7141_v54, %v7119_v35  ;;  %v13549_v4 = vld [vmem:[#allocation48_spill] sm:$0xff]  ;;  %v13551_v62 = vld [vmem:[#allocation26_spill] sm:$0xff] }
 0x41b   : > { %v7085_v39 = vadd.f32 %v13009_v44, %v7062_v32  ;;  %v7061_v19 = vadd.f32 %v6990_v63, %v6832_v20  ;;  %10212 = vtanh.f32 %v7082_v2  ;;  %v6381_v32 = vadd.f32 %v12952_v60, %v12928_v45  ;;  %v10008_v60 = vpop.f32.mrf.mxu0  ;;  %v13552_v54 = vld [vmem:[#allocation50_spill] sm:$0xff] }
 0x41c   : > { %v10028_v15 = vpop.f32.mrf.mxu1  ;;  %v6837_v8 = vadd.f32 %v12986_v0, %v6608_v22  ;;  %v6380_v51 = vadd.f32 %v12956_v10, %v12932_v50  ;;  %v6836_v45 = vadd.f32 %v12990_v7, %v6607_v14  ;;  %v5926_v40 = vadd.f32 %v12910_v25, %v12900_v27 }
 0x41d   : > { %v7064_v58 = vadd.f32 %v10028_v15, %v6835_v17  ;;  %10214 = vtanh.f32 %v7085_v39  ;;  %v6610_v57 = vadd.f32 %v12976_v49, %v6381_v32  ;;  %v7084_v56 = vadd.f32 %v13009_v44, %v7061_v19  ;;  %v7145_v39 = vpop.permute.xlu1 %7144  ;;  %v13555_v32 = vld [vmem:[#allocation31_spill] sm:$0xff] }
 0x41e   : > { %v7000_v12 = vpop.f32.mrf.mxu1  ;;  %v6383_v2 = vadd.f32 %v12958_v61, %v12936_v33  ;;  %v6609_v50 = vadd.f32 %v12978_v41, %v6380_v51  ;;  %v6156_v42 = vadd.f32 %v12942_v6, %v5926_v40  ;;  %v6382_v23 = vadd.f32 %v12960_v3, %v12940_v36  ;;  %v6811_v33 = vpop.f32.mrf.mxu0  ;;  %v13547_v41 = vld [vmem:[#allocation42_spill] sm:$0xff] }
 0x41f   : > { %v7087_v47 = vadd.f32 %v13009_v44, %v7064_v58  ;;  %v7063_v9 = vadd.f32 %v7000_v12, %v6834_v26  ;;  %v6839_v49 = vadd.f32 %v12996_v18, %v6610_v57  ;;  %v5928_v63 = vadd.f32 %v13547_v41, %v12902_v48  ;;  %v13553_v26 = vld [vmem:[#allocation53_spill] sm:$0xff]  ;;  %v13554_v48 = vld [vmem:[#allocation43_spill] sm:$0xff]  ;;  %v13557_v40 = vld [vmem:[#allocation30_spill] sm:$0xff] }
 0x420   : > { %v10031_v5 = vpop.f32.mrf.mxu1  ;;  %v6612_v20 = vadd.f32 %v12980_v52, %v6383_v2  ;;  %v6838_v25 = vadd.f32 %v13004_v37, %v6609_v50  ;;  %v5927_v6 = vadd.f32 %v13549_v4, %v13548_v28  ;;  %v6385_v17 = vadd.f32 %v13550_v21, %v6156_v42  ;;  %v13558_v50 = vld [vmem:[#allocation27_spill] sm:$0xff]  ;;  %v13559_v42 = vld [vmem:[#allocation28_spill] sm:$0xff] }
 0x421   : > { %10216 = vtanh.f32 %v7087_v47  ;;  %v7086_v29 = vadd.f32 %v13009_v44, %v7063_v9  ;;  %v7066_v0 = vadd.f32 %v10031_v5, %v6837_v8  ;;  %v10358_v3 = vmov 1983009808   ;;  %v13556_v9 = vld [vmem:[#allocation29_spill] sm:$0xff]  ;;  %v13096_v4 = vpop.permute.xlu1 %7148 }
 0x422   : > { %v7010_v10 = vpop.f32.mrf.mxu1  ;;  %v7229_v52 = vunpack.c.l.s4 %v10358_v3  ;;  %v6611_v19 = vadd.f32 %v13551_v62, %v6382_v23  ;;  %v6841_v37 = vadd.f32 %v13024_v31, %v6612_v20  ;;  %v6158_v22 = vadd.f32 %v13552_v54, %v5928_v63  ;;  %v13561_v63 = vld [vmem:[#allocation19_spill] sm:$0xff] }
 0x423   : > { %10218 = vtanh.f32 %v7086_v29  ;;  %v7089_v35 = vadd.f32 %v13009_v44, %v7066_v0  ;;  %v7065_v7 = vadd.f32 %v7010_v10, %v6836_v45  ;;  %v6157_v58 = vadd.f32 %v13553_v26, %v5927_v6  ;;  %v13083_v29 = vpop.permute.xlu0 %7142  ;;  %v13562_v6 = vld [vmem:[#allocation32_spill] sm:$0xff] }
 0x424   : > { %10220 = vtanh.f32 %v7084_v56  ;;  %v10034_v27 = vpop.f32.mrf.mxu1  ;;  %v6384_v12 = vadd.f32 %v13555_v32, %v13554_v48  ;;  %v7231_v8 = vlaneseq  ;;  %v6614_v51 = vadd.f32 %v13556_v9, %v6385_v17  ;;  %v10011_v56 = vpop.f32.mrf.mxu0 }
 0x425   : > { %10222 = vtanh.f32 %v7089_v35  ;;  %v7088_v61 = vadd.f32 %v13009_v44, %v7065_v7  ;;  %v7068_v18 = vadd.f32 %v10034_v27, %v6839_v49  ;;  %v6840_v57 = vadd.f32 %v6801_v16, %v6611_v19  ;;  %v13563_v19 = vld [vmem:[#allocation20_spill] sm:$0xff] }
 0x426   : > { %v7020_v36 = vpop.f32.mrf.mxu1  ;;  %v10211_v47 = vpop.eup %10210  ;;  %v7185_v0 = vmul.f32 %v7145_v39, %v7121_v59  ;;  %v6387_v2 = vadd.f32 %v13557_v40, %v6158_v22  ;;  %v6386_v10 = vadd.f32 %v13558_v50, %v6157_v58  ;;  %v7230_v35 = vunpack.c.0.s8 %v7229_v52  ;;  %v13565_v58 = vld [vmem:[#allocation14_spill] sm:$0xff] }
 0x427   : > { %10224 = vtanh.f32 %v7088_v61  ;;  %v7067_v15 = vadd.f32 %v7020_v36, %v6838_v25  ;;  %v7091_v5 = vadd.f32 %v13009_v44, %v7068_v18  ;;  %v6613_v23 = vadd.f32 %v13559_v42, %v6384_v12  ;;  %v13560_v25 = vld [vmem:[#allocation34_spill] sm:$0xff]  ;;  %v6821_v36 = vpop.f32.mrf.mxu0 }
 0x428   : > { %v10037_v14 = vpop.f32.mrf.mxu1  ;;  %v10213_v31 = vpop.eup %10212  ;;  %v6843_v16 = vadd.f32 %v10008_v60, %v6614_v51  ;;  %v6616_v61 = vadd.f32 %v13560_v25, %v6387_v2  ;;  %v7195_v59 = vmul.f32 %v10211_v47, %v13561_v63  ;;  %v13094_v28 = vshrl.u32 %v7231_v8, 7  ;;  %v13566_v42 = vld [vmem:[#allocation18_spill] sm:$0xff] }
 0x429   : > { %v7070_v45 = vadd.f32 %v10037_v14, %v6841_v37  ;;  %v7090_v20 = vadd.f32 %v13009_v44, %v7067_v15  ;;  %v6615_v21 = vadd.f32 %v13562_v6, %v6386_v10  ;;  %v6842_v17 = vadd.f32 %v6811_v33, %v6613_v23  ;;  %v13564_v15 = vld [vmem:[#allocation17_spill] sm:$0xff]  ;;  %v13104_v33 = vpop.permute.xlu0 %7146 }
 0x42a   : > { %v7030_v49 = vpop.f32.mrf.mxu1  ;;  %v10215_v7 = vpop.eup %10214  ;;  %10226 = vtanh.f32 %v7091_v5  ;;  %v6845_v52 = vadd.f32 %v10011_v56, %v6616_v61  ;;  %v7194_v54 = vmul.f32 %v10213_v31, %v13564_v15  ;;  %v7211_v8 = vadd.f32 %v7195_v59, %v13035_v13  ;;  %v13569_v59 = vld [vmem:[#allocation10_spill] sm:$0xff] }
 0x42b   : > { %v7069_v27 = vadd.f32 %v7030_v49, %v6840_v57  ;;  %v7093_v18 = vadd.f32 %v13009_v44, %v7070_v45  ;;  %v7197_v37 = vmul.f32 %v10215_v7, %v13563_v19  ;;  %10228 = vtanh.f32 %v7090_v20  ;;  %v13115_v13 = vpop.permute.xlu1 %7152 }
 0x42c   : > { %v10040_v41 = vpop.f32.mrf.mxu1  ;;  %v6844_v12 = vadd.f32 %v6821_v36, %v6615_v21  ;;  %v13108_v47 = vsub.s32 %v7230_v35, %v13094_v28  ;;  %v7210_v2 = vadd.f32 %v7194_v54, %v13027_v1  ;;  %v13567_v20 = vsub.f32 1.0, %v13566_v42 }
 0x42d   : > { %v7072_v60 = vadd.f32 %v10040_v41, %v6843_v16  ;;  %v7092_v39 = vadd.f32 %v13009_v44, %v7069_v27  ;;  %10230 = vtanh.f32 %v7093_v18  ;;  %v7213_v31 = vadd.f32 %v7197_v37, %v13040_v46  ;;  %v13568_v27 = vld [vmem:[#allocation33_spill] sm:$0xff]  ;;  %v13129_v61 = vpop.permute.xlu0 %7150 }
 0x42e   : > { %v10217_v3 = vpop.eup %10216  ;;  %v7040_v62 = vpop.f32.mrf.mxu1  ;;  %v7180_v25 = vmul.f32 %v13568_v27, %v13567_v20 }
 0x42f   : > { %v7095_v22 = vadd.f32 %v13009_v44, %v7072_v60  ;;  %v7071_v26 = vadd.f32 %v7040_v62, %v6842_v17  ;;  %v7199_v48 = vmul.f32 %v10217_v3, %v13565_v58  ;;  %v7157_v36 = vpop.permute.xlu1 %7156  ;;  %v10359_v62 = vmov 1934713408  }
 0x430   : > { %v10219_v32 = vpop.eup %10218  ;;  %v10043_v14 = vpop.f32.mrf.mxu1  ;;  %v7293_v19 = vunpack.c.l.s4 %v10359_v62 }
 0x431   : > { %v10221_v9 = vpop.eup %10220  ;;  %10232 = vtanh.f32 %v7095_v22  ;;  %v7094_v51 = vadd.f32 %v13009_v44, %v7071_v26  ;;  %v7074_v57 = vadd.f32 %v10043_v14, %v6845_v52  ;;  %v7215_v56 = vadd.f32 %v7199_v48, %v13049_v24  ;;  %v13571_v52 = vld [vmem:[#allocation16_spill] sm:$0xff] }
 0x432   : > { %v10223_v5 = vpop.eup %10222  ;;  %10234 = vtanh.f32 %v7092_v39  ;;  %v7050_v45 = vpop.f32.mrf.mxu1  ;;  %v7198_v40 = vmul.f32 %v10219_v32, %v13543_v34  ;;  %v7196_v23 = vmul.f32 %v10221_v9, %v13566_v42  ;;  %v7124_v39 = vsub.f32 1.0, %v13571_v52 }
 0x433   : > { %10236 = vtanh.f32 %v7094_v51  ;;  %v7097_v50 = vadd.f32 %v13009_v44, %v7074_v57  ;;  %v7073_v10 = vadd.f32 %v7050_v45, %v6844_v12  ;;  %v7201_v49 = vmul.f32 %v10223_v5, %v13544_v38  ;;  %v7155_v32 = vpop.permute.xlu0 %7154  ;;  %v13572_v57 = vld [vmem:[#allocation12_spill] sm:$0xff]  ;;  %v13573_v5 = vld [vmem:[#allocation13_spill] sm:$0xff] }
 0x434   : > { %v10225_v35 = vpop.eup %10224  ;;  %v7363_v7 = vcombine.high %v7211_v8, %v7215_v56  ;;  %v7362_v24 = vcombine.low %v7211_v8, %v7215_v56  ;;  %v7214_v16 = vadd.f32 %v7198_v40, %v13042_v43  ;;  %v7184_v38 = vmul.f32 %v13083_v29, %v7120_v30 }
 0x435   : > { %10238 = vtanh.f32 %v7097_v50  ;;  %v7096_v34 = vadd.f32 %v13009_v44, %v7073_v10  ;;  %v7217_v46 = vadd.f32 %v7201_v49, %v7185_v0  ;;  %v7200_v1 = vmul.f32 %v10225_v35, %v13545_v11  ;;  %v13570_v0 = vld [vmem:[#allocation15_spill] sm:$0xff] }
 0x436   : > { %v7227_v18 = vcombine.high %v7210_v2, %v7214_v16  ;;  %v7226_v41 = vcombine.low %v7210_v2, %v7214_v16  ;;  %v7122_v44 = vsub.f32 1.0, %v13569_v59  ;;  %v7125_v6 = vsub.f32 1.0, %v13570_v0 }
 0x437   : > { %10240 = vtanh.f32 %v7096_v34  ;;  %v7379_v43 = vcombine.high %v7213_v31, %v7217_v46  ;;  %v7378_v63 = vcombine.low %v7213_v31, %v7217_v46  ;;  %v7212_v21 = vadd.f32 %v7196_v23, %v7180_v25  ;;  %v10227_v3 = vpop.eup %10226  ;;  %v13574_v31 = vld [vmem:[#allocation21_spill] sm:$0xff]  ;;  %v7161_v23 = vpop.permute.xlu1 %7160 }
 0x438   : > { %v7216_v17 = vadd.f32 %v7200_v1, %v7184_v38  ;;  %v13134_v60 = vrot.slane %v7363_v7, %v13108_v47  ;;  %v13140_v30 = vrot.slane %v7362_v24, %v13108_v47  ;;  %v13153_v58 = vrot.slane %v7227_v18, %v13108_v47  ;;  %v10229_v48 = vpop.eup %10228  ;;  %v13575_v1 = vld [vmem:[#allocation22_spill] sm:$0xff] }
 0x439   : > { %v13137_v11 = vrot.slane %v7379_v43, %v13108_v47  ;;  %v13143_v29 = vrot.slane %v7378_v63, %v13108_v47  ;;  %v13161_v8 = vrot.slane %v7226_v41, %v13108_v47  ;;  %v7126_v56 = vsub.f32 1.0, %v13572_v57 }
 0x43a   : > { %v7243_v37 = vcombine.high %v7212_v21, %v7216_v17  ;;  %v7242_v15 = vcombine.low %v7212_v21, %v7216_v17  ;;  %v10231_v51 = vpop.eup %10230  ;;  %v7127_v45 = vsub.f32 1.0, %v13573_v5  ;;  %v7129_v40 = vsub.f32 1.0, %v13574_v31  ;;  %v7159_v21 = vpop.permute.xlu0 %7158 }
 0x43b   : > { %v7442_v54 = vcombine.low %v13134_v60, %v13137_v11  ;;  %v7426_v22 = vcombine.low %v13140_v30, %v13143_v29  ;;  %v7443_v26 = vcombine.high %v13134_v60, %v13137_v11  ;;  %v7427_v12 = vcombine.high %v13140_v30, %v13143_v29 }
 0x43c   : > { %v13158_v14 = vrot.slane %v7243_v37, %v13108_v47  ;;  %v13164_v9 = vrot.slane %v7242_v15, %v13108_v47  ;;  %v7203_v2 = vmul.f32 %v10227_v3, %v13546_v53  ;;  %v7187_v10 = vmul.f32 %v13096_v4, %v7123_v55 }
 0x43d   : > { %v7294_v49 = vunpack.c.0.s8 %v7293_v19  ;;  %v7191_v42 = vmul.f32 %v7157_v36, %v7127_v45  ;;  %v7186_v55 = vmul.f32 %v13104_v33, %v7122_v44  ;;  %v7190_v4 = vmul.f32 %v7155_v32, %v7126_v56 }
 0x43e   : > { %v10233_v50 = vpop.eup %10232  ;;  %v7306_v35 = vcombine.low %v13153_v58, %v13158_v14  ;;  %v7290_v7 = vcombine.low %v13161_v8, %v13164_v9  ;;  %v7307_v34 = vcombine.high %v13153_v58, %v13158_v14  ;;  %v7291_v53 = vcombine.high %v13161_v8, %v13164_v9 }
 0x43f   : > { %v10235_v24 = vpop.eup %10234  ;;  %v7207_v16 = vmul.f32 %v10233_v50, %v13573_v5  ;;  %v7128_v20 = vsub.f32 1.0, %v13575_v1  ;;  %v7202_v27 = vmul.f32 %v10229_v48, %v13569_v59  ;;  %v7205_v25 = vmul.f32 %v10231_v51, %v13570_v0 }
 0x440   : > { %v10237_v46 = vpop.eup %10236  ;;  %v7219_v38 = vadd.f32 %v7203_v2, %v7187_v10  ;;  %v7189_v63 = vmul.f32 %v13115_v13, %v7125_v6  ;;  %v7193_v17 = vmul.f32 %v7161_v23, %v7129_v40  ;;  %v7297_v36 = vsub.s32 %v7294_v49, %v13094_v28 }
 0x441   : > { %v7223_v18 = vadd.f32 %v7207_v16, %v7191_v42  ;;  %v7206_v41 = vmul.f32 %v10237_v46, %v13572_v57  ;;  %v7204_v33 = vmul.f32 %v10235_v24, %v13571_v52  ;;  %v7188_v0 = vmul.f32 %v13129_v61, %v7124_v39 }
 0x442   : > { %v10239_v43 = vpop.eup %10238  ;;  %v7218_v29 = vadd.f32 %v7202_v27, %v7186_v55  ;;  %v7192_v3 = vmul.f32 %v7159_v21, %v7128_v20  ;;  %v7221_v62 = vadd.f32 %v7205_v25, %v7189_v63  ;;  %v13193_v6 = vrot.slane %v7442_v54, %v7297_v36 }
 0x443   : > { %v7209_v44 = vmul.f32 %v10239_v43, %v13574_v31  ;;  %v7395_v60 = vcombine.high %v7219_v38, %v7223_v18  ;;  %v7394_v11 = vcombine.low %v7219_v38, %v7223_v18  ;;  %v7222_v59 = vadd.f32 %v7206_v41, %v7190_v4 }
 0x444   : > { %v10241_v30 = vpop.eup %10240  ;;  %v13195_v37 = vrot.slane %v7426_v22, %v7297_v36  ;;  %v7220_v48 = vadd.f32 %v7204_v33, %v7188_v0  ;;  %v7457_v39 = vrot.slane %v7443_v26, %v7297_v36  ;;  %v7441_v8 = vrot.slane %v7427_v12, %v7297_v36 }
 0x445   : > { %v7225_v19 = vadd.f32 %v7209_v44, %v7193_v17  ;;  %v7208_v13 = vmul.f32 %v10241_v30, %v13575_v1  ;;  %v7259_v28 = vcombine.high %v7218_v29, %v7222_v59  ;;  %v7258_v52 = vcombine.low %v7218_v29, %v7222_v59 }
 0x446   : > { %v7409_v14 = vrot.slane %v7395_v60, %v13108_v47  ;;  %v7402_v61 = vrot.slane %v7394_v11, %v13108_v47  ;;  %v13201_v22 = vrot.slane %v7306_v35, %v7297_v36  ;;  %v13203_v56 = vrot.slane %v7290_v7, %v7297_v36 }
 0x447   : > { %v7411_v15 = vcombine.high %v7221_v62, %v7225_v19  ;;  %v7410_v58 = vcombine.low %v7221_v62, %v7225_v19  ;;  %v7224_v32 = vadd.f32 %v7208_v13, %v7192_v3  ;;  %v7321_v5 = vrot.slane %v7307_v34, %v7297_v36 }
 0x448   : > { %v7305_v45 = vrot.slane %v7291_v53, %v7297_v36  ;;  %v7273_v10 = vrot.slane %v7259_v28, %v13108_v47  ;;  %v7266_v12 = vrot.slane %v7258_v52, %v13108_v47 }
 0x449   : > { %v7425_v9 = vrot.slane %v7411_v15, %v13108_v47  ;;  %v7418_v51 = vrot.slane %v7410_v58, %v13108_v47  ;;  %v7275_v54 = vcombine.high %v7220_v48, %v7224_v32  ;;  %v7274_v57 = vcombine.low %v7220_v48, %v7224_v32 }
 0x44b   : > { %v7474_v31 = vcombine.low %v7409_v14, %v7425_v9  ;;  %v7458_v40 = vcombine.low %v7402_v61, %v7418_v51  ;;  %v7475_v2 = vcombine.high %v7409_v14, %v7425_v9  ;;  %v7459_v50 = vcombine.high %v7402_v61, %v7418_v51 }
 0x44c   : > { %v7289_v26 = vrot.slane %v7275_v54, %v13108_v47  ;;  %v7282_v49 = vrot.slane %v7274_v57, %v13108_v47 }
 0x44d   : > { %v13209_v24 = vrot.slane %v7474_v31, %v7297_v36  ;;  %v13211_v35 = vrot.slane %v7458_v40, %v7297_v36  ;;  %v7489_v7 = vrot.slane %v7475_v2, %v7297_v36  ;;  %v7473_v42 = vrot.slane %v7459_v50, %v7297_v36 }
 0x44e   : > { %v7338_v23 = vcombine.low %v7273_v10, %v7289_v26  ;;  %v7322_v16 = vcombine.low %v7266_v12, %v7282_v49  ;;  %v7339_v34 = vcombine.high %v7273_v10, %v7289_v26  ;;  %v7323_v53 = vcombine.high %v7266_v12, %v7282_v49 }
 0x44f   : > { %v7495_v46 = vcombine.high %v13193_v6, %v13209_v24  ;;  %v7491_v55 = vcombine.high %v13195_v37, %v13211_v35  ;;  %v7496_v4 = vcombine.low %v7457_v39, %v7489_v7  ;;  %v7492_v1 = vcombine.low %v7441_v8, %v7473_v42 }
 0x450   : > { %v7346_v20 = vrot.slane %v7338_v23, %v7297_v36  ;;  %v7330_v47 = vrot.slane %v7322_v16, %v7297_v36  ;;  %v7353_v27 = vrot.slane %v7339_v34, %v7297_v36  ;;  %v7337_v25 = vrot.slane %v7323_v53, %v7297_v36 }
 0x451   : > { %7535 = vrot.lane.b32.xlu1 %v7495_v46, %s10360_s17  ;;  %7523 = vrot.lane.b32.xlu0 %v7491_v55, %s10360_s17  ;;  %v7497_v38 = vcombine.high %v7457_v39, %v7489_v7  ;;  %v7493_v18 = vcombine.high %v7441_v8, %v7473_v42  ;;  %v7494_v41 = vcombine.low %v13193_v6, %v13209_v24 }
 0x452   : > { %v7359_v43 = vcombine.high %v13201_v22, %v7346_v20  ;;  %v7355_v63 = vcombine.high %v13203_v56, %v7330_v47  ;;  %v7360_v21 = vcombine.low %v7321_v5, %v7353_v27  ;;  %v7356_v17 = vcombine.low %v7305_v45, %v7337_v25 }
 0x453   : > { %v7361_v33 = vcombine.high %v7321_v5, %v7353_v27  ;;  %v7357_v44 = vcombine.high %v7305_v45, %v7337_v25  ;;  %v7490_v60 = vcombine.low %v13195_v37, %v13211_v35  ;;  %v7358_v36 = vcombine.low %v13201_v22, %v7346_v20 }
 0x454   : > { %v7354_v11 = vcombine.low %v13203_v56, %v7330_v47 }
 0x455   : > { %7539 = vrot.lane.b32.xlu1 %v7496_v4, %s10361_s29  ;;  %7527 = vrot.lane.b32.xlu0 %v7492_v1, %s10361_s29 }
 0x459   : > { %7511 = vrot.lane.b32.xlu1 %v7359_v43, %s10360_s17  ;;  %7499 = vrot.lane.b32.xlu0 %v7355_v63, %s10360_s17 }
 0x45d   : > { %7515 = vrot.lane.b32.xlu1 %v7360_v21, %s10361_s29  ;;  %7503 = vrot.lane.b32.xlu0 %v7356_v17, %s10361_s29  ;;  %s10362_s29 = smov [#allocation3]  }
 0x45e   : > { %s10266_s9 = sshll.u32 %s10362_s29, 4  ;;  %s10267_s9 = int_to_ptr.vmem [resolvable:$false] %s10266_s9 }
 0x45f   : > { %s10268_s12 = scalar_lea.vmem %s10267_s9, 1024 }
 0x461   : > { %7519 = vrot.lane.b32.xlu1 %v7361_v33, %s10357_s20  ;;  %7507 = vrot.lane.b32.xlu0 %v7357_v44, %s10357_s20 }
 0x465   : > { %7543 = vrot.lane.b32.xlu1 %v7497_v38, %s10357_s20  ;;  %7531 = vrot.lane.b32.xlu0 %v7493_v18, %s10357_s20  ;;  %s7580_s20 = sshll.u32 %s258_s25, 4  ;;  %s13249_s20 = int_to_ptr.vmem [resolvable:$true] %s7580_s20 }
 0x466   : > { %s10262_s17 = scalar_lea.vmem %s13249_s20, 512  ;;  %p10269_p2 = scmp.lt.s32.totalorder %s13249_s20, %s10267_s9 }
 0x467   : > { %p10263_p13 = scmp.ne.s32.totalorder %s13249_s20, %s10262_s17  ;;  %p10270_p4 = scmp.lt.s32.totalorder %s10268_s12, %s10262_s17 }
 0x469   : > { %p10264_p0 = pnand %p10263_p13, %p10449_p3  ;;  %p10271_p5 = por %p10270_p4, %p10269_p2 }
 0x46b   : > { %p10265_p1 = pneg %p10264_p0 }
 0x46d   : > { %p10272_p6 = pnand %p10271_p5, %p10265_p1 }
 0x4c3   : > { %v7536_v59 = vpop.permute.xlu1 %7535  ;;  %v7524_v30 = vpop.permute.xlu0 %7523 }
 0x4c4   : > { %v7556_v14 = vsel %vm2959_vm2, %v7494_v41, %v7536_v59  ;;  %v7553_v61 = vsel %vm2959_vm2, %v7490_v60, %v7524_v30 }
 0x4c7   : > { %v7540_v0 = vpop.permute.xlu1 %7539  ;;  %v7528_v29 = vpop.permute.xlu0 %7527 }
 0x4c8   : > { %v7557_v39 = vsel %vm323_vm0, %v7556_v14, %v7540_v0  ;;  %v7554_v8 = vsel %vm323_vm0, %v7553_v61, %v7528_v29 }
 0x4cb   : > { %v7512_v3 = vpop.permute.xlu1 %7511  ;;  %v7500_v62 = vpop.permute.xlu0 %7499 }
 0x4cc   : > { %v7550_v6 = vsel %vm2959_vm2, %v7358_v36, %v7512_v3  ;;  %v7546_v37 = vsel %vm2959_vm2, %v7354_v11, %v7500_v62 }
 0x4cf   : > { %v7516_v19 = vpop.permute.xlu1 %7515  ;;  %v7504_v13 = vpop.permute.xlu0 %7503 }
 0x4d0   : > { %v7551_v28 = vsel %vm323_vm0, %v7550_v6, %v7516_v19  ;;  %v7547_v52 = vsel %vm323_vm0, %v7546_v37, %v7504_v13 }
 0x4d3   : > { %v7520_v15 = vpop.permute.xlu1 %7519  ;;  %v7508_v58 = vpop.permute.xlu0 %7507 }
 0x4d4   : > { %v7552_v48 = vsel %vm7548_vm3, %v7551_v28, %v7520_v15  ;;  %v7549_v32 = vsel %vm7548_vm3, %v7547_v52, %v7508_v58 }
 0x4d5   : > { %7560 = vst [vmem:[%s258_s25 + $0x8] sm:$0xff] %v7552_v48  ;;  %7559 = vst [vmem:[%s258_s25] sm:$0xff] %v7549_v32 }
 0x4d7   : > { %v7544_v9 = vpop.permute.xlu1 %7543  ;;  %v7532_v51 = vpop.permute.xlu0 %7531 }
 0x4d8   : > { %v7558_v54 = vsel %vm7548_vm3, %v7557_v39, %v7544_v9  ;;  %v7555_v57 = vsel %vm7548_vm3, %v7554_v8, %v7532_v51 }
 0x4d9   : > { %7562 = vst [vmem:[%s258_s25 + $0x18] sm:$0xff] %v7558_v54  ;;  %7561 = vst [vmem:[%s258_s25 + $0x10] sm:$0xff] %v7555_v57 }
 0x4da   : > { %10275 = shalt.err (!%p10272_p6)
}
 0x4db   : > { %s10276_s13 = scalar_lea.hbm %s13247_s18, 512  ;;  %s10280_s24 = scalar_lea.hbm %s13309_s6, 2048 }
 0x4dc   : > { %p10277_p7 = scmp.ne.s32.totalorder %s13247_s18, %s10276_s13  ;;  %p10281_p11 = scmp.lt.s32.totalorder %s13247_s18, %s13309_s6 }
 0x4dd   : > { %p10282_p12 = scmp.lt.s32.totalorder %s10280_s24, %s10276_s13 }
 0x4de   : > { %p10278_p9 = pnand %p10277_p7, %p10449_p3 }
 0x4df   : > { %p10283_p13 = por %p10282_p12, %p10281_p11 }
 0x4e0   : > { %p10279_p10 = pneg %p10278_p9 }
 0x4e2   : > { %p10284_p0 = pnand %p10283_p13, %p10279_p10 }
 0x4e4   : > { %10287 = shalt.err (!%p10284_p0)
}
 0x4e5   : > { %10053 = dma.vmem_to_hbm [thread:$0]  (%p10449_p3), %s13249_s20, 512, %s13247_s18, %s7564_s19  }
 0x4e6 PF: > { %p10059_p1 = scmp.ge.s32.totalorder %s10354_s28, 2  ;;  %s7592_s8 = sand.u32 1, %s10326_s21  }
 0x4e7   : > { %s7593_s17 = scalar_lea.sflag [#allocation4], %s7592_s8 }
 0x4e8   : > { %p10056_p2 = pnand %p10059_p1, %p10458_p8 }
 0x4ea   : > { %p10057_p4 = pneg %p10056_p2 }
 0x4ec   : > { %10321 = dma.done.wait (%p10057_p4), %s7593_s17, 512  }
 0x4ed   : > { %10323 = vsyncadd (%p10057_p4), %s7593_s17, 4294966784  ;;  %s19_s28 = sadd.s32 1, %s10354_s28   ;;  %s13576_s10 = sld [smem:[#allocation6_spill]] }
 0x4ee   : > { %p16_p5 = scmp.ge.s32.totalorder %s19_s28, 6   ;;  %s13577_s21 = smov %s10330_s22 }
 0x4ef   : > { %s13578_s22 = smov %s10334_s23  ;;  %s13579_s23 = smov %s10467_s15 }
 0x4f0   : > { %s13580_s24 = smov %s10346_s26  ;;  %s13581_s25 = smov %s10350_s27 }
 0x4f1   : > { %s13582_s26 = smov %s13585_s7  ;;  %18 = sbr.rel (!%p16_p5) target bundleno = 5 (0x5), region = 85 }
 0x4f3   : > { %s13583_s27 = smov %s13576_s10 }
 0x4f6   :  { %7598 = vsyncpa [#allocation4], 1 }
 0x4f7   :  { %7600 = vsyncpa [#allocation4 + $0x1], 1 }

</bundles_post_ra>
